<compile_context>
chip_gen: v7x
topology: tpu7x:2x2x1
jax: 0.10.0
libtpu: 0.0.40
codegen_flags: <defaults>
</compile_context>

<pallas_src>
import functools

import jax
import jax.numpy as jnp
from jax import lax
from jax.experimental import pallas as pl
from jax.experimental.pallas import tpu as pltpu


# ----------------------------------------------------------------------------
# Generation-aware VMEM / tile budgets
# ----------------------------------------------------------------------------

def _round_up(x, m):
    return ((x + m - 1) // m) * m


def _tpu_vmem_capacity():
    try:
        return int(pltpu.get_tpu_info().vmem_capacity_bytes)
    except Exception:                          # unknown chip / interpret mode
        return 64 * 1024 * 1024                # conservative (v7x per-TensorCore)


_VMEM_PHYS = _tpu_vmem_capacity()
# v5e/v6e: 128 MiB physical -> 64 MiB scoped limit; v7x: 64 MiB -> 32 MiB.
_VMEM_LIMIT = min(max(_VMEM_PHYS // 2, 32 * 1024 * 1024), 64 * 1024 * 1024)
_TILE_BYTES_BUDGET = (_VMEM_LIMIT * 2) // 3
_MAX_TILE_ROWS = 2048 if _VMEM_PHYS >= 96 * 1024 * 1024 else 1024
_MAX_INTERMEDIATE_BYTES = 4 * 1024 * 1024      # one tile_m x max_width f32 temp
_MAX_FUSED_POOL_K = 256                        # fall back to a pool kernel above


def _compiler_params():
    return pltpu.CompilerParams(
        dimension_semantics=("parallel",),
        vmem_limit_bytes=_VMEM_LIMIT,
    )


def _choose_tile_m(M, pool_k, row_bytes, weight_bytes, max_width):
    """Pick the row-tile size for a fused MLP call.

    Constraints: tile_m multiple of 8*pool_k (so the pooled output tile keeps an
    8-aligned sublane axis), fits the VMEM byte budget, prefers a divisor of M
    (no host-side pad copy) and >=2 grid steps (v7x megacore)."""
    pk = pool_k if pool_k > 1 else 1
    gran = 8 * pk
    avail = max(_TILE_BYTES_BUDGET - weight_bytes, gran * row_bytes)
    cap = avail // max(row_bytes, 1)
    cap = min(cap, _MAX_TILE_ROWS, _MAX_INTERMEDIATE_BYTES // (4 * max_width))
    cap = max(gran, (cap // gran) * gran)

    if M <= cap:
        half = _round_up((M + 1) // 2, gran)
        if gran < M and half < M and M % half == 0:
            return half            # >= 2 grid steps -> both v7x TensorCores busy
        return M                   # single full-extent block (grid == 1)

    t = min(cap, (M // gran) * gran)
    while t >= gran:
        if M % t == 0:
            return t               # tile divides M exactly: no padding copy
        t -= gran
    return cap                     # fall back: zero-pad the last tile


# ----------------------------------------------------------------------------
# Fused MLP (+ optional per-group max pool, final linear, log-softmax) kernel
# ----------------------------------------------------------------------------

def _fused_mlp_kernel(*refs, n_layers, pool_k, has_final, log_softmax):
    """refs = (x, w1, shift1, ..., wL, shiftL[, w_final, b_final], out).

    Runs the whole 1x1-conv (+ folded BN + ReLU) stack on a [tile_m, C0] slab
    kept in VMEM/vregs (bf16 MXU operands, f32 accumulation / pointwise math);
    optionally max-pools over groups of `pool_k` rows, applies a final linear
    layer (no ReLU) and a log-softmax over the (lane-dense) last axis before
    the single store."""
    x_ref = refs[0]
    o_ref = refs[-1]
    y = x_ref[...]                                         # f32 activation slab
    r = 1
    for _ in range(n_layers):
        w = refs[r][...]                                   # bf16, VMEM-resident
        s = refs[r + 1][...]                               # f32 shift
        r += 2
        y = jnp.dot(y.astype(jnp.bfloat16), w, preferred_element_type=jnp.float32)
        y = jnp.maximum(y + s, 0.0)
    if pool_k > 1:
        m, c = y.shape
        y = jnp.max(y.reshape(m // pool_k, pool_k, c), axis=1)
    if has_final:
        wf = refs[r][...]
        bf = refs[r + 1][...]
        y = jnp.dot(y.astype(jnp.bfloat16), wf, preferred_element_type=jnp.float32) + bf
    if log_softmax:
        mx = jnp.max(y, axis=-1, keepdims=True)
        yc = y - mx
        lse = jnp.log(jnp.sum(jnp.exp(yc), axis=-1, keepdims=True))
        y = yc - lse
    o_ref[...] = y.astype(o_ref.dtype)


def fused_mlp(x, layers, *, pool_k=None, final=None, log_softmax=False):
    """x: [M, C0] f32; layers: list of (w_bf16 [Ci,Ci+1] with BN scale folded in,
    shift_f32 [Ci+1]).  If pool_k is given, rows are group-major and the output
    is the per-group max [M//pool_k, C].  `final` is an optional (w, b) linear
    layer (no ReLU) applied after pooling; `log_softmax` normalizes the last
    axis of the result."""
    M, C0 = x.shape
    pk = pool_k if (pool_k is not None and pool_k > 1) else 1

    widths = [w.shape[1] for (w, _) in layers]
    out_w = final[0].shape[1] if final is not None else widths[-1]
    max_w = max(widths + [out_w, C0])
    # per-input-row VMEM estimate: double-buffered in/out + live f32/bf16 temps
    row_bytes = 8 * C0 + 8 * (out_w // pk) + 10 * max_w
    weight_bytes = sum(2 * w.size + 4 * s.size for (w, s) in layers)
    if final is not None:
        weight_bytes += 2 * final[0].size + 4 * final[1].size
    weight_bytes *= 2            # constant-index blocks are still double-buffered

    tile_m = _choose_tile_m(M, pk, row_bytes, weight_bytes, max_w)
    Mp = _round_up(M, tile_m)
    xp = jnp.pad(x, ((0, Mp - M), (0, 0))) if Mp != M else x

    in_specs = [pl.BlockSpec((tile_m, C0), lambda i: (i, 0))]
    args = [xp]
    for (w, s) in layers:
        ci, co = w.shape
        in_specs.append(pl.BlockSpec((ci, co), lambda i: (0, 0)))   # resident
        in_specs.append(pl.BlockSpec((1, co), lambda i: (0, 0)))    # resident
        args += [w, s.reshape(1, co)]
    if final is not None:
        wf, bf = final
        ci, co = wf.shape
        in_specs.append(pl.BlockSpec((ci, co), lambda i: (0, 0)))
        in_specs.append(pl.BlockSpec((1, co), lambda i: (0, 0)))
        args += [wf, bf.reshape(1, co)]

    out_rows, tile_out = Mp // pk, tile_m // pk
    out = pl.pallas_call(
        functools.partial(_fused_mlp_kernel, n_layers=len(layers), pool_k=pk,
                          has_final=final is not None, log_softmax=log_softmax),
        out_shape=jax.ShapeDtypeStruct((out_rows, out_w), jnp.float32),
        grid=(Mp // tile_m,),
        in_specs=in_specs,
        out_specs=pl.BlockSpec((tile_out, out_w), lambda i: (i, 0)),
        compiler_params=_compiler_params(),
    )(*args)
    return out[: M // pk]


def _maxpool_kernel(x_ref, o_ref):
    o_ref[...] = jnp.max(x_ref[...], axis=1)


def max_over_samples(x):
    """Fallback pooling path (only when K can't be fused): [G,K,C] -> [G,C]."""
    G, K, C = x.shape
    tile_g = max(8, min(128, (2 * 1024 * 1024) // max(1, K * C * 4) // 8 * 8))
    Gp = _round_up(G, tile_g)
    xp = jnp.pad(x, ((0, Gp - G), (0, 0), (0, 0))) if Gp != G else x
    out = pl.pallas_call(
        _maxpool_kernel,
        out_shape=jax.ShapeDtypeStruct((Gp, C), jnp.float32),
        grid=(Gp // tile_g,),
        in_specs=[pl.BlockSpec((tile_g, K, C), lambda i: (i, 0, 0))],
        out_specs=pl.BlockSpec((tile_g, C), lambda i: (i, 0)),
        compiler_params=_compiler_params(),
    )(xp)
    return out[:G]


# ----------------------------------------------------------------------------
# Plain-JAX glue: sampling / grouping / interpolation (data-dependent gathers)
# ----------------------------------------------------------------------------

def square_distance(src, dst):
    # src [B,N,3], dst [B,M,3] -> [B,N,M]
    return (jnp.sum(src ** 2, -1)[:, :, None]
            + jnp.sum(dst ** 2, -1)[:, None, :]
            - 2.0 * jnp.einsum("bnc,bmc->bnm", src, dst))


def index_points(points, idx):
    # points [B,N,C], idx [B, ...] -> [B, ..., C]
    B = points.shape[0]
    batch = jnp.arange(B).reshape((B,) + (1,) * (idx.ndim - 1))
    return points[batch, idx]


def farthest_point_sample(xyz, npoint):
    # TODO(synk): PyTorch seeds FPS with torch.randint; we deterministically start at 0.
    # TODO(synk): sequential fori_loop FPS is the real-scale bottleneck; needs a Pallas kernel.
    B, N, _ = xyz.shape

    def body(i, state):
        centroids, distance, farthest = state
        centroids = centroids.at[:, i].set(farthest)
        gidx = jnp.broadcast_to(farthest[:, None, None], (B, 1, 3))
        centroid = jnp.take_along_axis(xyz, gidx, axis=1)          # [B,1,3]
        dist = jnp.sum((xyz - centroid) ** 2, axis=-1)             # [B,N]
        distance = jnp.minimum(distance, dist)
        farthest = jnp.argmax(distance, axis=-1).astype(jnp.int32)
        return centroids, distance, farthest

    init = (jnp.zeros((B, npoint), jnp.int32),
            jnp.full((B, N), 1e10, jnp.float32),
            jnp.zeros((B,), jnp.int32))
    centroids, _, _ = lax.fori_loop(0, npoint, body, init)
    return centroids


def query_ball_point(radius, nsample, xyz, new_xyz):
    B, N, _ = xyz.shape
    S = new_xyz.shape[1]
    sqrdists = square_distance(new_xyz, xyz)                       # [B,S,N]
    idx_all = jnp.broadcast_to(jnp.arange(N, dtype=jnp.int32), (B, S, N))
    masked = jnp.where(sqrdists > radius ** 2, N, idx_all)
    # nsample smallest masked indices in ascending order (== sort + take first k)
    neg_topk, _ = lax.top_k(-masked, nsample)
    group_idx = -neg_topk
    group_first = jnp.broadcast_to(group_idx[:, :, :1], group_idx.shape)
    group_idx = jnp.where(group_idx == N, group_first, group_idx)
    return group_idx


# ----------------------------------------------------------------------------
# PointNet++ blocks (channel-last activations throughout)
# ----------------------------------------------------------------------------

def set_abstraction(xyz, points, npoint, radius, nsample, group_all, mlp_params):
    # xyz [B,N,3], points [B,N,D] (channel-last)
    B, N, _ = xyz.shape

    if group_all:
        new_xyz = jnp.zeros((B, 1, 3), xyz.dtype)
        grouped_xyz = xyz.reshape(B, 1, N, 3)
        if points is not None:
            new_points = jnp.concatenate(
                [grouped_xyz, points.reshape(B, 1, N, -1)], axis=-1)
        else:
            new_points = grouped_xyz
    else:
        fps_idx = farthest_point_sample(xyz, npoint)               # [B,S]
        new_xyz = index_points(xyz, fps_idx)                       # [B,S,3]
        idx = query_ball_point(radius, nsample, xyz, new_xyz)      # [B,S,K]
        grouped_xyz = index_points(xyz, idx)                       # [B,S,K,3]
        grouped_xyz_norm = grouped_xyz - new_xyz[:, :, None, :]
        if points is not None:
            grouped_points = index_points(points, idx)
            new_points = jnp.concatenate(
                [grouped_xyz_norm, grouped_points], axis=-1)
        else:
            new_points = grouped_xyz_norm

    Bn, S, K, Cin = new_points.shape
    feat = new_points.reshape(Bn * S * K, Cin)                     # group-major rows
    if K % 8 == 0 and K <= _MAX_FUSED_POOL_K:
        pooled = fused_mlp(feat, mlp_params, pool_k=K)             # [B*S, Cout]
    else:
        feat = fused_mlp(feat, mlp_params)
        pooled = max_over_samples(feat.reshape(Bn * S, K, -1))
    return new_xyz, pooled.reshape(Bn, S, -1)                      # channel-last


def fp_interpolate(xyz1, xyz2, points1, points2):
    """3-NN inverse-distance interpolation of points2 (at xyz2) onto xyz1, then
    concat with points1.  All channel-last."""
    B, N, _ = xyz1.shape
    S = xyz2.shape[1]
    if S == 1:
        interpolated = jnp.broadcast_to(points2, (B, N, points2.shape[-1]))
    else:
        dists = square_distance(xyz1, xyz2)                        # [B,N,S]
        neg_d3, idx = lax.top_k(-dists, 3)                         # 3-NN, no full sort
        d3 = jnp.maximum(-neg_d3, 0.0)                             # clamp cancellation
        dist_recip = 1.0 / (d3 + 1e-8)
        norm = jnp.sum(dist_recip, axis=2, keepdims=True)
        weight = dist_recip / norm
        interpolated = jnp.sum(index_points(points2, idx) * weight[..., None],
                               axis=2)                             # [B,N,D]
    if points1 is not None:
        return jnp.concatenate([points1, interpolated], axis=-1)
    return interpolated


def feature_propagation(xyz1, xyz2, points1, points2, mlp_params):
    new_points = fp_interpolate(xyz1, xyz2, points1, points2)      # [B,N,Cin]
    B, N, Cin = new_points.shape
    feat = fused_mlp(new_points.reshape(B * N, Cin), mlp_params)   # one kernel
    return feat.reshape(B, N, -1)                                  # channel-last


# ----------------------------------------------------------------------------
# Parameters (deterministic synthetic init, BN folded, bf16 weights) & forward
# ----------------------------------------------------------------------------

CLS_DIM = 13
NPOINT1, NPOINT2 = 32, 16           # scaled-down versions of 16384 / 4096
NSAMPLE = 8                         # scaled-down version of 64
RADIUS1, RADIUS2 = 0.15, 0.3


def make_mlp_params(key, c_in, channels, eps=1e-5):
    """Each layer: (bf16 w * bn_scale, f32 bn_shift) with the BN affine folded in.
    Intermediate channel widths are zero-padded to a multiple of 128 (exact:
    relu(0)=0 and the next layer's padded input rows are zero)."""
    layers = []
    c = c_in
    for c_out in channels:
        key, kw, kb, kg, kbt = jax.random.split(key, 5)
        w = jax.random.normal(kw, (c, c_out), jnp.float32) / jnp.sqrt(float(c))
        b = 0.01 * jax.random.normal(kb, (c_out,), jnp.float32)
        gamma = 1.0 + 0.01 * jax.random.normal(kg, (c_out,), jnp.float32)
        beta = 0.01 * jax.random.normal(kbt, (c_out,), jnp.float32)
        mean = jnp.zeros((c_out,), jnp.float32)    # BN running stats (eval)
        var = jnp.ones((c_out,), jnp.float32)
        scale = gamma / jnp.sqrt(var + eps)
        shift = beta + scale * (b - mean)
        layers.append([w * scale[None, :], shift])
        c = c_out
    # lane-dense intermediates
    for li in range(len(layers) - 1):
        w, s = layers[li]
        co = w.shape[1]
        cop = _round_up(co, 128)
        if cop != co:
            layers[li][0] = jnp.pad(w, ((0, 0), (0, cop - co)))
            layers[li][1] = jnp.pad(s, (0, cop - co))
            layers[li + 1][0] = jnp.pad(layers[li + 1][0], ((0, cop - co), (0, 0)))
    out = [(w.astype(jnp.bfloat16), s.astype(jnp.float32)) for (w, s) in layers]
    return out, key


def init_params(key, cls_dim):
    params = {}
    params["sa1"], key = make_mlp_params(key, 6, [64, 64, 128])
    params["sa2"], key = make_mlp_params(key, 128 + 3, [128, 128, 256])
    params["sa3"], key = make_mlp_params(key, 256 + 3, [256, 512, 1024])
    params["fp3"], key = make_mlp_params(key, 1280, [256, 256])
    params["fp2"], key = make_mlp_params(key, 384, [256, 128])
    params["fp1"], key = make_mlp_params(key, 131, [128, 128, 128])
    params["conv1"], key = make_mlp_params(key, 128, [128])   # conv1 + bn1 (+relu)
    # conv2: plain linear, class axis zero/ -1e9 padded to a lane-dense 128.
    key, kw, kb = jax.random.split(key, 3)
    w2 = jax.random.normal(kw, (128, cls_dim), jnp.float32) / jnp.sqrt(128.0)
    b2 = 0.01 * jax.random.normal(kb, (cls_dim,), jnp.float32)
    cpad = _round_up(max(cls_dim, 128), 128)
    w2p = jnp.pad(w2, ((0, 0), (0, cpad - cls_dim))).astype(jnp.bfloat16)
    b2p = jnp.pad(b2, (0, cpad - cls_dim), constant_values=-1e9).astype(jnp.float32)
    params["conv2"] = (w2p, b2p)
    return params


def forward(xyz, params):
    # xyz: [B, 3, N] (PyTorch layout).  One transpose at the input boundary;
    # everything internal is channel-last, and the final output is already the
    # PyTorch module's permute(0,2,1) layout.
    pts = jnp.transpose(xyz, (0, 2, 1))                           # [B,N,3]
    l0_xyz, l0_points = pts, pts
    l1_xyz, l1_points = set_abstraction(l0_xyz, l0_points, NPOINT1, RADIUS1,
                                        NSAMPLE, False, params["sa1"])
    l2_xyz, l2_points = set_abstraction(l1_xyz, l1_points, NPOINT2, RADIUS2,
                                        NSAMPLE, False, params["sa2"])
    l3_xyz, l3_points = set_abstraction(l2_xyz, l2_points, None, None,
                                        None, True, params["sa3"])
    l2_points = feature_propagation(l2_xyz, l3_xyz, l2_points, l3_points,
                                    params["fp3"])
    l1_points = feature_propagation(l1_xyz, l2_xyz, l1_points, l2_points,
                                    params["fp2"])

    # fp1 MLP + conv1/bn1/relu + (dropout=identity, eval) + conv2 + log_softmax
    # fused into a single kernel (all weights VMEM-resident).
    fp1_in = fp_interpolate(l0_xyz, l1_xyz, l0_points, l1_points)  # [B,N,131]
    B, N, Cin = fp1_in.shape
    head_layers = params["fp1"] + params["conv1"]
    logp = fused_mlp(fp1_in.reshape(B * N, Cin), head_layers,
                     final=params["conv2"], log_softmax=True)      # [B*N, 128]
    return logp.reshape(B, N, -1)[:, :, :CLS_DIM]                  # [B,N,cls]


if __name__ == "__main__":
    key = jax.random.PRNGKey(0)
    kparam, kdata = jax.random.split(key)
    params = init_params(kparam, CLS_DIM)

    B, N = 2, 64
    xyz = jax.random.uniform(kdata, (B, 3, N), jnp.float32)

    fwd = jax.jit(lambda x: forward(x, params))
    out = jax.block_until_ready(fwd(xyz))

    assert out.shape == (B, N, CLS_DIM), out.shape
    assert bool(jnp.all(jnp.isfinite(out)))
    # per-point log-probabilities must exponentiate-sum to ~1
    assert bool(jnp.all(jnp.abs(jnp.exp(out).sum(-1) - 1.0) < 1e-3))
    print("KERNEL_OK")
</pallas_src>

<mosaic_0001>
module attributes {stable_mosaic.version = 11 : i64} {
  func.func @_fused_mlp_kernel(%arg0: i32, %arg1: memref<256x6xf32, #tpu.memory_space<vmem>>, %arg2: memref<6x128xbf16, #tpu.memory_space<vmem>>, %arg3: memref<1x128xf32, #tpu.memory_space<vmem>>, %arg4: memref<128x128xbf16, #tpu.memory_space<vmem>>, %arg5: memref<1x128xf32, #tpu.memory_space<vmem>>, %arg6: memref<128x128xbf16, #tpu.memory_space<vmem>>, %arg7: memref<1x128xf32, #tpu.memory_space<vmem>>, %arg8: memref<32x128xf32, #tpu.memory_space<vmem>>) attributes {dimension_semantics = [#tpu.dimension_semantics<parallel>], iteration_bounds = array<i64: 2>, scalar_prefetch = 0 : i64, scratch_operands = 0 : i64, tpu.core_type = #tpu.core_type<tc>, window_params = [{transform_indices = @transform_0, window_bounds = array<i64: 256, 6>}, {pipeline_mode = #tpu.pipeline_mode<synchronous>, transform_indices = @transform_1, window_bounds = array<i64: 6, 128>}, {pipeline_mode = #tpu.pipeline_mode<synchronous>, transform_indices = @transform_2, window_bounds = array<i64: 1, 128>}, {pipeline_mode = #tpu.pipeline_mode<synchronous>, transform_indices = @transform_3, window_bounds = array<i64: 128, 128>}, {pipeline_mode = #tpu.pipeline_mode<synchronous>, transform_indices = @transform_4, window_bounds = array<i64: 1, 128>}, {pipeline_mode = #tpu.pipeline_mode<synchronous>, transform_indices = @transform_5, window_bounds = array<i64: 128, 128>}, {pipeline_mode = #tpu.pipeline_mode<synchronous>, transform_indices = @transform_6, window_bounds = array<i64: 1, 128>}, {transform_indices = @transform_7, window_bounds = array<i64: 32, 128>}]} {
    %c0 = arith.constant 0 : index
    %c0_0 = arith.constant 0 : index
    %0 = vector.load %arg1[%c0, %c0_0] : memref<256x6xf32, #tpu.memory_space<vmem>>, vector<256x6xf32>
    %c0_1 = arith.constant 0 : index
    %c0_2 = arith.constant 0 : index
    %1 = vector.load %arg2[%c0_1, %c0_2] : memref<6x128xbf16, #tpu.memory_space<vmem>>, vector<6x128xbf16>
    %c0_3 = arith.constant 0 : index
    %c0_4 = arith.constant 0 : index
    %2 = vector.load %arg3[%c0_3, %c0_4] : memref<1x128xf32, #tpu.memory_space<vmem>>, vector<1x128xf32>
    %3 = arith.truncf %0 : vector<256x6xf32> to vector<256x6xbf16>
    %cst = arith.constant dense<0.000000e+00> : vector<256x128xf32>
    %4 = tpu.matmul %3, %1, %cst {dimension_numbers = #tpu.dot_dimension_numbers<[1], [0], [0], [1], [0, 0, 1, 1], [], []>} : vector<256x6xbf16>, vector<6x128xbf16>, vector<256x128xf32> -> vector<256x128xf32>
    %5 = vector.broadcast %2 : vector<1x128xf32> to vector<256x128xf32>
    %6 = arith.addf %4, %5 : vector<256x128xf32>
    %cst_5 = arith.constant 0.000000e+00 : f32
    %7 = vector.broadcast %cst_5 : f32 to vector<256x128xf32>
    %8 = arith.maximumf %6, %7 : vector<256x128xf32>
    %c0_6 = arith.constant 0 : index
    %c0_7 = arith.constant 0 : index
    %9 = vector.load %arg4[%c0_6, %c0_7] : memref<128x128xbf16, #tpu.memory_space<vmem>>, vector<128x128xbf16>
    %c0_8 = arith.constant 0 : index
    %c0_9 = arith.constant 0 : index
    %10 = vector.load %arg5[%c0_8, %c0_9] : memref<1x128xf32, #tpu.memory_space<vmem>>, vector<1x128xf32>
    %11 = arith.truncf %8 : vector<256x128xf32> to vector<256x128xbf16>
    %cst_10 = arith.constant dense<0.000000e+00> : vector<256x128xf32>
    %12 = tpu.matmul %11, %9, %cst_10 {dimension_numbers = #tpu.dot_dimension_numbers<[1], [0], [0], [1], [0, 0, 1, 1], [], []>} : vector<256x128xbf16>, vector<128x128xbf16>, vector<256x128xf32> -> vector<256x128xf32>
    %13 = vector.broadcast %10 : vector<1x128xf32> to vector<256x128xf32>
    %14 = arith.addf %12, %13 : vector<256x128xf32>
    %cst_11 = arith.constant 0.000000e+00 : f32
    %15 = vector.broadcast %cst_11 : f32 to vector<256x128xf32>
    %16 = arith.maximumf %14, %15 : vector<256x128xf32>
    %c0_12 = arith.constant 0 : index
    %c0_13 = arith.constant 0 : index
    %17 = vector.load %arg6[%c0_12, %c0_13] : memref<128x128xbf16, #tpu.memory_space<vmem>>, vector<128x128xbf16>
    %c0_14 = arith.constant 0 : index
    %c0_15 = arith.constant 0 : index
    %18 = vector.load %arg7[%c0_14, %c0_15] : memref<1x128xf32, #tpu.memory_space<vmem>>, vector<1x128xf32>
    %19 = arith.truncf %16 : vector<256x128xf32> to vector<256x128xbf16>
    %cst_16 = arith.constant dense<0.000000e+00> : vector<256x128xf32>
    %20 = tpu.matmul %19, %17, %cst_16 {dimension_numbers = #tpu.dot_dimension_numbers<[1], [0], [0], [1], [0, 0, 1, 1], [], []>} : vector<256x128xbf16>, vector<128x128xbf16>, vector<256x128xf32> -> vector<256x128xf32>
    %21 = vector.broadcast %18 : vector<1x128xf32> to vector<256x128xf32>
    %22 = arith.addf %20, %21 : vector<256x128xf32>
    %cst_17 = arith.constant 0.000000e+00 : f32
    %23 = vector.broadcast %cst_17 : f32 to vector<256x128xf32>
    %24 = arith.maximumf %22, %23 : vector<256x128xf32>
    %25 = vector.shape_cast %24 : vector<256x128xf32> to vector<32x8x128xf32>
    %cst_18 = arith.constant dense<0xFF800000> : vector<32x128xf32>
    %26 = vector.multi_reduction <maximumf>, %25, %cst_18 [1] : vector<32x8x128xf32> to vector<32x128xf32>
    %c0_19 = arith.constant 0 : index
    %c0_20 = arith.constant 0 : index
    %27 = vector.load %arg8[%c0_19, %c0_20] : memref<32x128xf32, #tpu.memory_space<vmem>>, vector<32x128xf32>
    tpu.vector_store %arg8[%c0_19, %c0_20], %26 {strides = array<i32>} : memref<32x128xf32, #tpu.memory_space<vmem>>, vector<32x128xf32>,
    return
  }
  func.func @transform_0(%arg0: i32) -> (i32, i32) {
    %c0_i32 = arith.constant 0 : i32
    %c0_i32_0 = arith.constant 0 : i32
    return %arg0, %c0_i32 : i32, i32
  }
  func.func @transform_1(%arg0: i32) -> (i32, i32) {
    %c0_i32 = arith.constant 0 : i32
    %c0_i32_0 = arith.constant 0 : i32
    %c0_i32_1 = arith.constant 0 : i32
    return %c0_i32, %c0_i32_0 : i32, i32
  }
  func.func @transform_2(%arg0: i32) -> (i32, i32) {
    %c0_i32 = arith.constant 0 : i32
    %c0_i32_0 = arith.constant 0 : i32
    %c0_i32_1 = arith.constant 0 : i32
    return %c0_i32, %c0_i32_0 : i32, i32
  }
  func.func @transform_3(%arg0: i32) -> (i32, i32) {
    %c0_i32 = arith.constant 0 : i32
    %c0_i32_0 = arith.constant 0 : i32
    %c0_i32_1 = arith.constant 0 : i32
    return %c0_i32, %c0_i32_0 : i32, i32
  }
  func.func @transform_4(%arg0: i32) -> (i32, i32) {
    %c0_i32 = arith.constant 0 : i32
    %c0_i32_0 = arith.constant 0 : i32
    %c0_i32_1 = arith.constant 0 : i32
    return %c0_i32, %c0_i32_0 : i32, i32
  }
  func.func @transform_5(%arg0: i32) -> (i32, i32) {
    %c0_i32 = arith.constant 0 : i32
    %c0_i32_0 = arith.constant 0 : i32
    %c0_i32_1 = arith.constant 0 : i32
    return %c0_i32, %c0_i32_0 : i32, i32
  }
  func.func @transform_6(%arg0: i32) -> (i32, i32) {
    %c0_i32 = arith.constant 0 : i32
    %c0_i32_0 = arith.constant 0 : i32
    %c0_i32_1 = arith.constant 0 : i32
    return %c0_i32, %c0_i32_0 : i32, i32
  }
  func.func @transform_7(%arg0: i32) -> (i32, i32) {
    %c0_i32 = arith.constant 0 : i32
    %c0_i32_0 = arith.constant 0 : i32
    return %arg0, %c0_i32 : i32, i32
  }
}

module attributes {stable_mosaic.version = 11 : i64} {
  func.func @_fused_mlp_kernel(%arg0: i32, %arg1: memref<128x131xf32, #tpu.memory_space<vmem>>, %arg2: memref<131x128xbf16, #tpu.memory_space<vmem>>, %arg3: memref<1x128xf32, #tpu.memory_space<vmem>>, %arg4: memref<128x128xbf16, #tpu.memory_space<vmem>>, %arg5: memref<1x128xf32, #tpu.memory_space<vmem>>, %arg6: memref<128x256xbf16, #tpu.memory_space<vmem>>, %arg7: memref<1x256xf32, #tpu.memory_space<vmem>>, %arg8: memref<16x256xf32, #tpu.memory_space<vmem>>) attributes {dimension_semantics = [#tpu.dimension_semantics<parallel>], iteration_bounds = array<i64: 2>, scalar_prefetch = 0 : i64, scratch_operands = 0 : i64, tpu.core_type = #tpu.core_type<tc>, window_params = [{transform_indices = @transform_0, window_bounds = array<i64: 128, 131>}, {pipeline_mode = #tpu.pipeline_mode<synchronous>, transform_indices = @transform_1, window_bounds = array<i64: 131, 128>}, {pipeline_mode = #tpu.pipeline_mode<synchronous>, transform_indices = @transform_2, window_bounds = array<i64: 1, 128>}, {pipeline_mode = #tpu.pipeline_mode<synchronous>, transform_indices = @transform_3, window_bounds = array<i64: 128, 128>}, {pipeline_mode = #tpu.pipeline_mode<synchronous>, transform_indices = @transform_4, window_bounds = array<i64: 1, 128>}, {pipeline_mode = #tpu.pipeline_mode<synchronous>, transform_indices = @transform_5, window_bounds = array<i64: 128, 256>}, {pipeline_mode = #tpu.pipeline_mode<synchronous>, transform_indices = @transform_6, window_bounds = array<i64: 1, 256>}, {transform_indices = @transform_7, window_bounds = array<i64: 16, 256>}]} {
    %c0 = arith.constant 0 : index
    %c0_0 = arith.constant 0 : index
    %0 = vector.load %arg1[%c0, %c0_0] : memref<128x131xf32, #tpu.memory_space<vmem>>, vector<128x131xf32>
    %c0_1 = arith.constant 0 : index
    %c0_2 = arith.constant 0 : index
    %1 = vector.load %arg2[%c0_1, %c0_2] : memref<131x128xbf16, #tpu.memory_space<vmem>>, vector<131x128xbf16>
    %c0_3 = arith.constant 0 : index
    %c0_4 = arith.constant 0 : index
    %2 = vector.load %arg3[%c0_3, %c0_4] : memref<1x128xf32, #tpu.memory_space<vmem>>, vector<1x128xf32>
    %3 = arith.truncf %0 : vector<128x131xf32> to vector<128x131xbf16>
    %cst = arith.constant dense<0.000000e+00> : vector<128x128xf32>
    %4 = tpu.matmul %3, %1, %cst {dimension_numbers = #tpu.dot_dimension_numbers<[1], [0], [0], [1], [0, 0, 1, 1], [], []>} : vector<128x131xbf16>, vector<131x128xbf16>, vector<128x128xf32> -> vector<128x128xf32>
    %5 = vector.broadcast %2 : vector<1x128xf32> to vector<128x128xf32>
    %6 = arith.addf %4, %5 : vector<128x128xf32>
    %cst_5 = arith.constant 0.000000e+00 : f32
    %7 = vector.broadcast %cst_5 : f32 to vector<128x128xf32>
    %8 = arith.maximumf %6, %7 : vector<128x128xf32>
    %c0_6 = arith.constant 0 : index
    %c0_7 = arith.constant 0 : index
    %9 = vector.load %arg4[%c0_6, %c0_7] : memref<128x128xbf16, #tpu.memory_space<vmem>>, vector<128x128xbf16>
    %c0_8 = arith.constant 0 : index
    %c0_9 = arith.constant 0 : index
    %10 = vector.load %arg5[%c0_8, %c0_9] : memref<1x128xf32, #tpu.memory_space<vmem>>, vector<1x128xf32>
    %11 = arith.truncf %8 : vector<128x128xf32> to vector<128x128xbf16>
    %cst_10 = arith.constant dense<0.000000e+00> : vector<128x128xf32>
    %12 = tpu.matmul %11, %9, %cst_10 {dimension_numbers = #tpu.dot_dimension_numbers<[1], [0], [0], [1], [0, 0, 1, 1], [], []>} : vector<128x128xbf16>, vector<128x128xbf16>, vector<128x128xf32> -> vector<128x128xf32>
    %13 = vector.broadcast %10 : vector<1x128xf32> to vector<128x128xf32>
    %14 = arith.addf %12, %13 : vector<128x128xf32>
    %cst_11 = arith.constant 0.000000e+00 : f32
    %15 = vector.broadcast %cst_11 : f32 to vector<128x128xf32>
    %16 = arith.maximumf %14, %15 : vector<128x128xf32>
    %c0_12 = arith.constant 0 : index
    %c0_13 = arith.constant 0 : index
    %17 = vector.load %arg6[%c0_12, %c0_13] : memref<128x256xbf16, #tpu.memory_space<vmem>>, vector<128x256xbf16>
    %c0_14 = arith.constant 0 : index
    %c0_15 = arith.constant 0 : index
    %18 = vector.load %arg7[%c0_14, %c0_15] : memref<1x256xf32, #tpu.memory_space<vmem>>, vector<1x256xf32>
    %19 = arith.truncf %16 : vector<128x128xf32> to vector<128x128xbf16>
    %cst_16 = arith.constant dense<0.000000e+00> : vector<128x256xf32>
    %20 = tpu.matmul %19, %17, %cst_16 {dimension_numbers = #tpu.dot_dimension_numbers<[1], [0], [0], [1], [0, 0, 1, 1], [], []>} : vector<128x128xbf16>, vector<128x256xbf16>, vector<128x256xf32> -> vector<128x256xf32>
    %21 = vector.broadcast %18 : vector<1x256xf32> to vector<128x256xf32>
    %22 = arith.addf %20, %21 : vector<128x256xf32>
    %cst_17 = arith.constant 0.000000e+00 : f32
    %23 = vector.broadcast %cst_17 : f32 to vector<128x256xf32>
    %24 = arith.maximumf %22, %23 : vector<128x256xf32>
    %25 = vector.shape_cast %24 : vector<128x256xf32> to vector<16x8x256xf32>
    %cst_18 = arith.constant dense<0xFF800000> : vector<16x256xf32>
    %26 = vector.multi_reduction <maximumf>, %25, %cst_18 [1] : vector<16x8x256xf32> to vector<16x256xf32>
    %c0_19 = arith.constant 0 : index
    %c0_20 = arith.constant 0 : index
    %27 = vector.load %arg8[%c0_19, %c0_20] : memref<16x256xf32, #tpu.memory_space<vmem>>, vector<16x256xf32>
    tpu.vector_store %arg8[%c0_19, %c0_20], %26 {strides = array<i32>} : memref<16x256xf32, #tpu.memory_space<vmem>>, vector<16x256xf32>,
    return
  }
  func.func @transform_0(%arg0: i32) -> (i32, i32) {
    %c0_i32 = arith.constant 0 : i32
    %c0_i32_0 = arith.constant 0 : i32
    return %arg0, %c0_i32 : i32, i32
  }
  func.func @transform_1(%arg0: i32) -> (i32, i32) {
    %c0_i32 = arith.constant 0 : i32
    %c0_i32_0 = arith.constant 0 : i32
    %c0_i32_1 = arith.constant 0 : i32
    return %c0_i32, %c0_i32_0 : i32, i32
  }
  func.func @transform_2(%arg0: i32) -> (i32, i32) {
    %c0_i32 = arith.constant 0 : i32
    %c0_i32_0 = arith.constant 0 : i32
    %c0_i32_1 = arith.constant 0 : i32
    return %c0_i32, %c0_i32_0 : i32, i32
  }
  func.func @transform_3(%arg0: i32) -> (i32, i32) {
    %c0_i32 = arith.constant 0 : i32
    %c0_i32_0 = arith.constant 0 : i32
    %c0_i32_1 = arith.constant 0 : i32
    return %c0_i32, %c0_i32_0 : i32, i32
  }
  func.func @transform_4(%arg0: i32) -> (i32, i32) {
    %c0_i32 = arith.constant 0 : i32
    %c0_i32_0 = arith.constant 0 : i32
    %c0_i32_1 = arith.constant 0 : i32
    return %c0_i32, %c0_i32_0 : i32, i32
  }
  func.func @transform_5(%arg0: i32) -> (i32, i32) {
    %c0_i32 = arith.constant 0 : i32
    %c0_i32_0 = arith.constant 0 : i32
    %c0_i32_1 = arith.constant 0 : i32
    return %c0_i32, %c0_i32_0 : i32, i32
  }
  func.func @transform_6(%arg0: i32) -> (i32, i32) {
    %c0_i32 = arith.constant 0 : i32
    %c0_i32_0 = arith.constant 0 : i32
    %c0_i32_1 = arith.constant 0 : i32
    return %c0_i32, %c0_i32_0 : i32, i32
  }
  func.func @transform_7(%arg0: i32) -> (i32, i32) {
    %c0_i32 = arith.constant 0 : i32
    %c0_i32_0 = arith.constant 0 : i32
    return %arg0, %c0_i32 : i32, i32
  }
}

module attributes {stable_mosaic.version = 11 : i64} {
  func.func @_fused_mlp_kernel(%arg0: i32, %arg1: memref<32x259xf32, #tpu.memory_space<vmem>>, %arg2: memref<259x256xbf16, #tpu.memory_space<vmem>>, %arg3: memref<1x256xf32, #tpu.memory_space<vmem>>, %arg4: memref<256x512xbf16, #tpu.memory_space<vmem>>, %arg5: memref<1x512xf32, #tpu.memory_space<vmem>>, %arg6: memref<512x1024xbf16, #tpu.memory_space<vmem>>, %arg7: memref<1x1024xf32, #tpu.memory_space<vmem>>, %arg8: memref<2x1024xf32, #tpu.memory_space<vmem>>) attributes {dimension_semantics = [#tpu.dimension_semantics<parallel>], iteration_bounds = array<i64: 1>, scalar_prefetch = 0 : i64, scratch_operands = 0 : i64, tpu.core_type = #tpu.core_type<tc>, window_params = [{transform_indices = @transform_0, window_bounds = array<i64: 32, 259>}, {pipeline_mode = #tpu.pipeline_mode<synchronous>, transform_indices = @transform_1, window_bounds = array<i64: 259, 256>}, {pipeline_mode = #tpu.pipeline_mode<synchronous>, transform_indices = @transform_2, window_bounds = array<i64: 1, 256>}, {pipeline_mode = #tpu.pipeline_mode<synchronous>, transform_indices = @transform_3, window_bounds = array<i64: 256, 512>}, {pipeline_mode = #tpu.pipeline_mode<synchronous>, transform_indices = @transform_4, window_bounds = array<i64: 1, 512>}, {pipeline_mode = #tpu.pipeline_mode<synchronous>, transform_indices = @transform_5, window_bounds = array<i64: 512, 1024>}, {pipeline_mode = #tpu.pipeline_mode<synchronous>, transform_indices = @transform_6, window_bounds = array<i64: 1, 1024>}, {transform_indices = @transform_7, window_bounds = array<i64: 2, 1024>}]} {
    %c0 = arith.constant 0 : index
    %c0_0 = arith.constant 0 : index
    %0 = vector.load %arg1[%c0, %c0_0] : memref<32x259xf32, #tpu.memory_space<vmem>>, vector<32x259xf32>
    %c0_1 = arith.constant 0 : index
    %c0_2 = arith.constant 0 : index
    %1 = vector.load %arg2[%c0_1, %c0_2] : memref<259x256xbf16, #tpu.memory_space<vmem>>, vector<259x256xbf16>
    %c0_3 = arith.constant 0 : index
    %c0_4 = arith.constant 0 : index
    %2 = vector.load %arg3[%c0_3, %c0_4] : memref<1x256xf32, #tpu.memory_space<vmem>>, vector<1x256xf32>
    %3 = arith.truncf %0 : vector<32x259xf32> to vector<32x259xbf16>
    %cst = arith.constant dense<0.000000e+00> : vector<32x256xf32>
    %4 = tpu.matmul %3, %1, %cst {dimension_numbers = #tpu.dot_dimension_numbers<[1], [0], [0], [1], [0, 0, 1, 1], [], []>} : vector<32x259xbf16>, vector<259x256xbf16>, vector<32x256xf32> -> vector<32x256xf32>
    %5 = vector.broadcast %2 : vector<1x256xf32> to vector<32x256xf32>
    %6 = arith.addf %4, %5 : vector<32x256xf32>
    %cst_5 = arith.constant 0.000000e+00 : f32
    %7 = vector.broadcast %cst_5 : f32 to vector<32x256xf32>
    %8 = arith.maximumf %6, %7 : vector<32x256xf32>
    %c0_6 = arith.constant 0 : index
    %c0_7 = arith.constant 0 : index
    %9 = vector.load %arg4[%c0_6, %c0_7] : memref<256x512xbf16, #tpu.memory_space<vmem>>, vector<256x512xbf16>
    %c0_8 = arith.constant 0 : index
    %c0_9 = arith.constant 0 : index
    %10 = vector.load %arg5[%c0_8, %c0_9] : memref<1x512xf32, #tpu.memory_space<vmem>>, vector<1x512xf32>
    %11 = arith.truncf %8 : vector<32x256xf32> to vector<32x256xbf16>
    %cst_10 = arith.constant dense<0.000000e+00> : vector<32x512xf32>
    %12 = tpu.matmul %11, %9, %cst_10 {dimension_numbers = #tpu.dot_dimension_numbers<[1], [0], [0], [1], [0, 0, 1, 1], [], []>} : vector<32x256xbf16>, vector<256x512xbf16>, vector<32x512xf32> -> vector<32x512xf32>
    %13 = vector.broadcast %10 : vector<1x512xf32> to vector<32x512xf32>
    %14 = arith.addf %12, %13 : vector<32x512xf32>
    %cst_11 = arith.constant 0.000000e+00 : f32
    %15 = vector.broadcast %cst_11 : f32 to vector<32x512xf32>
    %16 = arith.maximumf %14, %15 : vector<32x512xf32>
    %c0_12 = arith.constant 0 : index
    %c0_13 = arith.constant 0 : index
    %17 = vector.load %arg6[%c0_12, %c0_13] : memref<512x1024xbf16, #tpu.memory_space<vmem>>, vector<512x1024xbf16>
    %c0_14 = arith.constant 0 : index
    %c0_15 = arith.constant 0 : index
    %18 = vector.load %arg7[%c0_14, %c0_15] : memref<1x1024xf32, #tpu.memory_space<vmem>>, vector<1x1024xf32>
    %19 = arith.truncf %16 : vector<32x512xf32> to vector<32x512xbf16>
    %cst_16 = arith.constant dense<0.000000e+00> : vector<32x1024xf32>
    %20 = tpu.matmul %19, %17, %cst_16 {dimension_numbers = #tpu.dot_dimension_numbers<[1], [0], [0], [1], [0, 0, 1, 1], [], []>} : vector<32x512xbf16>, vector<512x1024xbf16>, vector<32x1024xf32> -> vector<32x1024xf32>
    %21 = vector.broadcast %18 : vector<1x1024xf32> to vector<32x1024xf32>
    %22 = arith.addf %20, %21 : vector<32x1024xf32>
    %cst_17 = arith.constant 0.000000e+00 : f32
    %23 = vector.broadcast %cst_17 : f32 to vector<32x1024xf32>
    %24 = arith.maximumf %22, %23 : vector<32x1024xf32>
    %25 = vector.shape_cast %24 : vector<32x1024xf32> to vector<2x16x1024xf32>
    %cst_18 = arith.constant dense<0xFF800000> : vector<2x1024xf32>
    %26 = vector.multi_reduction <maximumf>, %25, %cst_18 [1] : vector<2x16x1024xf32> to vector<2x1024xf32>
    %c0_19 = arith.constant 0 : index
    %c0_20 = arith.constant 0 : index
    %27 = vector.load %arg8[%c0_19, %c0_20] : memref<2x1024xf32, #tpu.memory_space<vmem>>, vector<2x1024xf32>
    tpu.vector_store %arg8[%c0_19, %c0_20], %26 {strides = array<i32>} : memref<2x1024xf32, #tpu.memory_space<vmem>>, vector<2x1024xf32>,
    return
  }
  func.func @transform_0(%arg0: i32) -> (i32, i32) {
    %c0_i32 = arith.constant 0 : i32
    %c0_i32_0 = arith.constant 0 : i32
    return %arg0, %c0_i32 : i32, i32
  }
  func.func @transform_1(%arg0: i32) -> (i32, i32) {
    %c0_i32 = arith.constant 0 : i32
    %c0_i32_0 = arith.constant 0 : i32
    %c0_i32_1 = arith.constant 0 : i32
    return %c0_i32, %c0_i32_0 : i32, i32
  }
  func.func @transform_2(%arg0: i32) -> (i32, i32) {
    %c0_i32 = arith.constant 0 : i32
    %c0_i32_0 = arith.constant 0 : i32
    %c0_i32_1 = arith.constant 0 : i32
    return %c0_i32, %c0_i32_0 : i32, i32
  }
  func.func @transform_3(%arg0: i32) -> (i32, i32) {
    %c0_i32 = arith.constant 0 : i32
    %c0_i32_0 = arith.constant 0 : i32
    %c0_i32_1 = arith.constant 0 : i32
    return %c0_i32, %c0_i32_0 : i32, i32
  }
  func.func @transform_4(%arg0: i32) -> (i32, i32) {
    %c0_i32 = arith.constant 0 : i32
    %c0_i32_0 = arith.constant 0 : i32
    %c0_i32_1 = arith.constant 0 : i32
    return %c0_i32, %c0_i32_0 : i32, i32
  }
  func.func @transform_5(%arg0: i32) -> (i32, i32) {
    %c0_i32 = arith.constant 0 : i32
    %c0_i32_0 = arith.constant 0 : i32
    %c0_i32_1 = arith.constant 0 : i32
    return %c0_i32, %c0_i32_0 : i32, i32
  }
  func.func @transform_6(%arg0: i32) -> (i32, i32) {
    %c0_i32 = arith.constant 0 : i32
    %c0_i32_0 = arith.constant 0 : i32
    %c0_i32_1 = arith.constant 0 : i32
    return %c0_i32, %c0_i32_0 : i32, i32
  }
  func.func @transform_7(%arg0: i32) -> (i32, i32) {
    %c0_i32 = arith.constant 0 : i32
    %c0_i32_0 = arith.constant 0 : i32
    return %arg0, %c0_i32 : i32, i32
  }
}

module attributes {stable_mosaic.version = 11 : i64} {
  func.func @_fused_mlp_kernel(%arg0: i32, %arg1: memref<16x1280xf32, #tpu.memory_space<vmem>>, %arg2: memref<1280x256xbf16, #tpu.memory_space<vmem>>, %arg3: memref<1x256xf32, #tpu.memory_space<vmem>>, %arg4: memref<256x256xbf16, #tpu.memory_space<vmem>>, %arg5: memref<1x256xf32, #tpu.memory_space<vmem>>, %arg6: memref<16x256xf32, #tpu.memory_space<vmem>>) attributes {dimension_semantics = [#tpu.dimension_semantics<parallel>], iteration_bounds = array<i64: 2>, scalar_prefetch = 0 : i64, scratch_operands = 0 : i64, tpu.core_type = #tpu.core_type<tc>, window_params = [{transform_indices = @transform_0, window_bounds = array<i64: 16, 1280>}, {pipeline_mode = #tpu.pipeline_mode<synchronous>, transform_indices = @transform_1, window_bounds = array<i64: 1280, 256>}, {pipeline_mode = #tpu.pipeline_mode<synchronous>, transform_indices = @transform_2, window_bounds = array<i64: 1, 256>}, {pipeline_mode = #tpu.pipeline_mode<synchronous>, transform_indices = @transform_3, window_bounds = array<i64: 256, 256>}, {pipeline_mode = #tpu.pipeline_mode<synchronous>, transform_indices = @transform_4, window_bounds = array<i64: 1, 256>}, {transform_indices = @transform_5, window_bounds = array<i64: 16, 256>}]} {
    %c0 = arith.constant 0 : index
    %c0_0 = arith.constant 0 : index
    %0 = vector.load %arg1[%c0, %c0_0] : memref<16x1280xf32, #tpu.memory_space<vmem>>, vector<16x1280xf32>
    %c0_1 = arith.constant 0 : index
    %c0_2 = arith.constant 0 : index
    %1 = vector.load %arg2[%c0_1, %c0_2] : memref<1280x256xbf16, #tpu.memory_space<vmem>>, vector<1280x256xbf16>
    %c0_3 = arith.constant 0 : index
    %c0_4 = arith.constant 0 : index
    %2 = vector.load %arg3[%c0_3, %c0_4] : memref<1x256xf32, #tpu.memory_space<vmem>>, vector<1x256xf32>
    %3 = arith.truncf %0 : vector<16x1280xf32> to vector<16x1280xbf16>
    %cst = arith.constant dense<0.000000e+00> : vector<16x256xf32>
    %4 = tpu.matmul %3, %1, %cst {dimension_numbers = #tpu.dot_dimension_numbers<[1], [0], [0], [1], [0, 0, 1, 1], [], []>} : vector<16x1280xbf16>, vector<1280x256xbf16>, vector<16x256xf32> -> vector<16x256xf32>
    %5 = vector.broadcast %2 : vector<1x256xf32> to vector<16x256xf32>
    %6 = arith.addf %4, %5 : vector<16x256xf32>
    %cst_5 = arith.constant 0.000000e+00 : f32
    %7 = vector.broadcast %cst_5 : f32 to vector<16x256xf32>
    %8 = arith.maximumf %6, %7 : vector<16x256xf32>
    %c0_6 = arith.constant 0 : index
    %c0_7 = arith.constant 0 : index
    %9 = vector.load %arg4[%c0_6, %c0_7] : memref<256x256xbf16, #tpu.memory_space<vmem>>, vector<256x256xbf16>
    %c0_8 = arith.constant 0 : index
    %c0_9 = arith.constant 0 : index
    %10 = vector.load %arg5[%c0_8, %c0_9] : memref<1x256xf32, #tpu.memory_space<vmem>>, vector<1x256xf32>
    %11 = arith.truncf %8 : vector<16x256xf32> to vector<16x256xbf16>
    %cst_10 = arith.constant dense<0.000000e+00> : vector<16x256xf32>
    %12 = tpu.matmul %11, %9, %cst_10 {dimension_numbers = #tpu.dot_dimension_numbers<[1], [0], [0], [1], [0, 0, 1, 1], [], []>} : vector<16x256xbf16>, vector<256x256xbf16>, vector<16x256xf32> -> vector<16x256xf32>
    %13 = vector.broadcast %10 : vector<1x256xf32> to vector<16x256xf32>
    %14 = arith.addf %12, %13 : vector<16x256xf32>
    %cst_11 = arith.constant 0.000000e+00 : f32
    %15 = vector.broadcast %cst_11 : f32 to vector<16x256xf32>
    %16 = arith.maximumf %14, %15 : vector<16x256xf32>
    %c0_12 = arith.constant 0 : index
    %c0_13 = arith.constant 0 : index
    %17 = vector.load %arg6[%c0_12, %c0_13] : memref<16x256xf32, #tpu.memory_space<vmem>>, vector<16x256xf32>
    tpu.vector_store %arg6[%c0_12, %c0_13], %16 {strides = array<i32>} : memref<16x256xf32, #tpu.memory_space<vmem>>, vector<16x256xf32>,
    return
  }
  func.func @transform_0(%arg0: i32) -> (i32, i32) {
    %c0_i32 = arith.constant 0 : i32
    %c0_i32_0 = arith.constant 0 : i32
    return %arg0, %c0_i32 : i32, i32
  }
  func.func @transform_1(%arg0: i32) -> (i32, i32) {
    %c0_i32 = arith.constant 0 : i32
    %c0_i32_0 = arith.constant 0 : i32
    %c0_i32_1 = arith.constant 0 : i32
    return %c0_i32, %c0_i32_0 : i32, i32
  }
  func.func @transform_2(%arg0: i32) -> (i32, i32) {
    %c0_i32 = arith.constant 0 : i32
    %c0_i32_0 = arith.constant 0 : i32
    %c0_i32_1 = arith.constant 0 : i32
    return %c0_i32, %c0_i32_0 : i32, i32
  }
  func.func @transform_3(%arg0: i32) -> (i32, i32) {
    %c0_i32 = arith.constant 0 : i32
    %c0_i32_0 = arith.constant 0 : i32
    %c0_i32_1 = arith.constant 0 : i32
    return %c0_i32, %c0_i32_0 : i32, i32
  }
  func.func @transform_4(%arg0: i32) -> (i32, i32) {
    %c0_i32 = arith.constant 0 : i32
    %c0_i32_0 = arith.constant 0 : i32
    %c0_i32_1 = arith.constant 0 : i32
    return %c0_i32, %c0_i32_0 : i32, i32
  }
  func.func @transform_5(%arg0: i32) -> (i32, i32) {
    %c0_i32 = arith.constant 0 : i32
    %c0_i32_0 = arith.constant 0 : i32
    return %arg0, %c0_i32 : i32, i32
  }
}

module attributes {stable_mosaic.version = 11 : i64} {
  func.func @_fused_mlp_kernel(%arg0: i32, %arg1: memref<32x384xf32, #tpu.memory_space<vmem>>, %arg2: memref<384x256xbf16, #tpu.memory_space<vmem>>, %arg3: memref<1x256xf32, #tpu.memory_space<vmem>>, %arg4: memref<256x128xbf16, #tpu.memory_space<vmem>>, %arg5: memref<1x128xf32, #tpu.memory_space<vmem>>, %arg6: memref<32x128xf32, #tpu.memory_space<vmem>>) attributes {dimension_semantics = [#tpu.dimension_semantics<parallel>], iteration_bounds = array<i64: 2>, scalar_prefetch = 0 : i64, scratch_operands = 0 : i64, tpu.core_type = #tpu.core_type<tc>, window_params = [{transform_indices = @transform_0, window_bounds = array<i64: 32, 384>}, {pipeline_mode = #tpu.pipeline_mode<synchronous>, transform_indices = @transform_1, window_bounds = array<i64: 384, 256>}, {pipeline_mode = #tpu.pipeline_mode<synchronous>, transform_indices = @transform_2, window_bounds = array<i64: 1, 256>}, {pipeline_mode = #tpu.pipeline_mode<synchronous>, transform_indices = @transform_3, window_bounds = array<i64: 256, 128>}, {pipeline_mode = #tpu.pipeline_mode<synchronous>, transform_indices = @transform_4, window_bounds = array<i64: 1, 128>}, {transform_indices = @transform_5, window_bounds = array<i64: 32, 128>}]} {
    %c0 = arith.constant 0 : index
    %c0_0 = arith.constant 0 : index
    %0 = vector.load %arg1[%c0, %c0_0] : memref<32x384xf32, #tpu.memory_space<vmem>>, vector<32x384xf32>
    %c0_1 = arith.constant 0 : index
    %c0_2 = arith.constant 0 : index
    %1 = vector.load %arg2[%c0_1, %c0_2] : memref<384x256xbf16, #tpu.memory_space<vmem>>, vector<384x256xbf16>
    %c0_3 = arith.constant 0 : index
    %c0_4 = arith.constant 0 : index
    %2 = vector.load %arg3[%c0_3, %c0_4] : memref<1x256xf32, #tpu.memory_space<vmem>>, vector<1x256xf32>
    %3 = arith.truncf %0 : vector<32x384xf32> to vector<32x384xbf16>
    %cst = arith.constant dense<0.000000e+00> : vector<32x256xf32>
    %4 = tpu.matmul %3, %1, %cst {dimension_numbers = #tpu.dot_dimension_numbers<[1], [0], [0], [1], [0, 0, 1, 1], [], []>} : vector<32x384xbf16>, vector<384x256xbf16>, vector<32x256xf32> -> vector<32x256xf32>
    %5 = vector.broadcast %2 : vector<1x256xf32> to vector<32x256xf32>
    %6 = arith.addf %4, %5 : vector<32x256xf32>
    %cst_5 = arith.constant 0.000000e+00 : f32
    %7 = vector.broadcast %cst_5 : f32 to vector<32x256xf32>
    %8 = arith.maximumf %6, %7 : vector<32x256xf32>
    %c0_6 = arith.constant 0 : index
    %c0_7 = arith.constant 0 : index
    %9 = vector.load %arg4[%c0_6, %c0_7] : memref<256x128xbf16, #tpu.memory_space<vmem>>, vector<256x128xbf16>
    %c0_8 = arith.constant 0 : index
    %c0_9 = arith.constant 0 : index
    %10 = vector.load %arg5[%c0_8, %c0_9] : memref<1x128xf32, #tpu.memory_space<vmem>>, vector<1x128xf32>
    %11 = arith.truncf %8 : vector<32x256xf32> to vector<32x256xbf16>
    %cst_10 = arith.constant dense<0.000000e+00> : vector<32x128xf32>
    %12 = tpu.matmul %11, %9, %cst_10 {dimension_numbers = #tpu.dot_dimension_numbers<[1], [0], [0], [1], [0, 0, 1, 1], [], []>} : vector<32x256xbf16>, vector<256x128xbf16>, vector<32x128xf32> -> vector<32x128xf32>
    %13 = vector.broadcast %10 : vector<1x128xf32> to vector<32x128xf32>
    %14 = arith.addf %12, %13 : vector<32x128xf32>
    %cst_11 = arith.constant 0.000000e+00 : f32
    %15 = vector.broadcast %cst_11 : f32 to vector<32x128xf32>
    %16 = arith.maximumf %14, %15 : vector<32x128xf32>
    %c0_12 = arith.constant 0 : index
    %c0_13 = arith.constant 0 : index
    %17 = vector.load %arg6[%c0_12, %c0_13] : memref<32x128xf32, #tpu.memory_space<vmem>>, vector<32x128xf32>
    tpu.vector_store %arg6[%c0_12, %c0_13], %16 {strides = array<i32>} : memref<32x128xf32, #tpu.memory_space<vmem>>, vector<32x128xf32>,
    return
  }
  func.func @transform_0(%arg0: i32) -> (i32, i32) {
    %c0_i32 = arith.constant 0 : i32
    %c0_i32_0 = arith.constant 0 : i32
    return %arg0, %c0_i32 : i32, i32
  }
  func.func @transform_1(%arg0: i32) -> (i32, i32) {
    %c0_i32 = arith.constant 0 : i32
    %c0_i32_0 = arith.constant 0 : i32
    %c0_i32_1 = arith.constant 0 : i32
    return %c0_i32, %c0_i32_0 : i32, i32
  }
  func.func @transform_2(%arg0: i32) -> (i32, i32) {
    %c0_i32 = arith.constant 0 : i32
    %c0_i32_0 = arith.constant 0 : i32
    %c0_i32_1 = arith.constant 0 : i32
    return %c0_i32, %c0_i32_0 : i32, i32
  }
  func.func @transform_3(%arg0: i32) -> (i32, i32) {
    %c0_i32 = arith.constant 0 : i32
    %c0_i32_0 = arith.constant 0 : i32
    %c0_i32_1 = arith.constant 0 : i32
    return %c0_i32, %c0_i32_0 : i32, i32
  }
  func.func @transform_4(%arg0: i32) -> (i32, i32) {
    %c0_i32 = arith.constant 0 : i32
    %c0_i32_0 = arith.constant 0 : i32
    %c0_i32_1 = arith.constant 0 : i32
    return %c0_i32, %c0_i32_0 : i32, i32
  }
  func.func @transform_5(%arg0: i32) -> (i32, i32) {
    %c0_i32 = arith.constant 0 : i32
    %c0_i32_0 = arith.constant 0 : i32
    return %arg0, %c0_i32 : i32, i32
  }
}

module attributes {stable_mosaic.version = 11 : i64} {
  func.func @_fused_mlp_kernel(%arg0: i32, %arg1: memref<64x131xf32, #tpu.memory_space<vmem>>, %arg2: memref<131x128xbf16, #tpu.memory_space<vmem>>, %arg3: memref<1x128xf32, #tpu.memory_space<vmem>>, %arg4: memref<128x128xbf16, #tpu.memory_space<vmem>>, %arg5: memref<1x128xf32, #tpu.memory_space<vmem>>, %arg6: memref<128x128xbf16, #tpu.memory_space<vmem>>, %arg7: memref<1x128xf32, #tpu.memory_space<vmem>>, %arg8: memref<128x128xbf16, #tpu.memory_space<vmem>>, %arg9: memref<1x128xf32, #tpu.memory_space<vmem>>, %arg10: memref<128x128xbf16, #tpu.memory_space<vmem>>, %arg11: memref<1x128xf32, #tpu.memory_space<vmem>>, %arg12: memref<64x128xf32, #tpu.memory_space<vmem>>) attributes {dimension_semantics = [#tpu.dimension_semantics<parallel>], iteration_bounds = array<i64: 2>, scalar_prefetch = 0 : i64, scratch_operands = 0 : i64, tpu.core_type = #tpu.core_type<tc>, window_params = [{transform_indices = @transform_0, window_bounds = array<i64: 64, 131>}, {pipeline_mode = #tpu.pipeline_mode<synchronous>, transform_indices = @transform_1, window_bounds = array<i64: 131, 128>}, {pipeline_mode = #tpu.pipeline_mode<synchronous>, transform_indices = @transform_2, window_bounds = array<i64: 1, 128>}, {pipeline_mode = #tpu.pipeline_mode<synchronous>, transform_indices = @transform_3, window_bounds = array<i64: 128, 128>}, {pipeline_mode = #tpu.pipeline_mode<synchronous>, transform_indices = @transform_4, window_bounds = array<i64: 1, 128>}, {pipeline_mode = #tpu.pipeline_mode<synchronous>, transform_indices = @transform_5, window_bounds = array<i64: 128, 128>}, {pipeline_mode = #tpu.pipeline_mode<synchronous>, transform_indices = @transform_6, window_bounds = array<i64: 1, 128>}, {pipeline_mode = #tpu.pipeline_mode<synchronous>, transform_indices = @transform_7, window_bounds = array<i64: 128, 128>}, {pipeline_mode = #tpu.pipeline_mode<synchronous>, transform_indices = @transform_8, window_bounds = array<i64: 1, 128>}, {pipeline_mode = #tpu.pipeline_mode<synchronous>, transform_indices = @transform_9, window_bounds = array<i64: 128, 128>}, {pipeline_mode = #tpu.pipeline_mode<synchronous>, transform_indices = @transform_10, window_bounds = array<i64: 1, 128>}, {transform_indices = @transform_11, window_bounds = array<i64: 64, 128>}]} {
    %c0 = arith.constant 0 : index
    %c0_0 = arith.constant 0 : index
    %0 = vector.load %arg1[%c0, %c0_0] : memref<64x131xf32, #tpu.memory_space<vmem>>, vector<64x131xf32>
    %c0_1 = arith.constant 0 : index
    %c0_2 = arith.constant 0 : index
    %1 = vector.load %arg2[%c0_1, %c0_2] : memref<131x128xbf16, #tpu.memory_space<vmem>>, vector<131x128xbf16>
    %c0_3 = arith.constant 0 : index
    %c0_4 = arith.constant 0 : index
    %2 = vector.load %arg3[%c0_3, %c0_4] : memref<1x128xf32, #tpu.memory_space<vmem>>, vector<1x128xf32>
    %3 = arith.truncf %0 : vector<64x131xf32> to vector<64x131xbf16>
    %cst = arith.constant dense<0.000000e+00> : vector<64x128xf32>
    %4 = tpu.matmul %3, %1, %cst {dimension_numbers = #tpu.dot_dimension_numbers<[1], [0], [0], [1], [0, 0, 1, 1], [], []>} : vector<64x131xbf16>, vector<131x128xbf16>, vector<64x128xf32> -> vector<64x128xf32>
    %5 = vector.broadcast %2 : vector<1x128xf32> to vector<64x128xf32>
    %6 = arith.addf %4, %5 : vector<64x128xf32>
    %cst_5 = arith.constant 0.000000e+00 : f32
    %7 = vector.broadcast %cst_5 : f32 to vector<64x128xf32>
    %8 = arith.maximumf %6, %7 : vector<64x128xf32>
    %c0_6 = arith.constant 0 : index
    %c0_7 = arith.constant 0 : index
    %9 = vector.load %arg4[%c0_6, %c0_7] : memref<128x128xbf16, #tpu.memory_space<vmem>>, vector<128x128xbf16>
    %c0_8 = arith.constant 0 : index
    %c0_9 = arith.constant 0 : index
    %10 = vector.load %arg5[%c0_8, %c0_9] : memref<1x128xf32, #tpu.memory_space<vmem>>, vector<1x128xf32>
    %11 = arith.truncf %8 : vector<64x128xf32> to vector<64x128xbf16>
    %cst_10 = arith.constant dense<0.000000e+00> : vector<64x128xf32>
    %12 = tpu.matmul %11, %9, %cst_10 {dimension_numbers = #tpu.dot_dimension_numbers<[1], [0], [0], [1], [0, 0, 1, 1], [], []>} : vector<64x128xbf16>, vector<128x128xbf16>, vector<64x128xf32> -> vector<64x128xf32>
    %13 = vector.broadcast %10 : vector<1x128xf32> to vector<64x128xf32>
    %14 = arith.addf %12, %13 : vector<64x128xf32>
    %cst_11 = arith.constant 0.000000e+00 : f32
    %15 = vector.broadcast %cst_11 : f32 to vector<64x128xf32>
    %16 = arith.maximumf %14, %15 : vector<64x128xf32>
    %c0_12 = arith.constant 0 : index
    %c0_13 = arith.constant 0 : index
    %17 = vector.load %arg6[%c0_12, %c0_13] : memref<128x128xbf16, #tpu.memory_space<vmem>>, vector<128x128xbf16>
    %c0_14 = arith.constant 0 : index
    %c0_15 = arith.constant 0 : index
    %18 = vector.load %arg7[%c0_14, %c0_15] : memref<1x128xf32, #tpu.memory_space<vmem>>, vector<1x128xf32>
    %19 = arith.truncf %16 : vector<64x128xf32> to vector<64x128xbf16>
    %cst_16 = arith.constant dense<0.000000e+00> : vector<64x128xf32>
    %20 = tpu.matmul %19, %17, %cst_16 {dimension_numbers = #tpu.dot_dimension_numbers<[1], [0], [0], [1], [0, 0, 1, 1], [], []>} : vector<64x128xbf16>, vector<128x128xbf16>, vector<64x128xf32> -> vector<64x128xf32>
    %21 = vector.broadcast %18 : vector<1x128xf32> to vector<64x128xf32>
    %22 = arith.addf %20, %21 : vector<64x128xf32>
    %cst_17 = arith.constant 0.000000e+00 : f32
    %23 = vector.broadcast %cst_17 : f32 to vector<64x128xf32>
    %24 = arith.maximumf %22, %23 : vector<64x128xf32>
    %c0_18 = arith.constant 0 : index
    %c0_19 = arith.constant 0 : index
    %25 = vector.load %arg8[%c0_18, %c0_19] : memref<128x128xbf16, #tpu.memory_space<vmem>>, vector<128x128xbf16>
    %c0_20 = arith.constant 0 : index
    %c0_21 = arith.constant 0 : index
    %26 = vector.load %arg9[%c0_20, %c0_21] : memref<1x128xf32, #tpu.memory_space<vmem>>, vector<1x128xf32>
    %27 = arith.truncf %24 : vector<64x128xf32> to vector<64x128xbf16>
    %cst_22 = arith.constant dense<0.000000e+00> : vector<64x128xf32>
    %28 = tpu.matmul %27, %25, %cst_22 {dimension_numbers = #tpu.dot_dimension_numbers<[1], [0], [0], [1], [0, 0, 1, 1], [], []>} : vector<64x128xbf16>, vector<128x128xbf16>, vector<64x128xf32> -> vector<64x128xf32>
    %29 = vector.broadcast %26 : vector<1x128xf32> to vector<64x128xf32>
    %30 = arith.addf %28, %29 : vector<64x128xf32>
    %cst_23 = arith.constant 0.000000e+00 : f32
    %31 = vector.broadcast %cst_23 : f32 to vector<64x128xf32>
    %32 = arith.maximumf %30, %31 : vector<64x128xf32>
    %c0_24 = arith.constant 0 : index
    %c0_25 = arith.constant 0 : index
    %33 = vector.load %arg10[%c0_24, %c0_25] : memref<128x128xbf16, #tpu.memory_space<vmem>>, vector<128x128xbf16>
    %c0_26 = arith.constant 0 : index
    %c0_27 = arith.constant 0 : index
    %34 = vector.load %arg11[%c0_26, %c0_27] : memref<1x128xf32, #tpu.memory_space<vmem>>, vector<1x128xf32>
    %35 = arith.truncf %32 : vector<64x128xf32> to vector<64x128xbf16>
    %cst_28 = arith.constant dense<0.000000e+00> : vector<64x128xf32>
    %36 = tpu.matmul %35, %33, %cst_28 {dimension_numbers = #tpu.dot_dimension_numbers<[1], [0], [0], [1], [0, 0, 1, 1], [], []>} : vector<64x128xbf16>, vector<128x128xbf16>, vector<64x128xf32> -> vector<64x128xf32>
    %37 = vector.broadcast %34 : vector<1x128xf32> to vector<64x128xf32>
    %38 = arith.addf %36, %37 : vector<64x128xf32>
    %cst_29 = arith.constant dense<0xFF800000> : vector<64xf32>
    %39 = vector.multi_reduction <maximumf>, %38, %cst_29 [1] : vector<64x128xf32> to vector<64xf32>
    %40 = vector.shape_cast %39 : vector<64xf32> to vector<64x1xf32>
    %41 = vector.broadcast %40 : vector<64x1xf32> to vector<64x128xf32>
    %42 = arith.subf %38, %41 : vector<64x128xf32>
    %43 = math.exp %42 : vector<64x128xf32>
    %cst_30 = arith.constant dense<0.000000e+00> : vector<64xf32>
    %44 = vector.multi_reduction <add>, %43, %cst_30 [1] : vector<64x128xf32> to vector<64xf32>
    %45 = vector.shape_cast %44 : vector<64xf32> to vector<64x1xf32>
    %46 = math.log %45 : vector<64x1xf32>
    %47 = vector.broadcast %46 : vector<64x1xf32> to vector<64x128xf32>
    %48 = arith.subf %42, %47 : vector<64x128xf32>
    %c0_31 = arith.constant 0 : index
    %c0_32 = arith.constant 0 : index
    %49 = vector.load %arg12[%c0_31, %c0_32] : memref<64x128xf32, #tpu.memory_space<vmem>>, vector<64x128xf32>
    tpu.vector_store %arg12[%c0_31, %c0_32], %48 {strides = array<i32>} : memref<64x128xf32, #tpu.memory_space<vmem>>, vector<64x128xf32>,
    return
  }
  func.func @transform_0(%arg0: i32) -> (i32, i32) {
    %c0_i32 = arith.constant 0 : i32
    %c0_i32_0 = arith.constant 0 : i32
    return %arg0, %c0_i32 : i32, i32
  }
  func.func @transform_1(%arg0: i32) -> (i32, i32) {
    %c0_i32 = arith.constant 0 : i32
    %c0_i32_0 = arith.constant 0 : i32
    %c0_i32_1 = arith.constant 0 : i32
    return %c0_i32, %c0_i32_0 : i32, i32
  }
  func.func @transform_2(%arg0: i32) -> (i32, i32) {
    %c0_i32 = arith.constant 0 : i32
    %c0_i32_0 = arith.constant 0 : i32
    %c0_i32_1 = arith.constant 0 : i32
    return %c0_i32, %c0_i32_0 : i32, i32
  }
  func.func @transform_3(%arg0: i32) -> (i32, i32) {
    %c0_i32 = arith.constant 0 : i32
    %c0_i32_0 = arith.constant 0 : i32
    %c0_i32_1 = arith.constant 0 : i32
    return %c0_i32, %c0_i32_0 : i32, i32
  }
  func.func @transform_4(%arg0: i32) -> (i32, i32) {
    %c0_i32 = arith.constant 0 : i32
    %c0_i32_0 = arith.constant 0 : i32
    %c0_i32_1 = arith.constant 0 : i32
    return %c0_i32, %c0_i32_0 : i32, i32
  }
  func.func @transform_5(%arg0: i32) -> (i32, i32) {
    %c0_i32 = arith.constant 0 : i32
    %c0_i32_0 = arith.constant 0 : i32
    %c0_i32_1 = arith.constant 0 : i32
    return %c0_i32, %c0_i32_0 : i32, i32
  }
  func.func @transform_6(%arg0: i32) -> (i32, i32) {
    %c0_i32 = arith.constant 0 : i32
    %c0_i32_0 = arith.constant 0 : i32
    %c0_i32_1 = arith.constant 0 : i32
    return %c0_i32, %c0_i32_0 : i32, i32
  }
  func.func @transform_7(%arg0: i32) -> (i32, i32) {
    %c0_i32 = arith.constant 0 : i32
    %c0_i32_0 = arith.constant 0 : i32
    %c0_i32_1 = arith.constant 0 : i32
    return %c0_i32, %c0_i32_0 : i32, i32
  }
  func.func @transform_8(%arg0: i32) -> (i32, i32) {
    %c0_i32 = arith.constant 0 : i32
    %c0_i32_0 = arith.constant 0 : i32
    %c0_i32_1 = arith.constant 0 : i32
    return %c0_i32, %c0_i32_0 : i32, i32
  }
  func.func @transform_9(%arg0: i32) -> (i32, i32) {
    %c0_i32 = arith.constant 0 : i32
    %c0_i32_0 = arith.constant 0 : i32
    %c0_i32_1 = arith.constant 0 : i32
    return %c0_i32, %c0_i32_0 : i32, i32
  }
  func.func @transform_10(%arg0: i32) -> (i32, i32) {
    %c0_i32 = arith.constant 0 : i32
    %c0_i32_0 = arith.constant 0 : i32
    %c0_i32_1 = arith.constant 0 : i32
    return %c0_i32, %c0_i32_0 : i32, i32
  }
  func.func @transform_11(%arg0: i32) -> (i32, i32) {
    %c0_i32 = arith.constant 0 : i32
    %c0_i32_0 = arith.constant 0 : i32
    return %arg0, %c0_i32 : i32, i32
  }
}

</mosaic_0001>

<bundles_post_ra>
// kernel: custom-call.18
= control target key start
LH: loop header
LB: loop body
LE: loop exit
PB: predicated region body
PF: predicated region fallthrough
CT: control target
= control target key end

     0   :  { %s6_s0 = inlined_call_operand.vmem [shape: f32[2,64], index: 0, kind: output, shape index: {}]  }

// kernel: custom-call.19
= control target key start
LH: loop header
LB: loop body
LE: loop exit
PB: predicated region body
PF: predicated region fallthrough
CT: control target
= control target key end

     0   :  { %s6_s0 = inlined_call_operand.vmem [shape: f32[2,32], index: 0, kind: output, shape index: {}]  }

// kernel: sub.44
= control target key start
LH: loop header
LB: loop body
LE: loop exit
PB: predicated region body
PF: predicated region fallthrough
CT: control target
= control target key end

     0   :  { %s1420_s0 = inlined_call_operand.vmem [shape: f32[512,3], index: 0, kind: input, shape index: {}]   ;;  %s1421_s1 = inlined_call_operand.vmem [shape: f32[512,3], index: 1, kind: input, shape index: {}]   ;;  %s1422_s2 = inlined_call_operand.vmem [shape: f32[512,3], index: 2, kind: output, shape index: {}]  }
   0x1   :  { %v3_v0 = vld [vmem:[%s1420_s0] sm:$0xff]  ;;  %v640_v2 = vld [vmem:[%s1420_s0 + $0x8] sm:$0xff]  ;;  %v643_v5 = vld [vmem:[%s1420_s0 + $0x10] sm:$0xff] }
   0x2   :  { %v4_v1 = vld [vmem:[%s1421_s1] sm:$0xff]  ;;  %v641_v4 = vld [vmem:[%s1421_s1 + $0x8] sm:$0xff]  ;;  %v644_v6 = vld [vmem:[%s1421_s1 + $0x10] sm:$0xff] }
   0x3   :  { %v7_v3 = vsub.f32 %v3_v0, %v4_v1  ;;  %v16_v7 = vsub.f32 %v640_v2, %v641_v4  ;;  %v26_v8 = vsub.f32 %v643_v5, %v644_v6  ;;  %v646_v9 = vld [vmem:[%s1420_s0 + $0x18] sm:$0xff]  ;;  %v649_v11 = vld [vmem:[%s1420_s0 + $0x20] sm:$0xff]  ;;  %v652_v14 = vld [vmem:[%s1420_s0 + $0x28] sm:$0xff] }
   0x4   :  { %v647_v10 = vld [vmem:[%s1421_s1 + $0x18] sm:$0xff]  ;;  %v650_v13 = vld [vmem:[%s1421_s1 + $0x20] sm:$0xff]  ;;  %v653_v15 = vld [vmem:[%s1421_s1 + $0x28] sm:$0xff] }
   0x5   :  { %9 = vst [vmem:[%s1422_s2] sm:$0xff] %v7_v3  ;;  %v36_v12 = vsub.f32 %v646_v9, %v647_v10  ;;  %642 = vst [vmem:[%s1422_s2 + $0x8] sm:$0xff] %v16_v7  ;;  %v46_v16 = vsub.f32 %v649_v11, %v650_v13  ;;  %v56_v17 = vsub.f32 %v652_v14, %v653_v15  ;;  %v655_v18 = vld [vmem:[%s1420_s0 + $0x30] sm:$0xff]  ;;  %v658_v20 = vld [vmem:[%s1420_s0 + $0x38] sm:$0xff] }
   0x6   :  { %645 = vst [vmem:[%s1422_s2 + $0x10] sm:$0xff] %v26_v8  ;;  %v656_v19 = vld [vmem:[%s1421_s1 + $0x30] sm:$0xff]  ;;  %v659_v22 = vld [vmem:[%s1421_s1 + $0x38] sm:$0xff]  ;;  %v661_v23 = vld [vmem:[%s1420_s0 + $0x40] sm:$0xff] }
   0x7   :  { %648 = vst [vmem:[%s1422_s2 + $0x18] sm:$0xff] %v36_v12  ;;  %v66_v21 = vsub.f32 %v655_v18, %v656_v19  ;;  %v662_v24 = vld [vmem:[%s1421_s1 + $0x40] sm:$0xff]  ;;  %651 = vst [vmem:[%s1422_s2 + $0x20] sm:$0xff] %v46_v16  ;;  %v76_v25 = vsub.f32 %v658_v20, %v659_v22  ;;  %v664_v27 = vld [vmem:[%s1420_s0 + $0x48] sm:$0xff] }
   0x8   :  { %654 = vst [vmem:[%s1422_s2 + $0x28] sm:$0xff] %v56_v17  ;;  %v86_v26 = vsub.f32 %v661_v23, %v662_v24  ;;  %v665_v28 = vld [vmem:[%s1421_s1 + $0x48] sm:$0xff]  ;;  %v667_v29 = vld [vmem:[%s1420_s0 + $0x50] sm:$0xff]  ;;  %v670_v32 = vld [vmem:[%s1420_s0 + $0x58] sm:$0xff] }
   0x9   :  { %657 = vst [vmem:[%s1422_s2 + $0x30] sm:$0xff] %v66_v21  ;;  %v96_v30 = vsub.f32 %v664_v27, %v665_v28  ;;  %v668_v31 = vld [vmem:[%s1421_s1 + $0x50] sm:$0xff]  ;;  %v671_v33 = vld [vmem:[%s1421_s1 + $0x58] sm:$0xff]  ;;  %660 = vst [vmem:[%s1422_s2 + $0x38] sm:$0xff] %v76_v25 }
   0xa   :  { %663 = vst [vmem:[%s1422_s2 + $0x40] sm:$0xff] %v86_v26  ;;  %v106_v34 = vsub.f32 %v667_v29, %v668_v31  ;;  %v116_v35 = vsub.f32 %v670_v32, %v671_v33  ;;  %v673_v36 = vld [vmem:[%s1420_s0 + $0x60] sm:$0xff]  ;;  %v676_v38 = vld [vmem:[%s1420_s0 + $0x68] sm:$0xff]  ;;  %v679_v41 = vld [vmem:[%s1420_s0 + $0x70] sm:$0xff] }
   0xb   :  { %v674_v37 = vld [vmem:[%s1421_s1 + $0x60] sm:$0xff]  ;;  %666 = vst [vmem:[%s1422_s2 + $0x48] sm:$0xff] %v96_v30  ;;  %v677_v40 = vld [vmem:[%s1421_s1 + $0x68] sm:$0xff]  ;;  %v680_v42 = vld [vmem:[%s1421_s1 + $0x70] sm:$0xff] }
   0xc   :  { %v126_v39 = vsub.f32 %v673_v36, %v674_v37  ;;  %669 = vst [vmem:[%s1422_s2 + $0x50] sm:$0xff] %v106_v34  ;;  %672 = vst [vmem:[%s1422_s2 + $0x58] sm:$0xff] %v116_v35  ;;  %v136_v43 = vsub.f32 %v676_v38, %v677_v40  ;;  %v146_v44 = vsub.f32 %v679_v41, %v680_v42  ;;  %v682_v45 = vld [vmem:[%s1420_s0 + $0x78] sm:$0xff]  ;;  %v685_v47 = vld [vmem:[%s1420_s0 + $0x80] sm:$0xff] }
   0xd   :  { %v683_v46 = vld [vmem:[%s1421_s1 + $0x78] sm:$0xff]  ;;  %v686_v49 = vld [vmem:[%s1421_s1 + $0x80] sm:$0xff]  ;;  %v688_v50 = vld [vmem:[%s1420_s0 + $0x88] sm:$0xff] }
   0xe   :  { %675 = vst [vmem:[%s1422_s2 + $0x60] sm:$0xff] %v126_v39  ;;  %v156_v48 = vsub.f32 %v682_v45, %v683_v46  ;;  %v689_v51 = vld [vmem:[%s1421_s1 + $0x88] sm:$0xff]  ;;  %678 = vst [vmem:[%s1422_s2 + $0x68] sm:$0xff] %v136_v43  ;;  %v166_v52 = vsub.f32 %v685_v47, %v686_v49  ;;  %v691_v54 = vld [vmem:[%s1420_s0 + $0x90] sm:$0xff] }
   0xf   :  { %681 = vst [vmem:[%s1422_s2 + $0x70] sm:$0xff] %v146_v44  ;;  %v176_v53 = vsub.f32 %v688_v50, %v689_v51  ;;  %v692_v55 = vld [vmem:[%s1421_s1 + $0x90] sm:$0xff]  ;;  %v694_v56 = vld [vmem:[%s1420_s0 + $0x98] sm:$0xff]  ;;  %v697_v59 = vld [vmem:[%s1420_s0 + $0xa0] sm:$0xff] }
  0x10   :  { %684 = vst [vmem:[%s1422_s2 + $0x78] sm:$0xff] %v156_v48  ;;  %v186_v57 = vsub.f32 %v691_v54, %v692_v55  ;;  %v695_v58 = vld [vmem:[%s1421_s1 + $0x98] sm:$0xff]  ;;  %v698_v60 = vld [vmem:[%s1421_s1 + $0xa0] sm:$0xff]  ;;  %687 = vst [vmem:[%s1422_s2 + $0x80] sm:$0xff] %v166_v52 }
  0x11   :  { %690 = vst [vmem:[%s1422_s2 + $0x88] sm:$0xff] %v176_v53  ;;  %v196_v61 = vsub.f32 %v694_v56, %v695_v58  ;;  %v206_v62 = vsub.f32 %v697_v59, %v698_v60  ;;  %v700_v63 = vld [vmem:[%s1420_s0 + $0xa8] sm:$0xff]  ;;  %v703_v1 = vld [vmem:[%s1420_s0 + $0xb0] sm:$0xff]  ;;  %v706_v4 = vld [vmem:[%s1420_s0 + $0xb8] sm:$0xff] }
  0x12   :  { %v701_v0 = vld [vmem:[%s1421_s1 + $0xa8] sm:$0xff]  ;;  %693 = vst [vmem:[%s1422_s2 + $0x90] sm:$0xff] %v186_v57  ;;  %v704_v3 = vld [vmem:[%s1421_s1 + $0xb0] sm:$0xff]  ;;  %v707_v5 = vld [vmem:[%s1421_s1 + $0xb8] sm:$0xff] }
  0x13   :  { %v216_v2 = vsub.f32 %v700_v63, %v701_v0  ;;  %696 = vst [vmem:[%s1422_s2 + $0x98] sm:$0xff] %v196_v61  ;;  %699 = vst [vmem:[%s1422_s2 + $0xa0] sm:$0xff] %v206_v62  ;;  %v226_v6 = vsub.f32 %v703_v1, %v704_v3  ;;  %v236_v7 = vsub.f32 %v706_v4, %v707_v5  ;;  %v709_v8 = vld [vmem:[%s1420_s0 + $0xc0] sm:$0xff]  ;;  %v712_v10 = vld [vmem:[%s1420_s0 + $0xc8] sm:$0xff] }
  0x14   :  { %v710_v9 = vld [vmem:[%s1421_s1 + $0xc0] sm:$0xff]  ;;  %v713_v12 = vld [vmem:[%s1421_s1 + $0xc8] sm:$0xff]  ;;  %v715_v13 = vld [vmem:[%s1420_s0 + $0xd0] sm:$0xff] }
  0x15   :  { %702 = vst [vmem:[%s1422_s2 + $0xa8] sm:$0xff] %v216_v2  ;;  %v246_v11 = vsub.f32 %v709_v8, %v710_v9  ;;  %v716_v14 = vld [vmem:[%s1421_s1 + $0xd0] sm:$0xff]  ;;  %705 = vst [vmem:[%s1422_s2 + $0xb0] sm:$0xff] %v226_v6  ;;  %v256_v15 = vsub.f32 %v712_v10, %v713_v12  ;;  %v718_v17 = vld [vmem:[%s1420_s0 + $0xd8] sm:$0xff] }
  0x16   :  { %708 = vst [vmem:[%s1422_s2 + $0xb8] sm:$0xff] %v236_v7  ;;  %v266_v16 = vsub.f32 %v715_v13, %v716_v14  ;;  %v719_v18 = vld [vmem:[%s1421_s1 + $0xd8] sm:$0xff]  ;;  %v721_v19 = vld [vmem:[%s1420_s0 + $0xe0] sm:$0xff]  ;;  %v724_v22 = vld [vmem:[%s1420_s0 + $0xe8] sm:$0xff] }
  0x17   :  { %711 = vst [vmem:[%s1422_s2 + $0xc0] sm:$0xff] %v246_v11  ;;  %v276_v20 = vsub.f32 %v718_v17, %v719_v18  ;;  %v722_v21 = vld [vmem:[%s1421_s1 + $0xe0] sm:$0xff]  ;;  %v725_v23 = vld [vmem:[%s1421_s1 + $0xe8] sm:$0xff]  ;;  %714 = vst [vmem:[%s1422_s2 + $0xc8] sm:$0xff] %v256_v15 }
  0x18   :  { %717 = vst [vmem:[%s1422_s2 + $0xd0] sm:$0xff] %v266_v16  ;;  %v286_v24 = vsub.f32 %v721_v19, %v722_v21  ;;  %v296_v25 = vsub.f32 %v724_v22, %v725_v23  ;;  %v727_v26 = vld [vmem:[%s1420_s0 + $0xf0] sm:$0xff]  ;;  %v730_v28 = vld [vmem:[%s1420_s0 + $0xf8] sm:$0xff]  ;;  %v733_v31 = vld [vmem:[%s1420_s0 + $0x100] sm:$0xff] }
  0x19   :  { %v728_v27 = vld [vmem:[%s1421_s1 + $0xf0] sm:$0xff]  ;;  %720 = vst [vmem:[%s1422_s2 + $0xd8] sm:$0xff] %v276_v20  ;;  %v731_v30 = vld [vmem:[%s1421_s1 + $0xf8] sm:$0xff]  ;;  %v734_v32 = vld [vmem:[%s1421_s1 + $0x100] sm:$0xff] }
  0x1a   :  { %v306_v29 = vsub.f32 %v727_v26, %v728_v27  ;;  %723 = vst [vmem:[%s1422_s2 + $0xe0] sm:$0xff] %v286_v24  ;;  %726 = vst [vmem:[%s1422_s2 + $0xe8] sm:$0xff] %v296_v25  ;;  %v316_v33 = vsub.f32 %v730_v28, %v731_v30  ;;  %v326_v34 = vsub.f32 %v733_v31, %v734_v32  ;;  %v736_v35 = vld [vmem:[%s1420_s0 + $0x108] sm:$0xff]  ;;  %v739_v37 = vld [vmem:[%s1420_s0 + $0x110] sm:$0xff] }
  0x1b   :  { %v737_v36 = vld [vmem:[%s1421_s1 + $0x108] sm:$0xff]  ;;  %v740_v39 = vld [vmem:[%s1421_s1 + $0x110] sm:$0xff]  ;;  %v742_v40 = vld [vmem:[%s1420_s0 + $0x118] sm:$0xff] }
  0x1c   :  { %729 = vst [vmem:[%s1422_s2 + $0xf0] sm:$0xff] %v306_v29  ;;  %v336_v38 = vsub.f32 %v736_v35, %v737_v36  ;;  %v743_v41 = vld [vmem:[%s1421_s1 + $0x118] sm:$0xff]  ;;  %732 = vst [vmem:[%s1422_s2 + $0xf8] sm:$0xff] %v316_v33  ;;  %v346_v42 = vsub.f32 %v739_v37, %v740_v39  ;;  %v745_v44 = vld [vmem:[%s1420_s0 + $0x120] sm:$0xff] }
  0x1d   :  { %735 = vst [vmem:[%s1422_s2 + $0x100] sm:$0xff] %v326_v34  ;;  %v356_v43 = vsub.f32 %v742_v40, %v743_v41  ;;  %v746_v45 = vld [vmem:[%s1421_s1 + $0x120] sm:$0xff]  ;;  %v748_v46 = vld [vmem:[%s1420_s0 + $0x128] sm:$0xff]  ;;  %v751_v49 = vld [vmem:[%s1420_s0 + $0x130] sm:$0xff] }
  0x1e   :  { %738 = vst [vmem:[%s1422_s2 + $0x108] sm:$0xff] %v336_v38  ;;  %v366_v47 = vsub.f32 %v745_v44, %v746_v45  ;;  %v749_v48 = vld [vmem:[%s1421_s1 + $0x128] sm:$0xff]  ;;  %v752_v50 = vld [vmem:[%s1421_s1 + $0x130] sm:$0xff]  ;;  %741 = vst [vmem:[%s1422_s2 + $0x110] sm:$0xff] %v346_v42 }
  0x1f   :  { %744 = vst [vmem:[%s1422_s2 + $0x118] sm:$0xff] %v356_v43  ;;  %v376_v51 = vsub.f32 %v748_v46, %v749_v48  ;;  %v386_v52 = vsub.f32 %v751_v49, %v752_v50  ;;  %v754_v53 = vld [vmem:[%s1420_s0 + $0x138] sm:$0xff]  ;;  %v757_v55 = vld [vmem:[%s1420_s0 + $0x140] sm:$0xff]  ;;  %v760_v58 = vld [vmem:[%s1420_s0 + $0x148] sm:$0xff] }
  0x20   :  { %v755_v54 = vld [vmem:[%s1421_s1 + $0x138] sm:$0xff]  ;;  %747 = vst [vmem:[%s1422_s2 + $0x120] sm:$0xff] %v366_v47  ;;  %v758_v57 = vld [vmem:[%s1421_s1 + $0x140] sm:$0xff]  ;;  %v761_v59 = vld [vmem:[%s1421_s1 + $0x148] sm:$0xff] }
  0x21   :  { %v396_v56 = vsub.f32 %v754_v53, %v755_v54  ;;  %750 = vst [vmem:[%s1422_s2 + $0x128] sm:$0xff] %v376_v51  ;;  %753 = vst [vmem:[%s1422_s2 + $0x130] sm:$0xff] %v386_v52  ;;  %v406_v60 = vsub.f32 %v757_v55, %v758_v57  ;;  %v416_v61 = vsub.f32 %v760_v58, %v761_v59  ;;  %v763_v62 = vld [vmem:[%s1420_s0 + $0x150] sm:$0xff]  ;;  %v766_v0 = vld [vmem:[%s1420_s0 + $0x158] sm:$0xff] }
  0x22   :  { %v764_v63 = vld [vmem:[%s1421_s1 + $0x150] sm:$0xff]  ;;  %v767_v2 = vld [vmem:[%s1421_s1 + $0x158] sm:$0xff]  ;;  %v769_v3 = vld [vmem:[%s1420_s0 + $0x160] sm:$0xff] }
  0x23   :  { %756 = vst [vmem:[%s1422_s2 + $0x138] sm:$0xff] %v396_v56  ;;  %v426_v1 = vsub.f32 %v763_v62, %v764_v63  ;;  %v770_v4 = vld [vmem:[%s1421_s1 + $0x160] sm:$0xff]  ;;  %759 = vst [vmem:[%s1422_s2 + $0x140] sm:$0xff] %v406_v60  ;;  %v436_v5 = vsub.f32 %v766_v0, %v767_v2  ;;  %v772_v7 = vld [vmem:[%s1420_s0 + $0x168] sm:$0xff] }
  0x24   :  { %762 = vst [vmem:[%s1422_s2 + $0x148] sm:$0xff] %v416_v61  ;;  %v446_v6 = vsub.f32 %v769_v3, %v770_v4  ;;  %v773_v8 = vld [vmem:[%s1421_s1 + $0x168] sm:$0xff]  ;;  %v775_v9 = vld [vmem:[%s1420_s0 + $0x170] sm:$0xff]  ;;  %v778_v12 = vld [vmem:[%s1420_s0 + $0x178] sm:$0xff] }
  0x25   :  { %765 = vst [vmem:[%s1422_s2 + $0x150] sm:$0xff] %v426_v1  ;;  %v456_v10 = vsub.f32 %v772_v7, %v773_v8  ;;  %v776_v11 = vld [vmem:[%s1421_s1 + $0x170] sm:$0xff]  ;;  %v779_v13 = vld [vmem:[%s1421_s1 + $0x178] sm:$0xff]  ;;  %768 = vst [vmem:[%s1422_s2 + $0x158] sm:$0xff] %v436_v5 }
  0x26   :  { %771 = vst [vmem:[%s1422_s2 + $0x160] sm:$0xff] %v446_v6  ;;  %v466_v14 = vsub.f32 %v775_v9, %v776_v11  ;;  %v476_v15 = vsub.f32 %v778_v12, %v779_v13  ;;  %v781_v16 = vld [vmem:[%s1420_s0 + $0x180] sm:$0xff]  ;;  %v784_v18 = vld [vmem:[%s1420_s0 + $0x188] sm:$0xff]  ;;  %v787_v21 = vld [vmem:[%s1420_s0 + $0x190] sm:$0xff] }
  0x27   :  { %v782_v17 = vld [vmem:[%s1421_s1 + $0x180] sm:$0xff]  ;;  %774 = vst [vmem:[%s1422_s2 + $0x168] sm:$0xff] %v456_v10  ;;  %v785_v20 = vld [vmem:[%s1421_s1 + $0x188] sm:$0xff]  ;;  %v788_v22 = vld [vmem:[%s1421_s1 + $0x190] sm:$0xff] }
  0x28   :  { %v486_v19 = vsub.f32 %v781_v16, %v782_v17  ;;  %777 = vst [vmem:[%s1422_s2 + $0x170] sm:$0xff] %v466_v14  ;;  %780 = vst [vmem:[%s1422_s2 + $0x178] sm:$0xff] %v476_v15  ;;  %v496_v23 = vsub.f32 %v784_v18, %v785_v20  ;;  %v506_v24 = vsub.f32 %v787_v21, %v788_v22  ;;  %v790_v25 = vld [vmem:[%s1420_s0 + $0x198] sm:$0xff]  ;;  %v793_v27 = vld [vmem:[%s1420_s0 + $0x1a0] sm:$0xff] }
  0x29   :  { %v791_v26 = vld [vmem:[%s1421_s1 + $0x198] sm:$0xff]  ;;  %v794_v29 = vld [vmem:[%s1421_s1 + $0x1a0] sm:$0xff]  ;;  %v796_v30 = vld [vmem:[%s1420_s0 + $0x1a8] sm:$0xff] }
  0x2a   :  { %783 = vst [vmem:[%s1422_s2 + $0x180] sm:$0xff] %v486_v19  ;;  %v516_v28 = vsub.f32 %v790_v25, %v791_v26  ;;  %v797_v31 = vld [vmem:[%s1421_s1 + $0x1a8] sm:$0xff]  ;;  %786 = vst [vmem:[%s1422_s2 + $0x188] sm:$0xff] %v496_v23  ;;  %v526_v32 = vsub.f32 %v793_v27, %v794_v29  ;;  %v799_v34 = vld [vmem:[%s1420_s0 + $0x1b0] sm:$0xff] }
  0x2b   :  { %789 = vst [vmem:[%s1422_s2 + $0x190] sm:$0xff] %v506_v24  ;;  %v536_v33 = vsub.f32 %v796_v30, %v797_v31  ;;  %v800_v35 = vld [vmem:[%s1421_s1 + $0x1b0] sm:$0xff]  ;;  %v802_v36 = vld [vmem:[%s1420_s0 + $0x1b8] sm:$0xff]  ;;  %v805_v39 = vld [vmem:[%s1420_s0 + $0x1c0] sm:$0xff] }
  0x2c   :  { %792 = vst [vmem:[%s1422_s2 + $0x198] sm:$0xff] %v516_v28  ;;  %v546_v37 = vsub.f32 %v799_v34, %v800_v35  ;;  %v803_v38 = vld [vmem:[%s1421_s1 + $0x1b8] sm:$0xff]  ;;  %v806_v40 = vld [vmem:[%s1421_s1 + $0x1c0] sm:$0xff]  ;;  %795 = vst [vmem:[%s1422_s2 + $0x1a0] sm:$0xff] %v526_v32 }
  0x2d   :  { %798 = vst [vmem:[%s1422_s2 + $0x1a8] sm:$0xff] %v536_v33  ;;  %v556_v41 = vsub.f32 %v802_v36, %v803_v38  ;;  %v566_v42 = vsub.f32 %v805_v39, %v806_v40  ;;  %v808_v43 = vld [vmem:[%s1420_s0 + $0x1c8] sm:$0xff]  ;;  %v811_v45 = vld [vmem:[%s1420_s0 + $0x1d0] sm:$0xff]  ;;  %v814_v48 = vld [vmem:[%s1420_s0 + $0x1d8] sm:$0xff] }
  0x2e   :  { %v809_v44 = vld [vmem:[%s1421_s1 + $0x1c8] sm:$0xff]  ;;  %801 = vst [vmem:[%s1422_s2 + $0x1b0] sm:$0xff] %v546_v37  ;;  %v812_v47 = vld [vmem:[%s1421_s1 + $0x1d0] sm:$0xff]  ;;  %v815_v49 = vld [vmem:[%s1421_s1 + $0x1d8] sm:$0xff] }
  0x2f   :  { %v576_v46 = vsub.f32 %v808_v43, %v809_v44  ;;  %804 = vst [vmem:[%s1422_s2 + $0x1b8] sm:$0xff] %v556_v41  ;;  %807 = vst [vmem:[%s1422_s2 + $0x1c0] sm:$0xff] %v566_v42  ;;  %v586_v50 = vsub.f32 %v811_v45, %v812_v47  ;;  %v596_v51 = vsub.f32 %v814_v48, %v815_v49  ;;  %v817_v52 = vld [vmem:[%s1420_s0 + $0x1e0] sm:$0xff]  ;;  %v820_v54 = vld [vmem:[%s1420_s0 + $0x1e8] sm:$0xff] }
  0x30   :  { %v818_v53 = vld [vmem:[%s1421_s1 + $0x1e0] sm:$0xff]  ;;  %v821_v56 = vld [vmem:[%s1421_s1 + $0x1e8] sm:$0xff]  ;;  %v823_v57 = vld [vmem:[%s1420_s0 + $0x1f0] sm:$0xff] }
  0x31   :  { %810 = vst [vmem:[%s1422_s2 + $0x1c8] sm:$0xff] %v576_v46  ;;  %v606_v55 = vsub.f32 %v817_v52, %v818_v53  ;;  %v824_v58 = vld [vmem:[%s1421_s1 + $0x1f0] sm:$0xff]  ;;  %813 = vst [vmem:[%s1422_s2 + $0x1d0] sm:$0xff] %v586_v50  ;;  %v616_v59 = vsub.f32 %v820_v54, %v821_v56  ;;  %v826_v61 = vld [vmem:[%s1420_s0 + $0x1f8] sm:$0xff] }
  0x32   :  { %816 = vst [vmem:[%s1422_s2 + $0x1d8] sm:$0xff] %v596_v51  ;;  %v626_v60 = vsub.f32 %v823_v57, %v824_v58  ;;  %v827_v62 = vld [vmem:[%s1421_s1 + $0x1f8] sm:$0xff] }
  0x33   :  { %819 = vst [vmem:[%s1422_s2 + $0x1e0] sm:$0xff] %v606_v55  ;;  %v636_v63 = vsub.f32 %v826_v61, %v827_v62  ;;  %822 = vst [vmem:[%s1422_s2 + $0x1e8] sm:$0xff] %v616_v59 }
  0x34   :  { %825 = vst [vmem:[%s1422_s2 + $0x1f0] sm:$0xff] %v626_v60 }
  0x35   :  { %828 = vst [vmem:[%s1422_s2 + $0x1f8] sm:$0xff] %v636_v63 }

// kernel: _lambda_.6
= control target key start
LH: loop header
LB: loop body
LE: loop exit
PB: predicated region body
PF: predicated region fallthrough
CT: control target
= control target key end

     0   :  { %s1785_s24 = smov 0   ;;  %s2067_s0 = inlined_call_operand.vmem [shape: f32[512,6], index: 0, kind: input, shape index: {}]   ;;  %s2068_s1 = inlined_call_operand.vmem [shape: bf16[6,128], index: 1, kind: input, shape index: {}]   ;;  %s2069_s2 = inlined_call_operand.vmem [shape: f32[1,128], index: 2, kind: input, shape index: {}]   ;;  %s2070_s3 = inlined_call_operand.vmem [shape: bf16[128,128], index: 3, kind: input, shape index: {}]   ;;  %s2071_s4 = inlined_call_operand.vmem [shape: f32[1,128], index: 4, kind: input, shape index: {}]   ;;  %s2072_s5 = inlined_call_operand.vmem [shape: bf16[128,128], index: 5, kind: input, shape index: {}]   ;;  %s2073_s6 = inlined_call_operand.vmem [shape: f32[1,128], index: 6, kind: input, shape index: {}]   ;;  %s2074_s7 = inlined_call_operand.vmem [shape: f32[64,128], index: 7, kind: output, shape index: {}]  }
   0x1 LB: > { %s1468_s25 = sadd.s32 4294967295, %s1743_s24   ;;  %p1472_p0 = scmp.ge.s32.totalorder %s1743_s24, 1  ;;  %s1743_s24 = sphi %s1785_s24, %s17_s24  }
   0x2   : > { %p238_p1 = scmp.lt.s32.totalorder %s1743_s24, 3 }
   0x4   : > { %p239_p2 = pnand %p1472_p0, %p238_p1 }
   0x5   : > { %v315_v0 = vld [vmem:[%s2068_s1] sm:$0x7] (!%p239_p2)  ;;  %vm388_vm0 = vcmask (!%p239_p2), 1042432   ;;  %s1473_s28 = sshll.u32 (!%p239_p2), %s1468_s25, 5  ;;  %vm339_vm1 = vcmask (!%p239_p2), 48128   ;;  %v1722_v24 = vld [vmem:[%s2070_s3 + $0x8] sm:$0xff] (!%p239_p2)  }
   0x6   : > { %242 = sbr.rel (%p239_p2) target bundleno = 760 (0x2f8), region = 48  ;;  %v1721_v1 = vld [vmem:[%s2070_s3] sm:$0xff] (!%p239_p2)   ;;  %1711 = vmatprep.subr.msk.bf16.mxu0 (!%p239_p2), %vm388_vm0, %v315_v0  ;;  %v390_v2 = vsel (!%p239_p2), %vm388_vm0, %v315_v0, 0  ;;  %p271_p3 = scmp.lt.s32.totalorder (!%p239_p2), %s1473_s28, 63  ;;  %1712 = vmatprep.subr.msk.bf16.mxu1 (!%p239_p2), %vm388_vm0, %v315_v0  ;;  %v1723_v30 = vld [vmem:[%s2070_s3 + $0x10] sm:$0xff] (!%p239_p2)   ;;  %v1724_v38 = vld [vmem:[%s2070_s3 + $0x18] sm:$0xff] (!%p239_p2)  }
   0x7   : > { %1580 = vmatpush3.bf16.msra.mxu0 (!%p239_p2), %v390_v2  ;;  %1710 = vmatpush3.bf16.msra.mxu1 (!%p239_p2), %v390_v2  ;;  %v1725_v46 = vld [vmem:[%s2070_s3 + $0x20] sm:$0xff] (!%p239_p2)   ;;  %v1726_v51 = vld [vmem:[%s2070_s3 + $0x28] sm:$0xff] (!%p239_p2)   ;;  %v1727_v56 = vld [vmem:[%s2070_s3 + $0x30] sm:$0xff] (!%p239_p2)   ;;  %vm1369_vm2 = vcmask (!%p239_p2), 1041409   ;;  %vm1371_vm3 = vcmask (!%p239_p2), 1042434   ;;  %vm1373_vm4 = vcmask (!%p239_p2), 1043459  }
   0x8   : > { %1613 = vmatprep.subr.bf16.mxu1 (!%p239_p2), %v1721_v1  ;;  %v1728_v57 = vld [vmem:[%s2070_s3 + $0x38] sm:$0xff] (!%p239_p2)   ;;  %v1729_v58 = vld [vmem:[%s2072_s5] sm:$0xff] (!%p239_p2)   ;;  %v1730_v59 = vld [vmem:[%s2072_s5 + $0x8] sm:$0xff] (!%p239_p2)   ;;  %s1994_s29 = sshll.u32 (!%p239_p2), %s1468_s25, 2  ;;  %vm1375_vm5 = vcmask (!%p239_p2), 1044484   ;;  %vm1377_vm6 = vcmask (!%p239_p2), 1045509  }
   0x9   : > { %1661 = vmatprep.subr.bf16.mxu0 (!%p239_p2), %v1729_v58  ;;  %v1731_v60 = vld [vmem:[%s2072_s5 + $0x10] sm:$0xff] (!%p239_p2)   ;;  %v1732_v61 = vld [vmem:[%s2072_s5 + $0x18] sm:$0xff] (!%p239_p2)   ;;  %v1733_v62 = vld [vmem:[%s2072_s5 + $0x20] sm:$0xff] (!%p239_p2)   ;;  %p277_p4 = scmp.lt.s32.totalorder (!%p239_p2), %s1994_s29, 7  ;;  %vm1379_vm7 = vcmask (!%p239_p2), 1046534   ;;  %vm1381_vm8 = vcmask (!%p239_p2), 1047559  }
   0xa   : > { %v1734_v63 = vld [vmem:[%s2072_s5 + $0x28] sm:$0xff] (!%p239_p2)   ;;  %v1896_v0 = vld [vmem:[%s2069_s2] ss:$0 sm:$0xff] (!%p239_p2) }
   0xd   : > { %s2076_s28 = smov (!%p271_p3, %s1473_s28), 63  ;;  %s2078_s29 = smov (!%p277_p4, %s1994_s29), 7 }
   0xe   : > { %s1474_s8 = sshll.u32 %s2076_s28, 3  ;;  %s1476_s25 = sshll.u32 %s2078_s29, 3 }
   0xf   : > { %s1804_s11 = scalar_lea.vmem %s2067_s0, %s1474_s8  ;;  %s2016_s9 = scalar_lea.vmem %s2074_s7, %s1476_s25 }
  0x10   : > { %v283_v3 = vld [vmem:[%s1804_s11] sm:$0xff]  ;;  %v284_v4 = vld [vmem:[%s1804_s11 + $0x8] sm:$0xff]  ;;  %v285_v5 = vld [vmem:[%s1804_s11 + $0x10] sm:$0xff] }
  0x11   : > { %v317_v6 = vpack.c.bf16 %v284_v4, %v283_v3  ;;  %v286_v7 = vld [vmem:[%s1804_s11 + $0x18] sm:$0xff]  ;;  %v287_v8 = vld [vmem:[%s1804_s11 + $0x20] sm:$0xff]  ;;  %v288_v9 = vld [vmem:[%s1804_s11 + $0x28] sm:$0xff] }
  0x12   : > { %v318_v10 = vpack.c.bf16 %v286_v7, %v285_v5  ;;  %v319_v11 = vpack.c.bf16 %v288_v9, %v287_v8  ;;  %v289_v12 = vld [vmem:[%s1804_s11 + $0x30] sm:$0xff]  ;;  %v290_v13 = vld [vmem:[%s1804_s11 + $0x38] sm:$0xff]  ;;  %v291_v14 = vld [vmem:[%s1804_s11 + $0x40] sm:$0xff] }
  0x13   : > { %1581 = vmatprep.mubr.msk.bf16.mxu0 %vm339_vm1, %v317_v6  ;;  %v292_v15 = vld [vmem:[%s1804_s11 + $0x48] sm:$0xff]  ;;  %v299_v16 = vld [vmem:[%s1804_s11 + $0x80] sm:$0xff]  ;;  %v301_v19 = vld [vmem:[%s1804_s11 + $0x90] sm:$0xff]  ;;  %v320_v25 = vpack.c.bf16 %v290_v13, %v289_v12 }
  0x14   : > { %1582 = vmatmul.mubr.msk.bf16.vlgmr.msra.gmra.mrb[0].mxu0 %vm339_vm1, %v318_v10  ;;  %v300_v17 = vld [vmem:[%s1804_s11 + $0x88] sm:$0xff]  ;;  %v302_v20 = vld [vmem:[%s1804_s11 + $0x98] sm:$0xff]  ;;  %v303_v21 = vld [vmem:[%s1804_s11 + $0xa0] sm:$0xff]  ;;  %v321_v27 = vpack.c.bf16 %v292_v15, %v291_v14 }
  0x15   : > { %1585 = vmatprep.mubr.msk.bf16.mxu0 %vm339_vm1, %v319_v11  ;;  %v325_v18 = vpack.c.bf16 %v300_v17, %v299_v16  ;;  %v326_v22 = vpack.c.bf16 %v302_v20, %v301_v19  ;;  %v304_v23 = vld [vmem:[%s1804_s11 + $0xa8] sm:$0xff]  ;;  %v305_v28 = vld [vmem:[%s1804_s11 + $0xb0] sm:$0xff]  ;;  %v306_v29 = vld [vmem:[%s1804_s11 + $0xb8] sm:$0xff]  ;;  %1662 = vmatpush3.bf16.msra.mxu0 %v1729_v58 }
  0x16   : > { %v327_v26 = vpack.c.bf16 %v304_v23, %v303_v21  ;;  %v307_v31 = vld [vmem:[%s1804_s11 + $0xc0] sm:$0xff]  ;;  %v308_v32 = vld [vmem:[%s1804_s11 + $0xc8] sm:$0xff]  ;;  %v293_v33 = vld [vmem:[%s1804_s11 + $0x50] sm:$0xff]  ;;  %v328_v37 = vpack.c.bf16 %v306_v29, %v305_v28  ;;  %1663 = vmatprep.subr.bf16.mxu0 %v1730_v59 }
  0x17   : > { %1597 = vmatprep.mubr.msk.bf16.mxu1 %vm339_vm1, %v325_v18  ;;  %v294_v34 = vld [vmem:[%s1804_s11 + $0x58] sm:$0xff]  ;;  %v295_v35 = vld [vmem:[%s1804_s11 + $0x60] sm:$0xff]  ;;  %v296_v36 = vld [vmem:[%s1804_s11 + $0x68] sm:$0xff]  ;;  %v329_v39 = vpack.c.bf16 %v308_v32, %v307_v31 }
  0x18   : > { %1598 = vmatmul.mubr.msk.bf16.vlgmr.msra.gmra.mrb[0].mxu1 %vm339_vm1, %v326_v22  ;;  %v322_v40 = vpack.c.bf16 %v294_v34, %v293_v33  ;;  %v323_v41 = vpack.c.bf16 %v296_v36, %v295_v35  ;;  %v309_v42 = vld [vmem:[%s1804_s11 + $0xd0] sm:$0xff]  ;;  %v310_v43 = vld [vmem:[%s1804_s11 + $0xd8] sm:$0xff]  ;;  %v311_v44 = vld [vmem:[%s1804_s11 + $0xe0] sm:$0xff] }
  0x19   : > { %1601 = vmatprep.mubr.msk.bf16.mxu1 %vm339_vm1, %v327_v26  ;;  %1614 = vmatpush3.bf16.msra.mxu1 %v1721_v1  ;;  %v312_v45 = vld [vmem:[%s1804_s11 + $0xe8] sm:$0xff]  ;;  %v297_v47 = vld [vmem:[%s1804_s11 + $0x70] sm:$0xff]  ;;  %v298_v48 = vld [vmem:[%s1804_s11 + $0x78] sm:$0xff]  ;;  %v330_v49 = vpack.c.bf16 %v310_v43, %v309_v42 }
  0x1a   : > { %1615 = vmatprep.subr.bf16.mxu1 %v1722_v24  ;;  %v331_v50 = vpack.c.bf16 %v312_v45, %v311_v44  ;;  %v324_v52 = vpack.c.bf16 %v298_v48, %v297_v47  ;;  %v313_v53 = vld [vmem:[%s1804_s11 + $0xf0] sm:$0xff]  ;;  %v314_v54 = vld [vmem:[%s1804_s11 + $0xf8] sm:$0xff]  ;;  %1664 = vmatpush3.bf16.msra.mxu0 %v1730_v59 }
  0x1b   : > { %v332_v55 = vpack.c.bf16 %v314_v54, %v313_v53  ;;  %1665 = vmatprep.subr.bf16.mxu0 %v1731_v60 }
  0x1c   : > { %1586 = vmatmul.mubr.msk.bf16.gmra.mrb[4].mxu0 %vm339_vm1, %v320_v25 }
  0x1d   : > { %1589 = vmatprep.mubr.msk.bf16.mxu0 %vm339_vm1, %v321_v27  ;;  %1616 = vmatpush3.bf16.msra.mxu1 %v1722_v24 }
  0x1e   : > { %1617 = vmatprep.subr.bf16.mxu1 %v1723_v30  ;;  %1666 = vmatpush3.bf16.msra.mxu0 %v1731_v60 }
  0x1f   : > { %1667 = vmatprep.subr.bf16.mxu0 %v1732_v61 }
  0x20   : > { %1602 = vmatmul.mubr.msk.bf16.gmra.mrb[4].mxu1 %vm339_vm1, %v328_v37 }
  0x21   : > { %1605 = vmatprep.mubr.msk.bf16.mxu1 %vm339_vm1, %v329_v39  ;;  %1618 = vmatpush3.bf16.msra.mxu1 %v1723_v30 }
  0x22   : > { %1619 = vmatprep.subr.bf16.mxu1 %v1724_v38  ;;  %1668 = vmatpush3.bf16.msra.mxu0 %v1732_v61 }
  0x23   : > { %1669 = vmatprep.subr.bf16.mxu0 %v1733_v62 }
  0x24   : > { %1590 = vmatmul.mubr.msk.bf16.gmra.mrb[8].mxu0 %vm339_vm1, %v322_v40 }
  0x25   : > { %1593 = vmatprep.mubr.msk.bf16.mxu0 %vm339_vm1, %v323_v41  ;;  %1620 = vmatpush3.bf16.msra.mxu1 %v1724_v38 }
  0x26   : > { %1621 = vmatprep.subr.bf16.mxu1 %v1725_v46  ;;  %1670 = vmatpush3.bf16.msra.mxu0 %v1733_v62 }
  0x27   : > { %1671 = vmatprep.subr.bf16.mxu0 %v1734_v63 }
  0x28   : > { %1606 = vmatmul.mubr.msk.bf16.gmra.mrb[8].mxu1 %vm339_vm1, %v330_v49 }
  0x29   : > { %1609 = vmatprep.mubr.msk.bf16.mxu1 %vm339_vm1, %v331_v50  ;;  %1622 = vmatpush3.bf16.msra.mxu1 %v1725_v46 }
  0x2a   : > { %1623 = vmatprep.subr.bf16.mxu1 %v1726_v51  ;;  %1672 = vmatpush3.bf16.msra.mxu0 %v1734_v63 }
  0x2c   : > { %1594 = vmatmul.mubr.msk.bf16.gmra.mrb[12].mxu0 %vm339_vm1, %v324_v52 }
  0x2d   : > { %1624 = vmatpush3.bf16.msra.mxu1 %v1726_v51 }
  0x2e   : > { %1625 = vmatprep.subr.bf16.mxu1 %v1727_v56 }
  0x30   : > { %1610 = vmatmul.mubr.msk.bf16.gmra.mrb[12].mxu1 %vm339_vm1, %v332_v55 }
  0x31   : > { %1626 = vmatpush3.bf16.msra.mxu1 %v1727_v56 }
  0x32   : > { %1627 = vmatprep.subr.bf16.mxu1 %v1728_v57 }
  0x35   : > { %1628 = vmatpush3.bf16.msra.mxu1 %v1728_v57 }
  0xe7   : > { %v1583_v1 = vpop.f32.mrb[0].mxu0 }
  0xe8   : > { %v435_v2 = vadd.f32 %v1583_v1, %v1896_v0  ;;  %v426_v3 = vpop.f32.mrb[1].mxu0 }
  0xe9   : > { %v427_v4 = vadd.f32 %v1896_v0, %v426_v3  ;;  %v1584_v5 = vpop.f32.mrb[2].mxu0 }
  0xea   : > { %v438_v6 = vadd.f32 %v1584_v5, %v1896_v0  ;;  %v429_v7 = vpop.f32.mrb[3].mxu0  ;;  %v555_v9 = vmax.f32 %v435_v2, 0.0 }
  0xeb   : > { %v430_v8 = vadd.f32 %v1896_v0, %v429_v7  ;;  %v1599_v11 = vpop.f32.mrb[0].mxu1  ;;  %v553_v12 = vmax.f32 %v427_v4, 0.0 }
  0xec   : > { %v556_v10 = vmax.f32 %v438_v6, 0.0  ;;  %v499_v14 = vadd.f32 %v1599_v11, %v1896_v0  ;;  %v490_v15 = vpop.f32.mrb[1].mxu1 }
  0xed   : > { %v554_v13 = vmax.f32 %v430_v8, 0.0  ;;  %v491_v17 = vadd.f32 %v1896_v0, %v490_v15  ;;  %v1600_v18 = vpop.f32.mrb[2].mxu1 }
  0xee   : > { %v603_v16 = vpack.c.bf16 %v556_v10, %v555_v9  ;;  %v571_v21 = vmax.f32 %v499_v14, 0.0  ;;  %v502_v22 = vadd.f32 %v1600_v18, %v1896_v0  ;;  %v493_v23 = vpop.f32.mrb[3].mxu1 }
  0xef   : > { %v602_v19 = vpack.c.bf16 %v554_v13, %v553_v12  ;;  %v1587_v20 = vpop.f32.mrb[4].mxu0  ;;  %v569_v26 = vmax.f32 %v491_v17, 0.0  ;;  %v494_v27 = vadd.f32 %v1896_v0, %v493_v23 }
  0xf0   : > { %v451_v24 = vadd.f32 %v1587_v20, %v1896_v0  ;;  %v442_v25 = vpop.f32.mrb[5].mxu0  ;;  %v572_v30 = vmax.f32 %v502_v22, 0.0 }
  0xf1   : > { %v443_v28 = vadd.f32 %v1896_v0, %v442_v25  ;;  %v1588_v29 = vpop.f32.mrb[6].mxu0  ;;  %1629 = vmatprep.mubr.bf16.mxu1 %v602_v19  ;;  %v570_v33 = vmax.f32 %v494_v27, 0.0 }
  0xf2   : > { %v454_v31 = vadd.f32 %v1588_v29, %v1896_v0  ;;  %v445_v32 = vpop.f32.mrb[7].mxu0  ;;  %1630 = vmatmul.mubr.bf16.vlgmr.msra.gmra.mrb[16].mxu1 %v603_v16  ;;  %v1910_v35 = vpack.c.bf16 %v572_v30, %v571_v21  ;;  %v559_v36 = vmax.f32 %v451_v24, 0.0 }
  0xf3   : > { %v446_v34 = vadd.f32 %v1896_v0, %v445_v32  ;;  %v1912_v38 = vpack.c.bf16 %v570_v33, %v569_v26  ;;  %v1603_v39 = vpop.f32.mrb[4].mxu1  ;;  %v557_v40 = vmax.f32 %v443_v28, 0.0 }
  0xf4   : > { %v560_v37 = vmax.f32 %v454_v31, 0.0  ;;  %v515_v42 = vadd.f32 %v1603_v39, %v1896_v0  ;;  %v506_v43 = vpop.f32.mrb[5].mxu1 }
  0xf5   : > { %v558_v41 = vmax.f32 %v446_v34, 0.0  ;;  %v507_v45 = vadd.f32 %v1896_v0, %v506_v43  ;;  %v1604_v46 = vpop.f32.mrb[6].mxu1 }
  0xf6   : > { %v605_v44 = vpack.c.bf16 %v560_v37, %v559_v36  ;;  %v575_v49 = vmax.f32 %v515_v42, 0.0  ;;  %v518_v50 = vadd.f32 %v1604_v46, %v1896_v0  ;;  %v509_v51 = vpop.f32.mrb[7].mxu1 }
  0xf7   : > { %v604_v47 = vpack.c.bf16 %v558_v41, %v557_v40  ;;  %v1591_v48 = vpop.f32.mrb[8].mxu0  ;;  %v573_v54 = vmax.f32 %v507_v45, 0.0  ;;  %v510_v55 = vadd.f32 %v1896_v0, %v509_v51 }
  0xf8   : > { %v467_v52 = vadd.f32 %v1591_v48, %v1896_v0  ;;  %v458_v53 = vpop.f32.mrb[9].mxu0  ;;  %v576_v58 = vmax.f32 %v518_v50, 0.0 }
  0xf9   : > { %v459_v56 = vadd.f32 %v1896_v0, %v458_v53  ;;  %v1592_v57 = vpop.f32.mrb[10].mxu0  ;;  %1633 = vmatprep.mubr.bf16.mxu1 %v604_v47  ;;  %v574_v61 = vmax.f32 %v510_v55, 0.0 }
  0xfa   : > { %v470_v59 = vadd.f32 %v1592_v57, %v1896_v0  ;;  %v461_v60 = vpop.f32.mrb[11].mxu0  ;;  %1634 = vmatmul.mubr.bf16.gmra.mrb[20].mxu1 %v605_v44  ;;  %v613_v63 = vpack.c.bf16 %v576_v58, %v575_v49  ;;  %v563_v1 = vmax.f32 %v467_v52, 0.0 }
  0xfb   : > { %v462_v62 = vadd.f32 %v1896_v0, %v461_v60  ;;  %v612_v3 = vpack.c.bf16 %v574_v61, %v573_v54  ;;  %v1607_v4 = vpop.f32.mrb[8].mxu1  ;;  %v561_v5 = vmax.f32 %v459_v56, 0.0 }
  0xfc   : > { %v564_v2 = vmax.f32 %v470_v59, 0.0  ;;  %v531_v7 = vadd.f32 %v1607_v4, %v1896_v0  ;;  %v522_v8 = vpop.f32.mrb[9].mxu1 }
  0xfd   : > { %v562_v6 = vmax.f32 %v462_v62, 0.0  ;;  %v523_v10 = vadd.f32 %v1896_v0, %v522_v8  ;;  %v1608_v11 = vpop.f32.mrb[10].mxu1 }
  0xfe   : > { %v607_v9 = vpack.c.bf16 %v564_v2, %v563_v1  ;;  %v579_v14 = vmax.f32 %v531_v7, 0.0  ;;  %v534_v15 = vadd.f32 %v1608_v11, %v1896_v0  ;;  %v525_v16 = vpop.f32.mrb[11].mxu1 }
  0xff   : > { %v606_v12 = vpack.c.bf16 %v562_v6, %v561_v5  ;;  %v1595_v13 = vpop.f32.mrb[12].mxu0  ;;  %v577_v19 = vmax.f32 %v523_v10, 0.0  ;;  %v526_v20 = vadd.f32 %v1896_v0, %v525_v16 }
 0x100   : > { %v483_v17 = vadd.f32 %v1595_v13, %v1896_v0  ;;  %v474_v18 = vpop.f32.mrb[13].mxu0  ;;  %v580_v23 = vmax.f32 %v534_v15, 0.0 }
 0x101   : > { %v475_v21 = vadd.f32 %v1896_v0, %v474_v18  ;;  %v1596_v22 = vpop.f32.mrb[14].mxu0  ;;  %1637 = vmatprep.mubr.bf16.mxu1 %v606_v12  ;;  %v578_v26 = vmax.f32 %v526_v20, 0.0 }
 0x102   : > { %v486_v24 = vadd.f32 %v1596_v22, %v1896_v0  ;;  %v477_v25 = vpop.f32.mrb[15].mxu0  ;;  %1638 = vmatmul.mubr.bf16.gmra.mrb[24].mxu1 %v607_v9  ;;  %v615_v28 = vpack.c.bf16 %v580_v23, %v579_v14  ;;  %v567_v29 = vmax.f32 %v483_v17, 0.0 }
 0x103   : > { %v478_v27 = vadd.f32 %v1896_v0, %v477_v25  ;;  %v614_v31 = vpack.c.bf16 %v578_v26, %v577_v19  ;;  %v1611_v32 = vpop.f32.mrb[12].mxu1  ;;  %v565_v33 = vmax.f32 %v475_v21, 0.0 }
 0x104   : > { %v568_v30 = vmax.f32 %v486_v24, 0.0  ;;  %v547_v36 = vadd.f32 %v1611_v32, %v1896_v0  ;;  %v538_v37 = vpop.f32.mrb[13].mxu1 }
 0x105   : > { %v566_v34 = vmax.f32 %v478_v27, 0.0  ;;  %v539_v40 = vadd.f32 %v1896_v0, %v538_v37  ;;  %v1612_v41 = vpop.f32.mrb[14].mxu1 }
 0x106   : > { %v609_v39 = vpack.c.bf16 %v568_v30, %v567_v29  ;;  %v583_v43 = vmax.f32 %v547_v36, 0.0  ;;  %v550_v44 = vadd.f32 %v1612_v41, %v1896_v0  ;;  %v541_v45 = vpop.f32.mrb[15].mxu1 }
 0x107   : > { %v608_v42 = vpack.c.bf16 %v566_v34, %v565_v33  ;;  %v581_v46 = vmax.f32 %v539_v40, 0.0  ;;  %v542_v47 = vadd.f32 %v1896_v0, %v541_v45  ;;  %v1735_v0 = vld [vmem:[%s2072_s5 + $0x30] sm:$0xff]  }
 0x108   : > { %v584_v48 = vmax.f32 %v550_v44, 0.0  ;;  %1673 = vmatprep.subr.bf16.mxu0 %v1735_v0 }
 0x109   : > { %1641 = vmatprep.mubr.bf16.mxu1 %v608_v42  ;;  %v582_v49 = vmax.f32 %v542_v47, 0.0  ;;  %1674 = vmatpush3.bf16.msra.mxu0 %v1735_v0 }
 0x10a   : > { %1642 = vmatmul.mubr.bf16.gmra.mrb[28].mxu1 %v609_v39  ;;  %v617_v50 = vpack.c.bf16 %v584_v48, %v583_v43 }
 0x10b   : > { %1645 = vmatprep.mubr.bf16.mxu1 %v1912_v38  ;;  %v616_v51 = vpack.c.bf16 %v582_v49, %v581_v46  ;;  %v1736_v38 = vld [vmem:[%s2072_s5 + $0x38] sm:$0xff]  }
 0x10c   : > { %1675 = vmatprep.subr.bf16.mxu0 %v1736_v38 }
 0x10d   : > { %1676 = vmatpush3.bf16.msra.mxu0 %v1736_v38 }
 0x112   : > { %1646 = vmatmul.mubr.bf16.gmra.mrb[32].mxu1 %v1910_v35  ;;  %v1945_v35 = vld [vmem:[%s2071_s4] ss:$0 sm:$0xff] }
 0x113   : > { %1649 = vmatprep.mubr.bf16.mxu1 %v612_v3 }
 0x11a   : > { %1650 = vmatmul.mubr.bf16.gmra.mrb[36].mxu1 %v613_v63 }
 0x11b   : > { %1653 = vmatprep.mubr.bf16.mxu1 %v614_v31 }
 0x122   : > { %1654 = vmatmul.mubr.bf16.gmra.mrb[40].mxu1 %v615_v28 }
 0x123   : > { %1657 = vmatprep.mubr.bf16.mxu1 %v616_v51 }
 0x12a   : > { %1658 = vmatmul.mubr.bf16.gmra.mrb[44].mxu1 %v617_v50 }
 0x1c5   : > { %v1631_v52 = vpop.f32.mrb[16].mxu1 }
 0x1c6   : > { %v715_v53 = vadd.f32 %v1631_v52, %v1945_v35  ;;  %v706_v54 = vpop.f32.mrb[17].mxu1 }
 0x1c7   : > { %v707_v55 = vadd.f32 %v1945_v35, %v706_v54  ;;  %v1632_v56 = vpop.f32.mrb[18].mxu1 }
 0x1c8   : > { %v718_v57 = vadd.f32 %v1632_v56, %v1945_v35  ;;  %v709_v58 = vpop.f32.mrb[19].mxu1  ;;  %v835_v60 = vmax.f32 %v715_v53, 0.0 }
 0x1c9   : > { %v710_v59 = vadd.f32 %v1945_v35, %v709_v58  ;;  %v833_v62 = vmax.f32 %v707_v55, 0.0 }
 0x1ca   : > { %v836_v61 = vmax.f32 %v718_v57, 0.0 }
 0x1cb   : > { %v834_v63 = vmax.f32 %v710_v59, 0.0 }
 0x1cc   : > { %v883_v1 = vpack.c.bf16 %v836_v61, %v835_v60 }
 0x1cd   : > { %v882_v2 = vpack.c.bf16 %v834_v63, %v833_v62  ;;  %v1635_v3 = vpop.f32.mrb[20].mxu1 }
 0x1ce   : > { %v731_v4 = vadd.f32 %v1635_v3, %v1945_v35  ;;  %v722_v5 = vpop.f32.mrb[21].mxu1 }
 0x1cf   : > { %v723_v6 = vadd.f32 %v1945_v35, %v722_v5  ;;  %v1636_v7 = vpop.f32.mrb[22].mxu1  ;;  %1677 = vmatprep.mubr.bf16.mxu0 %v882_v2 }
 0x1d0   : > { %v734_v8 = vadd.f32 %v1636_v7, %v1945_v35  ;;  %v725_v9 = vpop.f32.mrb[23].mxu1  ;;  %1678 = vmatmul.mubr.bf16.vlgmr.msra.gmra.mrb[16].mxu0 %v883_v1  ;;  %v839_v11 = vmax.f32 %v731_v4, 0.0 }
 0x1d1   : > { %v726_v10 = vadd.f32 %v1945_v35, %v725_v9  ;;  %v837_v13 = vmax.f32 %v723_v6, 0.0 }
 0x1d2   : > { %v840_v12 = vmax.f32 %v734_v8, 0.0 }
 0x1d3   : > { %v838_v14 = vmax.f32 %v726_v10, 0.0 }
 0x1d4   : > { %v885_v15 = vpack.c.bf16 %v840_v12, %v839_v11 }
 0x1d5   : > { %v884_v16 = vpack.c.bf16 %v838_v14, %v837_v13  ;;  %v1639_v17 = vpop.f32.mrb[24].mxu1 }
 0x1d6   : > { %v747_v18 = vadd.f32 %v1639_v17, %v1945_v35  ;;  %v738_v19 = vpop.f32.mrb[25].mxu1 }
 0x1d7   : > { %v739_v20 = vadd.f32 %v1945_v35, %v738_v19  ;;  %v1640_v21 = vpop.f32.mrb[26].mxu1  ;;  %1681 = vmatprep.mubr.bf16.mxu0 %v884_v16 }
 0x1d8   : > { %v750_v22 = vadd.f32 %v1640_v21, %v1945_v35  ;;  %v741_v23 = vpop.f32.mrb[27].mxu1  ;;  %1682 = vmatmul.mubr.bf16.gmra.mrb[20].mxu0 %v885_v15  ;;  %v843_v25 = vmax.f32 %v747_v18, 0.0 }
 0x1d9   : > { %v742_v24 = vadd.f32 %v1945_v35, %v741_v23  ;;  %v841_v27 = vmax.f32 %v739_v20, 0.0 }
 0x1da   : > { %v844_v26 = vmax.f32 %v750_v22, 0.0 }
 0x1db   : > { %v842_v28 = vmax.f32 %v742_v24, 0.0 }
 0x1dc   : > { %v887_v29 = vpack.c.bf16 %v844_v26, %v843_v25 }
 0x1dd   : > { %v886_v30 = vpack.c.bf16 %v842_v28, %v841_v27  ;;  %v1643_v31 = vpop.f32.mrb[28].mxu1 }
 0x1de   : > { %v763_v32 = vadd.f32 %v1643_v31, %v1945_v35  ;;  %v754_v33 = vpop.f32.mrb[29].mxu1 }
 0x1df   : > { %v755_v34 = vadd.f32 %v1945_v35, %v754_v33  ;;  %v1644_v36 = vpop.f32.mrb[30].mxu1  ;;  %1685 = vmatprep.mubr.bf16.mxu0 %v886_v30 }
 0x1e0   : > { %v766_v37 = vadd.f32 %v1644_v36, %v1945_v35  ;;  %v757_v39 = vpop.f32.mrb[31].mxu1  ;;  %1686 = vmatmul.mubr.bf16.gmra.mrb[24].mxu0 %v887_v29  ;;  %v847_v41 = vmax.f32 %v763_v32, 0.0 }
 0x1e1   : > { %v758_v40 = vadd.f32 %v1945_v35, %v757_v39  ;;  %v845_v43 = vmax.f32 %v755_v34, 0.0 }
 0x1e2   : > { %v848_v42 = vmax.f32 %v766_v37, 0.0 }
 0x1e3   : > { %v846_v44 = vmax.f32 %v758_v40, 0.0  ;;  %v1982_v40 = vld [vmem:[%s2073_s6] ss:$0 sm:$0xff] }
 0x1e4   : > { %v889_v45 = vpack.c.bf16 %v848_v42, %v847_v41 }
 0x1e5   : > { %v888_v46 = vpack.c.bf16 %v846_v44, %v845_v43  ;;  %v1647_v47 = vpop.f32.mrb[32].mxu1 }
 0x1e6   : > { %v779_v48 = vadd.f32 %v1647_v47, %v1945_v35  ;;  %v770_v49 = vpop.f32.mrb[33].mxu1 }
 0x1e7   : > { %v771_v50 = vadd.f32 %v1945_v35, %v770_v49  ;;  %v1648_v51 = vpop.f32.mrb[34].mxu1  ;;  %1689 = vmatprep.mubr.bf16.mxu0 %v888_v46 }
 0x1e8   : > { %v782_v0 = vadd.f32 %v1648_v51, %v1945_v35  ;;  %v773_v38 = vpop.f32.mrb[35].mxu1  ;;  %1690 = vmatmul.mubr.bf16.gmra.mrb[28].mxu0 %v889_v45  ;;  %v851_v53 = vmax.f32 %v779_v48, 0.0 }
 0x1e9   : > { %v774_v52 = vadd.f32 %v1945_v35, %v773_v38  ;;  %v849_v55 = vmax.f32 %v771_v50, 0.0 }
 0x1ea   : > { %v852_v54 = vmax.f32 %v782_v0, 0.0 }
 0x1eb   : > { %v850_v56 = vmax.f32 %v774_v52, 0.0 }
 0x1ec   : > { %v891_v57 = vpack.c.bf16 %v852_v54, %v851_v53 }
 0x1ed   : > { %v890_v58 = vpack.c.bf16 %v850_v56, %v849_v55  ;;  %v1651_v59 = vpop.f32.mrb[36].mxu1 }
 0x1ee   : > { %v795_v60 = vadd.f32 %v1651_v59, %v1945_v35  ;;  %v786_v61 = vpop.f32.mrb[37].mxu1 }
 0x1ef   : > { %v787_v62 = vadd.f32 %v1945_v35, %v786_v61  ;;  %v1652_v63 = vpop.f32.mrb[38].mxu1  ;;  %1693 = vmatprep.mubr.bf16.mxu0 %v890_v58 }
 0x1f0   : > { %v798_v1 = vadd.f32 %v1652_v63, %v1945_v35  ;;  %v789_v2 = vpop.f32.mrb[39].mxu1  ;;  %1694 = vmatmul.mubr.bf16.gmra.mrb[32].mxu0 %v891_v57  ;;  %v855_v4 = vmax.f32 %v795_v60, 0.0 }
 0x1f1   : > { %v790_v3 = vadd.f32 %v1945_v35, %v789_v2  ;;  %v853_v6 = vmax.f32 %v787_v62, 0.0 }
 0x1f2   : > { %v856_v5 = vmax.f32 %v798_v1, 0.0 }
 0x1f3   : > { %v854_v7 = vmax.f32 %v790_v3, 0.0 }
 0x1f4   : > { %v893_v8 = vpack.c.bf16 %v856_v5, %v855_v4 }
 0x1f5   : > { %v892_v9 = vpack.c.bf16 %v854_v7, %v853_v6  ;;  %v1655_v10 = vpop.f32.mrb[40].mxu1 }
 0x1f6   : > { %v811_v11 = vadd.f32 %v1655_v10, %v1945_v35  ;;  %v802_v12 = vpop.f32.mrb[41].mxu1 }
 0x1f7   : > { %v803_v13 = vadd.f32 %v1945_v35, %v802_v12  ;;  %v1656_v14 = vpop.f32.mrb[42].mxu1  ;;  %1697 = vmatprep.mubr.bf16.mxu0 %v892_v9 }
 0x1f8   : > { %v814_v15 = vadd.f32 %v1656_v14, %v1945_v35  ;;  %v805_v16 = vpop.f32.mrb[43].mxu1  ;;  %1698 = vmatmul.mubr.bf16.gmra.mrb[36].mxu0 %v893_v8  ;;  %v859_v18 = vmax.f32 %v811_v11, 0.0 }
 0x1f9   : > { %v806_v17 = vadd.f32 %v1945_v35, %v805_v16  ;;  %v857_v20 = vmax.f32 %v803_v13, 0.0 }
 0x1fa   : > { %v860_v19 = vmax.f32 %v814_v15, 0.0 }
 0x1fb   : > { %v858_v21 = vmax.f32 %v806_v17, 0.0 }
 0x1fc   : > { %v895_v22 = vpack.c.bf16 %v860_v19, %v859_v18 }
 0x1fd   : > { %v894_v23 = vpack.c.bf16 %v858_v21, %v857_v20  ;;  %v1659_v24 = vpop.f32.mrb[44].mxu1 }
 0x1fe   : > { %v827_v25 = vadd.f32 %v1659_v24, %v1945_v35  ;;  %v818_v26 = vpop.f32.mrb[45].mxu1 }
 0x1ff   : > { %v819_v27 = vadd.f32 %v1945_v35, %v818_v26  ;;  %v1660_v28 = vpop.f32.mrb[46].mxu1  ;;  %1701 = vmatprep.mubr.bf16.mxu0 %v894_v23 }
 0x200   : > { %v830_v29 = vadd.f32 %v1660_v28, %v1945_v35  ;;  %v821_v30 = vpop.f32.mrb[47].mxu1  ;;  %1702 = vmatmul.mubr.bf16.gmra.mrb[40].mxu0 %v895_v22  ;;  %v863_v32 = vmax.f32 %v827_v25, 0.0 }
 0x201   : > { %v822_v31 = vadd.f32 %v1945_v35, %v821_v30  ;;  %v861_v34 = vmax.f32 %v819_v27, 0.0 }
 0x202   : > { %v864_v33 = vmax.f32 %v830_v29, 0.0 }
 0x203   : > { %v862_v36 = vmax.f32 %v822_v31, 0.0 }
 0x204   : > { %v897_v37 = vpack.c.bf16 %v864_v33, %v863_v32 }
 0x205   : > { %v896_v39 = vpack.c.bf16 %v862_v36, %v861_v34 }
 0x207   : > { %1705 = vmatprep.mubr.bf16.mxu0 %v896_v39 }
 0x208   : > { %1706 = vmatmul.mubr.bf16.gmra.mrb[44].mxu0 %v897_v37 }
 0x2a3   : > { %v1679_v41 = vpop.f32.mrb[16].mxu0 }
 0x2a4   : > { %v995_v42 = vadd.f32 %v1679_v41, %v1982_v40  ;;  %v986_v43 = vpop.f32.mrb[17].mxu0 }
 0x2a5   : > { %v987_v44 = vadd.f32 %v1982_v40, %v986_v43  ;;  %v1680_v35 = vpop.f32.mrb[18].mxu0 }
 0x2a6   : > { %v1115_v45 = vmax.f32 %v995_v42, 0.0  ;;  %v998_v46 = vadd.f32 %v1680_v35, %v1982_v40  ;;  %v989_v47 = vpop.f32.mrb[19].mxu0 }
 0x2a7   : > { %v1113_v48 = vmax.f32 %v987_v44, 0.0  ;;  %v990_v49 = vadd.f32 %v1982_v40, %v989_v47 }
 0x2a8   : > { %v1157_v50 = vrot.slane %v1115_v45, 4  ;;  %v1116_v51 = vmax.f32 %v998_v46, 0.0 }
 0x2a9   : > { %v1145_v0 = vrot.slane %v1113_v48, 4  ;;  %v1114_v38 = vmax.f32 %v990_v49, 0.0 }
 0x2aa   : > { %v1158_v52 = vmax.f32 %v1115_v45, %v1157_v50  ;;  %v1163_v53 = vrot.slane %v1116_v51, 4 }
 0x2ab   : > { %v1146_v54 = vmax.f32 %v1113_v48, %v1145_v0  ;;  %v1151_v55 = vrot.slane %v1114_v38, 4  ;;  %v1683_v56 = vpop.f32.mrb[20].mxu0 }
 0x2ac   : > { %v1159_v57 = vrot.slane %v1158_v52, 2  ;;  %v1164_v58 = vmax.f32 %v1116_v51, %v1163_v53  ;;  %v1011_v59 = vadd.f32 %v1683_v56, %v1982_v40  ;;  %v1002_v60 = vpop.f32.mrb[21].mxu0 }
 0x2ad   : > { %v1147_v61 = vrot.slane %v1146_v54, 2  ;;  %v1152_v62 = vmax.f32 %v1114_v38, %v1151_v55  ;;  %v1003_v63 = vadd.f32 %v1982_v40, %v1002_v60  ;;  %v1684_v1 = vpop.f32.mrb[22].mxu0 }
 0x2ae   : > { %v1160_v2 = vmax.f32 %v1158_v52, %v1159_v57  ;;  %v1165_v3 = vrot.slane %v1164_v58, 2  ;;  %v1119_v4 = vmax.f32 %v1011_v59, 0.0  ;;  %v1014_v5 = vadd.f32 %v1684_v1, %v1982_v40  ;;  %v1005_v6 = vpop.f32.mrb[23].mxu0 }
 0x2af   : > { %v1148_v7 = vmax.f32 %v1146_v54, %v1147_v61  ;;  %v1153_v8 = vrot.slane %v1152_v62, 2  ;;  %v1117_v9 = vmax.f32 %v1003_v63, 0.0  ;;  %v1006_v10 = vadd.f32 %v1982_v40, %v1005_v6 }
 0x2b0   : > { %v1161_v11 = vrot.slane %v1160_v2, 1  ;;  %v1166_v12 = vmax.f32 %v1164_v58, %v1165_v3  ;;  %v1181_v13 = vrot.slane %v1119_v4, 4  ;;  %v1120_v14 = vmax.f32 %v1014_v5, 0.0 }
 0x2b1   : > { %v1149_v15 = vrot.slane %v1148_v7, 1  ;;  %v1154_v16 = vmax.f32 %v1152_v62, %v1153_v8  ;;  %v1169_v17 = vrot.slane %v1117_v9, 4  ;;  %v1118_v18 = vmax.f32 %v1006_v10, 0.0 }
 0x2b2   : > { %v1162_v19 = vmax.f32 %v1160_v2, %v1161_v11  ;;  %v1167_v20 = vrot.slane %v1166_v12, 1  ;;  %v1182_v21 = vmax.f32 %v1119_v4, %v1181_v13  ;;  %v1187_v22 = vrot.slane %v1120_v14, 4 }
 0x2b3   : > { %v1150_v23 = vmax.f32 %v1148_v7, %v1149_v15  ;;  %v1155_v24 = vrot.slane %v1154_v16, 1  ;;  %v1170_v25 = vmax.f32 %v1117_v9, %v1169_v17  ;;  %v1175_v26 = vrot.slane %v1118_v18, 4  ;;  %v1687_v27 = vpop.f32.mrb[24].mxu0 }
 0x2b4   : > { %v1168_v28 = vmax.f32 %v1166_v12, %v1167_v20  ;;  %v1183_v29 = vrot.slane %v1182_v21, 2  ;;  %v1188_v30 = vmax.f32 %v1120_v14, %v1187_v22  ;;  %v1027_v31 = vadd.f32 %v1687_v27, %v1982_v40  ;;  %v1018_v32 = vpop.f32.mrb[25].mxu0 }
 0x2b5   : > { %v1156_v33 = vmax.f32 %v1154_v16, %v1155_v24  ;;  %v1171_v34 = vrot.slane %v1170_v25, 2  ;;  %v1176_v36 = vmax.f32 %v1118_v18, %v1175_v26  ;;  %v1019_v37 = vadd.f32 %v1982_v40, %v1018_v32  ;;  %v1688_v39 = vpop.f32.mrb[26].mxu0 }
 0x2b6   : > { %v1184_v41 = vmax.f32 %v1182_v21, %v1183_v29  ;;  %v1189_v42 = vrot.slane %v1188_v30, 2  ;;  %v1123_v43 = vmax.f32 %v1027_v31, 0.0  ;;  %v1030_v44 = vadd.f32 %v1688_v39, %v1982_v40  ;;  %v1021_v35 = vpop.f32.mrb[27].mxu0 }
 0x2b7   : > { %v1370_v45 = vsel %vm1369_vm2, %v1156_v33, %v1150_v23  ;;  %v1172_v46 = vmax.f32 %v1170_v25, %v1171_v34  ;;  %v1177_v47 = vrot.slane %v1176_v36, 2  ;;  %v1121_v48 = vmax.f32 %v1019_v37, 0.0 }
 0x2b8   : > { %v1372_v49 = vsel %vm1371_vm3, %v1162_v19, %v1370_v45  ;;  %v1185_v50 = vrot.slane %v1184_v41, 1  ;;  %v1190_v51 = vmax.f32 %v1188_v30, %v1189_v42  ;;  %v1205_v0 = vrot.slane %v1123_v43, 4 }
 0x2b9   : > { %v1173_v38 = vrot.slane %v1172_v46, 1  ;;  %v1374_v52 = vsel %vm1373_vm4, %v1168_v28, %v1372_v49  ;;  %v1178_v53 = vmax.f32 %v1176_v36, %v1177_v47  ;;  %v1193_v54 = vrot.slane %v1121_v48, 4 }
 0x2ba   : > { %v1186_v55 = vmax.f32 %v1184_v41, %v1185_v50  ;;  %v1191_v56 = vrot.slane %v1190_v51, 1  ;;  %v1206_v57 = vmax.f32 %v1123_v43, %v1205_v0  ;;  %v1124_v58 = vmax.f32 %v1030_v44, 0.0 }
 0x2bb   : > { %v1174_v59 = vmax.f32 %v1172_v46, %v1173_v38  ;;  %v1179_v60 = vrot.slane %v1178_v53, 1  ;;  %v1194_v61 = vmax.f32 %v1121_v48, %v1193_v54  ;;  %v1022_v62 = vadd.f32 %v1982_v40, %v1021_v35  ;;  %v1691_v63 = vpop.f32.mrb[28].mxu0 }
 0x2bc   : > { %v1192_v1 = vmax.f32 %v1190_v51, %v1191_v56  ;;  %v1207_v2 = vrot.slane %v1206_v57, 2  ;;  %v1211_v3 = vrot.slane %v1124_v58, 4  ;;  %v1043_v4 = vadd.f32 %v1691_v63, %v1982_v40  ;;  %v1034_v5 = vpop.f32.mrb[29].mxu0 }
 0x2bd   : > { %v1376_v6 = vsel %vm1375_vm5, %v1174_v59, %v1374_v52  ;;  %v1180_v7 = vmax.f32 %v1178_v53, %v1179_v60  ;;  %v1195_v8 = vrot.slane %v1194_v61, 2  ;;  %v1122_v9 = vmax.f32 %v1022_v62, 0.0  ;;  %v1692_v10 = vpop.f32.mrb[30].mxu0 }
 0x2be   : > { %v1208_v11 = vmax.f32 %v1206_v57, %v1207_v2  ;;  %v1212_v12 = vmax.f32 %v1124_v58, %v1211_v3  ;;  %v1127_v13 = vmax.f32 %v1043_v4, 0.0  ;;  %v1035_v14 = vadd.f32 %v1982_v40, %v1034_v5  ;;  %v1037_v15 = vpop.f32.mrb[31].mxu0 }
 0x2bf   : > { %v1378_v16 = vsel %vm1377_vm6, %v1180_v7, %v1376_v6  ;;  %v1196_v17 = vmax.f32 %v1194_v61, %v1195_v8  ;;  %v1199_v18 = vrot.slane %v1122_v9, 4  ;;  %v1046_v19 = vadd.f32 %v1692_v10, %v1982_v40 }
 0x2c0   : > { %v1380_v20 = vsel %vm1379_vm7, %v1186_v55, %v1378_v16  ;;  %v1209_v21 = vrot.slane %v1208_v11, 1  ;;  %v1213_v22 = vrot.slane %v1212_v12, 2  ;;  %v1229_v23 = vrot.slane %v1127_v13, 4 }
 0x2c1   : > { %v1382_v24 = vsel %vm1381_vm8, %v1192_v1, %v1380_v20  ;;  %v1200_v25 = vmax.f32 %v1122_v9, %v1199_v18  ;;  %v1125_v26 = vmax.f32 %v1035_v14, 0.0  ;;  %v1197_v27 = vrot.slane %v1196_v17, 1 }
 0x2c2   : > { %1408 = vst [vmem:[%s2016_s9] sm:$0xff] %v1382_v24  ;;  %v1214_v28 = vmax.f32 %v1212_v12, %v1213_v22  ;;  %v1230_v29 = vmax.f32 %v1127_v13, %v1229_v23  ;;  %v1128_v30 = vmax.f32 %v1046_v19, 0.0  ;;  %v1038_v33 = vadd.f32 %v1982_v40, %v1037_v15 }
 0x2c3   : > { %v1201_v31 = vrot.slane %v1200_v25, 2  ;;  %v1217_v32 = vrot.slane %v1125_v26, 4  ;;  %v1695_v34 = vpop.f32.mrb[32].mxu0  ;;  %v1210_v36 = vmax.f32 %v1208_v11, %v1209_v21  ;;  %v1198_v47 = vmax.f32 %v1196_v17, %v1197_v27 }
 0x2c4   : > { %v1231_v37 = vrot.slane %v1230_v29, 2  ;;  %v1235_v39 = vrot.slane %v1128_v30, 4  ;;  %v1059_v41 = vadd.f32 %v1695_v34, %v1982_v40  ;;  %v1050_v42 = vpop.f32.mrb[33].mxu0  ;;  %v1126_v35 = vmax.f32 %v1038_v33, 0.0 }
 0x2c5   : > { %v1202_v43 = vmax.f32 %v1200_v25, %v1201_v31  ;;  %v1218_v44 = vmax.f32 %v1125_v26, %v1217_v32  ;;  %v1051_v45 = vadd.f32 %v1982_v40, %v1050_v42  ;;  %v1696_v46 = vpop.f32.mrb[34].mxu0  ;;  %v1215_v48 = vrot.slane %v1214_v28, 1 }
 0x2c6   : > { %v1236_v49 = vmax.f32 %v1128_v30, %v1235_v39  ;;  %v1131_v50 = vmax.f32 %v1059_v41, 0.0  ;;  %v1053_v51 = vpop.f32.mrb[35].mxu0  ;;  %v1223_v52 = vrot.slane %v1126_v35, 4  ;;  %v1232_v54 = vmax.f32 %v1230_v29, %v1231_v37 }
 0x2c7   : > { %v1203_v0 = vrot.slane %v1202_v43, 1  ;;  %v1219_v38 = vrot.slane %v1218_v44, 2  ;;  %v1129_v53 = vmax.f32 %v1051_v45, 0.0  ;;  %v1062_v57 = vadd.f32 %v1696_v46, %v1982_v40 }
 0x2c8   : > { %v1237_v55 = vrot.slane %v1236_v49, 2  ;;  %v1253_v56 = vrot.slane %v1131_v50, 4  ;;  %v1224_v60 = vmax.f32 %v1126_v35, %v1223_v52  ;;  %v1216_v62 = vmax.f32 %v1214_v28, %v1215_v48 }
 0x2c9   : > { %v1204_v58 = vmax.f32 %v1202_v43, %v1203_v0  ;;  %v1220_v59 = vmax.f32 %v1218_v44, %v1219_v38  ;;  %v1241_v61 = vrot.slane %v1129_v53, 4  ;;  %v1132_v2 = vmax.f32 %v1062_v57, 0.0 }
 0x2ca   : > { %v1238_v63 = vmax.f32 %v1236_v49, %v1237_v55  ;;  %v1254_v1 = vmax.f32 %v1131_v50, %v1253_v56  ;;  %v1225_v5 = vrot.slane %v1224_v60, 2  ;;  %v1233_v12 = vrot.slane %v1232_v54, 1 }
 0x2cb   : > { %v1383_v3 = vsel %vm1369_vm2, %v1204_v58, %v1198_v47  ;;  %v1221_v4 = vrot.slane %v1220_v59, 1  ;;  %v1242_v6 = vmax.f32 %v1129_v53, %v1241_v61  ;;  %v1699_v7 = vpop.f32.mrb[36].mxu0  ;;  %v1259_v10 = vrot.slane %v1132_v2, 4 }
 0x2cc   : > { %v1384_v8 = vsel %vm1371_vm3, %v1210_v36, %v1383_v3  ;;  %v1255_v9 = vrot.slane %v1254_v1, 2  ;;  %v1066_v11 = vpop.f32.mrb[37].mxu0  ;;  %v1226_v15 = vmax.f32 %v1224_v60, %v1225_v5  ;;  %v1239_v17 = vrot.slane %v1238_v63, 1 }
 0x2cd   : > { %v1222_v13 = vmax.f32 %v1220_v59, %v1221_v4  ;;  %v1385_v14 = vsel %vm1373_vm4, %v1216_v62, %v1384_v8  ;;  %v1700_v16 = vpop.f32.mrb[38].mxu0  ;;  %v1243_v18 = vrot.slane %v1242_v6, 2  ;;  %v1260_v19 = vmax.f32 %v1132_v2, %v1259_v10 }
 0x2ce   : > { %v1054_v20 = vadd.f32 %v1982_v40, %v1053_v51  ;;  %v1069_v21 = vpop.f32.mrb[39].mxu0  ;;  %v1227_v23 = vrot.slane %v1226_v15, 1  ;;  %v1256_v24 = vmax.f32 %v1254_v1, %v1255_v9  ;;  %v1075_v25 = vadd.f32 %v1699_v7, %v1982_v40 }
 0x2cf   : > { %v1386_v22 = vsel %vm1375_vm5, %v1222_v13, %v1385_v14  ;;  %v1261_v26 = vrot.slane %v1260_v19, 2  ;;  %v1067_v28 = vadd.f32 %v1982_v40, %v1066_v11  ;;  %v1234_v29 = vmax.f32 %v1232_v54, %v1233_v12 }
 0x2d0   : > { %v1130_v27 = vmax.f32 %v1054_v20, 0.0  ;;  %v1228_v30 = vmax.f32 %v1226_v15, %v1227_v23  ;;  %v1135_v31 = vmax.f32 %v1075_v25, 0.0  ;;  %v1078_v32 = vadd.f32 %v1700_v16, %v1982_v40 }
 0x2d1   : > { %v1240_v33 = vmax.f32 %v1238_v63, %v1239_v17  ;;  %v1244_v34 = vmax.f32 %v1242_v6, %v1243_v18  ;;  %v1133_v37 = vmax.f32 %v1067_v28, 0.0  ;;  %v1257_v41 = vrot.slane %v1256_v24, 1 }
 0x2d2   : > { %v1247_v36 = vrot.slane %v1130_v27, 4  ;;  %v1387_v39 = vsel %vm1377_vm6, %v1228_v30, %v1386_v22  ;;  %v1277_v42 = vrot.slane %v1135_v31, 4  ;;  %v1136_v43 = vmax.f32 %v1078_v32, 0.0 }
 0x2d3   : > { %v1703_v44 = vpop.f32.mrb[40].mxu0  ;;  %v1388_v35 = vsel %vm1379_vm7, %v1234_v29, %v1387_v39  ;;  %v1262_v45 = vmax.f32 %v1260_v19, %v1261_v26  ;;  %v1265_v47 = vrot.slane %v1133_v37, 4  ;;  %v1070_v0 = vadd.f32 %v1982_v40, %v1069_v21 }
 0x2d4   : > { %v1248_v46 = vmax.f32 %v1130_v27, %v1247_v36  ;;  %v1082_v48 = vpop.f32.mrb[41].mxu0  ;;  %v1389_v49 = vsel %vm1381_vm8, %v1240_v33, %v1388_v35  ;;  %v1278_v50 = vmax.f32 %v1135_v31, %v1277_v42  ;;  %v1283_v51 = vrot.slane %v1136_v43, 4 }
 0x2d5   : > { %v1704_v38 = vpop.f32.mrb[42].mxu0  ;;  %1409 = vst [vmem:[%s2016_s9 + $0x8] sm:$0xff] %v1389_v49  ;;  %v1245_v52 = vrot.slane %v1244_v34, 1  ;;  %v1266_v54 = vmax.f32 %v1133_v37, %v1265_v47  ;;  %v1091_v55 = vadd.f32 %v1703_v44, %v1982_v40  ;;  %v1134_v59 = vmax.f32 %v1070_v0, 0.0 }
 0x2d6   : > { %v1249_v53 = vrot.slane %v1248_v46, 2  ;;  %v1085_v56 = vpop.f32.mrb[43].mxu0  ;;  %v1279_v57 = vrot.slane %v1278_v50, 2  ;;  %v1284_v58 = vmax.f32 %v1136_v43, %v1283_v51  ;;  %v1083_v60 = vadd.f32 %v1982_v40, %v1082_v48 }
 0x2d7   : > { %v1267_v62 = vrot.slane %v1266_v54, 2  ;;  %v1139_v63 = vmax.f32 %v1091_v55, 0.0  ;;  %v1094_v1 = vadd.f32 %v1704_v38, %v1982_v40  ;;  %v1263_v2 = vrot.slane %v1262_v45, 1 }
 0x2d8   : > { %v1250_v61 = vmax.f32 %v1248_v46, %v1249_v53  ;;  %v1285_v3 = vrot.slane %v1284_v58, 2  ;;  %v1271_v4 = vrot.slane %v1134_v59, 4  ;;  %v1137_v5 = vmax.f32 %v1083_v60, 0.0 }
 0x2d9   : > { %v1268_v7 = vmax.f32 %v1266_v54, %v1267_v62  ;;  %v1301_v8 = vrot.slane %v1139_v63, 4  ;;  %v1140_v9 = vmax.f32 %v1094_v1, 0.0  ;;  %v1246_v10 = vmax.f32 %v1244_v34, %v1245_v52 }
 0x2da   : > { %v1251_v6 = vrot.slane %v1250_v61, 1  ;;  %v1280_v11 = vmax.f32 %v1278_v50, %v1279_v57  ;;  %v1272_v12 = vmax.f32 %v1134_v59, %v1271_v4  ;;  %v1289_v13 = vrot.slane %v1137_v5, 4 }
 0x2db   : > { %v1707_v14 = vpop.f32.mrb[44].mxu0  ;;  %v1269_v16 = vrot.slane %v1268_v7, 1  ;;  %v1286_v17 = vmax.f32 %v1284_v58, %v1285_v3  ;;  %v1307_v18 = vrot.slane %v1140_v9, 4  ;;  %v1258_v20 = vmax.f32 %v1256_v24, %v1257_v41 }
 0x2dc   : > { %v1252_v15 = vmax.f32 %v1250_v61, %v1251_v6  ;;  %v1098_v19 = vpop.f32.mrb[45].mxu0  ;;  %v1273_v21 = vrot.slane %v1272_v12, 2  ;;  %v1302_v22 = vmax.f32 %v1139_v63, %v1301_v8  ;;  %v1264_v25 = vmax.f32 %v1262_v45, %v1263_v2 }
 0x2dd   : > { %v1708_v23 = vpop.f32.mrb[46].mxu0  ;;  %v1270_v27 = vmax.f32 %v1268_v7, %v1269_v16  ;;  %v1290_v28 = vmax.f32 %v1137_v5, %v1289_v13  ;;  %v1281_v31 = vrot.slane %v1280_v11, 1  ;;  %v1287_v34 = vrot.slane %v1286_v17, 1 }
 0x2de   : > { %v1390_v26 = vsel %vm1369_vm2, %v1252_v15, %v1246_v10  ;;  %v1101_v29 = vpop.f32.mrb[47].mxu0  ;;  %v1274_v32 = vmax.f32 %v1272_v12, %v1273_v21  ;;  %v1308_v36 = vmax.f32 %v1140_v9, %v1307_v18  ;;  %v1086_v37 = vadd.f32 %v1982_v40, %v1085_v56 }
 0x2df   : > { %v1391_v30 = vsel %vm1371_vm3, %v1258_v20, %v1390_v26  ;;  %v1303_v41 = vrot.slane %v1302_v22, 2  ;;  %v1107_v42 = vadd.f32 %v1707_v14, %v1982_v40  ;;  %v1291_v43 = vrot.slane %v1290_v28, 2 }
 0x2e0   : > { %v1392_v33 = vsel %vm1373_vm4, %v1264_v25, %v1391_v30  ;;  %v1275_v39 = vrot.slane %v1274_v32, 1  ;;  %v1138_v44 = vmax.f32 %v1086_v37, 0.0  ;;  %v1099_v35 = vadd.f32 %v1982_v40, %v1098_v19 }
 0x2e1   : > { %v1393_v24 = vsel %vm1375_vm5, %v1270_v27, %v1392_v33  ;;  %v1282_v45 = vmax.f32 %v1280_v11, %v1281_v31  ;;  %v1143_v47 = vmax.f32 %v1107_v42, 0.0  ;;  %v1110_v48 = vadd.f32 %v1708_v23, %v1982_v40 }
 0x2e2   : > { %v1276_v46 = vmax.f32 %v1274_v32, %v1275_v39  ;;  %v1288_v49 = vmax.f32 %v1286_v17, %v1287_v34  ;;  %v1309_v50 = vrot.slane %v1308_v36, 2  ;;  %v1295_v51 = vrot.slane %v1138_v44, 4 }
 0x2e3   : > { %v1141_v0 = vmax.f32 %v1099_v35, 0.0  ;;  %v1304_v52 = vmax.f32 %v1302_v22, %v1303_v41  ;;  %v1325_v53 = vrot.slane %v1143_v47, 4  ;;  %v1144_v54 = vmax.f32 %v1110_v48, 0.0 }
 0x2e4   : > { %v1394_v38 = vsel %vm1377_vm6, %v1276_v46, %v1393_v24  ;;  %v1292_v56 = vmax.f32 %v1290_v28, %v1291_v43  ;;  %v1296_v57 = vmax.f32 %v1138_v44, %v1295_v51  ;;  %v1102_v62 = vadd.f32 %v1982_v40, %v1101_v29 }
 0x2e5   : > { %v1395_v55 = vsel %vm1379_vm7, %v1282_v45, %v1394_v38  ;;  %v1313_v58 = vrot.slane %v1141_v0, 4  ;;  %v1326_v60 = vmax.f32 %v1143_v47, %v1325_v53  ;;  %v1331_v61 = vrot.slane %v1144_v54, 4 }
 0x2e6   : > { %v1396_v59 = vsel %vm1381_vm8, %v1288_v49, %v1395_v55  ;;  %v1310_v63 = vmax.f32 %v1308_v36, %v1309_v50  ;;  %v1297_v1 = vrot.slane %v1296_v57, 2  ;;  %v1142_v4 = vmax.f32 %v1102_v62, 0.0 }
 0x2e7   : > { %1410 = vst [vmem:[%s2016_s9 + $0x10] sm:$0xff] %v1396_v59  ;;  %v1314_v2 = vmax.f32 %v1141_v0, %v1313_v58  ;;  %v1332_v3 = vmax.f32 %v1144_v54, %v1331_v61  ;;  %v1293_v5 = vrot.slane %v1292_v56, 1  ;;  %v1327_v7 = vrot.slane %v1326_v60, 2 }
 0x2e8   : > { %v1298_v6 = vmax.f32 %v1296_v57, %v1297_v1  ;;  %v1305_v9 = vrot.slane %v1304_v52, 1  ;;  %v1319_v11 = vrot.slane %v1142_v4, 4  ;;  %v1311_v12 = vrot.slane %v1310_v63, 1 }
 0x2e9   : > { %v1315_v8 = vrot.slane %v1314_v2, 2  ;;  %v1333_v10 = vrot.slane %v1332_v3, 2  ;;  %v1294_v16 = vmax.f32 %v1292_v56, %v1293_v5  ;;  %v1328_v40 = vmax.f32 %v1326_v60, %v1327_v7 }
 0x2ea   : > { %v1299_v13 = vrot.slane %v1298_v6, 1  ;;  %v1320_v15 = vmax.f32 %v1142_v4, %v1319_v11  ;;  %v1306_v19 = vmax.f32 %v1304_v52, %v1305_v9  ;;  %v1312_v22 = vmax.f32 %v1310_v63, %v1311_v12 }
 0x2eb   : > { %v1316_v14 = vmax.f32 %v1314_v2, %v1315_v8  ;;  %v1334_v20 = vmax.f32 %v1332_v3, %v1333_v10  ;;  %v1329_v28 = vrot.slane %v1328_v40, 1 }
 0x2ec   : > { %v1300_v17 = vmax.f32 %v1298_v6, %v1299_v13  ;;  %v1321_v21 = vrot.slane %v1320_v15, 2 }
 0x2ed   : > { %v1317_v18 = vrot.slane %v1316_v14, 1  ;;  %v1335_v31 = vrot.slane %v1334_v20, 1  ;;  %v1330_v34 = vmax.f32 %v1328_v40, %v1329_v28 }
 0x2ee   : > { %v1397_v23 = vsel %vm1369_vm2, %v1300_v17, %v1294_v16  ;;  %v1322_v27 = vmax.f32 %v1320_v15, %v1321_v21 }
 0x2ef   : > { %v1318_v25 = vmax.f32 %v1316_v14, %v1317_v18  ;;  %v1398_v26 = vsel %vm1371_vm3, %v1306_v19, %v1397_v23  ;;  %v1336_v36 = vmax.f32 %v1334_v20, %v1335_v31 }
 0x2f0   : > { %v1399_v29 = vsel %vm1373_vm4, %v1312_v22, %v1398_v26  ;;  %v1323_v32 = vrot.slane %v1322_v27, 1 }
 0x2f1   : > { %v1400_v30 = vsel %vm1375_vm5, %v1318_v25, %v1399_v29 }
 0x2f2   : > { %v1324_v33 = vmax.f32 %v1322_v27, %v1323_v32 }
 0x2f4   : > { %v1401_v37 = vsel %vm1377_vm6, %v1324_v33, %v1400_v30 }
 0x2f5   : > { %v1402_v24 = vsel %vm1379_vm7, %v1330_v34, %v1401_v37 }
 0x2f6   : > { %v1403_v39 = vsel %vm1381_vm8, %v1336_v36, %v1402_v24 }
 0x2f7   : > { %1411 = vst [vmem:[%s2016_s9 + $0x18] sm:$0xff] %v1403_v39 }
 0x2f8 PF: > { %s17_s24 = sadd.s32 1, %s1743_s24  }
 0x2f9   : > { %p14_p5 = scmp.ge.s32.totalorder %s17_s24, 4  }
 0x2fb   :  { %16 = sbr.rel (!%p14_p5) target bundleno = 1 (0x1), region = 78 }

// kernel: _lambda_.7
= control target key start
LH: loop header
LB: loop body
LE: loop exit
PB: predicated region body
PF: predicated region fallthrough
CT: control target
= control target key end

     0   :  { %s1557_s24 = smov 0   ;;  %s1842_s0 = inlined_call_operand.vmem [shape: f32[256,131], index: 0, kind: input, shape index: {}]   ;;  %s1843_s1 = inlined_call_operand.vmem [shape: bf16[131,128], index: 1, kind: input, shape index: {}]   ;;  %s1844_s2 = inlined_call_operand.vmem [shape: f32[1,128], index: 2, kind: input, shape index: {}]   ;;  %s1845_s3 = inlined_call_operand.vmem [shape: bf16[128,128], index: 3, kind: input, shape index: {}]   ;;  %s1846_s4 = inlined_call_operand.vmem [shape: f32[1,128], index: 4, kind: input, shape index: {}]   ;;  %s1847_s5 = inlined_call_operand.vmem [shape: bf16[128,256], index: 5, kind: input, shape index: {}]   ;;  %s1848_s6 = inlined_call_operand.vmem [shape: f32[1,256], index: 6, kind: input, shape index: {}]   ;;  %s1849_s7 = inlined_call_operand.vmem [shape: f32[32,256], index: 7, kind: output, shape index: {}]  }
   0x1 LB: > { %s1334_s25 = sadd.s32 4294967295, %s1513_s24   ;;  %p1338_p0 = scmp.ge.s32.totalorder %s1513_s24, 1  ;;  %s1513_s24 = sphi %s1557_s24, %s17_s24  }
   0x2   : > { %p239_p1 = scmp.lt.s32.totalorder %s1513_s24, 3 }
   0x4   : > { %p240_p2 = pnand %p1338_p0, %p239_p1 }
   0x5   : > { %v1466_v0 = vld [vmem:[%s1843_s1] sm:$0xff] (!%p240_p2)   ;;  %v1515_v1 = vmov (!%p240_p2), 0   ;;  %v1467_v2 = vld [vmem:[%s1843_s1 + $0x8] sm:$0xff] (!%p240_p2)   ;;  %v1468_v3 = vld [vmem:[%s1843_s1 + $0x10] sm:$0xff] (!%p240_p2)   ;;  %s1339_s9 = sshll.u32 (!%p240_p2), %s1334_s25, 4  ;;  %vm411_vm0 = vcmask (!%p240_p2), 23552  }
   0x6   : > { %243 = sbr.rel (%p240_p2) target bundleno = 784 (0x310), region = 48  ;;  %443 = vmatprep.subr.bf16.mxu0 (!%p240_p2), %v1515_v1  ;;  %p274_p3 = scmp.lt.s32.totalorder (!%p240_p2), %s1339_s9, 31  ;;  %v1469_v4 = vld [vmem:[%s1843_s1 + $0x18] sm:$0xff] (!%p240_p2)   ;;  %v1475_v5 = vld [vmem:[%s1845_s3] sm:$0xff] (!%p240_p2)   ;;  %v1476_v6 = vld [vmem:[%s1845_s3 + $0x8] sm:$0xff] (!%p240_p2)   ;;  %vm436_vm1 = vcmask (!%p240_p2), 1040384  }
   0x7   : > { %444 = vmatpush1.bf16.msra.mxu0 (!%p240_p2), %v1466_v0  ;;  %1408 = vmatprep.subr.bf16.mxu1 (!%p240_p2), %v1475_v5  ;;  %v1477_v9 = vld [vmem:[%s1845_s3 + $0x10] sm:$0xff] (!%p240_p2)   ;;  %v1470_v10 = vld [vmem:[%s1843_s1 + $0x20] sm:$0xff] (!%p240_p2)   ;;  %v1478_v12 = vld [vmem:[%s1845_s3 + $0x18] sm:$0xff] (!%p240_p2)   ;;  %vm437_vm2 = vcmask (!%p240_p2), 1041408   ;;  %v1516_v15 = vmov (!%p240_p2), 65535   ;;  %vm1233_vm3 = vcmask (!%p240_p2), 1041409  }
   0x8   : > { %445 = vmatprep.subr.bf16.mxu0 (!%p240_p2), %v1515_v1  ;;  %1409 = vmatpush3.bf16.msra.mxu1 (!%p240_p2), %v1475_v5  ;;  %v1471_v13 = vld [vmem:[%s1843_s1 + $0x28] sm:$0xff] (!%p240_p2)   ;;  %v1472_v14 = vld [vmem:[%s1843_s1 + $0x30] sm:$0xff] (!%p240_p2)   ;;  %v438_v16 = vsel (!%p240_p2), %vm436_vm1, 4294967295, %v1516_v15  ;;  %v1473_v17 = vld [vmem:[%s1843_s1 + $0x38] sm:$0xff] (!%p240_p2)   ;;  %vm1235_vm4 = vcmask (!%p240_p2), 1042434   ;;  %vm1237_vm5 = vcmask (!%p240_p2), 1043459  }
   0x9   : > { %1410 = vmatprep.subr.bf16.mxu1 (!%p240_p2), %v1476_v6  ;;  %v1474_v18 = vld [vmem:[%s1843_s1 + $0x40] ss:$0 sps:$4 sm:$0x33] (!%p240_p2)   ;;  %v439_v19 = vsel (!%p240_p2), %vm437_vm2, %v438_v16, 0  ;;  %v1481_v5 = vld [vmem:[%s1845_s3 + $0x30] sm:$0xff] (!%p240_p2)   ;;  %vm1239_vm6 = vcmask (!%p240_p2), 1044484  }
   0xa   : > { %v441_v24 = vand.u32 (!%p240_p2), %v1474_v18, %v439_v19  ;;  %v1497_v15 = vld [vmem:[%s1847_s5 + $0x44] ss:$8 sps:$4 sm:$0xff] (!%p240_p2)   ;;  %v1495_v16 = vld [vmem:[%s1847_s5 + $0x40] ss:$8 sps:$4 sm:$0xff] (!%p240_p2)   ;;  %v1498_v18 = vld [vmem:[%s1847_s5 + $0x50] ss:$8 sps:$4 sm:$0xff] (!%p240_p2)  }
   0xb   : > { %446 = vmatpush1.bf16.msra.mxu0 (!%p240_p2), %v1467_v2  ;;  %v1712_v19 = vld [vmem:[%s1844_s2] ss:$0 sm:$0xff] (!%p240_p2)  ;;  %vm1241_vm7 = vcmask (!%p240_p2), 1045509   ;;  %s1781_s17 = sshll.u32 (!%p240_p2), %s1334_s25, 1  ;;  %vm1243_vm8 = vcmask (!%p240_p2), 1046534   ;;  %vm1245_vm9 = vcmask (!%p240_p2), 1047559  }
   0xc   : > { %447 = vmatprep.subr.bf16.mxu0 (!%p240_p2), %v1515_v1  ;;  %1411 = vmatpush3.bf16.msra.mxu1 (!%p240_p2), %v1476_v6  ;;  %v1482_v6 = vld [vmem:[%s1845_s3 + $0x38] sm:$0xff] (!%p240_p2)   ;;  %p281_p4 = scmp.lt.s32.totalorder (!%p240_p2), %s1781_s17, 3 }
   0xd   : > { %s1851_s9 = smov (!%p274_p3, %s1339_s9), 31  ;;  %1412 = vmatprep.subr.bf16.mxu1 %v1477_v9 }
   0xe   : > { %s1390_s16 = sshll.u32 %s1851_s9, 4  ;;  %s1853_s17 = smov (!%p281_p4, %s1781_s17), 3 }
   0xf   : > { %448 = vmatpush1.bf16.msra.mxu0 %v1468_v3  ;;  %s1592_s19 = scalar_lea.vmem %s1842_s0, %s1390_s16  ;;  %v1479_v3 = vld [vmem:[%s1845_s3 + $0x20] sm:$0xff]   ;;  %s1391_s25 = sshll.u32 %s1853_s17, 4 }
  0x10   : > { %449 = vmatprep.subr.bf16.mxu0 %v1515_v1  ;;  %v289_v7 = vld [vmem:[%s1592_s19 + $0x8] sm:$0xff]  ;;  %v291_v8 = vld [vmem:[%s1592_s19 + $0x18] sm:$0xff]  ;;  %1413 = vmatpush3.bf16.msra.mxu1 %v1477_v9  ;;  %v288_v20 = vld [vmem:[%s1592_s19] sm:$0xff]  ;;  %s1804_s20 = scalar_lea.vmem %s1849_s7, %s1391_s25 }
  0x11   : > { %v339_v11 = vpack.c.bf16 %v291_v8, %v289_v7  ;;  %1414 = vmatprep.subr.bf16.mxu1 %v1478_v12  ;;  %v290_v21 = vld [vmem:[%s1592_s19 + $0x10] sm:$0xff]  ;;  %v293_v22 = vld [vmem:[%s1592_s19 + $0x28] sm:$0xff]  ;;  %v295_v23 = vld [vmem:[%s1592_s19 + $0x38] sm:$0xff] }
  0x12   : > { %v338_v25 = vpack.c.bf16 %v290_v21, %v288_v20  ;;  %v341_v26 = vpack.c.bf16 %v295_v23, %v293_v22  ;;  %v292_v27 = vld [vmem:[%s1592_s19 + $0x20] sm:$0xff]  ;;  %v294_v28 = vld [vmem:[%s1592_s19 + $0x30] sm:$0xff]  ;;  %v297_v29 = vld [vmem:[%s1592_s19 + $0x48] sm:$0xff] }
  0x13   : > { %450 = vmatpush1.bf16.msra.mxu0 %v1469_v4  ;;  %1355 = vmatprep.mubr.msk.bf16.mxu0 %vm411_vm0, %v339_v11  ;;  %v299_v30 = vld [vmem:[%s1592_s19 + $0x58] sm:$0xff]  ;;  %v340_v31 = vpack.c.bf16 %v294_v28, %v292_v27  ;;  %v296_v33 = vld [vmem:[%s1592_s19 + $0x40] sm:$0xff]  ;;  %v298_v34 = vld [vmem:[%s1592_s19 + $0x50] sm:$0xff] }
  0x14   : > { %451 = vmatprep.subr.bf16.mxu0 %v1515_v1  ;;  %1415 = vmatpush3.bf16.msra.mxu1 %v1478_v12  ;;  %v343_v32 = vpack.c.bf16 %v299_v30, %v297_v29  ;;  %v301_v35 = vld [vmem:[%s1592_s19 + $0x68] sm:$0xff]  ;;  %v303_v36 = vld [vmem:[%s1592_s19 + $0x78] sm:$0xff]  ;;  %v342_v37 = vpack.c.bf16 %v298_v34, %v296_v33  ;;  %v300_v39 = vld [vmem:[%s1592_s19 + $0x60] sm:$0xff] }
  0x15   : > { %v345_v38 = vpack.c.bf16 %v303_v36, %v301_v35  ;;  %v302_v40 = vld [vmem:[%s1592_s19 + $0x70] sm:$0xff]  ;;  %v305_v41 = vld [vmem:[%s1592_s19 + $0x88] sm:$0xff]  ;;  %v307_v42 = vld [vmem:[%s1592_s19 + $0x98] sm:$0xff]  ;;  %1416 = vmatprep.subr.bf16.mxu1 %v1479_v3 }
  0x16   : > { %v344_v43 = vpack.c.bf16 %v302_v40, %v300_v39  ;;  %v347_v44 = vpack.c.bf16 %v307_v42, %v305_v41  ;;  %v304_v45 = vld [vmem:[%s1592_s19 + $0x80] sm:$0xff]  ;;  %v306_v46 = vld [vmem:[%s1592_s19 + $0x90] sm:$0xff]  ;;  %v309_v47 = vld [vmem:[%s1592_s19 + $0xa8] sm:$0xff] }
  0x17   : > { %452 = vmatpush1.bf16.msra.mxu0 %v1470_v10  ;;  %v311_v48 = vld [vmem:[%s1592_s19 + $0xb8] sm:$0xff]  ;;  %v346_v49 = vpack.c.bf16 %v306_v46, %v304_v45  ;;  %v308_v51 = vld [vmem:[%s1592_s19 + $0xa0] sm:$0xff]  ;;  %v310_v52 = vld [vmem:[%s1592_s19 + $0xb0] sm:$0xff] }
  0x18   : > { %453 = vmatprep.subr.bf16.mxu0 %v1515_v1  ;;  %v349_v50 = vpack.c.bf16 %v311_v48, %v309_v47  ;;  %v313_v53 = vld [vmem:[%s1592_s19 + $0xc8] sm:$0xff]  ;;  %v315_v54 = vld [vmem:[%s1592_s19 + $0xd8] sm:$0xff]  ;;  %v348_v55 = vpack.c.bf16 %v310_v52, %v308_v51  ;;  %v312_v57 = vld [vmem:[%s1592_s19 + $0xc0] sm:$0xff]  ;;  %1417 = vmatpush3.bf16.msra.mxu1 %v1479_v3 }
  0x19   : > { %v351_v56 = vpack.c.bf16 %v315_v54, %v313_v53  ;;  %v314_v58 = vld [vmem:[%s1592_s19 + $0xd0] sm:$0xff]  ;;  %v317_v59 = vld [vmem:[%s1592_s19 + $0xe8] sm:$0xff]  ;;  %v319_v60 = vld [vmem:[%s1592_s19 + $0xf8] sm:$0xff] }
  0x1a   : > { %v350_v61 = vpack.c.bf16 %v314_v58, %v312_v57  ;;  %v353_v62 = vpack.c.bf16 %v319_v60, %v317_v59  ;;  %v316_v63 = vld [vmem:[%s1592_s19 + $0xe0] sm:$0xff]  ;;  %v318_v0 = vld [vmem:[%s1592_s19 + $0xf0] sm:$0xff]  ;;  %v1480_v4 = vld [vmem:[%s1845_s3 + $0x28] sm:$0xff]  }
  0x1b   : > { %454 = vmatpush1.bf16.msra.mxu0 %v1471_v13  ;;  %v352_v2 = vpack.c.bf16 %v318_v0, %v316_v63  ;;  %1418 = vmatprep.subr.bf16.mxu1 %v1480_v4  ;;  %v1483_v7 = vld [vmem:[%s1847_s5] ss:$8 sps:$4 sm:$0xff]   ;;  %v1485_v8 = vld [vmem:[%s1847_s5 + $0x4] ss:$8 sps:$4 sm:$0xff]   ;;  %v1488_v9 = vld [vmem:[%s1847_s5 + $0x14] ss:$8 sps:$4 sm:$0xff]  }
  0x1c   : > { %455 = vmatprep.subr.bf16.mxu0 %v1515_v1  ;;  %1419 = vmatpush3.bf16.msra.mxu1 %v1480_v4  ;;  %v1486_v10 = vld [vmem:[%s1847_s5 + $0x10] ss:$8 sps:$4 sm:$0xff]   ;;  %v1491_v11 = vld [vmem:[%s1847_s5 + $0x24] ss:$8 sps:$4 sm:$0xff]   ;;  %v1489_v12 = vld [vmem:[%s1847_s5 + $0x20] ss:$8 sps:$4 sm:$0xff]  }
  0x1d   : > { %1420 = vmatprep.subr.bf16.mxu1 %v1481_v5  ;;  %v1494_v13 = vld [vmem:[%s1847_s5 + $0x34] ss:$8 sps:$4 sm:$0xff]  }
  0x1f   : > { %456 = vmatpush1.bf16.msra.mxu0 %v1472_v14  ;;  %v1492_v14 = vld [vmem:[%s1847_s5 + $0x30] ss:$8 sps:$4 sm:$0xff]  }
  0x20   : > { %457 = vmatprep.subr.bf16.mxu0 %v1515_v1  ;;  %1421 = vmatpush3.bf16.msra.mxu1 %v1481_v5 }
  0x21   : > { %1422 = vmatprep.subr.bf16.mxu1 %v1482_v6 }
  0x23   : > { %458 = vmatpush1.bf16.msra.mxu0 %v1473_v17  ;;  %v1500_v17 = vld [vmem:[%s1847_s5 + $0x54] ss:$8 sps:$4 sm:$0xff]  }
  0x24   : > { %459 = vmatprep.subr.bf16.mxu0 %v1515_v1  ;;  %1423 = vmatpush3.bf16.msra.mxu1 %v1482_v6 }
  0x25   : > { %1440 = vmatprep.subr.bf16.mxu1 %v1485_v8 }
  0x27   : > { %460 = vmatpush1.bf16.msra.mxu0 %v441_v24 }
  0x28   : > { %864 = vmatprep.subr.bf16.mxu0 %v1485_v8 }
  0x2a   : > { %476 = vmatmul.mubr.bf16.vlgmr.msra.gmra.mrb[0].mxu0 %v338_v25 }
  0x2b   : > { %1356 = vmatprep.mubr.msk.bf16.mxu0 %vm411_vm0, %v341_v26  ;;  %865 = vmatpush1.bf16.msra.mxu0 %v1483_v7 }
  0x2c   : > { %866 = vmatprep.subr.bf16.mxu0 %v1488_v9 }
  0x2f   : > { %867 = vmatpush1.bf16.msra.mxu0 %v1486_v10 }
  0x30   : > { %868 = vmatprep.subr.bf16.mxu0 %v1491_v11 }
  0x32   : > { %484 = vmatmul.mubr.bf16.gmra.mrb[4].mxu0 %v340_v31 }
  0x33   : > { %1357 = vmatprep.mubr.msk.bf16.mxu0 %vm411_vm0, %v343_v32  ;;  %869 = vmatpush1.bf16.msra.mxu0 %v1489_v12 }
  0x34   : > { %870 = vmatprep.subr.bf16.mxu0 %v1494_v13 }
  0x37   : > { %871 = vmatpush1.bf16.msra.mxu0 %v1492_v14 }
  0x38   : > { %872 = vmatprep.subr.bf16.mxu0 %v1497_v15 }
  0x3a   : > { %492 = vmatmul.mubr.bf16.gmra.mrb[8].mxu0 %v342_v37 }
  0x3b   : > { %1358 = vmatprep.mubr.msk.bf16.mxu0 %vm411_vm0, %v345_v38  ;;  %873 = vmatpush1.bf16.msra.mxu0 %v1495_v16 }
  0x3c   : > { %874 = vmatprep.subr.bf16.mxu0 %v1500_v17 }
  0x3f   : > { %875 = vmatpush1.bf16.msra.mxu0 %v1498_v18 }
  0x42   : > { %500 = vmatmul.mubr.bf16.gmra.mrb[12].mxu0 %v344_v43 }
  0x43   : > { %1359 = vmatprep.mubr.msk.bf16.mxu0 %vm411_vm0, %v347_v44 }
  0x4a   : > { %508 = vmatmul.mubr.bf16.gmra.mrb[16].mxu0 %v346_v49 }
  0x4b   : > { %1360 = vmatprep.mubr.msk.bf16.mxu0 %vm411_vm0, %v349_v50 }
  0x52   : > { %516 = vmatmul.mubr.bf16.gmra.mrb[20].mxu0 %v348_v55 }
  0x53   : > { %1361 = vmatprep.mubr.msk.bf16.mxu0 %vm411_vm0, %v351_v56 }
  0x5a   : > { %524 = vmatmul.mubr.bf16.gmra.mrb[24].mxu0 %v350_v61 }
  0x5b   : > { %1362 = vmatprep.mubr.msk.bf16.mxu0 %vm411_vm0, %v353_v62 }
  0x62   : > { %532 = vmatmul.mubr.bf16.gmra.mrb[28].mxu0 %v352_v2 }
  0x63   : > { %896 = vmatprep.mubr.bf16.mxu0 %v1515_v1 }
  0xfd   : > { %v477_v20 = vpop.f32.mrb[0].mxu0 }
  0xfe   : > { %v478_v21 = vadd.f32 %v1712_v19, %v477_v20  ;;  %v479_v22 = vpop.f32.mrb[1].mxu0 }
  0xff   : > { %v480_v23 = vpop.f32.mrb[2].mxu0 }
 0x100   : > { %v481_v24 = vadd.f32 %v1712_v19, %v480_v23  ;;  %v482_v25 = vpop.f32.mrb[3].mxu0  ;;  %v540_v26 = vmax.f32 %v478_v21, 0.0 }
 0x102   : > { %v541_v27 = vmax.f32 %v481_v24, 0.0 }
 0x104   : > { %v573_v28 = vpack.c.bf16 %v541_v27, %v540_v26 }
 0x105   : > { %v485_v29 = vpop.f32.mrb[4].mxu0 }
 0x106   : > { %v486_v30 = vadd.f32 %v1712_v19, %v485_v29  ;;  %v487_v31 = vpop.f32.mrb[5].mxu0  ;;  %1424 = vmatprep.mubr.bf16.mxu1 %v573_v28 }
 0x107   : > { %v488_v32 = vpop.f32.mrb[6].mxu0  ;;  %v1501_v31 = vld [vmem:[%s1847_s5 + $0x60] ss:$8 sps:$4 sm:$0xff]  }
 0x108   : > { %v489_v33 = vadd.f32 %v1712_v19, %v488_v32  ;;  %v490_v34 = vpop.f32.mrb[7].mxu0  ;;  %v542_v35 = vmax.f32 %v486_v30, 0.0  ;;  %v1503_v30 = vld [vmem:[%s1847_s5 + $0x64] ss:$8 sps:$4 sm:$0xff]   ;;  %v1504_v32 = vld [vmem:[%s1847_s5 + $0x70] ss:$8 sps:$4 sm:$0xff]  }
 0x109   : > { %876 = vmatprep.subr.bf16.mxu0 %v1503_v30 }
 0x10a   : > { %v543_v36 = vmax.f32 %v489_v33, 0.0  ;;  %877 = vmatpush1.bf16.msra.mxu0 %v1501_v31  ;;  %v1363_v33 = vld [vmem:[%s1846_s4] ss:$0 sm:$0xff] }
 0x10c   : > { %v574_v37 = vpack.c.bf16 %v543_v36, %v542_v35 }
 0x10d   : > { %v493_v38 = vpop.f32.mrb[8].mxu0 }
 0x10e   : > { %v494_v39 = vadd.f32 %v1712_v19, %v493_v38  ;;  %v495_v40 = vpop.f32.mrb[9].mxu0  ;;  %1425 = vmatmul.mubr.bf16.vlgmr.msra.gmra.mrb[0].mxu1 %v574_v37 }
 0x10f   : > { %v496_v41 = vpop.f32.mrb[10].mxu0  ;;  %1448 = vmatpush1.bf16.msra.mxu1 %v1483_v7 }
 0x110   : > { %v497_v42 = vadd.f32 %v1712_v19, %v496_v41  ;;  %v498_v43 = vpop.f32.mrb[11].mxu0  ;;  %1441 = vmatprep.subr.bf16.mxu1 %v1488_v9  ;;  %v544_v44 = vmax.f32 %v494_v39, 0.0 }
 0x112   : > { %v545_v45 = vmax.f32 %v497_v42, 0.0 }
 0x113   : > { %1449 = vmatpush1.bf16.msra.mxu1 %v1486_v10 }
 0x114   : > { %v575_v46 = vpack.c.bf16 %v545_v45, %v544_v44  ;;  %1442 = vmatprep.subr.bf16.mxu1 %v1491_v11 }
 0x115   : > { %v501_v47 = vpop.f32.mrb[12].mxu0 }
 0x116   : > { %v502_v48 = vadd.f32 %v1712_v19, %v501_v47  ;;  %v503_v49 = vpop.f32.mrb[13].mxu0  ;;  %1428 = vmatprep.mubr.bf16.mxu1 %v575_v46 }
 0x117   : > { %v504_v50 = vpop.f32.mrb[14].mxu0  ;;  %1450 = vmatpush1.bf16.msra.mxu1 %v1489_v12 }
 0x118   : > { %v505_v51 = vadd.f32 %v1712_v19, %v504_v50  ;;  %v506_v52 = vpop.f32.mrb[15].mxu0  ;;  %1443 = vmatprep.subr.bf16.mxu1 %v1494_v13  ;;  %v546_v53 = vmax.f32 %v502_v48, 0.0 }
 0x11a   : > { %v547_v54 = vmax.f32 %v505_v51, 0.0 }
 0x11b   : > { %1451 = vmatpush1.bf16.msra.mxu1 %v1492_v14 }
 0x11c   : > { %v576_v55 = vpack.c.bf16 %v547_v54, %v546_v53  ;;  %1444 = vmatprep.subr.bf16.mxu1 %v1497_v15 }
 0x11d   : > { %v509_v56 = vpop.f32.mrb[16].mxu0 }
 0x11e   : > { %v510_v57 = vadd.f32 %v1712_v19, %v509_v56  ;;  %v511_v58 = vpop.f32.mrb[17].mxu0  ;;  %1429 = vmatmul.mubr.bf16.gmra.mrb[4].mxu1 %v576_v55 }
 0x11f   : > { %v512_v59 = vpop.f32.mrb[18].mxu0  ;;  %1452 = vmatpush1.bf16.msra.mxu1 %v1495_v16 }
 0x120   : > { %v513_v60 = vadd.f32 %v1712_v19, %v512_v59  ;;  %v514_v61 = vpop.f32.mrb[19].mxu0  ;;  %1445 = vmatprep.subr.bf16.mxu1 %v1500_v17  ;;  %v548_v62 = vmax.f32 %v510_v57, 0.0 }
 0x122   : > { %v549_v63 = vmax.f32 %v513_v60, 0.0 }
 0x123   : > { %1453 = vmatpush1.bf16.msra.mxu1 %v1498_v18 }
 0x124   : > { %v577_v0 = vpack.c.bf16 %v549_v63, %v548_v62  ;;  %1446 = vmatprep.subr.bf16.mxu1 %v1503_v30 }
 0x125   : > { %v517_v2 = vpop.f32.mrb[20].mxu0 }
 0x126   : > { %v518_v3 = vadd.f32 %v1712_v19, %v517_v2  ;;  %v519_v4 = vpop.f32.mrb[21].mxu0  ;;  %1432 = vmatprep.mubr.bf16.mxu1 %v577_v0 }
 0x127   : > { %v520_v5 = vpop.f32.mrb[22].mxu0  ;;  %1454 = vmatpush1.bf16.msra.mxu1 %v1501_v31  ;;  %v764_v31 = vld [vmem:[%s1848_s6] sm:$0x3] }
 0x128   : > { %v521_v6 = vadd.f32 %v1712_v19, %v520_v5  ;;  %v522_v7 = vpop.f32.mrb[23].mxu0  ;;  %v550_v8 = vmax.f32 %v518_v3, 0.0 }
 0x12a   : > { %v551_v9 = vmax.f32 %v521_v6, 0.0 }
 0x12c   : > { %v578_v10 = vpack.c.bf16 %v551_v9, %v550_v8 }
 0x12d   : > { %v525_v11 = vpop.f32.mrb[24].mxu0 }
 0x12e   : > { %v526_v12 = vadd.f32 %v1712_v19, %v525_v11  ;;  %v527_v13 = vpop.f32.mrb[25].mxu0  ;;  %1433 = vmatmul.mubr.bf16.gmra.mrb[8].mxu1 %v578_v10 }
 0x12f   : > { %v528_v14 = vpop.f32.mrb[26].mxu0 }
 0x130   : > { %v529_v15 = vadd.f32 %v1712_v19, %v528_v14  ;;  %v530_v16 = vpop.f32.mrb[27].mxu0  ;;  %v552_v17 = vmax.f32 %v526_v12, 0.0 }
 0x132   : > { %v553_v18 = vmax.f32 %v529_v15, 0.0 }
 0x134   : > { %v579_v20 = vpack.c.bf16 %v553_v18, %v552_v17 }
 0x135   : > { %v533_v21 = vpop.f32.mrb[28].mxu0 }
 0x136   : > { %v534_v22 = vadd.f32 %v1712_v19, %v533_v21  ;;  %v535_v23 = vpop.f32.mrb[29].mxu0  ;;  %1436 = vmatprep.mubr.bf16.mxu1 %v579_v20 }
 0x137   : > { %v536_v24 = vpop.f32.mrb[30].mxu0 }
 0x138   : > { %v537_v25 = vadd.f32 %v1712_v19, %v536_v24  ;;  %v538_v26 = vpop.f32.mrb[31].mxu0  ;;  %v554_v27 = vmax.f32 %v534_v22, 0.0  ;;  %v1506_v19 = vld [vmem:[%s1847_s5 + $0x74] ss:$8 sps:$4 sm:$0xff]  }
 0x139   : > { %1447 = vmatprep.subr.bf16.mxu1 %v1506_v19  ;;  %878 = vmatprep.subr.bf16.mxu0 %v1506_v19 }
 0x13a   : > { %v555_v28 = vmax.f32 %v537_v25, 0.0  ;;  %1455 = vmatpush1.bf16.msra.mxu1 %v1504_v32  ;;  %879 = vmatpush1.bf16.msra.mxu0 %v1504_v32 }
 0x13c   : > { %v580_v29 = vpack.c.bf16 %v555_v28, %v554_v27  ;;  %v774_v28 = vlaneseq }
 0x13e   : > { %1437 = vmatmul.mubr.bf16.gmra.mrb[12].mxu1 %v580_v29  ;;  %v775_v29 = vshrl.u32 %v774_v28, 7 }
 0x13f   : > { %906 = vmatprep.mubr.bf16.mxu1 %v1515_v1 }
 0x140   : > { %v776_v30 = vsub.s32 0, %v775_v29  ;;  %v780_v19 = vsub.s32 1, %v775_v29 }
 0x142   : > { %v1755_v32 = vrot.slane %v764_v31, %v776_v30 }
 0x1e1   : > { %v1426_v34 = vpop.f32.mrb[0].mxu1 }
 0x1e2   : > { %v678_v35 = vadd.f32 %v1426_v34, %v1363_v33  ;;  %v669_v36 = vpop.f32.mrb[1].mxu1 }
 0x1e3   : > { %v670_v37 = vadd.f32 %v1363_v33, %v669_v36  ;;  %v1427_v38 = vpop.f32.mrb[2].mxu1 }
 0x1e4   : > { %v681_v39 = vadd.f32 %v1427_v38, %v1363_v33  ;;  %v672_v40 = vpop.f32.mrb[3].mxu1  ;;  %v734_v42 = vmax.f32 %v678_v35, 0.0 }
 0x1e5   : > { %v673_v41 = vadd.f32 %v1363_v33, %v672_v40  ;;  %v732_v44 = vmax.f32 %v670_v37, 0.0 }
 0x1e6   : > { %v735_v43 = vmax.f32 %v681_v39, 0.0 }
 0x1e7   : > { %v733_v45 = vmax.f32 %v673_v41, 0.0 }
 0x1e8   : > { %v766_v46 = vpack.c.bf16 %v735_v43, %v734_v42 }
 0x1e9   : > { %v765_v47 = vpack.c.bf16 %v733_v45, %v732_v44 }
 0x1ea   : > { %907 = vmatmul.mubr.bf16.vlgmr.msra.gmra.mrb[16].mxu1 %v766_v46 }
 0x1eb   : > { %897 = vmatmul.mubr.bf16.vlgmr.msra.gmra.mrb[32].mxu0 %v765_v47  ;;  %916 = vmatprep.mubr.bf16.mxu1 %v1515_v1 }
 0x1f1   : > { %v1430_v48 = vpop.f32.mrb[4].mxu1 }
 0x1f2   : > { %v694_v49 = vadd.f32 %v1430_v48, %v1363_v33  ;;  %v685_v50 = vpop.f32.mrb[5].mxu1 }
 0x1f3   : > { %v686_v51 = vadd.f32 %v1363_v33, %v685_v50  ;;  %v1431_v52 = vpop.f32.mrb[6].mxu1 }
 0x1f4   : > { %v697_v53 = vadd.f32 %v1431_v52, %v1363_v33  ;;  %v688_v54 = vpop.f32.mrb[7].mxu1  ;;  %v738_v56 = vmax.f32 %v694_v49, 0.0 }
 0x1f5   : > { %v689_v55 = vadd.f32 %v1363_v33, %v688_v54  ;;  %v736_v58 = vmax.f32 %v686_v51, 0.0 }
 0x1f6   : > { %v739_v57 = vmax.f32 %v697_v53, 0.0 }
 0x1f7   : > { %v737_v59 = vmax.f32 %v689_v55, 0.0 }
 0x1f8   : > { %v768_v60 = vpack.c.bf16 %v739_v57, %v738_v56 }
 0x1f9   : > { %v767_v61 = vpack.c.bf16 %v737_v59, %v736_v58 }
 0x1fb   : > { %917 = vmatmul.mubr.bf16.gmra.mrb[20].mxu1 %v767_v61 }
 0x1fc   : > { %926 = vmatprep.mubr.bf16.mxu1 %v1515_v1 }
 0x201   : > { %v1434_v62 = vpop.f32.mrb[8].mxu1 }
 0x202   : > { %v710_v63 = vadd.f32 %v1434_v62, %v1363_v33  ;;  %v701_v0 = vpop.f32.mrb[9].mxu1 }
 0x203   : > { %v702_v2 = vadd.f32 %v1363_v33, %v701_v0  ;;  %v1435_v3 = vpop.f32.mrb[10].mxu1  ;;  %927 = vmatmul.mubr.bf16.gmra.mrb[24].mxu1 %v768_v60 }
 0x204   : > { %v713_v4 = vadd.f32 %v1435_v3, %v1363_v33  ;;  %v704_v5 = vpop.f32.mrb[11].mxu1  ;;  %936 = vmatprep.mubr.bf16.mxu1 %v1515_v1  ;;  %v742_v7 = vmax.f32 %v710_v63, 0.0 }
 0x205   : > { %v705_v6 = vadd.f32 %v1363_v33, %v704_v5  ;;  %v740_v9 = vmax.f32 %v702_v2, 0.0 }
 0x206   : > { %v743_v8 = vmax.f32 %v713_v4, 0.0 }
 0x207   : > { %v741_v10 = vmax.f32 %v705_v6, 0.0 }
 0x208   : > { %v770_v11 = vpack.c.bf16 %v743_v8, %v742_v7 }
 0x209   : > { %v769_v12 = vpack.c.bf16 %v741_v10, %v740_v9 }
 0x20b   : > { %937 = vmatmul.mubr.bf16.gmra.mrb[28].mxu1 %v769_v12 }
 0x20c   : > { %946 = vmatprep.mubr.bf16.mxu1 %v1515_v1 }
 0x211   : > { %v1438_v13 = vpop.f32.mrb[12].mxu1 }
 0x212   : > { %v726_v14 = vadd.f32 %v1438_v13, %v1363_v33  ;;  %v717_v15 = vpop.f32.mrb[13].mxu1 }
 0x213   : > { %v718_v16 = vadd.f32 %v1363_v33, %v717_v15  ;;  %v1439_v17 = vpop.f32.mrb[14].mxu1  ;;  %947 = vmatmul.mubr.bf16.gmra.mrb[32].mxu1 %v770_v11 }
 0x214   : > { %v729_v18 = vadd.f32 %v1439_v17, %v1363_v33  ;;  %v720_v20 = vpop.f32.mrb[15].mxu1  ;;  %956 = vmatprep.mubr.bf16.mxu1 %v1515_v1  ;;  %v746_v22 = vmax.f32 %v726_v14, 0.0 }
 0x215   : > { %v721_v21 = vadd.f32 %v1363_v33, %v720_v20  ;;  %v744_v24 = vmax.f32 %v718_v16, 0.0  ;;  %v1757_v33 = vrot.slane %v764_v31, %v780_v19 }
 0x216   : > { %v747_v23 = vmax.f32 %v729_v18, 0.0 }
 0x217   : > { %v745_v25 = vmax.f32 %v721_v21, 0.0 }
 0x218   : > { %v772_v26 = vpack.c.bf16 %v747_v23, %v746_v22 }
 0x219   : > { %v771_v27 = vpack.c.bf16 %v745_v25, %v744_v24 }
 0x21b   : > { %957 = vmatmul.mubr.bf16.gmra.mrb[36].mxu1 %v771_v27 }
 0x21c   : > { %966 = vmatprep.mubr.bf16.mxu1 %v1515_v1 }
 0x223   : > { %967 = vmatmul.mubr.bf16.gmra.mrb[40].mxu1 %v772_v26 }
 0x2bd   : > { %v908_v34 = vpop.f32.mrb[16].mxu1 }
 0x2be   : > { %v909_v35 = vadd.f32 %v908_v34, %v1755_v32  ;;  %v898_v36 = vpop.f32.mrb[32].mxu0  ;;  %v910_v37 = vpop.f32.mrb[17].mxu1 }
 0x2bf   : > { %v899_v1 = vadd.f32 %v898_v36, %v1755_v32  ;;  %v911_v38 = vadd.f32 %v910_v37, %v1757_v33  ;;  %v900_v39 = vpop.f32.mrb[33].mxu0  ;;  %v912_v40 = vpop.f32.mrb[18].mxu1 }
 0x2c0   : > { %v981_v41 = vmax.f32 %v909_v35, 0.0  ;;  %v901_v42 = vadd.f32 %v900_v39, %v1757_v33  ;;  %v913_v43 = vadd.f32 %v912_v40, %v1755_v32  ;;  %v902_v44 = vpop.f32.mrb[34].mxu0  ;;  %v914_v45 = vpop.f32.mrb[19].mxu1 }
 0x2c1   : > { %v977_v46 = vmax.f32 %v899_v1, 0.0  ;;  %v982_v47 = vmax.f32 %v911_v38, 0.0  ;;  %v903_v48 = vadd.f32 %v902_v44, %v1755_v32  ;;  %v915_v49 = vadd.f32 %v914_v45, %v1757_v33  ;;  %v904_v50 = vpop.f32.mrb[35].mxu0 }
 0x2c2   : > { %v1033_v51 = vrot.slane %v981_v41, 4  ;;  %v978_v52 = vmax.f32 %v901_v42, 0.0  ;;  %v983_v53 = vmax.f32 %v913_v43, 0.0  ;;  %v905_v54 = vadd.f32 %v904_v50, %v1757_v33 }
 0x2c3   : > { %v1009_v55 = vrot.slane %v977_v46, 4  ;;  %v1039_v56 = vrot.slane %v982_v47, 4  ;;  %v979_v57 = vmax.f32 %v903_v48, 0.0  ;;  %v984_v58 = vmax.f32 %v915_v49, 0.0 }
 0x2c4   : > { %v1034_v59 = vmax.f32 %v981_v41, %v1033_v51  ;;  %v1015_v60 = vrot.slane %v978_v52, 4  ;;  %v1045_v61 = vrot.slane %v983_v53, 4  ;;  %v980_v62 = vmax.f32 %v905_v54, 0.0 }
 0x2c5   : > { %v1010_v63 = vmax.f32 %v977_v46, %v1009_v55  ;;  %v1040_v0 = vmax.f32 %v982_v47, %v1039_v56  ;;  %v1021_v2 = vrot.slane %v979_v57, 4  ;;  %v1051_v3 = vrot.slane %v984_v58, 4 }
 0x2c6   : > { %v1035_v4 = vrot.slane %v1034_v59, 2  ;;  %v1016_v5 = vmax.f32 %v978_v52, %v1015_v60  ;;  %v1046_v6 = vmax.f32 %v983_v53, %v1045_v61  ;;  %v1027_v7 = vrot.slane %v980_v62, 4 }
 0x2c7   : > { %v1011_v8 = vrot.slane %v1010_v63, 2  ;;  %v1041_v9 = vrot.slane %v1040_v0, 2  ;;  %v1022_v10 = vmax.f32 %v979_v57, %v1021_v2  ;;  %v1052_v11 = vmax.f32 %v984_v58, %v1051_v3 }
 0x2c8   : > { %v1036_v12 = vmax.f32 %v1034_v59, %v1035_v4  ;;  %v1017_v13 = vrot.slane %v1016_v5, 2  ;;  %v1047_v14 = vrot.slane %v1046_v6, 2  ;;  %v1028_v15 = vmax.f32 %v980_v62, %v1027_v7 }
 0x2c9   : > { %v1012_v16 = vmax.f32 %v1010_v63, %v1011_v8  ;;  %v1042_v17 = vmax.f32 %v1040_v0, %v1041_v9  ;;  %v1023_v18 = vrot.slane %v1022_v10, 2  ;;  %v1053_v20 = vrot.slane %v1052_v11, 2 }
 0x2ca   : > { %v1037_v21 = vrot.slane %v1036_v12, 1  ;;  %v1018_v22 = vmax.f32 %v1016_v5, %v1017_v13  ;;  %v1048_v23 = vmax.f32 %v1046_v6, %v1047_v14  ;;  %v1029_v24 = vrot.slane %v1028_v15, 2 }
 0x2cb   : > { %v1013_v25 = vrot.slane %v1012_v16, 1  ;;  %v1043_v26 = vrot.slane %v1042_v17, 1  ;;  %v1024_v27 = vmax.f32 %v1022_v10, %v1023_v18  ;;  %v1054_v28 = vmax.f32 %v1052_v11, %v1053_v20 }
 0x2cc   : > { %v1019_v29 = vrot.slane %v1018_v22, 1  ;;  %v1049_v30 = vrot.slane %v1048_v23, 1  ;;  %v1030_v31 = vmax.f32 %v1028_v15, %v1029_v24  ;;  %v1038_v35 = vmax.f32 %v1036_v12, %v1037_v21 }
 0x2cd   : > { %v1025_v19 = vrot.slane %v1024_v27, 1  ;;  %v1055_v34 = vrot.slane %v1054_v28, 1  ;;  %v1014_v1 = vmax.f32 %v1012_v16, %v1013_v25  ;;  %v1044_v38 = vmax.f32 %v1042_v17, %v1043_v26 }
 0x2ce   : > { %v1031_v36 = vrot.slane %v1030_v31, 1  ;;  %v918_v37 = vpop.f32.mrb[20].mxu1  ;;  %v1020_v42 = vmax.f32 %v1018_v22, %v1019_v29  ;;  %v1050_v43 = vmax.f32 %v1048_v23, %v1049_v30 }
 0x2cf   : > { %v1026_v39 = vmax.f32 %v1024_v27, %v1025_v19  ;;  %v919_v40 = vadd.f32 %v918_v37, %v1755_v32  ;;  %v920_v41 = vpop.f32.mrb[21].mxu1  ;;  %v1056_v48 = vmax.f32 %v1054_v28, %v1055_v34 }
 0x2d0   : > { %v1032_v44 = vmax.f32 %v1030_v31, %v1031_v36  ;;  %v921_v45 = vadd.f32 %v920_v41, %v1757_v33  ;;  %v922_v46 = vpop.f32.mrb[22].mxu1 }
 0x2d1   : > { %v1234_v47 = vsel %vm1233_vm3, %v1026_v39, %v1014_v1  ;;  %v985_v49 = vmax.f32 %v919_v40, 0.0  ;;  %v923_v50 = vadd.f32 %v922_v46, %v1755_v32  ;;  %v924_v51 = vpop.f32.mrb[23].mxu1 }
 0x2d2   : > { %v1236_v52 = vsel %vm1235_vm4, %v1038_v35, %v1234_v47  ;;  %v1247_v53 = vsel %vm1233_vm3, %v1032_v44, %v1020_v42  ;;  %v986_v54 = vmax.f32 %v921_v45, 0.0  ;;  %v925_v55 = vadd.f32 %v924_v51, %v1757_v33 }
 0x2d3   : > { %v1248_v56 = vsel %vm1235_vm4, %v1044_v38, %v1247_v53  ;;  %v1057_v57 = vrot.slane %v985_v49, 4  ;;  %v1238_v58 = vsel %vm1237_vm5, %v1050_v43, %v1236_v52  ;;  %v987_v59 = vmax.f32 %v923_v50, 0.0 }
 0x2d4   : > { %v1063_v60 = vrot.slane %v986_v54, 4  ;;  %v1249_v61 = vsel %vm1237_vm5, %v1056_v48, %v1248_v56  ;;  %v988_v62 = vmax.f32 %v925_v55, 0.0 }
 0x2d5   : > { %v1058_v63 = vmax.f32 %v985_v49, %v1057_v57  ;;  %v1069_v0 = vrot.slane %v987_v59, 4 }
 0x2d6   : > { %v1064_v2 = vmax.f32 %v986_v54, %v1063_v60  ;;  %v1075_v3 = vrot.slane %v988_v62, 4  ;;  %v928_v4 = vpop.f32.mrb[24].mxu1 }
 0x2d7   : > { %v1059_v5 = vrot.slane %v1058_v63, 2  ;;  %v1070_v6 = vmax.f32 %v987_v59, %v1069_v0  ;;  %v929_v7 = vadd.f32 %v928_v4, %v1755_v32  ;;  %v930_v8 = vpop.f32.mrb[25].mxu1 }
 0x2d8   : > { %v1065_v9 = vrot.slane %v1064_v2, 2  ;;  %v1076_v10 = vmax.f32 %v988_v62, %v1075_v3  ;;  %v931_v11 = vadd.f32 %v930_v8, %v1757_v33  ;;  %v932_v12 = vpop.f32.mrb[26].mxu1 }
 0x2d9   : > { %v1060_v13 = vmax.f32 %v1058_v63, %v1059_v5  ;;  %v1071_v14 = vrot.slane %v1070_v6, 2  ;;  %v989_v15 = vmax.f32 %v929_v7, 0.0  ;;  %v933_v16 = vadd.f32 %v932_v12, %v1755_v32  ;;  %v934_v17 = vpop.f32.mrb[27].mxu1 }
 0x2da   : > { %v1066_v18 = vmax.f32 %v1064_v2, %v1065_v9  ;;  %v1077_v20 = vrot.slane %v1076_v10, 2  ;;  %v990_v21 = vmax.f32 %v931_v11, 0.0  ;;  %v935_v22 = vadd.f32 %v934_v17, %v1757_v33 }
 0x2db   : > { %v1061_v23 = vrot.slane %v1060_v13, 1  ;;  %v1072_v24 = vmax.f32 %v1070_v6, %v1071_v14  ;;  %v1081_v25 = vrot.slane %v989_v15, 4  ;;  %v991_v26 = vmax.f32 %v933_v16, 0.0 }
 0x2dc   : > { %v1067_v27 = vrot.slane %v1066_v18, 1  ;;  %v1078_v28 = vmax.f32 %v1076_v10, %v1077_v20  ;;  %v1087_v29 = vrot.slane %v990_v21, 4  ;;  %v992_v30 = vmax.f32 %v935_v22, 0.0 }
 0x2dd   : > { %v1062_v31 = vmax.f32 %v1060_v13, %v1061_v23  ;;  %v1073_v19 = vrot.slane %v1072_v24, 1  ;;  %v1082_v34 = vmax.f32 %v989_v15, %v1081_v25  ;;  %v1093_v35 = vrot.slane %v991_v26, 4 }
 0x2de   : > { %v1068_v36 = vmax.f32 %v1066_v18, %v1067_v27  ;;  %v1079_v37 = vrot.slane %v1078_v28, 1  ;;  %v1088_v1 = vmax.f32 %v990_v21, %v1087_v29  ;;  %v1099_v38 = vrot.slane %v992_v30, 4  ;;  %v938_v39 = vpop.f32.mrb[28].mxu1 }
 0x2df   : > { %v1240_v40 = vsel %vm1239_vm6, %v1062_v31, %v1238_v58  ;;  %v1074_v41 = vmax.f32 %v1072_v24, %v1073_v19  ;;  %v1083_v42 = vrot.slane %v1082_v34, 2  ;;  %v1094_v43 = vmax.f32 %v991_v26, %v1093_v35  ;;  %v940_v44 = vpop.f32.mrb[29].mxu1 }
 0x2e0   : > { %v1250_v45 = vsel %vm1239_vm6, %v1068_v36, %v1249_v61  ;;  %v1080_v46 = vmax.f32 %v1078_v28, %v1079_v37  ;;  %v1089_v47 = vrot.slane %v1088_v1, 2  ;;  %v1100_v48 = vmax.f32 %v992_v30, %v1099_v38  ;;  %v942_v49 = vpop.f32.mrb[30].mxu1 }
 0x2e1   : > { %v1242_v50 = vsel %vm1241_vm7, %v1074_v41, %v1240_v40  ;;  %v1084_v51 = vmax.f32 %v1082_v34, %v1083_v42  ;;  %v1095_v52 = vrot.slane %v1094_v43, 2  ;;  %v939_v53 = vadd.f32 %v938_v39, %v1755_v32  ;;  %v944_v54 = vpop.f32.mrb[31].mxu1 }
 0x2e2   : > { %v1251_v55 = vsel %vm1241_vm7, %v1080_v46, %v1250_v45  ;;  %v1090_v56 = vmax.f32 %v1088_v1, %v1089_v47  ;;  %v1101_v57 = vrot.slane %v1100_v48, 2  ;;  %v941_v58 = vadd.f32 %v940_v44, %v1757_v33 }
 0x2e3   : > { %v1085_v59 = vrot.slane %v1084_v51, 1  ;;  %v1096_v60 = vmax.f32 %v1094_v43, %v1095_v52  ;;  %v993_v61 = vmax.f32 %v939_v53, 0.0  ;;  %v943_v62 = vadd.f32 %v942_v49, %v1755_v32 }
 0x2e4   : > { %v1091_v63 = vrot.slane %v1090_v56, 1  ;;  %v1102_v0 = vmax.f32 %v1100_v48, %v1101_v57  ;;  %v994_v2 = vmax.f32 %v941_v58, 0.0  ;;  %v945_v3 = vadd.f32 %v944_v54, %v1757_v33 }
 0x2e5   : > { %v1086_v4 = vmax.f32 %v1084_v51, %v1085_v59  ;;  %v1097_v5 = vrot.slane %v1096_v60, 1  ;;  %v1105_v6 = vrot.slane %v993_v61, 4  ;;  %v995_v7 = vmax.f32 %v943_v62, 0.0 }
 0x2e6   : > { %v1092_v8 = vmax.f32 %v1090_v56, %v1091_v63  ;;  %v1103_v9 = vrot.slane %v1102_v0, 1  ;;  %v1111_v10 = vrot.slane %v994_v2, 4  ;;  %v996_v11 = vmax.f32 %v945_v3, 0.0  ;;  %v948_v12 = vpop.f32.mrb[32].mxu1 }
 0x2e7   : > { %v1244_v13 = vsel %vm1243_vm8, %v1086_v4, %v1242_v50  ;;  %v1098_v14 = vmax.f32 %v1096_v60, %v1097_v5  ;;  %v1106_v15 = vmax.f32 %v993_v61, %v1105_v6  ;;  %v1117_v16 = vrot.slane %v995_v7, 4  ;;  %v950_v17 = vpop.f32.mrb[33].mxu1 }
 0x2e8   : > { %v1252_v18 = vsel %vm1243_vm8, %v1092_v8, %v1251_v55  ;;  %v1104_v20 = vmax.f32 %v1102_v0, %v1103_v9  ;;  %v1112_v21 = vmax.f32 %v994_v2, %v1111_v10  ;;  %v1123_v22 = vrot.slane %v996_v11, 4  ;;  %v952_v23 = vpop.f32.mrb[34].mxu1 }
 0x2e9   : > { %v1246_v24 = vsel %vm1245_vm9, %v1098_v14, %v1244_v13  ;;  %v1107_v25 = vrot.slane %v1106_v15, 2  ;;  %v1118_v26 = vmax.f32 %v995_v7, %v1117_v16  ;;  %v949_v27 = vadd.f32 %v948_v12, %v1755_v32  ;;  %v954_v28 = vpop.f32.mrb[35].mxu1 }
 0x2ea   : > { %1272 = vst [vmem:[%s1804_s20] sm:$0xff] %v1246_v24  ;;  %v1253_v29 = vsel %vm1245_vm9, %v1104_v20, %v1252_v18  ;;  %v1113_v30 = vrot.slane %v1112_v21, 2  ;;  %v1124_v31 = vmax.f32 %v996_v11, %v1123_v22  ;;  %v951_v19 = vadd.f32 %v950_v17, %v1757_v33 }
 0x2eb   : > { %1273 = vst [vmem:[%s1804_s20 + $0x8] sm:$0xff] %v1253_v29  ;;  %v1108_v34 = vmax.f32 %v1106_v15, %v1107_v25  ;;  %v1119_v35 = vrot.slane %v1118_v26, 2  ;;  %v997_v36 = vmax.f32 %v949_v27, 0.0  ;;  %v953_v37 = vadd.f32 %v952_v23, %v1755_v32 }
 0x2ec   : > { %v1114_v1 = vmax.f32 %v1112_v21, %v1113_v30  ;;  %v1125_v38 = vrot.slane %v1124_v31, 2  ;;  %v998_v39 = vmax.f32 %v951_v19, 0.0  ;;  %v955_v40 = vadd.f32 %v954_v28, %v1757_v33 }
 0x2ed   : > { %v1109_v41 = vrot.slane %v1108_v34, 1  ;;  %v1120_v42 = vmax.f32 %v1118_v26, %v1119_v35  ;;  %v1129_v43 = vrot.slane %v997_v36, 4  ;;  %v999_v44 = vmax.f32 %v953_v37, 0.0 }
 0x2ee   : > { %v1115_v45 = vrot.slane %v1114_v1, 1  ;;  %v1126_v46 = vmax.f32 %v1124_v31, %v1125_v38  ;;  %v1135_v47 = vrot.slane %v998_v39, 4  ;;  %v1000_v48 = vmax.f32 %v955_v40, 0.0  ;;  %v958_v49 = vpop.f32.mrb[36].mxu1 }
 0x2ef   : > { %v1110_v50 = vmax.f32 %v1108_v34, %v1109_v41  ;;  %v1121_v51 = vrot.slane %v1120_v42, 1  ;;  %v1130_v52 = vmax.f32 %v997_v36, %v1129_v43  ;;  %v1141_v53 = vrot.slane %v999_v44, 4  ;;  %v960_v54 = vpop.f32.mrb[37].mxu1 }
 0x2f0   : > { %v1116_v55 = vmax.f32 %v1114_v1, %v1115_v45  ;;  %v1127_v56 = vrot.slane %v1126_v46, 1  ;;  %v1136_v57 = vmax.f32 %v998_v39, %v1135_v47  ;;  %v1147_v58 = vrot.slane %v1000_v48, 4  ;;  %v962_v59 = vpop.f32.mrb[38].mxu1 }
 0x2f1   : > { %v1122_v60 = vmax.f32 %v1120_v42, %v1121_v51  ;;  %v1131_v61 = vrot.slane %v1130_v52, 2  ;;  %v1142_v62 = vmax.f32 %v999_v44, %v1141_v53  ;;  %v959_v63 = vadd.f32 %v958_v49, %v1755_v32  ;;  %v964_v0 = vpop.f32.mrb[39].mxu1 }
 0x2f2   : > { %v1128_v2 = vmax.f32 %v1126_v46, %v1127_v56  ;;  %v1137_v3 = vrot.slane %v1136_v57, 2  ;;  %v1148_v4 = vmax.f32 %v1000_v48, %v1147_v58  ;;  %v961_v5 = vadd.f32 %v960_v54, %v1757_v33 }
 0x2f3   : > { %v1254_v6 = vsel %vm1233_vm3, %v1122_v60, %v1110_v50  ;;  %v1132_v7 = vmax.f32 %v1130_v52, %v1131_v61  ;;  %v1143_v8 = vrot.slane %v1142_v62, 2  ;;  %v1001_v9 = vmax.f32 %v959_v63, 0.0 }
 0x2f4   : > { %v1261_v10 = vsel %vm1233_vm3, %v1128_v2, %v1116_v55  ;;  %v1138_v11 = vmax.f32 %v1136_v57, %v1137_v3  ;;  %v1149_v12 = vrot.slane %v1148_v4, 2  ;;  %v1002_v13 = vmax.f32 %v961_v5, 0.0 }
 0x2f5   : > { %v1133_v14 = vrot.slane %v1132_v7, 1  ;;  %v1144_v15 = vmax.f32 %v1142_v62, %v1143_v8  ;;  %v1153_v16 = vrot.slane %v1001_v9, 4  ;;  %v963_v17 = vadd.f32 %v962_v59, %v1755_v32 }
 0x2f6   : > { %v1139_v18 = vrot.slane %v1138_v11, 1  ;;  %v1150_v20 = vmax.f32 %v1148_v4, %v1149_v12  ;;  %v1159_v21 = vrot.slane %v1002_v13, 4  ;;  %v965_v22 = vadd.f32 %v964_v0, %v1757_v33  ;;  %v968_v23 = vpop.f32.mrb[40].mxu1 }
 0x2f7   : > { %v1134_v24 = vmax.f32 %v1132_v7, %v1133_v14  ;;  %v1145_v25 = vrot.slane %v1144_v15, 1  ;;  %v1154_v26 = vmax.f32 %v1001_v9, %v1153_v16  ;;  %v1003_v27 = vmax.f32 %v963_v17, 0.0  ;;  %v970_v28 = vpop.f32.mrb[41].mxu1 }
 0x2f8   : > { %v1140_v29 = vmax.f32 %v1138_v11, %v1139_v18  ;;  %v1151_v30 = vrot.slane %v1150_v20, 1  ;;  %v1160_v31 = vmax.f32 %v1002_v13, %v1159_v21  ;;  %v1004_v19 = vmax.f32 %v965_v22, 0.0  ;;  %v972_v34 = vpop.f32.mrb[42].mxu1 }
 0x2f9   : > { %v1255_v35 = vsel %vm1235_vm4, %v1134_v24, %v1254_v6  ;;  %v1146_v36 = vmax.f32 %v1144_v15, %v1145_v25  ;;  %v1155_v37 = vrot.slane %v1154_v26, 2  ;;  %v1165_v1 = vrot.slane %v1003_v27, 4  ;;  %v974_v38 = vpop.f32.mrb[43].mxu1 }
 0x2fa   : > { %v1262_v39 = vsel %vm1235_vm4, %v1140_v29, %v1261_v10  ;;  %v1152_v40 = vmax.f32 %v1150_v20, %v1151_v30  ;;  %v1161_v41 = vrot.slane %v1160_v31, 2  ;;  %v1171_v42 = vrot.slane %v1004_v19, 4 }
 0x2fb   : > { %v1256_v43 = vsel %vm1237_vm5, %v1146_v36, %v1255_v35  ;;  %v1156_v44 = vmax.f32 %v1154_v26, %v1155_v37  ;;  %v1166_v45 = vmax.f32 %v1003_v27, %v1165_v1  ;;  %v969_v46 = vadd.f32 %v968_v23, %v1755_v32 }
 0x2fc   : > { %v1263_v47 = vsel %vm1237_vm5, %v1152_v40, %v1262_v39  ;;  %v1162_v48 = vmax.f32 %v1160_v31, %v1161_v41  ;;  %v1172_v49 = vmax.f32 %v1004_v19, %v1171_v42  ;;  %v971_v50 = vadd.f32 %v970_v28, %v1757_v33 }
 0x2fd   : > { %v1157_v51 = vrot.slane %v1156_v44, 1  ;;  %v1167_v52 = vrot.slane %v1166_v45, 2  ;;  %v1005_v53 = vmax.f32 %v969_v46, 0.0  ;;  %v973_v54 = vadd.f32 %v972_v34, %v1755_v32 }
 0x2fe   : > { %v1163_v55 = vrot.slane %v1162_v48, 1  ;;  %v1173_v56 = vrot.slane %v1172_v49, 2  ;;  %v1006_v57 = vmax.f32 %v971_v50, 0.0  ;;  %v975_v58 = vadd.f32 %v974_v38, %v1757_v33 }
 0x2ff   : > { %v1158_v59 = vmax.f32 %v1156_v44, %v1157_v51  ;;  %v1168_v60 = vmax.f32 %v1166_v45, %v1167_v52  ;;  %v1177_v61 = vrot.slane %v1005_v53, 4  ;;  %v1007_v62 = vmax.f32 %v973_v54, 0.0 }
 0x300   : > { %v1164_v63 = vmax.f32 %v1162_v48, %v1163_v55  ;;  %v1174_v0 = vmax.f32 %v1172_v49, %v1173_v56  ;;  %v1183_v2 = vrot.slane %v1006_v57, 4  ;;  %v1008_v3 = vmax.f32 %v975_v58, 0.0 }
 0x301   : > { %v1257_v4 = vsel %vm1239_vm6, %v1158_v59, %v1256_v43  ;;  %v1169_v5 = vrot.slane %v1168_v60, 1  ;;  %v1178_v6 = vmax.f32 %v1005_v53, %v1177_v61  ;;  %v1189_v7 = vrot.slane %v1007_v62, 4 }
 0x302   : > { %v1264_v32 = vsel %vm1239_vm6, %v1164_v63, %v1263_v47  ;;  %v1175_v8 = vrot.slane %v1174_v0, 1  ;;  %v1184_v9 = vmax.f32 %v1006_v57, %v1183_v2  ;;  %v1195_v10 = vrot.slane %v1008_v3, 4 }
 0x303   : > { %v1170_v11 = vmax.f32 %v1168_v60, %v1169_v5  ;;  %v1179_v33 = vrot.slane %v1178_v6, 2  ;;  %v1190_v12 = vmax.f32 %v1007_v62, %v1189_v7 }
 0x304   : > { %v1176_v13 = vmax.f32 %v1174_v0, %v1175_v8  ;;  %v1185_v14 = vrot.slane %v1184_v9, 2  ;;  %v1196_v15 = vmax.f32 %v1008_v3, %v1195_v10 }
 0x305   : > { %v1258_v16 = vsel %vm1241_vm7, %v1170_v11, %v1257_v4  ;;  %v1180_v17 = vmax.f32 %v1178_v6, %v1179_v33  ;;  %v1191_v18 = vrot.slane %v1190_v12, 2 }
 0x306   : > { %v1265_v20 = vsel %vm1241_vm7, %v1176_v13, %v1264_v32  ;;  %v1186_v21 = vmax.f32 %v1184_v9, %v1185_v14  ;;  %v1197_v22 = vrot.slane %v1196_v15, 2 }
 0x307   : > { %v1181_v23 = vrot.slane %v1180_v17, 1  ;;  %v1192_v24 = vmax.f32 %v1190_v12, %v1191_v18 }
 0x308   : > { %v1187_v25 = vrot.slane %v1186_v21, 1  ;;  %v1198_v26 = vmax.f32 %v1196_v15, %v1197_v22 }
 0x309   : > { %v1182_v27 = vmax.f32 %v1180_v17, %v1181_v23  ;;  %v1193_v28 = vrot.slane %v1192_v24, 1 }
 0x30a   : > { %v1188_v29 = vmax.f32 %v1186_v21, %v1187_v25  ;;  %v1199_v30 = vrot.slane %v1198_v26, 1 }
 0x30b   : > { %v1259_v31 = vsel %vm1243_vm8, %v1182_v27, %v1258_v16  ;;  %v1194_v19 = vmax.f32 %v1192_v24, %v1193_v28 }
 0x30c   : > { %v1266_v34 = vsel %vm1243_vm8, %v1188_v29, %v1265_v20  ;;  %v1200_v35 = vmax.f32 %v1198_v26, %v1199_v30 }
 0x30d   : > { %v1260_v36 = vsel %vm1245_vm9, %v1194_v19, %v1259_v31 }
 0x30e   : > { %1274 = vst [vmem:[%s1804_s20 + $0x10] sm:$0xff] %v1260_v36  ;;  %v1267_v37 = vsel %vm1245_vm9, %v1200_v35, %v1266_v34 }
 0x30f   : > { %1275 = vst [vmem:[%s1804_s20 + $0x18] sm:$0xff] %v1267_v37 }
 0x310 PF: > { %s17_s24 = sadd.s32 1, %s1513_s24  }
 0x311   : > { %p14_p5 = scmp.ge.s32.totalorder %s17_s24, 4  }
 0x313   :  { %16 = sbr.rel (!%p14_p5) target bundleno = 1 (0x1), region = 78 }

// kernel: _lambda_.9
= control target key start
LH: loop header
LB: loop body
LE: loop exit
PB: predicated region body
PF: predicated region fallthrough
CT: control target
= control target key end

     0   :  { %s2329_s18 = smov 0   ;;  %s2956_s0 = inlined_call_operand.vmem [shape: f32[32,1280], index: 0, kind: input, shape index: {}]   ;;  %s2957_s1 = inlined_call_operand.vmem [shape: bf16[1280,256], index: 1, kind: input, shape index: {}]   ;;  %s2958_s2 = inlined_call_operand.vmem [shape: f32[1,256], index: 2, kind: input, shape index: {}]   ;;  %s2959_s3 = inlined_call_operand.vmem [shape: bf16[256,256], index: 3, kind: input, shape index: {}]   ;;  %s2960_s4 = inlined_call_operand.vmem [shape: f32[1,256], index: 4, kind: input, shape index: {}]   ;;  %s2961_s5 = inlined_call_operand.vmem [shape: f32[32,256], index: 5, kind: output, shape index: {}]  }
   0x1 LB: > { %s1769_s19 = sadd.s32 4294967295, %s2297_s18   ;;  %p1773_p0 = scmp.ge.s32.totalorder %s2297_s18, 1  ;;  %s2297_s18 = sphi %s2329_s18, %s15_s18  }
   0x2   : > { %p189_p1 = scmp.lt.s32.totalorder %s2297_s18, 3 }
   0x4   : > { %p190_p2 = pnand %p1773_p0, %p189_p1 }
   0x5   : > { %v2003_v0 = vld [vmem:[%s2957_s1 + $0x4] ss:$8 sps:$4 sm:$0xff] (!%p190_p2)   ;;  %v2007_v2 = vld [vmem:[%s2957_s1] ss:$8 sps:$4 sm:$0xff] (!%p190_p2)   ;;  %v2009_v4 = vld [vmem:[%s2957_s1 + $0x14] ss:$8 sps:$4 sm:$0xff] (!%p190_p2)  }
   0x6   : > { %193 = sbr.rel (%p190_p2) target bundleno = 641 (0x281), region = 40  ;;  %v2005_v1 = vld [vmem:[%s2957_s1 + $0x204] ss:$8 sps:$4 sm:$0xff] (!%p190_p2)   ;;  %1235 = vmatprep.subr.bf16.mxu1 (!%p190_p2), %v2003_v0  ;;  %v2008_v3 = vld [vmem:[%s2957_s1 + $0x200] ss:$8 sps:$4 sm:$0xff] (!%p190_p2)   ;;  %s1774_s7 = sshll.u32 (!%p190_p2), %s1769_s19, 1 }
   0x7   : > { %1321 = vmatprep.subr.bf16.mxu0 (!%p190_p2), %v2005_v1  ;;  %1236 = vmatpush1.bf16.msra.mxu1 (!%p190_p2), %v2007_v2  ;;  %v2011_v5 = vld [vmem:[%s2957_s1 + $0x214] ss:$8 sps:$4 sm:$0xff] (!%p190_p2)   ;;  %v2013_v6 = vld [vmem:[%s2957_s1 + $0x10] ss:$8 sps:$4 sm:$0xff] (!%p190_p2)   ;;  %v2015_v8 = vld [vmem:[%s2957_s1 + $0x24] ss:$8 sps:$4 sm:$0xff] (!%p190_p2)  }
   0x8   : > { %1322 = vmatpush1.bf16.msra.mxu0 (!%p190_p2), %v2008_v3  ;;  %1237 = vmatprep.subr.bf16.mxu1 (!%p190_p2), %v2009_v4  ;;  %v2014_v7 = vld [vmem:[%s2957_s1 + $0x210] ss:$8 sps:$4 sm:$0xff] (!%p190_p2)   ;;  %v2017_v9 = vld [vmem:[%s2957_s1 + $0x224] ss:$8 sps:$4 sm:$0xff] (!%p190_p2)   ;;  %v2019_v10 = vld [vmem:[%s2957_s1 + $0x20] ss:$8 sps:$4 sm:$0xff] (!%p190_p2)  }
   0x9   : > { %1323 = vmatprep.subr.bf16.mxu0 (!%p190_p2), %v2011_v5  ;;  %v2020_v11 = vld [vmem:[%s2957_s1 + $0x220] ss:$8 sps:$4 sm:$0xff] (!%p190_p2)   ;;  %v2021_v12 = vld [vmem:[%s2957_s1 + $0x34] ss:$8 sps:$4 sm:$0xff] (!%p190_p2)   ;;  %v2025_v14 = vld [vmem:[%s2957_s1 + $0x30] ss:$8 sps:$4 sm:$0xff] (!%p190_p2)  }
   0xa   : > { %v2023_v13 = vld [vmem:[%s2957_s1 + $0x234] ss:$8 sps:$4 sm:$0xff] (!%p190_p2)   ;;  %v2026_v15 = vld [vmem:[%s2957_s1 + $0x230] ss:$8 sps:$4 sm:$0xff] (!%p190_p2)   ;;  %v2027_v16 = vld [vmem:[%s2957_s1 + $0x44] ss:$8 sps:$4 sm:$0xff] (!%p190_p2)  }
   0xb   : > { %1238 = vmatpush1.bf16.msra.mxu1 (!%p190_p2), %v2013_v6  ;;  %v2029_v17 = vld [vmem:[%s2957_s1 + $0x244] ss:$8 sps:$4 sm:$0xff] (!%p190_p2)   ;;  %v2031_v18 = vld [vmem:[%s2957_s1 + $0x40] ss:$8 sps:$4 sm:$0xff] (!%p190_p2)   ;;  %v2033_v20 = vld [vmem:[%s2957_s1 + $0x54] ss:$8 sps:$4 sm:$0xff] (!%p190_p2)  }
   0xc   : > { %1324 = vmatpush1.bf16.msra.mxu0 (!%p190_p2), %v2014_v7  ;;  %1239 = vmatprep.subr.bf16.mxu1 (!%p190_p2), %v2015_v8  ;;  %v2032_v19 = vld [vmem:[%s2957_s1 + $0x240] ss:$8 sps:$4 sm:$0xff] (!%p190_p2)   ;;  %v2035_v21 = vld [vmem:[%s2957_s1 + $0x254] ss:$8 sps:$4 sm:$0xff] (!%p190_p2)   ;;  %v2037_v22 = vld [vmem:[%s2957_s1 + $0x50] ss:$8 sps:$4 sm:$0xff] (!%p190_p2)  }
   0xd   : > { %1325 = vmatprep.subr.bf16.mxu0 %v2017_v9  ;;  %v2038_v23 = vld [vmem:[%s2957_s1 + $0x250] ss:$8 sps:$4 sm:$0xff]   ;;  %v2039_v24 = vld [vmem:[%s2957_s1 + $0x64] ss:$8 sps:$4 sm:$0xff]   ;;  %v2043_v26 = vld [vmem:[%s2957_s1 + $0x60] ss:$8 sps:$4 sm:$0xff]  }
   0xe   : > { %v2041_v25 = vld [vmem:[%s2957_s1 + $0x264] ss:$8 sps:$4 sm:$0xff]   ;;  %v2044_v27 = vld [vmem:[%s2957_s1 + $0x260] ss:$8 sps:$4 sm:$0xff]   ;;  %v2045_v28 = vld [vmem:[%s2957_s1 + $0x74] ss:$8 sps:$4 sm:$0xff]  }
   0xf   : > { %1240 = vmatpush1.bf16.msra.mxu1 %v2019_v10  ;;  %v2047_v29 = vld [vmem:[%s2957_s1 + $0x274] ss:$8 sps:$4 sm:$0xff]   ;;  %v2049_v30 = vld [vmem:[%s2957_s1 + $0x70] ss:$8 sps:$4 sm:$0xff]   ;;  %p220_p3 = scmp.lt.s32.totalorder %s1774_s7, 3 }
  0x10   : > { %1326 = vmatpush1.bf16.msra.mxu0 %v2020_v11  ;;  %1241 = vmatprep.subr.bf16.mxu1 %v2021_v12  ;;  %v2050_v31 = vld [vmem:[%s2957_s1 + $0x270] ss:$8 sps:$4 sm:$0xff]   ;;  %v2051_v32 = vld [vmem:[%s2957_s1 + $0x84] ss:$8 sps:$4 sm:$0xff]   ;;  %v2055_v34 = vld [vmem:[%s2957_s1 + $0x80] ss:$8 sps:$4 sm:$0xff]  }
  0x11   : > { %1327 = vmatprep.subr.bf16.mxu0 %v2023_v13  ;;  %v2053_v33 = vld [vmem:[%s2957_s1 + $0x284] ss:$8 sps:$4 sm:$0xff]   ;;  %v2056_v35 = vld [vmem:[%s2957_s1 + $0x280] ss:$8 sps:$4 sm:$0xff]   ;;  %s2963_s7 = smov (!%p220_p3, %s1774_s7), 3 }
  0x12   : > { %v2057_v36 = vld [vmem:[%s2957_s1 + $0x94] ss:$8 sps:$4 sm:$0xff]   ;;  %v2061_v38 = vld [vmem:[%s2957_s1 + $0x90] ss:$8 sps:$4 sm:$0xff]   ;;  %s1994_s29 = smul.u32 80, %s2963_s7  ;;  %s1973_s6 = sshll.u32 %s2963_s7, 4 }
  0x13   : > { %1242 = vmatpush1.bf16.msra.mxu1 %v2025_v14  ;;  %v2059_v37 = vld [vmem:[%s2957_s1 + $0x294] ss:$8 sps:$4 sm:$0xff]   ;;  %v2062_v39 = vld [vmem:[%s2957_s1 + $0x290] ss:$8 sps:$4 sm:$0xff]   ;;  %v2063_v40 = vld [vmem:[%s2957_s1 + $0xa4] ss:$8 sps:$4 sm:$0xff]   ;;  %s231_s10 = scalar_lea.vmem %s2961_s5, %s1973_s6 }
  0x14   : > { %1328 = vmatpush1.bf16.msra.mxu0 %v2026_v15  ;;  %1243 = vmatprep.subr.bf16.mxu1 %v2027_v16  ;;  %v2065_v41 = vld [vmem:[%s2957_s1 + $0x2a4] ss:$8 sps:$4 sm:$0xff]   ;;  %v2067_v42 = vld [vmem:[%s2957_s1 + $0xa0] ss:$8 sps:$4 sm:$0xff]   ;;  %s2477_s17 = scalar_lea.vmem %s2956_s0, %s1994_s29  ;;  %v2069_v44 = vld [vmem:[%s2957_s1 + $0xb4] ss:$8 sps:$4 sm:$0xff]  }
  0x15   : > { %1329 = vmatprep.subr.bf16.mxu0 %v2029_v17  ;;  %v2068_v43 = vld [vmem:[%s2957_s1 + $0x2a0] ss:$8 sps:$4 sm:$0xff]   ;;  %v2071_v45 = vld [vmem:[%s2957_s1 + $0x2b4] ss:$8 sps:$4 sm:$0xff]   ;;  %v2073_v46 = vld [vmem:[%s2957_s1 + $0xb0] ss:$8 sps:$4 sm:$0xff]  }
  0x16   : > { %v2074_v47 = vld [vmem:[%s2957_s1 + $0x2b0] ss:$8 sps:$4 sm:$0xff]   ;;  %v234_v48 = vld [vmem:[%s2477_s17 + $0x8] sm:$0xff]  ;;  %v2081_v58 = vld [vmem:[%s2957_s1 + $0xd4] ss:$8 sps:$4 sm:$0xff]  }
  0x17   : > { %1244 = vmatpush1.bf16.msra.mxu1 %v2031_v18  ;;  %v244_v49 = vld [vmem:[%s2477_s17 + $0x58] sm:$0xff]  ;;  %v2075_v50 = vld [vmem:[%s2957_s1 + $0xc4] ss:$8 sps:$4 sm:$0xff]   ;;  %v2079_v56 = vld [vmem:[%s2957_s1 + $0xc0] ss:$8 sps:$4 sm:$0xff]  }
  0x18   : > { %1330 = vmatpush1.bf16.msra.mxu0 %v2032_v19  ;;  %1245 = vmatprep.subr.bf16.mxu1 %v2033_v20  ;;  %v2077_v51 = vld [vmem:[%s2957_s1 + $0x2c4] ss:$8 sps:$4 sm:$0xff]   ;;  %v415_v52 = vpack.c.bf16 %v244_v49, %v234_v48  ;;  %v248_v54 = vld [vmem:[%s2477_s17 + $0x78] sm:$0xff]  ;;  %v2080_v57 = vld [vmem:[%s2957_s1 + $0x2c0] ss:$8 sps:$4 sm:$0xff]  }
  0x19   : > { %1331 = vmatprep.subr.bf16.mxu0 %v2035_v21  ;;  %v238_v53 = vld [vmem:[%s2477_s17 + $0x28] sm:$0xff]  ;;  %v2083_v59 = vld [vmem:[%s2957_s1 + $0x2d4] ss:$8 sps:$4 sm:$0xff]   ;;  %v2085_v60 = vld [vmem:[%s2957_s1 + $0xd0] ss:$8 sps:$4 sm:$0xff]  }
  0x1a   : > { %1267 = vmatprep.mubr.bf16.mxu1 %v415_v52  ;;  %v419_v55 = vpack.c.bf16 %v248_v54, %v238_v53  ;;  %v2086_v61 = vld [vmem:[%s2957_s1 + $0x2d0] ss:$8 sps:$4 sm:$0xff]   ;;  %v2087_v62 = vld [vmem:[%s2957_s1 + $0xe4] ss:$8 sps:$4 sm:$0xff]   ;;  %v2091_v0 = vld [vmem:[%s2957_s1 + $0xe0] ss:$8 sps:$4 sm:$0xff]  }
  0x1b   : > { %1246 = vmatpush1.bf16.msra.mxu1 %v2037_v22  ;;  %v2089_v63 = vld [vmem:[%s2957_s1 + $0x2e4] ss:$8 sps:$4 sm:$0xff]   ;;  %v2092_v1 = vld [vmem:[%s2957_s1 + $0x2e0] ss:$8 sps:$4 sm:$0xff]   ;;  %v2093_v2 = vld [vmem:[%s2957_s1 + $0xf4] ss:$8 sps:$4 sm:$0xff]  }
  0x1c   : > { %1332 = vmatpush1.bf16.msra.mxu0 %v2038_v23  ;;  %1247 = vmatprep.subr.bf16.mxu1 %v2039_v24  ;;  %v2095_v3 = vld [vmem:[%s2957_s1 + $0x2f4] ss:$8 sps:$4 sm:$0xff]   ;;  %v2097_v4 = vld [vmem:[%s2957_s1 + $0xf0] ss:$8 sps:$4 sm:$0xff]   ;;  %v233_v6 = vld [vmem:[%s2477_s17] sm:$0xff] }
  0x1d   : > { %1333 = vmatprep.subr.bf16.mxu0 %v2041_v25  ;;  %1353 = vmatprep.mubr.bf16.mxu0 %v419_v55  ;;  %v2098_v5 = vld [vmem:[%s2957_s1 + $0x2f0] ss:$8 sps:$4 sm:$0xff]   ;;  %v2101_v7 = vld [vmem:[%s2957_s1 + $0x104] ss:$8 sps:$4 sm:$0xff]   ;;  %v2099_v12 = vld [vmem:[%s2957_s1 + $0x100] ss:$8 sps:$4 sm:$0xff]  }
  0x1e   : > { %v243_v8 = vld [vmem:[%s2477_s17 + $0x50] sm:$0xff]  ;;  %v237_v9 = vld [vmem:[%s2477_s17 + $0x20] sm:$0xff] }
  0x1f   : > { %1248 = vmatpush1.bf16.msra.mxu1 %v2043_v26  ;;  %v247_v10 = vld [vmem:[%s2477_s17 + $0x70] sm:$0xff]  ;;  %v2104_v11 = vld [vmem:[%s2957_s1 + $0x304] ss:$8 sps:$4 sm:$0xff]   ;;  %v2102_v13 = vld [vmem:[%s2957_s1 + $0x300] ss:$8 sps:$4 sm:$0xff]   ;;  %v414_v14 = vpack.c.bf16 %v243_v8, %v233_v6 }
  0x20   : > { %1334 = vmatpush1.bf16.msra.mxu0 %v2044_v27  ;;  %1249 = vmatprep.subr.bf16.mxu1 %v2045_v28  ;;  %v418_v15 = vpack.c.bf16 %v247_v10, %v237_v9  ;;  %v2107_v16 = vld [vmem:[%s2957_s1 + $0x114] ss:$8 sps:$4 sm:$0xff]   ;;  %v2105_v18 = vld [vmem:[%s2957_s1 + $0x110] ss:$8 sps:$4 sm:$0xff]   ;;  %v2113_v20 = vld [vmem:[%s2957_s1 + $0x124] ss:$8 sps:$4 sm:$0xff]  }
  0x21   : > { %1335 = vmatprep.subr.bf16.mxu0 %v2047_v29  ;;  %v2110_v17 = vld [vmem:[%s2957_s1 + $0x314] ss:$8 sps:$4 sm:$0xff]   ;;  %v2108_v19 = vld [vmem:[%s2957_s1 + $0x310] ss:$8 sps:$4 sm:$0xff]   ;;  %v2116_v21 = vld [vmem:[%s2957_s1 + $0x324] ss:$8 sps:$4 sm:$0xff]  }
  0x22   : > { %v2111_v22 = vld [vmem:[%s2957_s1 + $0x120] ss:$8 sps:$4 sm:$0xff]   ;;  %v2119_v24 = vld [vmem:[%s2957_s1 + $0x134] ss:$8 sps:$4 sm:$0xff]   ;;  %v2117_v26 = vld [vmem:[%s2957_s1 + $0x130] ss:$8 sps:$4 sm:$0xff]  }
  0x23   : > { %1250 = vmatpush1.bf16.msra.mxu1 %v2049_v30  ;;  %v2114_v23 = vld [vmem:[%s2957_s1 + $0x320] ss:$8 sps:$4 sm:$0xff]   ;;  %v2122_v25 = vld [vmem:[%s2957_s1 + $0x334] ss:$8 sps:$4 sm:$0xff]   ;;  %v2120_v27 = vld [vmem:[%s2957_s1 + $0x330] ss:$8 sps:$4 sm:$0xff]  }
  0x24   : > { %1336 = vmatpush1.bf16.msra.mxu0 %v2050_v31  ;;  %1251 = vmatprep.subr.bf16.mxu1 %v2051_v32  ;;  %v2125_v28 = vld [vmem:[%s2957_s1 + $0x144] ss:$8 sps:$4 sm:$0xff]   ;;  %v2123_v30 = vld [vmem:[%s2957_s1 + $0x140] ss:$8 sps:$4 sm:$0xff]   ;;  %v2131_v32 = vld [vmem:[%s2957_s1 + $0x154] ss:$8 sps:$4 sm:$0xff]  }
  0x25   : > { %1337 = vmatprep.subr.bf16.mxu0 %v2053_v33  ;;  %v2128_v29 = vld [vmem:[%s2957_s1 + $0x344] ss:$8 sps:$4 sm:$0xff]   ;;  %v2126_v31 = vld [vmem:[%s2957_s1 + $0x340] ss:$8 sps:$4 sm:$0xff]   ;;  %v2134_v33 = vld [vmem:[%s2957_s1 + $0x354] ss:$8 sps:$4 sm:$0xff]  }
  0x26   : > { %v2141_v48 = vld [vmem:[%s2957_s1 + $0x170] ss:$8 sps:$4 sm:$0xff]   ;;  %v2147_v52 = vld [vmem:[%s2957_s1 + $0x180] ss:$8 sps:$4 sm:$0xff]   ;;  %v2155_v54 = vld [vmem:[%s2957_s1 + $0x194] ss:$8 sps:$4 sm:$0xff]  }
  0x27   : > { %1252 = vmatpush1.bf16.msra.mxu1 %v2055_v34  ;;  %v2129_v34 = vld [vmem:[%s2957_s1 + $0x150] ss:$8 sps:$4 sm:$0xff]   ;;  %v2150_v53 = vld [vmem:[%s2957_s1 + $0x380] ss:$8 sps:$4 sm:$0xff]   ;;  %v2158_v55 = vld [vmem:[%s2957_s1 + $0x394] ss:$8 sps:$4 sm:$0xff]  }
  0x28   : > { %1338 = vmatpush1.bf16.msra.mxu0 %v2056_v35  ;;  %1253 = vmatprep.subr.bf16.mxu1 %v2057_v36  ;;  %v2132_v35 = vld [vmem:[%s2957_s1 + $0x350] ss:$8 sps:$4 sm:$0xff]   ;;  %v2137_v36 = vld [vmem:[%s2957_s1 + $0x164] ss:$8 sps:$4 sm:$0xff]   ;;  %v2179_v6 = vld [vmem:[%s2957_s1 + $0x1d4] ss:$8 sps:$4 sm:$0xff]  }
  0x29   : > { %1339 = vmatprep.subr.bf16.mxu0 %v2059_v37  ;;  %v2140_v37 = vld [vmem:[%s2957_s1 + $0x364] ss:$8 sps:$4 sm:$0xff]   ;;  %v2144_v49 = vld [vmem:[%s2957_s1 + $0x370] ss:$8 sps:$4 sm:$0xff]  }
  0x2a   : > { %v2177_v8 = vld [vmem:[%s2957_s1 + $0x1d0] ss:$8 sps:$4 sm:$0xff]   ;;  %v2185_v10 = vld [vmem:[%s2957_s1 + $0x1e4] ss:$8 sps:$4 sm:$0xff]  }
  0x2b   : > { %1254 = vmatpush1.bf16.msra.mxu1 %v2061_v38  ;;  %v2135_v38 = vld [vmem:[%s2957_s1 + $0x160] ss:$8 sps:$4 sm:$0xff]   ;;  %v2180_v9 = vld [vmem:[%s2957_s1 + $0x3d0] ss:$8 sps:$4 sm:$0xff]  }
  0x2c   : > { %1340 = vmatpush1.bf16.msra.mxu0 %v2062_v39  ;;  %1255 = vmatprep.subr.bf16.mxu1 %v2063_v40  ;;  %v2138_v39 = vld [vmem:[%s2957_s1 + $0x360] ss:$8 sps:$4 sm:$0xff]   ;;  %v2143_v40 = vld [vmem:[%s2957_s1 + $0x174] ss:$8 sps:$4 sm:$0xff]  }
  0x2d   : > { %1341 = vmatprep.subr.bf16.mxu0 %v2065_v41  ;;  %v236_v41 = vld [vmem:[%s2477_s17 + $0x18] sm:$0xff] }
  0x2f   : > { %1256 = vmatpush1.bf16.msra.mxu1 %v2067_v42  ;;  %v246_v42 = vld [vmem:[%s2477_s17 + $0x68] sm:$0xff] }
  0x30   : > { %1342 = vmatpush1.bf16.msra.mxu0 %v2068_v43  ;;  %1257 = vmatprep.subr.bf16.mxu1 %v2069_v44  ;;  %v2146_v43 = vld [vmem:[%s2957_s1 + $0x374] ss:$8 sps:$4 sm:$0xff]   ;;  %v417_v44 = vpack.c.bf16 %v246_v42, %v236_v41  ;;  %v2216_v42 = vld [vmem:[%s2957_s1 + $0x470] ss:$8 sps:$4 sm:$0xff]  }
  0x31   : > { %1343 = vmatprep.subr.bf16.mxu0 %v2071_v45  ;;  %v240_v45 = vld [vmem:[%s2477_s17 + $0x38] sm:$0xff] }
  0x32   : > { %v2218_v41 = vld [vmem:[%s2957_s1 + $0x474] ss:$8 sps:$4 sm:$0xff]  }
  0x33   : > { %1258 = vmatpush1.bf16.msra.mxu1 %v2073_v46  ;;  %v250_v46 = vld [vmem:[%s2477_s17 + $0x88] sm:$0xff] }
  0x34   : > { %1344 = vmatpush1.bf16.msra.mxu0 %v2074_v47  ;;  %1259 = vmatprep.subr.bf16.mxu1 %v2075_v50  ;;  %v421_v47 = vpack.c.bf16 %v250_v46, %v240_v45  ;;  %v2149_v50 = vld [vmem:[%s2957_s1 + $0x184] ss:$8 sps:$4 sm:$0xff]   ;;  %v2224_v45 = vld [vmem:[%s2957_s1 + $0x494] ss:$8 sps:$4 sm:$0xff]   ;;  %v2222_v46 = vld [vmem:[%s2957_s1 + $0x490] ss:$8 sps:$4 sm:$0xff]  }
  0x35   : > { %1345 = vmatprep.subr.bf16.mxu0 %v2077_v51  ;;  %v2152_v51 = vld [vmem:[%s2957_s1 + $0x384] ss:$8 sps:$4 sm:$0xff]  }
  0x37   : > { %1260 = vmatpush1.bf16.msra.mxu1 %v2079_v56  ;;  %v2153_v56 = vld [vmem:[%s2957_s1 + $0x190] ss:$8 sps:$4 sm:$0xff]  }
  0x38   : > { %1346 = vmatpush1.bf16.msra.mxu0 %v2080_v57  ;;  %1261 = vmatprep.subr.bf16.mxu1 %v2081_v58  ;;  %v2156_v57 = vld [vmem:[%s2957_s1 + $0x390] ss:$8 sps:$4 sm:$0xff]   ;;  %v2161_v58 = vld [vmem:[%s2957_s1 + $0x1a4] ss:$8 sps:$4 sm:$0xff]  }
  0x39   : > { %1347 = vmatprep.subr.bf16.mxu0 %v2083_v59  ;;  %v2164_v59 = vld [vmem:[%s2957_s1 + $0x3a4] ss:$8 sps:$4 sm:$0xff]  }
  0x3b   : > { %1262 = vmatpush1.bf16.msra.mxu1 %v2085_v60  ;;  %v2159_v60 = vld [vmem:[%s2957_s1 + $0x1a0] ss:$8 sps:$4 sm:$0xff]  }
  0x3c   : > { %1348 = vmatpush1.bf16.msra.mxu0 %v2086_v61  ;;  %1263 = vmatprep.subr.bf16.mxu1 %v2087_v62  ;;  %v2162_v61 = vld [vmem:[%s2957_s1 + $0x3a0] ss:$8 sps:$4 sm:$0xff]   ;;  %v2167_v62 = vld [vmem:[%s2957_s1 + $0x1b4] ss:$8 sps:$4 sm:$0xff]  }
  0x3d   : > { %1349 = vmatprep.subr.bf16.mxu0 %v2089_v63  ;;  %v2170_v63 = vld [vmem:[%s2957_s1 + $0x3b4] ss:$8 sps:$4 sm:$0xff]  }
  0x3f   : > { %1264 = vmatpush1.bf16.msra.mxu1 %v2091_v0  ;;  %v2165_v0 = vld [vmem:[%s2957_s1 + $0x1b0] ss:$8 sps:$4 sm:$0xff]  }
  0x40   : > { %1350 = vmatpush1.bf16.msra.mxu0 %v2092_v1  ;;  %1265 = vmatprep.subr.bf16.mxu1 %v2093_v2  ;;  %v2168_v1 = vld [vmem:[%s2957_s1 + $0x3b0] ss:$8 sps:$4 sm:$0xff]   ;;  %v2173_v2 = vld [vmem:[%s2957_s1 + $0x1c4] ss:$8 sps:$4 sm:$0xff]  }
  0x41   : > { %1351 = vmatprep.subr.bf16.mxu0 %v2095_v3  ;;  %v2176_v3 = vld [vmem:[%s2957_s1 + $0x3c4] ss:$8 sps:$4 sm:$0xff]  }
  0x43   : > { %1266 = vmatpush1.bf16.msra.mxu1 %v2097_v4  ;;  %v2171_v4 = vld [vmem:[%s2957_s1 + $0x1c0] ss:$8 sps:$4 sm:$0xff]  }
  0x44   : > { %1352 = vmatpush1.bf16.msra.mxu0 %v2098_v5  ;;  %1278 = vmatprep.subr.bf16.mxu1 %v2101_v7  ;;  %v2174_v5 = vld [vmem:[%s2957_s1 + $0x3c0] ss:$8 sps:$4 sm:$0xff]   ;;  %v2182_v7 = vld [vmem:[%s2957_s1 + $0x3d4] ss:$8 sps:$4 sm:$0xff]  }
  0x45   : > { %1364 = vmatprep.subr.bf16.mxu0 %v2104_v11  ;;  %v2188_v11 = vld [vmem:[%s2957_s1 + $0x3e4] ss:$8 sps:$4 sm:$0xff]  }
  0x46   : > { %1268 = vmatmul.mubr.bf16.vlgmr.msra.gmra.mrb[0].mxu1 %v414_v14  ;;  %v2191_v14 = vld [vmem:[%s2957_s1 + $0x1f4] ss:$8 sps:$4 sm:$0xff]  }
  0x47   : > { %1354 = vmatmul.mubr.bf16.vlgmr.msra.gmra.mrb[0].mxu0 %v418_v15  ;;  %1279 = vmatpush1.bf16.msra.mxu1 %v2099_v12  ;;  %v2183_v12 = vld [vmem:[%s2957_s1 + $0x1e0] ss:$8 sps:$4 sm:$0xff]   ;;  %v2194_v15 = vld [vmem:[%s2957_s1 + $0x3f4] ss:$8 sps:$4 sm:$0xff]  }
  0x48   : > { %1365 = vmatpush1.bf16.msra.mxu0 %v2102_v13  ;;  %1280 = vmatprep.subr.bf16.mxu1 %v2107_v16  ;;  %v2186_v13 = vld [vmem:[%s2957_s1 + $0x3e0] ss:$8 sps:$4 sm:$0xff]   ;;  %v2189_v16 = vld [vmem:[%s2957_s1 + $0x1f0] ss:$8 sps:$4 sm:$0xff]  }
  0x49   : > { %1366 = vmatprep.subr.bf16.mxu0 %v2110_v17  ;;  %1310 = vmatprep.mubr.bf16.mxu1 %v417_v44  ;;  %v2192_v17 = vld [vmem:[%s2957_s1 + $0x3f0] ss:$8 sps:$4 sm:$0xff]   ;;  %v2219_v44 = vld [vmem:[%s2957_s1 + $0x480] ss:$8 sps:$4 sm:$0xff]  }
  0x4a   : > { %1396 = vmatprep.mubr.bf16.mxu0 %v421_v47  ;;  %v2227_v47 = vld [vmem:[%s2957_s1 + $0x4a4] ss:$8 sps:$4 sm:$0xff]  }
  0x4b   : > { %1281 = vmatpush1.bf16.msra.mxu1 %v2105_v18  ;;  %v235_v18 = vld [vmem:[%s2477_s17 + $0x10] sm:$0xff] }
  0x4c   : > { %1367 = vmatpush1.bf16.msra.mxu0 %v2108_v19  ;;  %1282 = vmatprep.subr.bf16.mxu1 %v2113_v20  ;;  %v245_v19 = vld [vmem:[%s2477_s17 + $0x60] sm:$0xff]  ;;  %v239_v20 = vld [vmem:[%s2477_s17 + $0x30] sm:$0xff] }
  0x4d   : > { %1368 = vmatprep.subr.bf16.mxu0 %v2116_v21  ;;  %v249_v21 = vld [vmem:[%s2477_s17 + $0x80] sm:$0xff] }
  0x4f   : > { %1283 = vmatpush1.bf16.msra.mxu1 %v2111_v22  ;;  %v2197_v22 = vld [vmem:[%s2957_s1 + $0x404] ss:$8 sps:$4 sm:$0xff]  }
  0x50   : > { %1369 = vmatpush1.bf16.msra.mxu0 %v2114_v23  ;;  %1284 = vmatprep.subr.bf16.mxu1 %v2119_v24  ;;  %v242_v23 = vld [vmem:[%s2477_s17 + $0x48] sm:$0xff]  ;;  %v252_v24 = vld [vmem:[%s2477_s17 + $0x98] sm:$0xff] }
  0x51   : > { %1370 = vmatprep.subr.bf16.mxu0 %v2122_v25  ;;  %v416_v25 = vpack.c.bf16 %v245_v19, %v235_v18  ;;  %v2275_v18 = vld [vmem:[%s2959_s3 + $0xa4] ss:$8 sps:$4 sm:$0xff]   ;;  %v2273_v19 = vld [vmem:[%s2959_s3 + $0xa0] ss:$8 sps:$4 sm:$0xff]  }
  0x53   : > { %1285 = vmatpush1.bf16.msra.mxu1 %v2117_v26  ;;  %v420_v26 = vpack.c.bf16 %v249_v21, %v239_v20  ;;  %v2278_v20 = vld [vmem:[%s2959_s3 + $0xb4] ss:$8 sps:$4 sm:$0xff]   ;;  %v2276_v21 = vld [vmem:[%s2959_s3 + $0xb0] ss:$8 sps:$4 sm:$0xff]  }
  0x54   : > { %1371 = vmatpush1.bf16.msra.mxu0 %v2120_v27  ;;  %1286 = vmatprep.subr.bf16.mxu1 %v2125_v28  ;;  %v2195_v27 = vld [vmem:[%s2957_s1 + $0x400] ss:$8 sps:$4 sm:$0xff]   ;;  %v423_v28 = vpack.c.bf16 %v252_v24, %v242_v23  ;;  %v2284_v24 = vld [vmem:[%s2959_s3 + $0xd4] ss:$8 sps:$4 sm:$0xff]  }
  0x55   : > { %1372 = vmatprep.subr.bf16.mxu0 %v2128_v29  ;;  %v2200_v29 = vld [vmem:[%s2957_s1 + $0x414] ss:$8 sps:$4 sm:$0xff]   ;;  %v2279_v23 = vld [vmem:[%s2959_s3 + $0xc0] ss:$8 sps:$4 sm:$0xff]  }
  0x57   : > { %1287 = vmatpush1.bf16.msra.mxu1 %v2123_v30  ;;  %v2198_v30 = vld [vmem:[%s2957_s1 + $0x410] ss:$8 sps:$4 sm:$0xff]  }
  0x58   : > { %1373 = vmatpush1.bf16.msra.mxu0 %v2126_v31  ;;  %1288 = vmatprep.subr.bf16.mxu1 %v2131_v32  ;;  %v2203_v31 = vld [vmem:[%s2957_s1 + $0x424] ss:$8 sps:$4 sm:$0xff]   ;;  %v2201_v32 = vld [vmem:[%s2957_s1 + $0x420] ss:$8 sps:$4 sm:$0xff]  }
  0x59   : > { %1374 = vmatprep.subr.bf16.mxu0 %v2134_v33  ;;  %v2206_v33 = vld [vmem:[%s2957_s1 + $0x434] ss:$8 sps:$4 sm:$0xff]  }
  0x5b   : > { %1289 = vmatpush1.bf16.msra.mxu1 %v2129_v34  ;;  %v2204_v34 = vld [vmem:[%s2957_s1 + $0x430] ss:$8 sps:$4 sm:$0xff]  }
  0x5c   : > { %1375 = vmatpush1.bf16.msra.mxu0 %v2132_v35  ;;  %1290 = vmatprep.subr.bf16.mxu1 %v2137_v36  ;;  %v2209_v35 = vld [vmem:[%s2957_s1 + $0x444] ss:$8 sps:$4 sm:$0xff]   ;;  %v2207_v36 = vld [vmem:[%s2957_s1 + $0x440] ss:$8 sps:$4 sm:$0xff]  }
  0x5d   : > { %1376 = vmatprep.subr.bf16.mxu0 %v2140_v37  ;;  %v2212_v37 = vld [vmem:[%s2957_s1 + $0x454] ss:$8 sps:$4 sm:$0xff]  }
  0x5f   : > { %1291 = vmatpush1.bf16.msra.mxu1 %v2135_v38  ;;  %v2210_v38 = vld [vmem:[%s2957_s1 + $0x450] ss:$8 sps:$4 sm:$0xff]  }
  0x60   : > { %1377 = vmatpush1.bf16.msra.mxu0 %v2138_v39  ;;  %1292 = vmatprep.subr.bf16.mxu1 %v2143_v40  ;;  %v2215_v39 = vld [vmem:[%s2957_s1 + $0x464] ss:$8 sps:$4 sm:$0xff]   ;;  %v2213_v40 = vld [vmem:[%s2957_s1 + $0x460] ss:$8 sps:$4 sm:$0xff]  }
  0x61   : > { %1378 = vmatprep.subr.bf16.mxu0 %v2146_v43  ;;  %v2221_v43 = vld [vmem:[%s2957_s1 + $0x484] ss:$8 sps:$4 sm:$0xff]  }
  0x63   : > { %1293 = vmatpush1.bf16.msra.mxu1 %v2141_v48  ;;  %v2225_v48 = vld [vmem:[%s2957_s1 + $0x4a0] ss:$8 sps:$4 sm:$0xff]  }
  0x64   : > { %1379 = vmatpush1.bf16.msra.mxu0 %v2144_v49  ;;  %1294 = vmatprep.subr.bf16.mxu1 %v2149_v50  ;;  %v2230_v49 = vld [vmem:[%s2957_s1 + $0x4b4] ss:$8 sps:$4 sm:$0xff]   ;;  %v2228_v50 = vld [vmem:[%s2957_s1 + $0x4b0] ss:$8 sps:$4 sm:$0xff]  }
  0x65   : > { %1380 = vmatprep.subr.bf16.mxu0 %v2152_v51  ;;  %v2233_v51 = vld [vmem:[%s2957_s1 + $0x4c4] ss:$8 sps:$4 sm:$0xff]  }
  0x67   : > { %1295 = vmatpush1.bf16.msra.mxu1 %v2147_v52  ;;  %v2231_v52 = vld [vmem:[%s2957_s1 + $0x4c0] ss:$8 sps:$4 sm:$0xff]  }
  0x68   : > { %1381 = vmatpush1.bf16.msra.mxu0 %v2150_v53  ;;  %1296 = vmatprep.subr.bf16.mxu1 %v2155_v54  ;;  %v2236_v53 = vld [vmem:[%s2957_s1 + $0x4d4] ss:$8 sps:$4 sm:$0xff]   ;;  %v2234_v54 = vld [vmem:[%s2957_s1 + $0x4d0] ss:$8 sps:$4 sm:$0xff]  }
  0x69   : > { %1382 = vmatprep.subr.bf16.mxu0 %v2158_v55  ;;  %v2239_v55 = vld [vmem:[%s2957_s1 + $0x4e4] ss:$8 sps:$4 sm:$0xff]  }
  0x6b   : > { %1297 = vmatpush1.bf16.msra.mxu1 %v2153_v56  ;;  %v2237_v56 = vld [vmem:[%s2957_s1 + $0x4e0] ss:$8 sps:$4 sm:$0xff]  }
  0x6c   : > { %1383 = vmatpush1.bf16.msra.mxu0 %v2156_v57  ;;  %1298 = vmatprep.subr.bf16.mxu1 %v2161_v58  ;;  %v2242_v57 = vld [vmem:[%s2957_s1 + $0x4f4] ss:$8 sps:$4 sm:$0xff]   ;;  %v2240_v58 = vld [vmem:[%s2957_s1 + $0x4f0] ss:$8 sps:$4 sm:$0xff]  }
  0x6d   : > { %1384 = vmatprep.subr.bf16.mxu0 %v2164_v59  ;;  %v241_v59 = vld [vmem:[%s2477_s17 + $0x40] sm:$0xff] }
  0x6f   : > { %1299 = vmatpush1.bf16.msra.mxu1 %v2159_v60  ;;  %v251_v60 = vld [vmem:[%s2477_s17 + $0x90] sm:$0xff] }
  0x70   : > { %1385 = vmatpush1.bf16.msra.mxu0 %v2162_v61  ;;  %1300 = vmatprep.subr.bf16.mxu1 %v2167_v62  ;;  %v422_v61 = vpack.c.bf16 %v251_v60, %v241_v59  ;;  %v2243_v62 = vld [vmem:[%s2959_s3] ss:$8 sps:$4 sm:$0xff]  }
  0x71   : > { %1386 = vmatprep.subr.bf16.mxu0 %v2170_v63  ;;  %v2245_v63 = vld [vmem:[%s2959_s3 + $0x4] ss:$8 sps:$4 sm:$0xff]   ;;  %v1486_v59 = vld [vmem:[%s2960_s4] sm:$0x3] }
  0x73   : > { %1301 = vmatpush1.bf16.msra.mxu1 %v2165_v0  ;;  %v2248_v0 = vld [vmem:[%s2959_s3 + $0x14] ss:$8 sps:$4 sm:$0xff]  }
  0x74   : > { %1387 = vmatpush1.bf16.msra.mxu0 %v2168_v1  ;;  %1302 = vmatprep.subr.bf16.mxu1 %v2173_v2  ;;  %v2246_v1 = vld [vmem:[%s2959_s3 + $0x10] ss:$8 sps:$4 sm:$0xff]   ;;  %v2251_v2 = vld [vmem:[%s2959_s3 + $0x24] ss:$8 sps:$4 sm:$0xff]  }
  0x75   : > { %1388 = vmatprep.subr.bf16.mxu0 %v2176_v3  ;;  %v2249_v3 = vld [vmem:[%s2959_s3 + $0x20] ss:$8 sps:$4 sm:$0xff]  }
  0x77   : > { %1303 = vmatpush1.bf16.msra.mxu1 %v2171_v4  ;;  %v2254_v4 = vld [vmem:[%s2959_s3 + $0x34] ss:$8 sps:$4 sm:$0xff]  }
  0x78   : > { %1389 = vmatpush1.bf16.msra.mxu0 %v2174_v5  ;;  %1304 = vmatprep.subr.bf16.mxu1 %v2179_v6  ;;  %v2252_v5 = vld [vmem:[%s2959_s3 + $0x30] ss:$8 sps:$4 sm:$0xff]   ;;  %v2257_v6 = vld [vmem:[%s2959_s3 + $0x44] ss:$8 sps:$4 sm:$0xff]  }
  0x79   : > { %1390 = vmatprep.subr.bf16.mxu0 %v2182_v7  ;;  %v2255_v7 = vld [vmem:[%s2959_s3 + $0x40] ss:$8 sps:$4 sm:$0xff]  }
  0x7b   : > { %1305 = vmatpush1.bf16.msra.mxu1 %v2177_v8  ;;  %v2260_v8 = vld [vmem:[%s2959_s3 + $0x54] ss:$8 sps:$4 sm:$0xff]  }
  0x7c   : > { %1391 = vmatpush1.bf16.msra.mxu0 %v2180_v9  ;;  %1306 = vmatprep.subr.bf16.mxu1 %v2185_v10  ;;  %v2258_v9 = vld [vmem:[%s2959_s3 + $0x50] ss:$8 sps:$4 sm:$0xff]   ;;  %v2263_v10 = vld [vmem:[%s2959_s3 + $0x64] ss:$8 sps:$4 sm:$0xff]  }
  0x7d   : > { %1392 = vmatprep.subr.bf16.mxu0 %v2188_v11  ;;  %v2261_v11 = vld [vmem:[%s2959_s3 + $0x60] ss:$8 sps:$4 sm:$0xff]  }
  0x7f   : > { %1307 = vmatpush1.bf16.msra.mxu1 %v2183_v12  ;;  %v2266_v12 = vld [vmem:[%s2959_s3 + $0x74] ss:$8 sps:$4 sm:$0xff]  }
  0x80   : > { %1393 = vmatpush1.bf16.msra.mxu0 %v2186_v13  ;;  %1308 = vmatprep.subr.bf16.mxu1 %v2191_v14  ;;  %v2264_v13 = vld [vmem:[%s2959_s3 + $0x70] ss:$8 sps:$4 sm:$0xff]   ;;  %v2269_v14 = vld [vmem:[%s2959_s3 + $0x84] ss:$8 sps:$4 sm:$0xff]  }
  0x81   : > { %1394 = vmatprep.subr.bf16.mxu0 %v2194_v15  ;;  %v2267_v15 = vld [vmem:[%s2959_s3 + $0x80] ss:$8 sps:$4 sm:$0xff]  }
  0x83   : > { %1309 = vmatpush1.bf16.msra.mxu1 %v2189_v16  ;;  %v2272_v16 = vld [vmem:[%s2959_s3 + $0x94] ss:$8 sps:$4 sm:$0xff]  }
  0x84   : > { %1395 = vmatpush1.bf16.msra.mxu0 %v2192_v17  ;;  %1660 = vmatprep.subr.bf16.mxu1 %v2245_v63  ;;  %v2270_v17 = vld [vmem:[%s2959_s3 + $0x90] ss:$8 sps:$4 sm:$0xff]  }
  0x85   : > { %1407 = vmatprep.subr.bf16.mxu0 %v2197_v22  ;;  %v2281_v22 = vld [vmem:[%s2959_s3 + $0xc4] ss:$8 sps:$4 sm:$0xff]  }
  0x86   : > { %1311 = vmatmul.mubr.bf16.vlgmr.msra.gmra.mrb[0].mxu1 %v416_v25  ;;  %v2282_v25 = vld [vmem:[%s2959_s3 + $0xd0] ss:$8 sps:$4 sm:$0xff]  }
  0x87   : > { %1397 = vmatmul.mubr.bf16.vlgmr.msra.gmra.mrb[0].mxu0 %v420_v26  ;;  %1661 = vmatpush1.bf16.msra.mxu1 %v2243_v62  ;;  %v2287_v26 = vld [vmem:[%s2959_s3 + $0xe4] ss:$8 sps:$4 sm:$0xff]  }
  0x88   : > { %1408 = vmatpush1.bf16.msra.mxu0 %v2195_v27  ;;  %1439 = vmatprep.mubr.bf16.mxu0 %v423_v28  ;;  %v2285_v27 = vld [vmem:[%s2959_s3 + $0xe0] ss:$8 sps:$4 sm:$0xff]   ;;  %v2290_v28 = vld [vmem:[%s2959_s3 + $0xf4] ss:$8 sps:$4 sm:$0xff]  }
  0x89   : > { %1409 = vmatprep.subr.bf16.mxu0 %v2200_v29  ;;  %1662 = vmatprep.subr.bf16.mxu1 %v2248_v0  ;;  %v2288_v29 = vld [vmem:[%s2959_s3 + $0xf0] ss:$8 sps:$4 sm:$0xff]  }
  0x8b   : > { %1663 = vmatpush1.bf16.msra.mxu1 %v2246_v1 }
  0x8c   : > { %1410 = vmatpush1.bf16.msra.mxu0 %v2198_v30  ;;  %1664 = vmatprep.subr.bf16.mxu1 %v2251_v2 }
  0x8d   : > { %1411 = vmatprep.subr.bf16.mxu0 %v2203_v31 }
  0x8f   : > { %1665 = vmatpush1.bf16.msra.mxu1 %v2249_v3 }
  0x90   : > { %1412 = vmatpush1.bf16.msra.mxu0 %v2201_v32  ;;  %1666 = vmatprep.subr.bf16.mxu1 %v2254_v4 }
  0x91   : > { %1413 = vmatprep.subr.bf16.mxu0 %v2206_v33 }
  0x93   : > { %1667 = vmatpush1.bf16.msra.mxu1 %v2252_v5 }
  0x94   : > { %1414 = vmatpush1.bf16.msra.mxu0 %v2204_v34  ;;  %1668 = vmatprep.subr.bf16.mxu1 %v2257_v6  ;;  %v425_v34 = vlaneseq }
  0x95   : > { %1415 = vmatprep.subr.bf16.mxu0 %v2209_v35 }
  0x96   : > { %v426_v35 = vshrl.u32 %v425_v34, 7 }
  0x97   : > { %1669 = vmatpush1.bf16.msra.mxu1 %v2255_v7 }
  0x98   : > { %1416 = vmatpush1.bf16.msra.mxu0 %v2207_v36  ;;  %1670 = vmatprep.subr.bf16.mxu1 %v2260_v8  ;;  %v427_v36 = vsub.s32 0, %v426_v35 }
  0x99   : > { %1417 = vmatprep.subr.bf16.mxu0 %v2212_v37  ;;  %v413_v37 = vld [vmem:[%s2958_s2] sm:$0x3] }
  0x9a   : > { %v1493_v60 = vrot.slane %v1486_v59, %v427_v36 }
  0x9b   : > { %1671 = vmatpush1.bf16.msra.mxu1 %v2258_v9 }
  0x9c   : > { %1418 = vmatpush1.bf16.msra.mxu0 %v2210_v38  ;;  %1672 = vmatprep.subr.bf16.mxu1 %v2263_v10  ;;  %v431_v38 = vsub.s32 1, %v426_v35 }
  0x9d   : > { %1419 = vmatprep.subr.bf16.mxu0 %v2215_v39  ;;  %v428_v39 = vrot.slane %v413_v37, %v427_v36 }
  0x9f   : > { %1673 = vmatpush1.bf16.msra.mxu1 %v2261_v11 }
  0xa0   : > { %1420 = vmatpush1.bf16.msra.mxu0 %v2213_v40  ;;  %1674 = vmatprep.subr.bf16.mxu1 %v2266_v12  ;;  %v432_v40 = vrot.slane %v413_v37, %v431_v38 }
  0xa1   : > { %1421 = vmatprep.subr.bf16.mxu0 %v2218_v41 }
  0xa3   : > { %1675 = vmatpush1.bf16.msra.mxu1 %v2264_v13 }
  0xa4   : > { %1422 = vmatpush1.bf16.msra.mxu0 %v2216_v42  ;;  %1676 = vmatprep.subr.bf16.mxu1 %v2269_v14 }
  0xa5   : > { %1423 = vmatprep.subr.bf16.mxu0 %v2221_v43 }
  0xa7   : > { %1677 = vmatpush1.bf16.msra.mxu1 %v2267_v15 }
  0xa8   : > { %1424 = vmatpush1.bf16.msra.mxu0 %v2219_v44  ;;  %1678 = vmatprep.subr.bf16.mxu1 %v2272_v16 }
  0xa9   : > { %1425 = vmatprep.subr.bf16.mxu0 %v2224_v45 }
  0xab   : > { %1679 = vmatpush1.bf16.msra.mxu1 %v2270_v17 }
  0xac   : > { %1426 = vmatpush1.bf16.msra.mxu0 %v2222_v46  ;;  %1680 = vmatprep.subr.bf16.mxu1 %v2275_v18 }
  0xad   : > { %1427 = vmatprep.subr.bf16.mxu0 %v2227_v47 }
  0xaf   : > { %1681 = vmatpush1.bf16.msra.mxu1 %v2273_v19 }
  0xb0   : > { %1428 = vmatpush1.bf16.msra.mxu0 %v2225_v48  ;;  %1682 = vmatprep.subr.bf16.mxu1 %v2278_v20 }
  0xb1   : > { %1429 = vmatprep.subr.bf16.mxu0 %v2230_v49 }
  0xb3   : > { %1683 = vmatpush1.bf16.msra.mxu1 %v2276_v21 }
  0xb4   : > { %1430 = vmatpush1.bf16.msra.mxu0 %v2228_v50  ;;  %1684 = vmatprep.subr.bf16.mxu1 %v2281_v22 }
  0xb5   : > { %1431 = vmatprep.subr.bf16.mxu0 %v2233_v51 }
  0xb7   : > { %1685 = vmatpush1.bf16.msra.mxu1 %v2279_v23 }
  0xb8   : > { %1432 = vmatpush1.bf16.msra.mxu0 %v2231_v52  ;;  %1686 = vmatprep.subr.bf16.mxu1 %v2284_v24 }
  0xb9   : > { %1433 = vmatprep.subr.bf16.mxu0 %v2236_v53 }
  0xbb   : > { %1687 = vmatpush1.bf16.msra.mxu1 %v2282_v25 }
  0xbc   : > { %1434 = vmatpush1.bf16.msra.mxu0 %v2234_v54  ;;  %1688 = vmatprep.subr.bf16.mxu1 %v2287_v26 }
  0xbd   : > { %1435 = vmatprep.subr.bf16.mxu0 %v2239_v55 }
  0xbf   : > { %1689 = vmatpush1.bf16.msra.mxu1 %v2285_v27 }
  0xc0   : > { %1436 = vmatpush1.bf16.msra.mxu0 %v2237_v56  ;;  %1690 = vmatprep.subr.bf16.mxu1 %v2290_v28 }
  0xc1   : > { %1437 = vmatprep.subr.bf16.mxu0 %v2242_v57 }
  0xc3   : > { %1691 = vmatpush1.bf16.msra.mxu1 %v2288_v29 }
  0xc4   : > { %1438 = vmatpush1.bf16.msra.mxu0 %v2240_v58 }
  0xc7   : > { %1440 = vmatmul.mubr.bf16.vlgmr.msra.gmra.mrb[0].mxu0 %v422_v61  ;;  %v1497_v61 = vrot.slane %v1486_v59, %v431_v38 }
 0x159   : > { %v1312_v30 = vpop.f32.mrb[0].mxu1 }
 0x15a   : > { %v1314_v31 = vpop.f32.mrb[1].mxu1  ;;  %v1974_v41 = vadd.f32 %v1312_v30, %v428_v39 }
 0x15b   : > { %v1316_v32 = vpop.f32.mrb[2].mxu1  ;;  %v1976_v42 = vadd.f32 %v1314_v31, %v432_v40 }
 0x15c   : > { %v1318_v33 = vpop.f32.mrb[3].mxu1  ;;  %v1978_v44 = vadd.f32 %v1316_v32, %v428_v39 }
 0x15d   : > { %v1980_v47 = vadd.f32 %v1318_v33, %v432_v40 }
 0x19a   : > { %v1441_v43 = vpop.f32.mrb[0].mxu0 }
 0x19b   : > { %v1975_v45 = vadd.f32 %v1974_v41, %v1441_v43  ;;  %v1443_v46 = vpop.f32.mrb[1].mxu0 }
 0x19c   : > { %v1977_v48 = vadd.f32 %v1976_v42, %v1443_v46  ;;  %v1445_v49 = vpop.f32.mrb[2].mxu0 }
 0x19d   : > { %v1979_v50 = vadd.f32 %v1978_v44, %v1445_v49  ;;  %v1447_v51 = vpop.f32.mrb[3].mxu0  ;;  %v1450_v53 = vmax.f32 %v1975_v45, 0.0 }
 0x19e   : > { %v1981_v52 = vadd.f32 %v1980_v47, %v1447_v51  ;;  %v1451_v55 = vmax.f32 %v1977_v48, 0.0 }
 0x19f   : > { %v1452_v54 = vmax.f32 %v1979_v50, 0.0 }
 0x1a0   : > { %v1453_v56 = vmax.f32 %v1981_v52, 0.0 }
 0x1a1   : > { %v1487_v57 = vpack.c.bf16 %v1452_v54, %v1450_v53 }
 0x1a2   : > { %v1488_v58 = vpack.c.bf16 %v1453_v56, %v1451_v55 }
 0x1a4   : > { %1692 = vmatprep.mubr.bf16.mxu1 %v1488_v58 }
 0x1a5   : > { %1693 = vmatmul.mubr.bf16.vlgmr.msra.gmra.mrb[4].mxu1 %v1487_v57 }
 0x278   : > { %v1694_v62 = vpop.f32.mrb[4].mxu1 }
 0x279   : > { %v1695_v63 = vadd.f32 %v1694_v62, %v1493_v60  ;;  %v1696_v0 = vpop.f32.mrb[5].mxu1 }
 0x27a   : > { %v1697_v1 = vadd.f32 %v1696_v0, %v1497_v61  ;;  %v1698_v2 = vpop.f32.mrb[6].mxu1 }
 0x27b   : > { %v1703_v3 = vmax.f32 %v1695_v63, 0.0  ;;  %v1699_v4 = vadd.f32 %v1698_v2, %v1493_v60  ;;  %v1700_v5 = vpop.f32.mrb[7].mxu1 }
 0x27c   : > { %v1704_v6 = vmax.f32 %v1697_v1, 0.0  ;;  %v1701_v7 = vadd.f32 %v1700_v5, %v1497_v61 }
 0x27d   : > { %1707 = vst [vmem:[%s231_s10] sm:$0xff] %v1703_v3  ;;  %v1705_v8 = vmax.f32 %v1699_v4, 0.0 }
 0x27e   : > { %1708 = vst [vmem:[%s231_s10 + $0x8] sm:$0xff] %v1704_v6  ;;  %v1706_v9 = vmax.f32 %v1701_v7, 0.0 }
 0x27f   : > { %1709 = vst [vmem:[%s231_s10 + $0x10] sm:$0xff] %v1705_v8 }
 0x280   : > { %1710 = vst [vmem:[%s231_s10 + $0x18] sm:$0xff] %v1706_v9 }
 0x281 PF: > { %s15_s18 = sadd.s32 1, %s2297_s18  }
 0x282   : > { %p12_p4 = scmp.ge.s32.totalorder %s15_s18, 4  }
 0x284   :  { %14 = sbr.rel (!%p12_p4) target bundleno = 1 (0x1), region = 70 }

// kernel: _lambda_.8
= control target key start
LH: loop header
LB: loop body
LE: loop exit
PB: predicated region body
PF: predicated region fallthrough
CT: control target
= control target key end

     0   :  { %vm262_vm0 = vcmask 1040384   ;;  %vm263_vm1 = vcmask 1041408   ;;  %v3769_v51 = vmov 65535   ;;  %vm255_vm2 = vcmask 23552   ;;  %s5091_s1 = inlined_call_operand.vmem [shape: bf16[259,256], index: 1, kind: input, shape index: {}]   ;;  %s5092_s0 = inlined_call_operand.vmem [shape: f32[32,259], index: 0, kind: input, shape index: {}]   ;;  %s5093_s3 = inlined_call_operand.vmem [shape: bf16[256,512], index: 3, kind: input, shape index: {}]   ;;  %s5094_s5 = inlined_call_operand.vmem [shape: bf16[512,1024], index: 5, kind: input, shape index: {}]   ;;  %s5095_s2 = inlined_call_operand.vmem [shape: f32[1,256], index: 2, kind: input, shape index: {}]   ;;  %s5096_s4 = inlined_call_operand.vmem [shape: f32[1,512], index: 4, kind: input, shape index: {}]   ;;  %s5097_s6 = inlined_call_operand.vmem [shape: f32[1,1024], index: 6, kind: input, shape index: {}]   ;;  %s5098_s7 = inlined_call_operand.vmem [shape: f32[2,1024], index: 7, kind: output, shape index: {}]  }
   0x1   :  { %v3623_v0 = vld [vmem:[%s5091_s1 + $0x4] ss:$8 sps:$4 sm:$0xff]   ;;  %v3625_v1 = vld [vmem:[%s5091_s1] ss:$8 sps:$4 sm:$0xff]   ;;  %v3626_v2 = vld [vmem:[%s5091_s1 + $0x14] ss:$8 sps:$4 sm:$0xff]  }
   0x2   :  { %272 = vmatprep.subr.bf16.mxu0 %v3623_v0  ;;  %v3628_v3 = vld [vmem:[%s5091_s1 + $0x10] ss:$8 sps:$4 sm:$0xff]   ;;  %v3629_v4 = vld [vmem:[%s5091_s1 + $0x24] ss:$8 sps:$4 sm:$0xff]   ;;  %v3631_v5 = vld [vmem:[%s5091_s1 + $0x20] ss:$8 sps:$4 sm:$0xff]  }
   0x3   :  { %273 = vmatpush1.bf16.msra.mxu0 %v3625_v1  ;;  %v3632_v6 = vld [vmem:[%s5091_s1 + $0x34] ss:$8 sps:$4 sm:$0xff]   ;;  %v3634_v7 = vld [vmem:[%s5091_s1 + $0x30] ss:$8 sps:$4 sm:$0xff]   ;;  %v3635_v8 = vld [vmem:[%s5091_s1 + $0x44] ss:$8 sps:$4 sm:$0xff]  }
   0x4   :  { %274 = vmatprep.subr.bf16.mxu0 %v3626_v2  ;;  %v3637_v9 = vld [vmem:[%s5091_s1 + $0x40] ss:$8 sps:$4 sm:$0xff]   ;;  %v3638_v10 = vld [vmem:[%s5091_s1 + $0x54] ss:$8 sps:$4 sm:$0xff]   ;;  %v3640_v11 = vld [vmem:[%s5091_s1 + $0x50] ss:$8 sps:$4 sm:$0xff]  }
   0x5   :  { %v3641_v12 = vld [vmem:[%s5091_s1 + $0x64] ss:$8 sps:$4 sm:$0xff]   ;;  %v3643_v16 = vld [vmem:[%s5091_s1 + $0x60] ss:$8 sps:$4 sm:$0xff]   ;;  %v3644_v17 = vld [vmem:[%s5091_s1 + $0x74] ss:$8 sps:$4 sm:$0xff]  }
   0x6   :  { %v28_v13 = vld [vmem:[%s5092_s0 + $0x8] sm:$0xff]  ;;  %v31_v14 = vld [vmem:[%s5092_s0 + $0x20] sm:$0xff]  ;;  %v3646_v18 = vld [vmem:[%s5091_s1 + $0x70] ss:$8 sps:$4 sm:$0xff]   ;;  %v264_v52 = vsel %vm262_vm0, 4294967295, %v3769_v51  ;;  %vm3161_vm3 = vcmask 1041409  }
   0x7   :  { %275 = vmatpush1.bf16.msra.mxu0 %v3628_v3  ;;  %v74_v15 = vpack.c.bf16 %v31_v14, %v28_v13  ;;  %v3673_v19 = vld [vmem:[%s5093_s3 + $0x4] ss:$16 sps:$4 sm:$0xff]   ;;  %v3675_v20 = vld [vmem:[%s5093_s3] ss:$16 sps:$4 sm:$0xff]   ;;  %v265_v55 = vsel %vm263_vm1, %v264_v52, 0  ;;  %v30_v60 = vld [vmem:[%s5092_s0 + $0x18] sm:$0xff] }
   0x8   :  { %276 = vmatprep.subr.bf16.mxu0 %v3629_v4  ;;  %v3676_v21 = vld [vmem:[%s5093_s3 + $0x24] ss:$16 sps:$4 sm:$0xff]   ;;  %796 = vmatprep.subr.bf16.mxu1 %v3673_v19  ;;  %v3678_v23 = vld [vmem:[%s5093_s3 + $0x20] ss:$16 sps:$4 sm:$0xff]   ;;  %v34_v63 = vld [vmem:[%s5092_s0 + $0x38] sm:$0xff]  ;;  %vm3163_vm4 = vcmask 1043459  }
   0x9   :  { %304 = vmatprep.mubr.bf16.mxu0 %v74_v15  ;;  %v3647_v22 = vld [vmem:[%s5091_s1 + $0x84] ss:$8 sps:$4 sm:$0xff]   ;;  %797 = vmatpush1.bf16.msra.mxu1 %v3675_v20  ;;  %v3649_v25 = vld [vmem:[%s5091_s1 + $0x80] ss:$8 sps:$4 sm:$0xff]   ;;  %v3650_v26 = vld [vmem:[%s5091_s1 + $0x94] ss:$8 sps:$4 sm:$0xff]  }
   0xa   :  { %798 = vmatprep.subr.bf16.mxu1 %v3676_v21  ;;  %v3679_v24 = vld [vmem:[%s5093_s3 + $0x44] ss:$16 sps:$4 sm:$0xff]   ;;  %v3681_v27 = vld [vmem:[%s5093_s3 + $0x40] ss:$16 sps:$4 sm:$0xff]   ;;  %v3770_v15 = vmov 0   ;;  %v38_v21 = vld [vmem:[%s5092_s0 + $0x58] sm:$0xff] }
   0xb   :  { %277 = vmatpush1.bf16.msra.mxu0 %v3631_v5  ;;  %v3682_v28 = vld [vmem:[%s5093_s3 + $0x64] ss:$16 sps:$4 sm:$0xff]   ;;  %v3652_v29 = vld [vmem:[%s5091_s1 + $0x90] ss:$8 sps:$4 sm:$0xff]   ;;  %v3655_v33 = vld [vmem:[%s5091_s1 + $0xa0] ss:$8 sps:$4 sm:$0xff]  }
   0xc   :  { %278 = vmatprep.subr.bf16.mxu0 %v3632_v6  ;;  %v3653_v30 = vld [vmem:[%s5091_s1 + $0xa4] ss:$8 sps:$4 sm:$0xff]   ;;  %v3684_v31 = vld [vmem:[%s5093_s3 + $0x60] ss:$16 sps:$4 sm:$0xff]   ;;  %v3656_v34 = vld [vmem:[%s5091_s1 + $0xb4] ss:$8 sps:$4 sm:$0xff]  }
   0xd   :  { %799 = vmatpush1.bf16.msra.mxu1 %v3678_v23  ;;  %v3685_v32 = vld [vmem:[%s5093_s3 + $0x84] ss:$16 sps:$4 sm:$0xff]   ;;  %v3687_v35 = vld [vmem:[%s5093_s3 + $0x80] ss:$16 sps:$4 sm:$0xff]   ;;  %vm3165_vm5 = vcmask 1045509   ;;  %vm3167_vm6 = vcmask 1047559  }
   0xe   :  { %800 = vmatprep.subr.bf16.mxu1 %v3679_v24  ;;  %v3658_v36 = vld [vmem:[%s5091_s1 + $0xb0] ss:$8 sps:$4 sm:$0xff]   ;;  %v3688_v37 = vld [vmem:[%s5093_s3 + $0xa4] ss:$16 sps:$4 sm:$0xff]   ;;  %v3661_v41 = vld [vmem:[%s5091_s1 + $0xc0] ss:$8 sps:$4 sm:$0xff]  }
   0xf   :  { %279 = vmatpush1.bf16.msra.mxu0 %v3634_v7  ;;  %v3659_v38 = vld [vmem:[%s5091_s1 + $0xc4] ss:$8 sps:$4 sm:$0xff]   ;;  %v3690_v39 = vld [vmem:[%s5093_s3 + $0xa0] ss:$16 sps:$4 sm:$0xff]   ;;  %v3662_v42 = vld [vmem:[%s5091_s1 + $0xd4] ss:$8 sps:$4 sm:$0xff]  }
  0x10   :  { %280 = vmatprep.subr.bf16.mxu0 %v3635_v8  ;;  %v3691_v40 = vld [vmem:[%s5093_s3 + $0xc4] ss:$16 sps:$4 sm:$0xff]   ;;  %v3693_v43 = vld [vmem:[%s5093_s3 + $0xc0] ss:$16 sps:$4 sm:$0xff]  }
  0x11   :  { %801 = vmatpush1.bf16.msra.mxu1 %v3681_v27  ;;  %v3694_v44 = vld [vmem:[%s5093_s3 + $0xe4] ss:$16 sps:$4 sm:$0xff]   ;;  %v3664_v45 = vld [vmem:[%s5091_s1 + $0xd0] ss:$8 sps:$4 sm:$0xff]   ;;  %v3667_v50 = vld [vmem:[%s5091_s1 + $0xe0] ss:$8 sps:$4 sm:$0xff]  }
  0x12   :  { %802 = vmatprep.subr.bf16.mxu1 %v3682_v28  ;;  %v3665_v46 = vld [vmem:[%s5091_s1 + $0xe4] ss:$8 sps:$4 sm:$0xff]   ;;  %v3696_v48 = vld [vmem:[%s5093_s3 + $0xe0] ss:$16 sps:$4 sm:$0xff]   ;;  %v3668_v53 = vld [vmem:[%s5091_s1 + $0xf4] ss:$8 sps:$4 sm:$0xff]  }
  0x13   :  { %281 = vmatpush1.bf16.msra.mxu0 %v3637_v9  ;;  %v71_v47 = vld [vmem:[%s5091_s1 + $0x100] sm:$0x33]  ;;  %v3670_v58 = vld [vmem:[%s5091_s1 + $0xf0] ss:$8 sps:$4 sm:$0xff]   ;;  %v36_v9 = vld [vmem:[%s5092_s0 + $0x48] sm:$0xff] }
  0x14   :  { %282 = vmatprep.subr.bf16.mxu0 %v3638_v10  ;;  %v3697_v49 = vld [vmem:[%s5093_s3 + $0x104] ss:$16 sps:$4 sm:$0xff]   ;;  %v3217_v54 = vcombine.high %v71_v47, %v71_v47  ;;  %v3699_v56 = vld [vmem:[%s5093_s3 + $0x100] ss:$16 sps:$4 sm:$0xff]   ;;  %v3216_v61 = vcombine.low %v71_v47, %v71_v47  ;;  %v3723_v27 = vld [vmem:[%s5093_s3 + $0xc] ss:$16 sps:$4 sm:$0xff]  }
  0x15   :  { %803 = vmatpush1.bf16.msra.mxu1 %v3684_v31  ;;  %v3700_v57 = vld [vmem:[%s5093_s3 + $0x124] ss:$16 sps:$4 sm:$0xff]   ;;  %v3702_v1 = vld [vmem:[%s5093_s3 + $0x120] ss:$16 sps:$4 sm:$0xff]  }
  0x16   :  { %804 = vmatprep.subr.bf16.mxu1 %v3685_v32  ;;  %v27_v59 = vld [vmem:[%s5092_s0] sm:$0xff]  ;;  %v270_v62 = vand.u32 %v3217_v54, %v265_v55  ;;  %v37_v0 = vld [vmem:[%s5092_s0 + $0x50] sm:$0xff]  ;;  %v267_v4 = vand.u32 %v3216_v61, %v265_v55 }
  0x17   :  { %283 = vmatpush1.bf16.msra.mxu0 %v3640_v11  ;;  %v73_v2 = vpack.c.bf16 %v30_v60, %v27_v59  ;;  %v3703_v3 = vld [vmem:[%s5093_s3 + $0x144] ss:$16 sps:$4 sm:$0xff]   ;;  %v77_v5 = vpack.c.bf16 %v37_v0, %v34_v63  ;;  %v3705_v6 = vld [vmem:[%s5093_s3 + $0x140] ss:$16 sps:$4 sm:$0xff]  }
  0x18   :  { %284 = vmatprep.subr.bf16.mxu0 %v3641_v12  ;;  %v3706_v7 = vld [vmem:[%s5093_s3 + $0x164] ss:$16 sps:$4 sm:$0xff]   ;;  %v3708_v10 = vld [vmem:[%s5093_s3 + $0x160] ss:$16 sps:$4 sm:$0xff]  }
  0x19   :  { %805 = vmatpush1.bf16.msra.mxu1 %v3687_v35  ;;  %v33_v8 = vld [vmem:[%s5092_s0 + $0x30] sm:$0xff]  ;;  %v35_v20 = vld [vmem:[%s5092_s0 + $0x40] sm:$0xff] }
  0x1a   :  { %806 = vmatprep.subr.bf16.mxu1 %v3688_v37  ;;  %v76_v11 = vpack.c.bf16 %v36_v9, %v33_v8  ;;  %v3709_v12 = vld [vmem:[%s5093_s3 + $0x184] ss:$16 sps:$4 sm:$0xff]   ;;  %v3711_v13 = vld [vmem:[%s5093_s3 + $0x180] ss:$16 sps:$4 sm:$0xff]  }
  0x1b   :  { %285 = vmatpush1.bf16.msra.mxu0 %v3643_v16  ;;  %v3712_v14 = vld [vmem:[%s5093_s3 + $0x1a4] ss:$16 sps:$4 sm:$0xff]   ;;  %v3717_v24 = vld [vmem:[%s5093_s3 + $0x1c0] ss:$16 sps:$4 sm:$0xff]  }
  0x1c   :  { %286 = vmatprep.subr.bf16.mxu0 %v3644_v17  ;;  %v29_v16 = vld [vmem:[%s5092_s0 + $0x10] sm:$0xff]  ;;  %v32_v17 = vld [vmem:[%s5092_s0 + $0x28] sm:$0xff]  ;;  %v918_v28 = vld [vmem:[%s5094_s5] sm:$0xff] }
  0x1d   :  { %807 = vmatpush1.bf16.msra.mxu1 %v3690_v39  ;;  %v75_v19 = vpack.c.bf16 %v32_v17, %v29_v16  ;;  %v3715_v23 = vld [vmem:[%s5093_s3 + $0x1c4] ss:$16 sps:$4 sm:$0xff]  }
  0x1e   :  { %808 = vmatprep.subr.bf16.mxu1 %v3691_v40  ;;  %v926_v32 = vld [vmem:[%s5094_s5 + $0x40] sm:$0xff] }
  0x1f   :  { %287 = vmatpush1.bf16.msra.mxu0 %v3646_v18  ;;  %v3714_v18 = vld [vmem:[%s5093_s3 + $0x1a0] ss:$16 sps:$4 sm:$0xff]  }
  0x20   :  { %288 = vmatprep.subr.bf16.mxu0 %v3647_v22  ;;  %v78_v22 = vpack.c.bf16 %v38_v21, %v35_v20  ;;  %v934_v35 = vld [vmem:[%s5094_s5 + $0x80] sm:$0xff] }
  0x21   :  { %809 = vmatpush1.bf16.msra.mxu1 %v3693_v43  ;;  %v942_v39 = vld [vmem:[%s5094_s5 + $0xc0] sm:$0xff] }
  0x22   :  { %810 = vmatprep.subr.bf16.mxu1 %v3694_v44  ;;  %v946_v40 = vld [vmem:[%s5094_s5 + $0xe0] sm:$0xff] }
  0x23   :  { %289 = vmatpush1.bf16.msra.mxu0 %v3649_v25  ;;  %v3718_v25 = vld [vmem:[%s5093_s3 + $0x1e4] ss:$16 sps:$4 sm:$0xff]  }
  0x24   :  { %290 = vmatprep.subr.bf16.mxu0 %v3650_v26  ;;  %v3720_v26 = vld [vmem:[%s5093_s3 + $0x1e0] ss:$16 sps:$4 sm:$0xff]  }
  0x25   :  { %811 = vmatpush1.bf16.msra.mxu1 %v3696_v48  ;;  %v950_v43 = vld [vmem:[%s5094_s5 + $0x100] sm:$0xff] }
  0x26   :  { %812 = vmatprep.subr.bf16.mxu1 %v3697_v49  ;;  %v954_v44 = vld [vmem:[%s5094_s5 + $0x120] sm:$0xff] }
  0x27   :  { %291 = vmatpush1.bf16.msra.mxu0 %v3652_v29  ;;  %v922_v29 = vld [vmem:[%s5094_s5 + $0x20] sm:$0xff]  ;;  %v3316_v49 = vcombine.low %v950_v43, %v954_v44 }
  0x28   :  { %292 = vmatprep.subr.bf16.mxu0 %v3653_v30  ;;  %v3284_v30 = vcombine.low %v918_v28, %v922_v29  ;;  %v3285_v31 = vcombine.high %v918_v28, %v922_v29  ;;  %v958_v47 = vld [vmem:[%s5094_s5 + $0x140] sm:$0xff] }
  0x29   :  { %813 = vmatpush1.bf16.msra.mxu1 %v3699_v56  ;;  %v962_v48 = vld [vmem:[%s5094_s5 + $0x160] sm:$0xff] }
  0x2a   :  { %814 = vmatprep.subr.bf16.mxu1 %v3700_v57  ;;  %v966_v51 = vld [vmem:[%s5094_s5 + $0x180] sm:$0xff] }
  0x2b   :  { %293 = vmatpush1.bf16.msra.mxu0 %v3655_v33  ;;  %v930_v33 = vld [vmem:[%s5094_s5 + $0x60] sm:$0xff] }
  0x2c   :  { %294 = vmatprep.subr.bf16.mxu0 %v3656_v34  ;;  %v3293_v34 = vcombine.high %v926_v32, %v930_v33  ;;  %v3292_v37 = vcombine.low %v926_v32, %v930_v33  ;;  %v970_v52 = vld [vmem:[%s5094_s5 + $0x1a0] sm:$0xff] }
  0x2d   :  { %815 = vmatpush1.bf16.msra.mxu1 %v3702_v1  ;;  %v3333_v54 = vcombine.high %v966_v51, %v970_v52  ;;  %v974_v55 = vld [vmem:[%s5094_s5 + $0x1c0] sm:$0xff]  ;;  %v3332_v57 = vcombine.low %v966_v51, %v970_v52  ;;  %v3724_v51 = vld [vmem:[%s5093_s3 + $0x28] ss:$16 sps:$4 sm:$0xff]  }
  0x2e   :  { %816 = vmatprep.subr.bf16.mxu1 %v3703_v3  ;;  %v978_v56 = vld [vmem:[%s5094_s5 + $0x1e0] sm:$0xff] }
  0x2f   :  { %295 = vmatpush1.bf16.msra.mxu0 %v3658_v36  ;;  %v938_v36 = vld [vmem:[%s5094_s5 + $0xa0] sm:$0xff]  ;;  %v3340_v61 = vcombine.low %v974_v55, %v978_v56 }
  0x30   :  { %296 = vmatprep.subr.bf16.mxu0 %v3659_v38  ;;  %v3301_v38 = vcombine.high %v934_v35, %v938_v36  ;;  %v982_v59 = vld [vmem:[%s5094_s5 + $0x200] sm:$0xff] }
  0x31   :  { %817 = vmatpush1.bf16.msra.mxu1 %v3705_v6  ;;  %v986_v60 = vld [vmem:[%s5094_s5 + $0x220] sm:$0xff] }
  0x32   :  { %818 = vmatprep.subr.bf16.mxu1 %v3706_v7  ;;  %v3349_v63 = vcombine.high %v982_v59, %v986_v60  ;;  %v990_v0 = vld [vmem:[%s5094_s5 + $0x240] sm:$0xff] }
  0x33   :  { %297 = vmatpush1.bf16.msra.mxu0 %v3661_v41  ;;  %v3300_v41 = vcombine.low %v934_v35, %v938_v36  ;;  %v994_v1 = vld [vmem:[%s5094_s5 + $0x260] sm:$0xff] }
  0x34   :  { %298 = vmatprep.subr.bf16.mxu0 %v3662_v42  ;;  %v3309_v42 = vcombine.high %v942_v39, %v946_v40  ;;  %v1002_v6 = vld [vmem:[%s5094_s5 + $0x2a0] sm:$0xff]  ;;  %v3356_v7 = vcombine.low %v990_v0, %v994_v1 }
  0x35   :  { %819 = vmatpush1.bf16.msra.mxu1 %v3708_v10  ;;  %v72_v10 = vld [vmem:[%s5095_s2] sm:$0x3] }
  0x36   :  { %820 = vmatprep.subr.bf16.mxu1 %v3709_v12  ;;  %v1006_v12 = vld [vmem:[%s5094_s5 + $0x2c0] sm:$0xff] }
  0x37   :  { %299 = vmatpush1.bf16.msra.mxu0 %v3664_v45  ;;  %v3308_v45 = vcombine.low %v942_v39, %v946_v40  ;;  %v1026_v28 = vld [vmem:[%s5094_s5 + $0x360] sm:$0xff] }
  0x38   :  { %300 = vmatprep.subr.bf16.mxu0 %v3665_v46  ;;  %v3317_v46 = vcombine.high %v950_v43, %v954_v44 }
  0x39   :  { %821 = vmatpush1.bf16.msra.mxu1 %v3711_v13  ;;  %v1010_v13 = vld [vmem:[%s5094_s5 + $0x2e0] sm:$0xff] }
  0x3a   :  { %822 = vmatprep.subr.bf16.mxu1 %v3712_v14  ;;  %v3373_v16 = vcombine.high %v1006_v12, %v1010_v13  ;;  %v3372_v21 = vcombine.low %v1006_v12, %v1010_v13  ;;  %v3748_v12 = vld [vmem:[%s5093_s3 + $0x128] ss:$16 sps:$4 sm:$0xff]   ;;  %v3753_v13 = vld [vmem:[%s5093_s3 + $0x14c] ss:$16 sps:$4 sm:$0xff]  }
  0x3b   :  { %301 = vmatpush1.bf16.msra.mxu0 %v3667_v50  ;;  %v3325_v50 = vcombine.high %v958_v47, %v962_v48 }
  0x3c   :  { %302 = vmatprep.subr.bf16.mxu0 %v3668_v53  ;;  %v3324_v53 = vcombine.low %v958_v47, %v962_v48 }
  0x3d   :  { %823 = vmatpush1.bf16.msra.mxu1 %v3714_v18  ;;  %v1014_v18 = vld [vmem:[%s5094_s5 + $0x300] sm:$0xff] }
  0x3e   :  { %824 = vmatprep.subr.bf16.mxu1 %v3715_v23 }
  0x3f   :  { %303 = vmatpush1.bf16.msra.mxu0 %v3670_v58  ;;  %v3341_v58 = vcombine.high %v974_v55, %v978_v56 }
  0x40   :  { %325 = vmatprep.subr.bf16.mxu0 %v270_v62  ;;  %v80_v62 = vlaneseq }
  0x41   :  { %825 = vmatpush1.bf16.msra.mxu1 %v3717_v24 }
  0x42   :  { %305 = vmatmul.mubr.bf16.vlgmr.msra.gmra.mrb[0].mxu0 %v73_v2  ;;  %826 = vmatprep.subr.bf16.mxu1 %v3718_v25  ;;  %v3348_v2 = vcombine.low %v982_v59, %v986_v60  ;;  %v4106_v3 = vshrl.u32 %v80_v62, 7  ;;  %v3727_v59 = vld [vmem:[%s5093_s3 + $0x48] ss:$16 sps:$4 sm:$0xff]   ;;  %v3732_v60 = vld [vmem:[%s5093_s3 + $0x6c] ss:$16 sps:$4 sm:$0xff]  }
  0x43   :  { %326 = vmatpush1.bf16.msra.mxu0 %v267_v4  ;;  %314 = vmatprep.mubr.bf16.mxu0 %v77_v5  ;;  %v3357_v4 = vcombine.high %v990_v0, %v994_v1  ;;  %v998_v5 = vld [vmem:[%s5094_s5 + $0x280] sm:$0xff]  ;;  %v3735_v62 = vld [vmem:[%s5093_s3 + $0x8c] ss:$16 sps:$4 sm:$0xff]   ;;  %v3736_v1 = vld [vmem:[%s5093_s3 + $0xa8] ss:$16 sps:$4 sm:$0xff]  }
  0x44   :  { %2504 = vmatprep.subr.bf16.mxu0 %v3285_v31  ;;  %v4115_v8 = vsub.s32 0, %v4106_v3  ;;  %v3365_v9 = vcombine.high %v998_v5, %v1002_v6  ;;  %v3364_v14 = vcombine.low %v998_v5, %v1002_v6  ;;  %v3738_v0 = vld [vmem:[%s5093_s3 + $0xac] ss:$16 sps:$4 sm:$0xff]   ;;  %v3742_v6 = vld [vmem:[%s5093_s3 + $0xe8] ss:$16 sps:$4 sm:$0xff]  }
  0x45   :  { %827 = vmatpush1.bf16.msra.mxu1 %v3720_v26  ;;  %v3744_v5 = vld [vmem:[%s5093_s3 + $0xec] ss:$16 sps:$4 sm:$0xff]  }
  0x46   :  { %849 = vmatprep.subr.bf16.mxu1 %v3723_v27  ;;  %v1022_v27 = vld [vmem:[%s5094_s5 + $0x340] sm:$0xff] }
  0x47   :  { %v3389_v35 = vcombine.high %v1022_v27, %v1026_v28 }
  0x4a   :  { %315 = vmatmul.mubr.bf16.gmra.mrb[4].mxu0 %v76_v11  ;;  %v4121_v11 = vsub.s32 1, %v4106_v3 }
  0x4b   :  { %357 = vmatprep.mubr.bf16.mxu0 %v3770_v15 }
  0x4c   :  { %v87_v17 = vrot.slane %v72_v10, %v4121_v11 }
  0x52   :  { %3218 = vmatmul.mubr.msk.bf16.vlgmr.msra.gmra.mrb[0].mxu0 %vm255_vm2, %v75_v19  ;;  %v1018_v19 = vld [vmem:[%s5094_s5 + $0x320] sm:$0xff] }
  0x53   :  { %367 = vmatprep.mubr.bf16.mxu0 %v3770_v15  ;;  %2505 = vmatpush1.bf16.msra.mxu0 %v3284_v30  ;;  %v83_v15 = vrot.slane %v72_v10, %v4115_v8  ;;  %v3381_v24 = vcombine.high %v1014_v18, %v1018_v19  ;;  %v3380_v32 = vcombine.low %v1014_v18, %v1018_v19  ;;  %v3750_v10 = vld [vmem:[%s5093_s3 + $0x12c] ss:$16 sps:$4 sm:$0xff]   ;;  %v3757_v18 = vld [vmem:[%s5093_s3 + $0x188] ss:$16 sps:$4 sm:$0xff]  }
  0x54   :  { %2506 = vmatprep.subr.bf16.mxu0 %v3293_v34  ;;  %v3762_v19 = vld [vmem:[%s5093_s3 + $0x1ac] ss:$16 sps:$4 sm:$0xff]  }
  0x57   :  { %2507 = vmatpush1.bf16.msra.mxu0 %v3292_v37 }
  0x58   :  { %2508 = vmatprep.subr.bf16.mxu0 %v3301_v38 }
  0x5a   :  { %3219 = vmatmul.mubr.msk.bf16.gmra.mrb[4].mxu0 %vm255_vm2, %v78_v22 }
  0x5b   :  { %2509 = vmatpush1.bf16.msra.mxu0 %v3300_v41  ;;  %v3721_v41 = vld [vmem:[%s5093_s3 + $0x8] ss:$16 sps:$4 sm:$0xff]  }
  0x5c   :  { %2510 = vmatprep.subr.bf16.mxu0 %v3309_v42  ;;  %v3388_v42 = vcombine.low %v1022_v27, %v1026_v28  ;;  %v927_v28 = vld [vmem:[%s5094_s5 + $0x48] sm:$0xff] }
  0x5f   :  { %2511 = vmatpush1.bf16.msra.mxu0 %v3308_v45  ;;  %v3726_v45 = vld [vmem:[%s5093_s3 + $0x2c] ss:$16 sps:$4 sm:$0xff]  }
  0x60   :  { %2512 = vmatprep.subr.bf16.mxu0 %v3317_v46 }
  0x63   :  { %2513 = vmatpush1.bf16.msra.mxu0 %v3316_v49 }
  0x64   :  { %2514 = vmatprep.subr.bf16.mxu0 %v3325_v50 }
  0x67   :  { %2515 = vmatpush1.bf16.msra.mxu0 %v3324_v53 }
  0x68   :  { %2516 = vmatprep.subr.bf16.mxu0 %v3333_v54  ;;  %v3729_v54 = vld [vmem:[%s5093_s3 + $0x4c] ss:$16 sps:$4 sm:$0xff]  }
  0x6b   :  { %2517 = vmatpush1.bf16.msra.mxu0 %v3332_v57 }
  0x6c   :  { %2518 = vmatprep.subr.bf16.mxu0 %v3341_v58 }
  0x6f   :  { %2519 = vmatpush1.bf16.msra.mxu0 %v3340_v61  ;;  %v3730_v61 = vld [vmem:[%s5093_s3 + $0x68] ss:$16 sps:$4 sm:$0xff]  }
  0x70   :  { %2520 = vmatprep.subr.bf16.mxu0 %v3349_v63  ;;  %v3733_v63 = vld [vmem:[%s5093_s3 + $0x88] ss:$16 sps:$4 sm:$0xff]  }
  0x73   :  { %2521 = vmatpush1.bf16.msra.mxu0 %v3348_v2  ;;  %v3741_v2 = vld [vmem:[%s5093_s3 + $0xcc] ss:$16 sps:$4 sm:$0xff]  }
  0x74   :  { %2522 = vmatprep.subr.bf16.mxu0 %v3357_v4  ;;  %v3739_v4 = vld [vmem:[%s5093_s3 + $0xc8] ss:$16 sps:$4 sm:$0xff]  }
  0x77   :  { %2523 = vmatpush1.bf16.msra.mxu0 %v3356_v7  ;;  %v3747_v7 = vld [vmem:[%s5093_s3 + $0x10c] ss:$16 sps:$4 sm:$0xff]  }
  0x78   :  { %2524 = vmatprep.subr.bf16.mxu0 %v3365_v9  ;;  %v3745_v9 = vld [vmem:[%s5093_s3 + $0x108] ss:$16 sps:$4 sm:$0xff]  }
  0x7b   :  { %2525 = vmatpush1.bf16.msra.mxu0 %v3364_v14  ;;  %v3751_v14 = vld [vmem:[%s5093_s3 + $0x148] ss:$16 sps:$4 sm:$0xff]  }
  0x7c   :  { %2526 = vmatprep.subr.bf16.mxu0 %v3373_v16  ;;  %v3754_v16 = vld [vmem:[%s5093_s3 + $0x168] ss:$16 sps:$4 sm:$0xff]  }
  0x7f   :  { %2527 = vmatpush1.bf16.msra.mxu0 %v3372_v21  ;;  %v3765_v21 = vld [vmem:[%s5093_s3 + $0x1cc] ss:$16 sps:$4 sm:$0xff]  }
  0x80   :  { %2528 = vmatprep.subr.bf16.mxu0 %v3381_v24  ;;  %v919_v24 = vld [vmem:[%s5094_s5 + $0x8] sm:$0xff] }
  0x83   :  { %2529 = vmatpush1.bf16.msra.mxu0 %v3380_v32  ;;  %v935_v32 = vld [vmem:[%s5094_s5 + $0x88] sm:$0xff] }
  0x84   :  { %2530 = vmatprep.subr.bf16.mxu0 %v3389_v35 }
  0x87   :  { %2531 = vmatpush1.bf16.msra.mxu0 %v3388_v42 }
 0x125   :  { %v359_v20 = vpop.f32.mrb[0].mxu0 }
 0x126   :  { %v3540_v22 = vadd.f32 %v359_v20, %v83_v15  ;;  %v361_v23 = vpop.f32.mrb[1].mxu0  ;;  %v3760_v20 = vld [vmem:[%s5093_s3 + $0x1a8] ss:$16 sps:$4 sm:$0xff]  }
 0x127   :  { %v3541_v25 = vadd.f32 %v361_v23, %v87_v17  ;;  %v363_v26 = vpop.f32.mrb[2].mxu0  ;;  %v3768_v23 = vld [vmem:[%s5093_s3 + $0x1ec] ss:$16 sps:$4 sm:$0xff]  }
 0x128   :  { %v3542_v29 = vadd.f32 %v363_v26, %v83_v15  ;;  %v365_v30 = vpop.f32.mrb[3].mxu0  ;;  %v378_v33 = vmax.f32 %v3540_v22, 0.0  ;;  %v3763_v22 = vld [vmem:[%s5093_s3 + $0x1c8] ss:$16 sps:$4 sm:$0xff]  }
 0x129   :  { %v3543_v31 = vadd.f32 %v365_v30, %v87_v17  ;;  %v379_v36 = vmax.f32 %v3541_v25, 0.0  ;;  %v923_v25 = vld [vmem:[%s5094_s5 + $0x28] sm:$0xff] }
 0x12a   :  { %v380_v34 = vmax.f32 %v3542_v29, 0.0  ;;  %v3766_v26 = vld [vmem:[%s5093_s3 + $0x1e8] ss:$16 sps:$4 sm:$0xff]   ;;  %v3287_v27 = vcombine.high %v919_v24, %v923_v25  ;;  %v3286_v30 = vcombine.low %v919_v24, %v923_v25 }
 0x12b   :  { %v381_v37 = vmax.f32 %v3543_v31, 0.0  ;;  %v931_v29 = vld [vmem:[%s5094_s5 + $0x68] sm:$0xff] }
 0x12c   :  { %v4143_v38 = vpack.c.bf16 %v380_v34, %v378_v33  ;;  %v3295_v31 = vcombine.high %v927_v28, %v931_v29  ;;  %v939_v33 = vld [vmem:[%s5094_s5 + $0xa8] sm:$0xff]  ;;  %v3294_v34 = vcombine.low %v927_v28, %v931_v29 }
 0x12d   :  { %v369_v39 = vpop.f32.mrb[4].mxu0  ;;  %v452_v40 = vpack.c.bf16 %v381_v37, %v379_v36  ;;  %v3303_v35 = vcombine.high %v935_v32, %v939_v33  ;;  %v943_v36 = vld [vmem:[%s5094_s5 + $0xc8] sm:$0xff] }
 0x12e   :  { %v3544_v43 = vadd.f32 %v369_v39, %v83_v15  ;;  %v371_v44 = vpop.f32.mrb[5].mxu0  ;;  %v947_v37 = vld [vmem:[%s5094_s5 + $0xe8] sm:$0xff]  ;;  %v3302_v39 = vcombine.low %v935_v32, %v939_v33 }
 0x12f   :  { %v3545_v46 = vadd.f32 %v371_v44, %v87_v17  ;;  %v373_v47 = vpop.f32.mrb[6].mxu0  ;;  %828 = vmatprep.mubr.bf16.mxu1 %v452_v40  ;;  %v3310_v42 = vcombine.low %v943_v36, %v947_v37  ;;  %v959_v44 = vld [vmem:[%s5094_s5 + $0x148] sm:$0xff] }
 0x130   :  { %v3546_v48 = vadd.f32 %v373_v47, %v83_v15  ;;  %v375_v49 = vpop.f32.mrb[7].mxu0  ;;  %829 = vmatmul.mubr.bf16.vlgmr.msra.gmra.mrb[0].mxu1 %v4143_v38  ;;  %v382_v52 = vmax.f32 %v3544_v43, 0.0  ;;  %v3756_v15 = vld [vmem:[%s5093_s3 + $0x16c] ss:$16 sps:$4 sm:$0xff]  }
 0x131   :  { %v3547_v50 = vadd.f32 %v375_v49, %v87_v17  ;;  %850 = vmatpush1.bf16.msra.mxu1 %v3721_v41  ;;  %v383_v55 = vmax.f32 %v3545_v46, 0.0  ;;  %v3759_v17 = vld [vmem:[%s5093_s3 + $0x18c] ss:$16 sps:$4 sm:$0xff]  }
 0x132   :  { %v384_v53 = vmax.f32 %v3546_v48, 0.0  ;;  %851 = vmatprep.subr.bf16.mxu1 %v3726_v45  ;;  %v955_v41 = vld [vmem:[%s5094_s5 + $0x128] sm:$0xff] }
 0x133   :  { %v385_v56 = vmax.f32 %v3547_v50, 0.0  ;;  %v963_v45 = vld [vmem:[%s5094_s5 + $0x168] sm:$0xff] }
 0x134   :  { %v4158_v57 = vpack.c.bf16 %v384_v53, %v382_v52  ;;  %v3327_v47 = vcombine.high %v959_v44, %v963_v45  ;;  %v967_v48 = vld [vmem:[%s5094_s5 + $0x188] sm:$0xff]  ;;  %v3326_v50 = vcombine.low %v959_v44, %v963_v45  ;;  %v4387_v44 = vld [vmem:[%s5096_s4] sm:$0xf] }
 0x135   :  { %v4160_v58 = vpack.c.bf16 %v385_v56, %v383_v55  ;;  %852 = vmatpush1.bf16.msra.mxu1 %v3724_v51  ;;  %v971_v49 = vld [vmem:[%s5094_s5 + $0x1a8] sm:$0xff]  ;;  %v1034_v55 = vld [vmem:[%s5094_s5 + $0x3a0] sm:$0xff]  ;;  %v459_v45 = vrot.slane %v4387_v44, %v4115_v8 }
 0x136   :  { %853 = vmatprep.subr.bf16.mxu1 %v3729_v54  ;;  %v3335_v51 = vcombine.high %v967_v48, %v971_v49  ;;  %v975_v52 = vld [vmem:[%s5094_s5 + $0x1c8] sm:$0xff]  ;;  %v1030_v54 = vld [vmem:[%s5094_s5 + $0x380] sm:$0xff] }
 0x137   :  { %838 = vmatprep.mubr.bf16.mxu1 %v4160_v58  ;;  %v979_v53 = vld [vmem:[%s5094_s5 + $0x1e8] sm:$0xff]  ;;  %v3397_v56 = vcombine.high %v1030_v54, %v1034_v55 }
 0x138   :  { %839 = vmatmul.mubr.bf16.gmra.mrb[4].mxu1 %v4158_v57 }
 0x139   :  { %854 = vmatpush1.bf16.msra.mxu1 %v3727_v59  ;;  %881 = vmatprep.mubr.bf16.mxu1 %v452_v40  ;;  %v3311_v40 = vcombine.high %v943_v36, %v947_v37  ;;  %v3343_v59 = vcombine.high %v975_v52, %v979_v53 }
 0x13a   :  { %855 = vmatprep.subr.bf16.mxu1 %v3732_v60  ;;  %v983_v60 = vld [vmem:[%s5094_s5 + $0x208] sm:$0xff]  ;;  %2532 = vmatprep.subr.bf16.mxu0 %v3397_v56 }
 0x13d   :  { %856 = vmatpush1.bf16.msra.mxu1 %v3730_v61  ;;  %v987_v61 = vld [vmem:[%s5094_s5 + $0x228] sm:$0xff] }
 0x13e   :  { %857 = vmatprep.subr.bf16.mxu1 %v3735_v62  ;;  %v1038_v62 = vld [vmem:[%s5094_s5 + $0x3c0] sm:$0xff] }
 0x141   :  { %858 = vmatpush1.bf16.msra.mxu1 %v3733_v63  ;;  %v1042_v63 = vld [vmem:[%s5094_s5 + $0x3e0] sm:$0xff] }
 0x142   :  { %859 = vmatprep.subr.bf16.mxu1 %v3738_v0  ;;  %v3405_v0 = vcombine.high %v1038_v62, %v1042_v63 }
 0x145   :  { %860 = vmatpush1.bf16.msra.mxu1 %v3736_v1  ;;  %v3342_v1 = vcombine.low %v975_v52, %v979_v53 }
 0x146   :  { %861 = vmatprep.subr.bf16.mxu1 %v3741_v2  ;;  %v3404_v2 = vcombine.low %v1038_v62, %v1042_v63  ;;  %v1059_v62 = vld [vmem:[%s5094_s5 + $0x468] sm:$0xff] }
 0x149   :  { %862 = vmatpush1.bf16.msra.mxu1 %v3739_v4  ;;  %v3351_v4 = vcombine.high %v983_v60, %v987_v61 }
 0x14a   :  { %863 = vmatprep.subr.bf16.mxu1 %v3744_v5  ;;  %v991_v5 = vld [vmem:[%s5094_s5 + $0x248] sm:$0xff] }
 0x14d   :  { %864 = vmatpush1.bf16.msra.mxu1 %v3742_v6  ;;  %v995_v6 = vld [vmem:[%s5094_s5 + $0x268] sm:$0xff] }
 0x14e   :  { %865 = vmatprep.subr.bf16.mxu1 %v3747_v7  ;;  %v4323_v7 = vld [vmem:[%s5094_s5 + $0x400] sm:$0xff] }
 0x151   :  { %866 = vmatpush1.bf16.msra.mxu1 %v3745_v9  ;;  %v4328_v9 = vld [vmem:[%s5094_s5 + $0x420] sm:$0xff] }
 0x152   :  { %867 = vmatprep.subr.bf16.mxu1 %v3750_v10  ;;  %v4333_v10 = vld [vmem:[%s5094_s5 + $0x408] sm:$0xff] }
 0x155   :  { %868 = vmatpush1.bf16.msra.mxu1 %v3748_v12  ;;  %v3413_v12 = vcombine.high %v4323_v7, %v4328_v9 }
 0x156   :  { %869 = vmatprep.subr.bf16.mxu1 %v3753_v13  ;;  %v4340_v13 = vld [vmem:[%s5094_s5 + $0x428] sm:$0xff] }
 0x159   :  { %870 = vmatpush1.bf16.msra.mxu1 %v3751_v14  ;;  %v3350_v14 = vcombine.low %v983_v60, %v987_v61  ;;  %v1058_v60 = vld [vmem:[%s5094_s5 + $0x460] sm:$0xff]  ;;  %v1055_v61 = vld [vmem:[%s5094_s5 + $0x448] sm:$0xff] }
 0x15a   :  { %871 = vmatprep.subr.bf16.mxu1 %v3756_v15  ;;  %v3412_v15 = vcombine.low %v4323_v7, %v4328_v9  ;;  %v1074_v7 = vld [vmem:[%s5094_s5 + $0x4e0] sm:$0xff]  ;;  %v1071_v9 = vld [vmem:[%s5094_s5 + $0x4c8] sm:$0xff] }
 0x15d   :  { %872 = vmatpush1.bf16.msra.mxu1 %v3754_v16  ;;  %v3414_v16 = vcombine.low %v4333_v10, %v4340_v13 }
 0x15e   :  { %873 = vmatprep.subr.bf16.mxu1 %v3759_v17  ;;  %v3359_v17 = vcombine.high %v991_v5, %v995_v6 }
 0x161   :  { %874 = vmatpush1.bf16.msra.mxu1 %v3757_v18  ;;  %v999_v18 = vld [vmem:[%s5094_s5 + $0x288] sm:$0xff] }
 0x162   :  { %875 = vmatprep.subr.bf16.mxu1 %v3762_v19  ;;  %v1003_v19 = vld [vmem:[%s5094_s5 + $0x2a8] sm:$0xff] }
 0x163   :  { %v3366_v24 = vcombine.low %v999_v18, %v1003_v19 }
 0x165   :  { %876 = vmatpush1.bf16.msra.mxu1 %v3760_v20  ;;  %v3358_v20 = vcombine.low %v991_v5, %v995_v6  ;;  %v3423_v6 = vcombine.high %v1055_v61, %v1059_v62 }
 0x166   :  { %877 = vmatprep.subr.bf16.mxu1 %v3765_v21  ;;  %v3367_v21 = vcombine.high %v999_v18, %v1003_v19  ;;  %v1066_v18 = vld [vmem:[%s5094_s5 + $0x4a0] sm:$0xff]  ;;  %v1063_v19 = vld [vmem:[%s5094_s5 + $0x488] sm:$0xff] }
 0x169   :  { %878 = vmatpush1.bf16.msra.mxu1 %v3763_v22  ;;  %v1007_v22 = vld [vmem:[%s5094_s5 + $0x2c8] sm:$0xff] }
 0x16a   :  { %879 = vmatprep.subr.bf16.mxu1 %v3768_v23  ;;  %v1011_v23 = vld [vmem:[%s5094_s5 + $0x2e8] sm:$0xff] }
 0x16b   :  { %v3375_v25 = vcombine.high %v1007_v22, %v1011_v23  ;;  %v3374_v28 = vcombine.low %v1007_v22, %v1011_v23 }
 0x16d   :  { %880 = vmatpush1.bf16.msra.mxu1 %v3766_v26  ;;  %v1015_v26 = vld [vmem:[%s5094_s5 + $0x308] sm:$0xff] }
 0x16e   :  { %2610 = vmatprep.subr.bf16.mxu1 %v3287_v27  ;;  %v1019_v27 = vld [vmem:[%s5094_s5 + $0x328] sm:$0xff] }
 0x16f   :  { %v3383_v29 = vcombine.high %v1015_v26, %v1019_v27  ;;  %v3382_v32 = vcombine.low %v1015_v26, %v1019_v27 }
 0x170   :  { %882 = vmatmul.mubr.bf16.vlgmr.msra.gmra.mrb[8].mxu1 %v4143_v38  ;;  %v951_v38 = vld [vmem:[%s5094_s5 + $0x108] sm:$0xff] }
 0x171   :  { %891 = vmatprep.mubr.bf16.mxu1 %v4160_v58  ;;  %2611 = vmatpush1.bf16.msra.mxu1 %v3286_v30  ;;  %v3319_v43 = vcombine.high %v951_v38, %v955_v41  ;;  %v3318_v46 = vcombine.low %v951_v38, %v955_v41  ;;  %v3396_v58 = vcombine.low %v1030_v54, %v1034_v55  ;;  %v1023_v30 = vld [vmem:[%s5094_s5 + $0x348] sm:$0xff] }
 0x172   :  { %2612 = vmatprep.subr.bf16.mxu1 %v3295_v31  ;;  %v1027_v31 = vld [vmem:[%s5094_s5 + $0x368] sm:$0xff] }
 0x173   :  { %2533 = vmatpush1.bf16.msra.mxu0 %v3396_v58  ;;  %v3391_v33 = vcombine.high %v1023_v30, %v1027_v31  ;;  %v3390_v36 = vcombine.low %v1023_v30, %v1027_v31  ;;  %v1070_v30 = vld [vmem:[%s5094_s5 + $0x4c0] sm:$0xff] }
 0x174   :  { %2534 = vmatprep.subr.bf16.mxu0 %v3405_v0 }
 0x175   :  { %2613 = vmatpush1.bf16.msra.mxu1 %v3294_v34  ;;  %v1031_v34 = vld [vmem:[%s5094_s5 + $0x388] sm:$0xff] }
 0x176   :  { %2614 = vmatprep.subr.bf16.mxu1 %v3303_v35  ;;  %v1035_v35 = vld [vmem:[%s5094_s5 + $0x3a8] sm:$0xff] }
 0x177   :  { %2535 = vmatpush1.bf16.msra.mxu0 %v3404_v2  ;;  %v3399_v37 = vcombine.high %v1031_v34, %v1035_v35  ;;  %v3398_v38 = vcombine.low %v1031_v34, %v1035_v35  ;;  %v3437_v34 = vcombine.high %v1070_v30, %v1074_v7 }
 0x178   :  { %892 = vmatmul.mubr.bf16.gmra.mrb[12].mxu1 %v4158_v57  ;;  %v3334_v57 = vcombine.low %v967_v48, %v971_v49  ;;  %2557 = vmatprep.subr.bf16.mxu0 %v3413_v12  ;;  %v1062_v12 = vld [vmem:[%s5094_s5 + $0x480] sm:$0xff] }
 0x179   :  { %2615 = vmatpush1.bf16.msra.mxu1 %v3302_v39  ;;  %v1039_v39 = vld [vmem:[%s5094_s5 + $0x3c8] sm:$0xff] }
 0x17a   :  { %2616 = vmatprep.subr.bf16.mxu1 %v3311_v40  ;;  %v1043_v40 = vld [vmem:[%s5094_s5 + $0x3e8] sm:$0xff] }
 0x17b   :  { %v3407_v41 = vcombine.high %v1039_v39, %v1043_v40 }
 0x17d   :  { %2617 = vmatpush1.bf16.msra.mxu1 %v3310_v42  ;;  %v3406_v42 = vcombine.low %v1039_v39, %v1043_v40  ;;  %v1079_v39 = vld [vmem:[%s5094_s5 + $0x508] sm:$0xff] }
 0x17e   :  { %2618 = vmatprep.subr.bf16.mxu1 %v3319_v43  ;;  %v3415_v43 = vcombine.high %v4333_v10, %v4340_v13  ;;  %v1075_v10 = vld [vmem:[%s5094_s5 + $0x4e8] sm:$0xff] }
 0x17f   :  { %v3439_v35 = vcombine.high %v1071_v9, %v1075_v10  ;;  %v1083_v40 = vld [vmem:[%s5094_s5 + $0x528] sm:$0xff] }
 0x181   :  { %2619 = vmatpush1.bf16.msra.mxu1 %v3318_v46  ;;  %v463_v46 = vrot.slane %v4387_v44, %v4121_v11 }
 0x182   :  { %2620 = vmatprep.subr.bf16.mxu1 %v3327_v47 }
 0x185   :  { %2621 = vmatpush1.bf16.msra.mxu1 %v3326_v50 }
 0x186   :  { %2622 = vmatprep.subr.bf16.mxu1 %v3335_v51 }
 0x189   :  { %2623 = vmatpush1.bf16.msra.mxu1 %v3334_v57  ;;  %v1054_v57 = vld [vmem:[%s5094_s5 + $0x440] sm:$0xff] }
 0x18a   :  { %2624 = vmatprep.subr.bf16.mxu1 %v3343_v59  ;;  %v3421_v5 = vcombine.high %v1054_v57, %v1058_v60 }
 0x18d   :  { %2625 = vmatpush1.bf16.msra.mxu1 %v3342_v1 }
 0x18e   :  { %2626 = vmatprep.subr.bf16.mxu1 %v3351_v4 }
 0x191   :  { %2627 = vmatpush1.bf16.msra.mxu1 %v3350_v14 }
 0x192   :  { %2628 = vmatprep.subr.bf16.mxu1 %v3359_v17 }
 0x195   :  { %2629 = vmatpush1.bf16.msra.mxu1 %v3358_v20  ;;  %v1067_v20 = vld [vmem:[%s5094_s5 + $0x4a8] sm:$0xff] }
 0x196   :  { %2630 = vmatprep.subr.bf16.mxu1 %v3367_v21 }
 0x199   :  { %2631 = vmatpush1.bf16.msra.mxu1 %v3366_v24  ;;  %v3420_v24 = vcombine.low %v1054_v57, %v1058_v60 }
 0x19a   :  { %2632 = vmatprep.subr.bf16.mxu1 %v3375_v25  ;;  %v3422_v25 = vcombine.low %v1055_v61, %v1059_v62  ;;  %v1102_v61 = vld [vmem:[%s5094_s5 + $0x5c0] sm:$0xff] }
 0x19b   :  { %v1106_v62 = vld [vmem:[%s5094_s5 + $0x5e0] sm:$0xff] }
 0x19d   :  { %2633 = vmatpush1.bf16.msra.mxu1 %v3374_v28  ;;  %v3429_v28 = vcombine.high %v1062_v12, %v1066_v18 }
 0x19e   :  { %2634 = vmatprep.subr.bf16.mxu1 %v3383_v29  ;;  %v3431_v29 = vcombine.high %v1063_v19, %v1067_v20 }
 0x1a1   :  { %2635 = vmatpush1.bf16.msra.mxu1 %v3382_v32 }
 0x1a2   :  { %2636 = vmatprep.subr.bf16.mxu1 %v3391_v33  ;;  %v3430_v33 = vcombine.low %v1063_v19, %v1067_v20  ;;  %v1115_v19 = vld [vmem:[%s5094_s5 + $0x628] sm:$0xff]  ;;  %v3468_v20 = vcombine.low %v1102_v61, %v1106_v62 }
 0x1a5   :  { %2637 = vmatpush1.bf16.msra.mxu1 %v3390_v36  ;;  %v1078_v36 = vld [vmem:[%s5094_s5 + $0x500] sm:$0xff] }
 0x1a6   :  { %2638 = vmatprep.subr.bf16.mxu1 %v3399_v37  ;;  %v1082_v37 = vld [vmem:[%s5094_s5 + $0x520] sm:$0xff] }
 0x1a9   :  { %2639 = vmatpush1.bf16.msra.mxu1 %v3398_v38  ;;  %v3436_v38 = vcombine.low %v1070_v30, %v1074_v7  ;;  %v1130_v7 = vld [vmem:[%s5094_s5 + $0x6a0] sm:$0xff] }
 0x1aa   :  { %2640 = vmatprep.subr.bf16.mxu1 %v3407_v41  ;;  %v3438_v41 = vcombine.low %v1071_v9, %v1075_v10  ;;  %v1127_v9 = vld [vmem:[%s5094_s5 + $0x688] sm:$0xff] }
 0x1ab   :  { %v1131_v10 = vld [vmem:[%s5094_s5 + $0x6a8] sm:$0xff] }
 0x1ad   :  { %2641 = vmatpush1.bf16.msra.mxu1 %v3406_v42  ;;  %v3445_v42 = vcombine.high %v1078_v36, %v1082_v37 }
 0x1ae   :  { %2663 = vmatprep.subr.bf16.mxu1 %v3415_v43  ;;  %v3447_v43 = vcombine.high %v1079_v39, %v1083_v40 }
 0x203   :  { %v830_v47 = vpop.f32.mrb[0].mxu1 }
 0x204   :  { %v831_v48 = vadd.f32 %v830_v47, %v459_v45  ;;  %v832_v49 = vpop.f32.mrb[1].mxu1  ;;  %v1087_v47 = vld [vmem:[%s5094_s5 + $0x548] sm:$0xff] }
 0x205   :  { %v833_v50 = vadd.f32 %v832_v49, %v463_v46  ;;  %v834_v51 = vpop.f32.mrb[2].mxu1  ;;  %v3444_v49 = vcombine.low %v1078_v36, %v1082_v37  ;;  %v1134_v36 = vld [vmem:[%s5094_s5 + $0x6c0] sm:$0xff] }
 0x206   :  { %v835_v52 = vadd.f32 %v834_v51, %v459_v45  ;;  %v836_v53 = vpop.f32.mrb[3].mxu1  ;;  %v902_v55 = vmax.f32 %v831_v48, 0.0  ;;  %v1091_v48 = vld [vmem:[%s5094_s5 + $0x568] sm:$0xff]  ;;  %v1138_v37 = vld [vmem:[%s5094_s5 + $0x6e0] sm:$0xff] }
 0x207   :  { %v837_v54 = vadd.f32 %v836_v53, %v463_v46  ;;  %v903_v58 = vmax.f32 %v833_v50, 0.0  ;;  %v3446_v50 = vcombine.low %v1079_v39, %v1083_v40  ;;  %v1094_v53 = vld [vmem:[%s5094_s5 + $0x580] sm:$0xff]  ;;  %v1135_v39 = vld [vmem:[%s5094_s5 + $0x6c8] sm:$0xff] }
 0x208   :  { %v906_v56 = vmax.f32 %v835_v52, 0.0  ;;  %v3455_v52 = vcombine.high %v1087_v47, %v1091_v48  ;;  %v1139_v40 = vld [vmem:[%s5094_s5 + $0x6e8] sm:$0xff] }
 0x209   :  { %v907_v59 = vmax.f32 %v837_v54, 0.0  ;;  %v1098_v54 = vld [vmem:[%s5094_s5 + $0x5a0] sm:$0xff] }
 0x20a   :  { %v4405_v63 = vpack.c.bf16 %v906_v56, %v902_v55  ;;  %v1095_v55 = vld [vmem:[%s5094_s5 + $0x588] sm:$0xff] }
 0x20b   :  { %v4407_v0 = vpack.c.bf16 %v907_v59, %v903_v58  ;;  %v840_v1 = vpop.f32.mrb[4].mxu1  ;;  %v1099_v56 = vld [vmem:[%s5094_s5 + $0x5a8] sm:$0xff]  ;;  %v3454_v58 = vcombine.low %v1087_v47, %v1091_v48  ;;  %v3461_v59 = vcombine.high %v1094_v53, %v1098_v54 }
 0x20c   :  { %v841_v2 = vadd.f32 %v840_v1, %v459_v45  ;;  %v842_v4 = vpop.f32.mrb[5].mxu1  ;;  %v3463_v60 = vcombine.high %v1095_v55, %v1099_v56  ;;  %v1103_v1 = vld [vmem:[%s5094_s5 + $0x5c8] sm:$0xff] }
 0x20d   :  { %v843_v14 = vadd.f32 %v842_v4, %v463_v46  ;;  %v844_v17 = vpop.f32.mrb[6].mxu1  ;;  %2536 = vmatprep.mubr.bf16.mxu0 %v4407_v0  ;;  %2642 = vmatprep.mubr.bf16.mxu1 %v4407_v0  ;;  %v3460_v4 = vcombine.low %v1094_v53, %v1098_v54  ;;  %v1143_v47 = vld [vmem:[%s5094_s5 + $0x708] sm:$0xff]  ;;  %v1150_v53 = vld [vmem:[%s5094_s5 + $0x740] sm:$0xff] }
 0x20e   :  { %v845_v21 = vadd.f32 %v844_v17, %v459_v45  ;;  %v846_v22 = vpop.f32.mrb[7].mxu1  ;;  %2537 = vmatmul.mubr.bf16.vlgmr.msra.gmra.mrb[8].mxu0 %v4405_v63  ;;  %2643 = vmatmul.mubr.bf16.vlgmr.msra.gmra.mrb[16].mxu1 %v4405_v63  ;;  %v910_v26 = vmax.f32 %v841_v2, 0.0  ;;  %v1086_v45 = vld [vmem:[%s5094_s5 + $0x540] sm:$0xff]  ;;  %v1107_v2 = vld [vmem:[%s5094_s5 + $0x5e8] sm:$0xff] }
 0x20f   :  { %v847_v23 = vadd.f32 %v846_v22, %v463_v46  ;;  %2558 = vmatpush1.bf16.msra.mxu0 %v3412_v15  ;;  %2664 = vmatpush1.bf16.msra.mxu1 %v3414_v16  ;;  %v911_v31 = vmax.f32 %v843_v14, 0.0  ;;  %v3428_v16 = vcombine.low %v1062_v12, %v1066_v18  ;;  %v1090_v46 = vld [vmem:[%s5094_s5 + $0x560] sm:$0xff]  ;;  %v3471_v12 = vcombine.high %v1103_v1, %v1107_v2  ;;  %v1111_v18 = vld [vmem:[%s5094_s5 + $0x608] sm:$0xff] }
 0x210   :  { %v914_v27 = vmax.f32 %v845_v21, 0.0  ;;  %2559 = vmatprep.subr.bf16.mxu0 %v3421_v5  ;;  %2665 = vmatprep.subr.bf16.mxu1 %v3423_v6  ;;  %v3453_v51 = vcombine.high %v1086_v45, %v1090_v46  ;;  %v3452_v57 = vcombine.low %v1086_v45, %v1090_v46  ;;  %v3462_v5 = vcombine.low %v1095_v55, %v1099_v56  ;;  %v1110_v14 = vld [vmem:[%s5094_s5 + $0x600] sm:$0xff]  ;;  %v1147_v48 = vld [vmem:[%s5094_s5 + $0x728] sm:$0xff] }
 0x211   :  { %v915_v32 = vmax.f32 %v847_v23, 0.0  ;;  %v3469_v6 = vcombine.high %v1102_v61, %v1106_v62  ;;  %v1114_v17 = vld [vmem:[%s5094_s5 + $0x620] sm:$0xff]  ;;  %v3470_v21 = vcombine.low %v1103_v1, %v1107_v2  ;;  %v3479_v23 = vcombine.high %v1111_v18, %v1115_v19  ;;  %v1151_v55 = vld [vmem:[%s5094_s5 + $0x748] sm:$0xff] }
 0x212   :  { %v4443_v13 = vpack.c.bf16 %v914_v27, %v910_v26  ;;  %v3477_v22 = vcombine.high %v1110_v14, %v1114_v17  ;;  %v1119_v26 = vld [vmem:[%s5094_s5 + $0x648] sm:$0xff]  ;;  %v1142_v45 = vld [vmem:[%s5094_s5 + $0x700] sm:$0xff]  ;;  %v466_v61 = vsub.s32 2, %v4106_v3  ;;  %v470_v1 = vsub.s32 3, %v4106_v3 }
 0x213   :  { %v4445_v15 = vpack.c.bf16 %v915_v32, %v911_v31  ;;  %2560 = vmatpush1.bf16.msra.mxu0 %v3420_v24  ;;  %2666 = vmatpush1.bf16.msra.mxu1 %v3422_v25  ;;  %v1118_v24 = vld [vmem:[%s5094_s5 + $0x640] sm:$0xff]  ;;  %v1123_v27 = vld [vmem:[%s5094_s5 + $0x668] sm:$0xff] }
 0x214   :  { %2561 = vmatprep.subr.bf16.mxu0 %v3429_v28  ;;  %2667 = vmatprep.subr.bf16.mxu1 %v3431_v29  ;;  %v1122_v25 = vld [vmem:[%s5094_s5 + $0x660] sm:$0xff]  ;;  %v3476_v28 = vcombine.low %v1110_v14, %v1114_v17  ;;  %v3478_v29 = vcombine.low %v1111_v18, %v1115_v19  ;;  %v3487_v31 = vcombine.high %v1119_v26, %v1123_v27  ;;  %v1155_v56 = vld [vmem:[%s5094_s5 + $0x768] sm:$0xff] }
 0x215   :  { %2546 = vmatprep.mubr.bf16.mxu0 %v4445_v15  ;;  %2652 = vmatprep.mubr.bf16.mxu1 %v4445_v15  ;;  %v3485_v30 = vcombine.high %v1118_v24, %v1122_v25  ;;  %v1126_v32 = vld [vmem:[%s5094_s5 + $0x680] sm:$0xff]  ;;  %v4588_v14 = vrot.slane %v4387_v44, %v466_v61 }
 0x216   :  { %2547 = vmatmul.mubr.bf16.gmra.mrb[12].mxu0 %v4443_v13  ;;  %2653 = vmatmul.mubr.bf16.gmra.mrb[20].mxu1 %v4443_v13  ;;  %v1146_v46 = vld [vmem:[%s5094_s5 + $0x720] sm:$0xff] }
 0x217   :  { %2562 = vmatpush1.bf16.msra.mxu0 %v3428_v16  ;;  %2668 = vmatpush1.bf16.msra.mxu1 %v3430_v33  ;;  %v3484_v16 = vcombine.low %v1118_v24, %v1122_v25  ;;  %v3486_v33 = vcombine.low %v1119_v26, %v1123_v27  ;;  %v1154_v54 = vld [vmem:[%s5094_s5 + $0x760] sm:$0xff] }
 0x218   :  { %2563 = vmatprep.subr.bf16.mxu0 %v3437_v34  ;;  %2669 = vmatprep.subr.bf16.mxu1 %v3439_v35  ;;  %v3493_v34 = vcombine.high %v1126_v32, %v1130_v7  ;;  %v3495_v35 = vcombine.high %v1127_v9, %v1131_v10  ;;  %v1158_v62 = vld [vmem:[%s5094_s5 + $0x780] sm:$0xff] }
 0x219   :  { %v1162_v2 = vld [vmem:[%s5094_s5 + $0x7a0] sm:$0xff] }
 0x21a   :  { %v3525_v17 = vcombine.high %v1158_v62, %v1162_v2  ;;  %v1166_v19 = vld [vmem:[%s5094_s5 + $0x7c0] sm:$0xff]  ;;  %v3524_v25 = vcombine.low %v1158_v62, %v1162_v2  ;;  %v937_v62 = vld [vmem:[%s5094_s5 + $0x98] sm:$0xff] }
 0x21b   :  { %2564 = vmatpush1.bf16.msra.mxu0 %v3436_v38  ;;  %2670 = vmatpush1.bf16.msra.mxu1 %v3438_v41  ;;  %v3492_v38 = vcombine.low %v1126_v32, %v1130_v7  ;;  %v3494_v41 = vcombine.low %v1127_v9, %v1131_v10  ;;  %v924_v7 = vld [vmem:[%s5094_s5 + $0x30] sm:$0xff]  ;;  %v921_v9 = vld [vmem:[%s5094_s5 + $0x18] sm:$0xff] }
 0x21c   :  { %2565 = vmatprep.subr.bf16.mxu0 %v3445_v42  ;;  %2671 = vmatprep.subr.bf16.mxu1 %v3447_v43  ;;  %v3501_v42 = vcombine.high %v1134_v36, %v1138_v37  ;;  %v3503_v43 = vcombine.high %v1135_v39, %v1139_v40  ;;  %v925_v10 = vld [vmem:[%s5094_s5 + $0x38] sm:$0xff] }
 0x21d   :  { %v941_v2 = vld [vmem:[%s5094_s5 + $0xb8] sm:$0xff] }
 0x21f   :  { %2566 = vmatpush1.bf16.msra.mxu0 %v3444_v49  ;;  %2672 = vmatpush1.bf16.msra.mxu1 %v3446_v50  ;;  %v3500_v49 = vcombine.low %v1134_v36, %v1138_v37  ;;  %v3502_v50 = vcombine.low %v1135_v39, %v1139_v40 }
 0x220   :  { %2567 = vmatprep.subr.bf16.mxu0 %v3453_v51  ;;  %2673 = vmatprep.subr.bf16.mxu1 %v3455_v52  ;;  %v3509_v51 = vcombine.high %v1142_v45, %v1146_v46  ;;  %v3511_v52 = vcombine.high %v1143_v47, %v1147_v48 }
 0x223   :  { %2568 = vmatpush1.bf16.msra.mxu0 %v3452_v57  ;;  %2674 = vmatpush1.bf16.msra.mxu1 %v3454_v58  ;;  %v3508_v57 = vcombine.low %v1142_v45, %v1146_v46  ;;  %v3510_v58 = vcombine.low %v1143_v47, %v1147_v48  ;;  %v932_v45 = vld [vmem:[%s5094_s5 + $0x70] sm:$0xff]  ;;  %v929_v46 = vld [vmem:[%s5094_s5 + $0x58] sm:$0xff] }
 0x224   :  { %2569 = vmatprep.subr.bf16.mxu0 %v3461_v59  ;;  %2675 = vmatprep.subr.bf16.mxu1 %v3463_v60  ;;  %v3517_v59 = vcombine.high %v1150_v53, %v1154_v54  ;;  %v3519_v60 = vcombine.high %v1151_v55, %v1155_v56  ;;  %v933_v47 = vld [vmem:[%s5094_s5 + $0x78] sm:$0xff] }
 0x227   :  { %2570 = vmatpush1.bf16.msra.mxu0 %v3460_v4  ;;  %2676 = vmatpush1.bf16.msra.mxu1 %v3462_v5  ;;  %v1159_v4 = vld [vmem:[%s5094_s5 + $0x788] sm:$0xff] }
 0x228   :  { %2571 = vmatprep.subr.bf16.mxu0 %v3469_v6  ;;  %2677 = vmatprep.subr.bf16.mxu1 %v3471_v12  ;;  %v1163_v5 = vld [vmem:[%s5094_s5 + $0x7a8] sm:$0xff]  ;;  %v3516_v6 = vcombine.low %v1150_v53, %v1154_v54  ;;  %v3518_v12 = vcombine.low %v1151_v55, %v1155_v56  ;;  %v3299_v56 = vcombine.high %v929_v46, %v933_v47 }
 0x229   :  { %v3527_v18 = vcombine.high %v1159_v4, %v1163_v5  ;;  %v3526_v26 = vcombine.low %v1159_v4, %v1163_v5 }
 0x22b   :  { %2572 = vmatpush1.bf16.msra.mxu0 %v3468_v20  ;;  %2678 = vmatpush1.bf16.msra.mxu1 %v3470_v21  ;;  %v4596_v20 = vrot.slane %v4387_v44, %v470_v1  ;;  %v1170_v21 = vld [vmem:[%s5094_s5 + $0x7e0] sm:$0xff] }
 0x22c   :  { %2573 = vmatprep.subr.bf16.mxu0 %v3477_v22  ;;  %2679 = vmatprep.subr.bf16.mxu1 %v3479_v23  ;;  %v1167_v22 = vld [vmem:[%s5094_s5 + $0x7c8] sm:$0xff] }
 0x22d   :  { %v1171_v23 = vld [vmem:[%s5094_s5 + $0x7e8] sm:$0xff] }
 0x22e   :  { %v3534_v36 = vcombine.low %v1167_v22, %v1171_v23 }
 0x22f   :  { %2574 = vmatpush1.bf16.msra.mxu0 %v3476_v28  ;;  %2680 = vmatpush1.bf16.msra.mxu1 %v3478_v29  ;;  %v3533_v28 = vcombine.high %v1166_v19, %v1170_v21  ;;  %v3535_v29 = vcombine.high %v1167_v22, %v1171_v23  ;;  %v3307_v22 = vcombine.high %v937_v62, %v941_v2 }
 0x230   :  { %2575 = vmatprep.subr.bf16.mxu0 %v3485_v30  ;;  %2681 = vmatprep.subr.bf16.mxu1 %v3487_v31  ;;  %v920_v30 = vld [vmem:[%s5094_s5 + $0x10] sm:$0xff] }
 0x231   :  { %v3289_v40 = vcombine.high %v920_v30, %v924_v7 }
 0x233   :  { %2576 = vmatpush1.bf16.msra.mxu0 %v3484_v16  ;;  %2682 = vmatpush1.bf16.msra.mxu1 %v3486_v33 }
 0x234   :  { %2577 = vmatprep.subr.bf16.mxu0 %v3493_v34  ;;  %2683 = vmatprep.subr.bf16.mxu1 %v3495_v35  ;;  %v3532_v35 = vcombine.low %v1166_v19, %v1170_v21 }
 0x237   :  { %2578 = vmatpush1.bf16.msra.mxu0 %v3492_v38  ;;  %2684 = vmatpush1.bf16.msra.mxu1 %v3494_v41  ;;  %v3291_v38 = vcombine.high %v921_v9, %v925_v10  ;;  %v928_v41 = vld [vmem:[%s5094_s5 + $0x50] sm:$0xff] }
 0x238   :  { %2579 = vmatprep.subr.bf16.mxu0 %v3501_v42  ;;  %2685 = vmatprep.subr.bf16.mxu1 %v3503_v43  ;;  %v3297_v55 = vcombine.high %v928_v41, %v932_v45 }
 0x23b   :  { %2580 = vmatpush1.bf16.msra.mxu0 %v3500_v49  ;;  %2686 = vmatpush1.bf16.msra.mxu1 %v3502_v50 }
 0x23c   :  { %2581 = vmatprep.subr.bf16.mxu0 %v3509_v51  ;;  %2687 = vmatprep.subr.bf16.mxu1 %v3511_v52  ;;  %v3288_v51 = vcombine.low %v920_v30, %v924_v7  ;;  %v3290_v52 = vcombine.low %v921_v9, %v925_v10  ;;  %v956_v7 = vld [vmem:[%s5094_s5 + $0x130] sm:$0xff]  ;;  %v953_v9 = vld [vmem:[%s5094_s5 + $0x118] sm:$0xff] }
 0x23d   :  { %v957_v10 = vld [vmem:[%s5094_s5 + $0x138] sm:$0xff] }
 0x23f   :  { %2582 = vmatpush1.bf16.msra.mxu0 %v3508_v57  ;;  %2688 = vmatpush1.bf16.msra.mxu1 %v3510_v58  ;;  %v936_v57 = vld [vmem:[%s5094_s5 + $0x90] sm:$0xff] }
 0x240   :  { %2583 = vmatprep.subr.bf16.mxu0 %v3517_v59  ;;  %2689 = vmatprep.subr.bf16.mxu1 %v3519_v60  ;;  %v940_v60 = vld [vmem:[%s5094_s5 + $0xb0] sm:$0xff] }
 0x241   :  { %v3305_v21 = vcombine.high %v936_v57, %v940_v60 }
 0x243   :  { %v883_v24 = vpop.f32.mrb[8].mxu1  ;;  %2584 = vmatpush1.bf16.msra.mxu0 %v3516_v6  ;;  %2690 = vmatpush1.bf16.msra.mxu1 %v3518_v12  ;;  %v3296_v12 = vcombine.low %v928_v41, %v932_v45  ;;  %v972_v45 = vld [vmem:[%s5094_s5 + $0x1b0] sm:$0xff] }
 0x244   :  { %v884_v44 = vadd.f32 %v883_v24, %v4588_v14  ;;  %v885_v27 = vpop.f32.mrb[9].mxu1  ;;  %2585 = vmatprep.subr.bf16.mxu0 %v3525_v17  ;;  %2691 = vmatprep.subr.bf16.mxu1 %v3527_v18  ;;  %v3298_v17 = vcombine.low %v929_v46, %v933_v47  ;;  %v969_v46 = vld [vmem:[%s5094_s5 + $0x198] sm:$0xff] }
 0x245   :  { %v886_v31 = vadd.f32 %v885_v27, %v4596_v20  ;;  %v887_v32 = vpop.f32.mrb[10].mxu1  ;;  %v973_v47 = vld [vmem:[%s5094_s5 + $0x1b8] sm:$0xff] }
 0x246   :  { %v888_v16 = vadd.f32 %v887_v32, %v4588_v14  ;;  %v889_v33 = vpop.f32.mrb[11].mxu1  ;;  %v904_v37 = vmax.f32 %v884_v44, 0.0  ;;  %v949_v44 = vld [vmem:[%s5094_s5 + $0xf8] sm:$0xff]  ;;  %v952_v32 = vld [vmem:[%s5094_s5 + $0x110] sm:$0xff] }
 0x247   :  { %v890_v34 = vadd.f32 %v889_v33, %v4596_v20  ;;  %2586 = vmatpush1.bf16.msra.mxu0 %v3524_v25  ;;  %2692 = vmatpush1.bf16.msra.mxu1 %v3526_v26  ;;  %v905_v42 = vmax.f32 %v886_v31, 0.0  ;;  %v945_v26 = vld [vmem:[%s5094_s5 + $0xd8] sm:$0xff] }
 0x248   :  { %v908_v39 = vmax.f32 %v888_v16, 0.0  ;;  %2587 = vmatprep.subr.bf16.mxu0 %v3533_v28  ;;  %2693 = vmatprep.subr.bf16.mxu1 %v3535_v29  ;;  %v3304_v28 = vcombine.low %v936_v57, %v940_v60  ;;  %v3306_v29 = vcombine.low %v937_v62, %v941_v2  ;;  %v3315_v31 = vcombine.high %v945_v26, %v949_v44  ;;  %v981_v57 = vld [vmem:[%s5094_s5 + $0x1f8] sm:$0xff]  ;;  %v984_v2 = vld [vmem:[%s5094_s5 + $0x210] sm:$0xff] }
 0x249   :  { %v909_v43 = vmax.f32 %v890_v34, 0.0  ;;  %v3314_v33 = vcombine.low %v945_v26, %v949_v44  ;;  %v3321_v34 = vcombine.high %v952_v32, %v956_v7 }
 0x24a   :  { %v4635_v48 = vpack.c.bf16 %v908_v39, %v904_v37  ;;  %v964_v37 = vld [vmem:[%s5094_s5 + $0x170] sm:$0xff]  ;;  %v961_v39 = vld [vmem:[%s5094_s5 + $0x158] sm:$0xff] }
 0x24b   :  { %v4637_v49 = vpack.c.bf16 %v909_v43, %v905_v42  ;;  %v893_v50 = vpop.f32.mrb[12].mxu1  ;;  %2588 = vmatpush1.bf16.msra.mxu0 %v3532_v35  ;;  %2694 = vmatpush1.bf16.msra.mxu1 %v3534_v36  ;;  %v3323_v35 = vcombine.high %v953_v9, %v957_v10  ;;  %v960_v36 = vld [vmem:[%s5094_s5 + $0x150] sm:$0xff] }
 0x24c   :  { %v894_v53 = vadd.f32 %v893_v50, %v4588_v14  ;;  %v895_v54 = vpop.f32.mrb[13].mxu1  ;;  %2716 = vmatprep.subr.bf16.mxu0 %v3289_v40  ;;  %2822 = vmatprep.subr.bf16.mxu1 %v3291_v38  ;;  %v3320_v40 = vcombine.low %v952_v32, %v956_v7  ;;  %v3322_v38 = vcombine.low %v953_v9, %v957_v10  ;;  %v968_v43 = vld [vmem:[%s5094_s5 + $0x190] sm:$0xff] }
 0x24d   :  { %v896_v58 = vadd.f32 %v895_v54, %v4596_v20  ;;  %v897_v59 = vpop.f32.mrb[14].mxu1  ;;  %2589 = vmatprep.mubr.bf16.mxu0 %v4637_v49  ;;  %2695 = vmatprep.mubr.bf16.mxu1 %v4637_v49  ;;  %v3329_v41 = vcombine.high %v960_v36, %v964_v37  ;;  %v3328_v50 = vcombine.low %v960_v36, %v964_v37  ;;  %v976_v54 = vld [vmem:[%s5094_s5 + $0x1d0] sm:$0xff] }
 0x24e   :  { %v898_v4 = vadd.f32 %v897_v59, %v4588_v14  ;;  %v899_v5 = vpop.f32.mrb[15].mxu1  ;;  %2590 = vmatmul.mubr.bf16.vlgmr.msra.gmra.mrb[8].mxu0 %v4635_v48  ;;  %2696 = vmatmul.mubr.bf16.vlgmr.msra.gmra.mrb[16].mxu1 %v4635_v48  ;;  %v912_v18 = vmax.f32 %v894_v53, 0.0  ;;  %v944_v14 = vld [vmem:[%s5094_s5 + $0xd0] sm:$0xff]  ;;  %v3339_v53 = vcombine.high %v969_v46, %v973_v47  ;;  %v3338_v59 = vcombine.low %v969_v46, %v973_v47 }
 0x24f   :  { %v900_v6 = vadd.f32 %v899_v5, %v4596_v20  ;;  %2717 = vmatpush1.bf16.msra.mxu0 %v3288_v51  ;;  %2823 = vmatpush1.bf16.msra.mxu1 %v3290_v52  ;;  %v913_v23 = vmax.f32 %v896_v58, 0.0  ;;  %v948_v20 = vld [vmem:[%s5094_s5 + $0xf0] sm:$0xff]  ;;  %v3337_v52 = vcombine.high %v968_v43, %v972_v45  ;;  %v3336_v58 = vcombine.low %v968_v43, %v972_v45  ;;  %v985_v5 = vld [vmem:[%s5094_s5 + $0x218] sm:$0xff] }
 0x250   :  { %v916_v19 = vmax.f32 %v898_v4, 0.0  ;;  %2718 = vmatprep.subr.bf16.mxu0 %v3297_v55  ;;  %2824 = vmatprep.subr.bf16.mxu1 %v3299_v56  ;;  %v3313_v30 = vcombine.high %v944_v14, %v948_v20  ;;  %v3312_v16 = vcombine.low %v944_v14, %v948_v20  ;;  %v980_v55 = vld [vmem:[%s5094_s5 + $0x1f0] sm:$0xff]  ;;  %v977_v56 = vld [vmem:[%s5094_s5 + $0x1d8] sm:$0xff] }
 0x251   :  { %v917_v24 = vmax.f32 %v900_v6, 0.0  ;;  %v3345_v60 = vcombine.high %v976_v54, %v980_v55  ;;  %v3347_v62 = vcombine.high %v977_v56, %v981_v57  ;;  %v988_v4 = vld [vmem:[%s5094_s5 + $0x230] sm:$0xff]  ;;  %v989_v6 = vld [vmem:[%s5094_s5 + $0x238] sm:$0xff] }
 0x252   :  { %v4662_v25 = vpack.c.bf16 %v916_v19, %v912_v18  ;;  %v3353_v18 = vcombine.high %v984_v2, %v988_v4  ;;  %v3355_v19 = vcombine.high %v985_v5, %v989_v6  ;;  %v3352_v14 = vcombine.low %v984_v2, %v988_v4 }
 0x253   :  { %v4673_v27 = vpack.c.bf16 %v917_v24, %v913_v23  ;;  %2719 = vmatpush1.bf16.msra.mxu0 %v3296_v12  ;;  %2825 = vmatpush1.bf16.msra.mxu1 %v3298_v17  ;;  %v3344_v12 = vcombine.low %v976_v54, %v980_v55  ;;  %v3346_v17 = vcombine.low %v977_v56, %v981_v57  ;;  %v993_v23 = vld [vmem:[%s5094_s5 + $0x258] sm:$0xff] }
 0x254   :  { %2720 = vmatprep.subr.bf16.mxu0 %v3305_v21  ;;  %2826 = vmatprep.subr.bf16.mxu1 %v3307_v22  ;;  %v992_v21 = vld [vmem:[%s5094_s5 + $0x250] sm:$0xff]  ;;  %v997_v24 = vld [vmem:[%s5094_s5 + $0x278] sm:$0xff]  ;;  %v3354_v20 = vcombine.low %v985_v5, %v989_v6 }
 0x255   :  { %2599 = vmatprep.mubr.bf16.mxu0 %v4673_v27  ;;  %2705 = vmatprep.mubr.bf16.mxu1 %v4673_v27  ;;  %v996_v22 = vld [vmem:[%s5094_s5 + $0x270] sm:$0xff]  ;;  %v3363_v44 = vcombine.high %v993_v23, %v997_v24  ;;  %v3362_v7 = vcombine.low %v993_v23, %v997_v24 }
 0x256   :  { %2600 = vmatmul.mubr.bf16.gmra.mrb[12].mxu0 %v4662_v25  ;;  %2706 = vmatmul.mubr.bf16.gmra.mrb[20].mxu1 %v4662_v25  ;;  %v3361_v26 = vcombine.high %v992_v21, %v996_v22  ;;  %v3360_v32 = vcombine.low %v992_v21, %v996_v22 }
 0x257   :  { %2721 = vmatpush1.bf16.msra.mxu0 %v3304_v28  ;;  %2748 = vmatprep.mubr.bf16.mxu0 %v4407_v0  ;;  %v1000_v28 = vld [vmem:[%s5094_s5 + $0x290] sm:$0xff] }
 0x258   :  { %2827 = vmatpush1.bf16.msra.mxu1 %v3306_v29  ;;  %2854 = vmatprep.mubr.bf16.mxu1 %v4407_v0  ;;  %v965_v0 = vld [vmem:[%s5094_s5 + $0x178] sm:$0xff]  ;;  %v1004_v29 = vld [vmem:[%s5094_s5 + $0x2b0] sm:$0xff] }
 0x259   :  { %2722 = vmatprep.subr.bf16.mxu0 %v3313_v30  ;;  %2828 = vmatprep.subr.bf16.mxu1 %v3315_v31  ;;  %v3331_v42 = vcombine.high %v961_v39, %v965_v0  ;;  %v3330_v51 = vcombine.low %v961_v39, %v965_v0  ;;  %v1001_v30 = vld [vmem:[%s5094_s5 + $0x298] sm:$0xff]  ;;  %v3369_v9 = vcombine.high %v1000_v28, %v1004_v29 }
 0x25a   :  { %v1005_v31 = vld [vmem:[%s5094_s5 + $0x2b8] sm:$0xff]  ;;  %v3368_v36 = vcombine.low %v1000_v28, %v1004_v29 }
 0x25b   :  { %2723 = vmatpush1.bf16.msra.mxu0 %v3312_v16  ;;  %v3371_v10 = vcombine.high %v1001_v30, %v1005_v31  ;;  %v1008_v16 = vld [vmem:[%s5094_s5 + $0x2d0] sm:$0xff]  ;;  %v3370_v37 = vcombine.low %v1001_v30, %v1005_v31 }
 0x25c   :  { %2829 = vmatpush1.bf16.msra.mxu1 %v3314_v33  ;;  %2724 = vmatprep.subr.bf16.mxu0 %v3321_v34  ;;  %v1012_v33 = vld [vmem:[%s5094_s5 + $0x2f0] sm:$0xff]  ;;  %v1009_v34 = vld [vmem:[%s5094_s5 + $0x2d8] sm:$0xff] }
 0x25d   :  { %2830 = vmatprep.subr.bf16.mxu1 %v3323_v35  ;;  %v1013_v35 = vld [vmem:[%s5094_s5 + $0x2f8] sm:$0xff]  ;;  %v3377_v39 = vcombine.high %v1008_v16, %v1012_v33  ;;  %v3376_v43 = vcombine.low %v1008_v16, %v1012_v33 }
 0x25e   :  { %v3379_v0 = vcombine.high %v1009_v34, %v1013_v35  ;;  %v3378_v45 = vcombine.low %v1009_v34, %v1013_v35 }
 0x25f   :  { %2725 = vmatpush1.bf16.msra.mxu0 %v3320_v40  ;;  %v1016_v40 = vld [vmem:[%s5094_s5 + $0x310] sm:$0xff] }
 0x260   :  { %2831 = vmatpush1.bf16.msra.mxu1 %v3322_v38  ;;  %2726 = vmatprep.subr.bf16.mxu0 %v3329_v41  ;;  %v1020_v38 = vld [vmem:[%s5094_s5 + $0x330] sm:$0xff]  ;;  %v1017_v41 = vld [vmem:[%s5094_s5 + $0x318] sm:$0xff] }
 0x261   :  { %2832 = vmatprep.subr.bf16.mxu1 %v3331_v42  ;;  %v1021_v42 = vld [vmem:[%s5094_s5 + $0x338] sm:$0xff]  ;;  %v3385_v46 = vcombine.high %v1016_v40, %v1020_v38  ;;  %v3384_v54 = vcombine.low %v1016_v40, %v1020_v38 }
 0x262   :  { %v3387_v47 = vcombine.high %v1017_v41, %v1021_v42  ;;  %v3386_v55 = vcombine.low %v1017_v41, %v1021_v42  ;;  %v1072_v42 = vld [vmem:[%s5094_s5 + $0x4d0] sm:$0xff] }
 0x263   :  { %2727 = vmatpush1.bf16.msra.mxu0 %v3328_v50  ;;  %v1024_v50 = vld [vmem:[%s5094_s5 + $0x350] sm:$0xff] }
 0x264   :  { %2833 = vmatpush1.bf16.msra.mxu1 %v3330_v51  ;;  %2728 = vmatprep.subr.bf16.mxu0 %v3337_v52  ;;  %v1028_v51 = vld [vmem:[%s5094_s5 + $0x370] sm:$0xff]  ;;  %v1025_v52 = vld [vmem:[%s5094_s5 + $0x358] sm:$0xff] }
 0x265   :  { %2834 = vmatprep.subr.bf16.mxu1 %v3339_v53  ;;  %v1029_v53 = vld [vmem:[%s5094_s5 + $0x378] sm:$0xff]  ;;  %v3393_v56 = vcombine.high %v1024_v50, %v1028_v51  ;;  %v3392_v2 = vcombine.low %v1024_v50, %v1028_v51 }
 0x266   :  { %v3395_v57 = vcombine.high %v1025_v52, %v1029_v53  ;;  %v3394_v4 = vcombine.low %v1025_v52, %v1029_v53  ;;  %v1080_v52 = vld [vmem:[%s5094_s5 + $0x510] sm:$0xff] }
 0x267   :  { %2729 = vmatpush1.bf16.msra.mxu0 %v3336_v58  ;;  %v1032_v58 = vld [vmem:[%s5094_s5 + $0x390] sm:$0xff] }
 0x268   :  { %2835 = vmatpush1.bf16.msra.mxu1 %v3338_v59  ;;  %2730 = vmatprep.subr.bf16.mxu0 %v3345_v60  ;;  %v1036_v59 = vld [vmem:[%s5094_s5 + $0x3b0] sm:$0xff]  ;;  %v1033_v60 = vld [vmem:[%s5094_s5 + $0x398] sm:$0xff] }
 0x269   :  { %2836 = vmatprep.subr.bf16.mxu1 %v3347_v62  ;;  %v1037_v62 = vld [vmem:[%s5094_s5 + $0x3b8] sm:$0xff]  ;;  %v3401_v5 = vcombine.high %v1032_v58, %v1036_v59  ;;  %v3400_v21 = vcombine.low %v1032_v58, %v1036_v59  ;;  %v1084_v53 = vld [vmem:[%s5094_s5 + $0x530] sm:$0xff] }
 0x26a   :  { %v3403_v6 = vcombine.high %v1033_v60, %v1037_v62  ;;  %v3402_v22 = vcombine.low %v1033_v60, %v1037_v62  ;;  %v3449_v58 = vcombine.high %v1080_v52, %v1084_v53  ;;  %v1088_v59 = vld [vmem:[%s5094_s5 + $0x550] sm:$0xff]  ;;  %v1089_v62 = vld [vmem:[%s5094_s5 + $0x558] sm:$0xff] }
 0x26b   :  { %2731 = vmatpush1.bf16.msra.mxu0 %v3344_v12  ;;  %v1040_v12 = vld [vmem:[%s5094_s5 + $0x3d0] sm:$0xff] }
 0x26c   :  { %2837 = vmatpush1.bf16.msra.mxu1 %v3346_v17  ;;  %2732 = vmatprep.subr.bf16.mxu0 %v3353_v18  ;;  %v1044_v17 = vld [vmem:[%s5094_s5 + $0x3f0] sm:$0xff]  ;;  %v1041_v18 = vld [vmem:[%s5094_s5 + $0x3d8] sm:$0xff] }
 0x26d   :  { %2838 = vmatprep.subr.bf16.mxu1 %v3355_v19  ;;  %v1045_v19 = vld [vmem:[%s5094_s5 + $0x3f8] sm:$0xff]  ;;  %v3409_v23 = vcombine.high %v1040_v12, %v1044_v17  ;;  %v3408_v28 = vcombine.low %v1040_v12, %v1044_v17  ;;  %v1092_v60 = vld [vmem:[%s5094_s5 + $0x570] sm:$0xff] }
 0x26e   :  { %v3411_v24 = vcombine.high %v1041_v18, %v1045_v19  ;;  %v3410_v29 = vcombine.low %v1041_v18, %v1045_v19  ;;  %v1096_v12 = vld [vmem:[%s5094_s5 + $0x590] sm:$0xff]  ;;  %v1097_v18 = vld [vmem:[%s5094_s5 + $0x598] sm:$0xff] }
 0x26f   :  { %2733 = vmatpush1.bf16.msra.mxu0 %v3352_v14  ;;  %v1048_v14 = vld [vmem:[%s5094_s5 + $0x410] sm:$0xff]  ;;  %v1101_v19 = vld [vmem:[%s5094_s5 + $0x5b8] sm:$0xff] }
 0x270   :  { %2839 = vmatpush1.bf16.msra.mxu1 %v3354_v20  ;;  %2734 = vmatprep.subr.bf16.mxu0 %v3361_v26  ;;  %v1052_v20 = vld [vmem:[%s5094_s5 + $0x430] sm:$0xff]  ;;  %v1049_v26 = vld [vmem:[%s5094_s5 + $0x418] sm:$0xff] }
 0x271   :  { %2840 = vmatprep.subr.bf16.mxu1 %v3363_v44  ;;  %v1053_v44 = vld [vmem:[%s5094_s5 + $0x438] sm:$0xff]  ;;  %v3417_v30 = vcombine.high %v1048_v14, %v1052_v20  ;;  %v3416_v16 = vcombine.low %v1048_v14, %v1052_v20  ;;  %v1100_v17 = vld [vmem:[%s5094_s5 + $0x5b0] sm:$0xff] }
 0x272   :  { %v3419_v31 = vcombine.high %v1049_v26, %v1053_v44  ;;  %v3418_v33 = vcombine.low %v1049_v26, %v1053_v44  ;;  %v1104_v14 = vld [vmem:[%s5094_s5 + $0x5d0] sm:$0xff]  ;;  %v1105_v26 = vld [vmem:[%s5094_s5 + $0x5d8] sm:$0xff] }
 0x273   :  { %2735 = vmatpush1.bf16.msra.mxu0 %v3360_v32  ;;  %v1056_v32 = vld [vmem:[%s5094_s5 + $0x450] sm:$0xff]  ;;  %v1109_v44 = vld [vmem:[%s5094_s5 + $0x5f8] sm:$0xff] }
 0x274   :  { %2841 = vmatpush1.bf16.msra.mxu1 %v3362_v7  ;;  %2736 = vmatprep.subr.bf16.mxu0 %v3369_v9  ;;  %v1060_v7 = vld [vmem:[%s5094_s5 + $0x470] sm:$0xff]  ;;  %v1057_v9 = vld [vmem:[%s5094_s5 + $0x458] sm:$0xff] }
 0x275   :  { %2842 = vmatprep.subr.bf16.mxu1 %v3371_v10  ;;  %v1061_v10 = vld [vmem:[%s5094_s5 + $0x478] sm:$0xff]  ;;  %v3425_v34 = vcombine.high %v1056_v32, %v1060_v7  ;;  %v3424_v40 = vcombine.low %v1056_v32, %v1060_v7  ;;  %v1108_v20 = vld [vmem:[%s5094_s5 + $0x5f0] sm:$0xff] }
 0x276   :  { %v3427_v35 = vcombine.high %v1057_v9, %v1061_v10  ;;  %v3426_v38 = vcombine.low %v1057_v9, %v1061_v10  ;;  %v1112_v32 = vld [vmem:[%s5094_s5 + $0x610] sm:$0xff]  ;;  %v1113_v9 = vld [vmem:[%s5094_s5 + $0x618] sm:$0xff] }
 0x277   :  { %2737 = vmatpush1.bf16.msra.mxu0 %v3368_v36  ;;  %v1064_v36 = vld [vmem:[%s5094_s5 + $0x490] sm:$0xff]  ;;  %v1117_v10 = vld [vmem:[%s5094_s5 + $0x638] sm:$0xff] }
 0x278   :  { %2843 = vmatpush1.bf16.msra.mxu1 %v3370_v37  ;;  %2738 = vmatprep.subr.bf16.mxu0 %v3377_v39  ;;  %v1068_v37 = vld [vmem:[%s5094_s5 + $0x4b0] sm:$0xff]  ;;  %v1065_v39 = vld [vmem:[%s5094_s5 + $0x498] sm:$0xff] }
 0x279   :  { %2844 = vmatprep.subr.bf16.mxu1 %v3379_v0  ;;  %v1069_v0 = vld [vmem:[%s5094_s5 + $0x4b8] sm:$0xff]  ;;  %v3433_v41 = vcombine.high %v1064_v36, %v1068_v37  ;;  %v1116_v7 = vld [vmem:[%s5094_s5 + $0x630] sm:$0xff] }
 0x27b   :  { %2739 = vmatpush1.bf16.msra.mxu0 %v3376_v43  ;;  %v1076_v43 = vld [vmem:[%s5094_s5 + $0x4f0] sm:$0xff] }
 0x27c   :  { %2845 = vmatpush1.bf16.msra.mxu1 %v3378_v45  ;;  %2740 = vmatprep.subr.bf16.mxu0 %v3385_v46  ;;  %v1073_v45 = vld [vmem:[%s5094_s5 + $0x4d8] sm:$0xff]  ;;  %v3432_v46 = vcombine.low %v1064_v36, %v1068_v37  ;;  %v3441_v50 = vcombine.high %v1072_v42, %v1076_v43  ;;  %v1120_v36 = vld [vmem:[%s5094_s5 + $0x650] sm:$0xff] }
 0x27d   :  { %2846 = vmatprep.subr.bf16.mxu1 %v3387_v47  ;;  %v3434_v47 = vcombine.low %v1065_v39, %v1069_v0  ;;  %v1124_v37 = vld [vmem:[%s5094_s5 + $0x670] sm:$0xff] }
 0x27f   :  { %2741 = vmatpush1.bf16.msra.mxu0 %v3384_v54  ;;  %v1081_v54 = vld [vmem:[%s5094_s5 + $0x518] sm:$0xff] }
 0x280   :  { %2847 = vmatpush1.bf16.msra.mxu1 %v3386_v55  ;;  %2742 = vmatprep.subr.bf16.mxu0 %v3393_v56  ;;  %v1085_v55 = vld [vmem:[%s5094_s5 + $0x538] sm:$0xff]  ;;  %v3440_v56 = vcombine.low %v1072_v42, %v1076_v43  ;;  %v1128_v42 = vld [vmem:[%s5094_s5 + $0x690] sm:$0xff] }
 0x281   :  { %2848 = vmatprep.subr.bf16.mxu1 %v3395_v57  ;;  %v1132_v43 = vld [vmem:[%s5094_s5 + $0x6b0] sm:$0xff] }
 0x283   :  { %2743 = vmatpush1.bf16.msra.mxu0 %v3392_v2  ;;  %v3448_v2 = vcombine.low %v1080_v52, %v1084_v53  ;;  %v1136_v52 = vld [vmem:[%s5094_s5 + $0x6d0] sm:$0xff] }
 0x284   :  { %2849 = vmatpush1.bf16.msra.mxu1 %v3394_v4  ;;  %2744 = vmatprep.subr.bf16.mxu0 %v3401_v5  ;;  %v3450_v4 = vcombine.low %v1081_v54, %v1085_v55  ;;  %v3457_v5 = vcombine.high %v1088_v59, %v1092_v60  ;;  %v1140_v53 = vld [vmem:[%s5094_s5 + $0x6f0] sm:$0xff] }
 0x285   :  { %2850 = vmatprep.subr.bf16.mxu1 %v3403_v6 }
 0x287   :  { %2745 = vmatpush1.bf16.msra.mxu0 %v3400_v21  ;;  %v3456_v21 = vcombine.low %v1088_v59, %v1092_v60  ;;  %v1144_v59 = vld [vmem:[%s5094_s5 + $0x710] sm:$0xff] }
 0x288   :  { %2851 = vmatpush1.bf16.msra.mxu1 %v3402_v22  ;;  %2746 = vmatprep.subr.bf16.mxu0 %v3409_v23  ;;  %v3465_v23 = vcombine.high %v1096_v12, %v1100_v17  ;;  %v1148_v60 = vld [vmem:[%s5094_s5 + $0x730] sm:$0xff] }
 0x289   :  { %2852 = vmatprep.subr.bf16.mxu1 %v3411_v24  ;;  %v3467_v24 = vcombine.high %v1097_v18, %v1101_v19 }
 0x28b   :  { %2747 = vmatpush1.bf16.msra.mxu0 %v3408_v28  ;;  %v3464_v28 = vcombine.low %v1096_v12, %v1100_v17  ;;  %v1152_v12 = vld [vmem:[%s5094_s5 + $0x750] sm:$0xff] }
 0x28c   :  { %2853 = vmatpush1.bf16.msra.mxu1 %v3410_v29  ;;  %2769 = vmatprep.subr.bf16.mxu0 %v3417_v30  ;;  %v3466_v29 = vcombine.low %v1097_v18, %v1101_v19  ;;  %v3473_v30 = vcombine.high %v1104_v14, %v1108_v20  ;;  %v1156_v17 = vld [vmem:[%s5094_s5 + $0x770] sm:$0xff]  ;;  %v1153_v18 = vld [vmem:[%s5094_s5 + $0x758] sm:$0xff] }
 0x28d   :  { %2875 = vmatprep.subr.bf16.mxu1 %v3419_v31  ;;  %v3475_v31 = vcombine.high %v1105_v26, %v1109_v44  ;;  %v1157_v19 = vld [vmem:[%s5094_s5 + $0x778] sm:$0xff] }
 0x28e   :  { %2749 = vmatmul.mubr.bf16.vlgmr.msra.gmra.mrb[16].mxu0 %v4405_v63 }
 0x28f   :  { %2855 = vmatmul.mubr.bf16.vlgmr.msra.gmra.mrb[24].mxu1 %v4405_v63  ;;  %2758 = vmatprep.mubr.bf16.mxu0 %v4445_v15  ;;  %v3435_v63 = vcombine.high %v1065_v39, %v1069_v0  ;;  %v1121_v39 = vld [vmem:[%s5094_s5 + $0x658] sm:$0xff] }
 0x290   :  { %2770 = vmatpush1.bf16.msra.mxu0 %v3416_v16  ;;  %2864 = vmatprep.mubr.bf16.mxu1 %v4445_v15  ;;  %v1077_v15 = vld [vmem:[%s5094_s5 + $0x4f8] sm:$0xff]  ;;  %v3472_v16 = vcombine.low %v1104_v14, %v1108_v20  ;;  %v1160_v14 = vld [vmem:[%s5094_s5 + $0x790] sm:$0xff] }
 0x291   :  { %2876 = vmatpush1.bf16.msra.mxu1 %v3418_v33  ;;  %2771 = vmatprep.subr.bf16.mxu0 %v3425_v34  ;;  %v3443_v51 = vcombine.high %v1073_v45, %v1077_v15  ;;  %v3442_v57 = vcombine.low %v1073_v45, %v1077_v15  ;;  %v3474_v33 = vcombine.low %v1105_v26, %v1109_v44  ;;  %v1125_v0 = vld [vmem:[%s5094_s5 + $0x678] sm:$0xff]  ;;  %v1164_v20 = vld [vmem:[%s5094_s5 + $0x7b0] sm:$0xff] }
 0x292   :  { %2877 = vmatprep.subr.bf16.mxu1 %v3427_v35  ;;  %v3481_v34 = vcombine.high %v1112_v32, %v1116_v7  ;;  %v3483_v35 = vcombine.high %v1113_v9, %v1117_v10  ;;  %v1129_v45 = vld [vmem:[%s5094_s5 + $0x698] sm:$0xff] }
 0x293   :  { %v1133_v15 = vld [vmem:[%s5094_s5 + $0x6b8] sm:$0xff] }
 0x294   :  { %2772 = vmatpush1.bf16.msra.mxu0 %v3424_v40  ;;  %v3480_v40 = vcombine.low %v1112_v32, %v1116_v7  ;;  %v1161_v26 = vld [vmem:[%s5094_s5 + $0x798] sm:$0xff]  ;;  %v1168_v32 = vld [vmem:[%s5094_s5 + $0x7d0] sm:$0xff] }
 0x295   :  { %2878 = vmatpush1.bf16.msra.mxu1 %v3426_v38  ;;  %2773 = vmatprep.subr.bf16.mxu0 %v3433_v41  ;;  %v3482_v38 = vcombine.low %v1113_v9, %v1117_v10  ;;  %v3489_v41 = vcombine.high %v1120_v36, %v1124_v37  ;;  %v1165_v44 = vld [vmem:[%s5094_s5 + $0x7b8] sm:$0xff]  ;;  %v1172_v7 = vld [vmem:[%s5094_s5 + $0x7f0] sm:$0xff] }
 0x296   :  { %2759 = vmatmul.mubr.bf16.gmra.mrb[20].mxu0 %v4443_v13  ;;  %2879 = vmatprep.subr.bf16.mxu1 %v3435_v63  ;;  %v3491_v63 = vcombine.high %v1121_v39, %v1125_v0  ;;  %v1169_v9 = vld [vmem:[%s5094_s5 + $0x7d8] sm:$0xff] }
 0x297   :  { %2865 = vmatmul.mubr.bf16.gmra.mrb[28].mxu1 %v4443_v13  ;;  %2801 = vmatprep.mubr.bf16.mxu0 %v4637_v49  ;;  %v3451_v13 = vcombine.high %v1081_v54, %v1085_v55  ;;  %v1137_v54 = vld [vmem:[%s5094_s5 + $0x6d8] sm:$0xff] }
 0x298   :  { %2774 = vmatpush1.bf16.msra.mxu0 %v3432_v46  ;;  %2907 = vmatprep.mubr.bf16.mxu1 %v4637_v49  ;;  %v1093_v49 = vld [vmem:[%s5094_s5 + $0x578] sm:$0xff]  ;;  %v3488_v46 = vcombine.low %v1120_v36, %v1124_v37  ;;  %v3536_v36 = vcombine.low %v1168_v32, %v1172_v7 }
 0x299   :  { %2880 = vmatpush1.bf16.msra.mxu1 %v3434_v47  ;;  %2775 = vmatprep.subr.bf16.mxu0 %v3441_v50  ;;  %v3459_v6 = vcombine.high %v1089_v62, %v1093_v49  ;;  %v3458_v22 = vcombine.low %v1089_v62, %v1093_v49  ;;  %v3490_v47 = vcombine.low %v1121_v39, %v1125_v0  ;;  %v1141_v55 = vld [vmem:[%s5094_s5 + $0x6f8] sm:$0xff]  ;;  %v5034_v39 = vld [vmem:[%s5097_s6] sm:$0xff] }
 0x29a   :  { %2881 = vmatprep.subr.bf16.mxu1 %v3443_v51  ;;  %v3497_v50 = vcombine.high %v1128_v42, %v1132_v43  ;;  %v3499_v51 = vcombine.high %v1129_v45, %v1133_v15  ;;  %v1145_v62 = vld [vmem:[%s5094_s5 + $0x718] sm:$0xff]  ;;  %v1187_v0 = vrot.slane %v5034_v39, %v4115_v8 }
 0x29b   :  { %v1149_v49 = vld [vmem:[%s5094_s5 + $0x738] sm:$0xff] }
 0x29c   :  { %2776 = vmatpush1.bf16.msra.mxu0 %v3440_v56  ;;  %v3496_v56 = vcombine.low %v1128_v42, %v1132_v43  ;;  %v1173_v10 = vld [vmem:[%s5094_s5 + $0x7f8] sm:$0xff] }
 0x29d   :  { %2882 = vmatpush1.bf16.msra.mxu1 %v3442_v57  ;;  %2777 = vmatprep.subr.bf16.mxu0 %v3449_v58  ;;  %v3498_v57 = vcombine.low %v1129_v45, %v1133_v15  ;;  %v3505_v58 = vcombine.high %v1136_v52, %v1140_v53  ;;  %v3538_v37 = vcombine.low %v1169_v9, %v1173_v10 }
 0x29e   :  { %2883 = vmatprep.subr.bf16.mxu1 %v3451_v13  ;;  %v3507_v13 = vcombine.high %v1137_v54, %v1141_v55 }
 0x2a0   :  { %2778 = vmatpush1.bf16.msra.mxu0 %v3448_v2  ;;  %v3504_v2 = vcombine.low %v1136_v52, %v1140_v53 }
 0x2a1   :  { %2884 = vmatpush1.bf16.msra.mxu1 %v3450_v4  ;;  %2779 = vmatprep.subr.bf16.mxu0 %v3457_v5  ;;  %v3506_v4 = vcombine.low %v1137_v54, %v1141_v55  ;;  %v3513_v5 = vcombine.high %v1144_v59, %v1148_v60 }
 0x2a2   :  { %2885 = vmatprep.subr.bf16.mxu1 %v3459_v6  ;;  %v3515_v6 = vcombine.high %v1145_v62, %v1149_v49 }
 0x2a4   :  { %2780 = vmatpush1.bf16.msra.mxu0 %v3456_v21  ;;  %v3512_v21 = vcombine.low %v1144_v59, %v1148_v60 }
 0x2a5   :  { %2886 = vmatpush1.bf16.msra.mxu1 %v3458_v22  ;;  %2781 = vmatprep.subr.bf16.mxu0 %v3465_v23  ;;  %v3514_v22 = vcombine.low %v1145_v62, %v1149_v49  ;;  %v3521_v23 = vcombine.high %v1152_v12, %v1156_v17 }
 0x2a6   :  { %2887 = vmatprep.subr.bf16.mxu1 %v3467_v24  ;;  %v3523_v24 = vcombine.high %v1153_v18, %v1157_v19 }
 0x2a8   :  { %2782 = vmatpush1.bf16.msra.mxu0 %v3464_v28  ;;  %v3520_v28 = vcombine.low %v1152_v12, %v1156_v17 }
 0x2a9   :  { %2888 = vmatpush1.bf16.msra.mxu1 %v3466_v29  ;;  %2783 = vmatprep.subr.bf16.mxu0 %v3473_v30  ;;  %v3522_v29 = vcombine.low %v1153_v18, %v1157_v19  ;;  %v3529_v30 = vcombine.high %v1160_v14, %v1164_v20 }
 0x2aa   :  { %2889 = vmatprep.subr.bf16.mxu1 %v3475_v31  ;;  %v3531_v31 = vcombine.high %v1161_v26, %v1165_v44 }
 0x2ac   :  { %2784 = vmatpush1.bf16.msra.mxu0 %v3472_v16  ;;  %v3528_v16 = vcombine.low %v1160_v14, %v1164_v20 }
 0x2ad   :  { %2890 = vmatpush1.bf16.msra.mxu1 %v3474_v33  ;;  %2785 = vmatprep.subr.bf16.mxu0 %v3481_v34  ;;  %v3530_v33 = vcombine.low %v1161_v26, %v1165_v44  ;;  %v3537_v34 = vcombine.high %v1168_v32, %v1172_v7 }
 0x2ae   :  { %2891 = vmatprep.subr.bf16.mxu1 %v3483_v35  ;;  %v3539_v35 = vcombine.high %v1169_v9, %v1173_v10 }
 0x2b0   :  { %2786 = vmatpush1.bf16.msra.mxu0 %v3480_v40  ;;  %v5043_v40 = vrot.slane %v5034_v39, %v4121_v11 }
 0x2b1   :  { %2892 = vmatpush1.bf16.msra.mxu1 %v3482_v38  ;;  %2787 = vmatprep.subr.bf16.mxu0 %v3489_v41  ;;  %v3771_v41 = vmov 1983009808  }
 0x2b2   :  { %2893 = vmatprep.subr.bf16.mxu1 %v3491_v63  ;;  %v3091_v63 = vunpack.c.l.s4 %v3771_v41 }
 0x2b4   :  { %2788 = vmatpush1.bf16.msra.mxu0 %v3488_v46  ;;  %v3092_v53 = vunpack.c.0.s8 %v3091_v63 }
 0x2b5   :  { %2894 = vmatpush1.bf16.msra.mxu1 %v3490_v47  ;;  %2789 = vmatprep.subr.bf16.mxu0 %v3497_v50 }
 0x2b6   :  { %2895 = vmatprep.subr.bf16.mxu1 %v3499_v51 }
 0x2b8   :  { %2790 = vmatpush1.bf16.msra.mxu0 %v3496_v56 }
 0x2b9   :  { %2896 = vmatpush1.bf16.msra.mxu1 %v3498_v57  ;;  %2791 = vmatprep.subr.bf16.mxu0 %v3505_v58 }
 0x2ba   :  { %2897 = vmatprep.subr.bf16.mxu1 %v3507_v13 }
 0x2bc   :  { %2792 = vmatpush1.bf16.msra.mxu0 %v3504_v2 }
 0x2bd   :  { %2898 = vmatpush1.bf16.msra.mxu1 %v3506_v4  ;;  %2793 = vmatprep.subr.bf16.mxu0 %v3513_v5  ;;  %v5055_v5 = vsub.s32 %v3092_v53, %v4106_v3 }
 0x2be   :  { %2899 = vmatprep.subr.bf16.mxu1 %v3515_v6 }
 0x2c0   :  { %2794 = vmatpush1.bf16.msra.mxu0 %v3512_v21 }
 0x2c1   :  { %2900 = vmatpush1.bf16.msra.mxu1 %v3514_v22  ;;  %2795 = vmatprep.subr.bf16.mxu0 %v3521_v23 }
 0x2c2   :  { %2901 = vmatprep.subr.bf16.mxu1 %v3523_v24 }
 0x2c4   :  { %2796 = vmatpush1.bf16.msra.mxu0 %v3520_v28 }
 0x2c5   :  { %2902 = vmatpush1.bf16.msra.mxu1 %v3522_v29  ;;  %2797 = vmatprep.subr.bf16.mxu0 %v3529_v30 }
 0x2c6   :  { %2903 = vmatprep.subr.bf16.mxu1 %v3531_v31 }
 0x2c8   :  { %2798 = vmatpush1.bf16.msra.mxu0 %v3528_v16 }
 0x2c9   :  { %2904 = vmatpush1.bf16.msra.mxu1 %v3530_v33  ;;  %2799 = vmatprep.subr.bf16.mxu0 %v3537_v34 }
 0x2ca   :  { %2905 = vmatprep.subr.bf16.mxu1 %v3539_v35 }
 0x2cc   :  { %2800 = vmatpush1.bf16.msra.mxu0 %v3536_v36 }
 0x2cd   :  { %2906 = vmatpush1.bf16.msra.mxu1 %v3538_v37 }
 0x2cf   :  { %2802 = vmatmul.mubr.bf16.vlgmr.msra.gmra.mrb[16].mxu0 %v4635_v48 }
 0x2d0   :  { %2908 = vmatmul.mubr.bf16.vlgmr.msra.gmra.mrb[24].mxu1 %v4635_v48  ;;  %2811 = vmatprep.mubr.bf16.mxu0 %v4673_v27  ;;  %v1195_v48 = vrot.slane %v5034_v39, %v466_v61 }
 0x2d1   :  { %2917 = vmatprep.mubr.bf16.mxu1 %v4673_v27 }
 0x2d7   :  { %2812 = vmatmul.mubr.bf16.gmra.mrb[20].mxu0 %v4662_v25 }
 0x2d8   :  { %2918 = vmatmul.mubr.bf16.gmra.mrb[28].mxu1 %v4662_v25  ;;  %v5048_v25 = vrot.slane %v5034_v39, %v470_v1 }
 0x321   :  { %v2591_v27 = vpop.f32.mrb[8].mxu0  ;;  %v2697_v38 = vpop.f32.mrb[16].mxu1 }
 0x322   :  { %v3548_v42 = vadd.f32 %v2591_v27, %v1187_v0  ;;  %v3556_v43 = vadd.f32 %v2697_v38, %v1195_v48  ;;  %v2593_v8 = vpop.f32.mrb[9].mxu0  ;;  %v2699_v45 = vpop.f32.mrb[17].mxu1 }
 0x323   :  { %v3549_v15 = vadd.f32 %v2593_v8, %v5043_v40  ;;  %v3557_v61 = vadd.f32 %v2699_v45, %v5048_v25  ;;  %v2595_v46 = vpop.f32.mrb[10].mxu0  ;;  %v2701_v11 = vpop.f32.mrb[18].mxu1 }
 0x324   :  { %v3550_v47 = vadd.f32 %v2595_v46, %v1187_v0  ;;  %v3558_v50 = vadd.f32 %v2701_v11, %v1195_v48  ;;  %v2597_v51 = vpop.f32.mrb[11].mxu0  ;;  %v2703_v52 = vpop.f32.mrb[19].mxu1  ;;  %v2928_v55 = vmax.f32 %v3548_v42, 0.0  ;;  %v2930_v56 = vmax.f32 %v3556_v43, 0.0 }
 0x325   :  { %v3551_v1 = vadd.f32 %v2597_v51, %v5043_v40  ;;  %v3559_v54 = vadd.f32 %v2703_v52, %v5048_v25  ;;  %v2929_v13 = vmax.f32 %v3549_v15, 0.0  ;;  %v2931_v59 = vmax.f32 %v3557_v61, 0.0 }
 0x326   :  { %v2936_v57 = vmax.f32 %v3550_v47, 0.0  ;;  %v2938_v58 = vmax.f32 %v3558_v50, 0.0 }
 0x327   :  { %v2937_v60 = vmax.f32 %v3551_v1, 0.0  ;;  %v2939_v62 = vmax.f32 %v3559_v54, 0.0 }
 0x328   :  { %v2960_v49 = vmax.f32 %v2928_v55, %v2936_v57  ;;  %v2974_v2 = vmax.f32 %v2930_v56, %v2938_v58 }
 0x329   :  { %v2967_v4 = vmax.f32 %v2929_v13, %v2937_v60  ;;  %v2981_v6 = vmax.f32 %v2931_v59, %v2939_v62  ;;  %v2601_v12 = vpop.f32.mrb[12].mxu0  ;;  %v2707_v17 = vpop.f32.mrb[20].mxu1 }
 0x32a   :  { %v2961_v18 = vrot.slane %v2960_v49, 4  ;;  %v2975_v19 = vrot.slane %v2974_v2, 4  ;;  %v3552_v21 = vadd.f32 %v2601_v12, %v1187_v0  ;;  %v3560_v22 = vadd.f32 %v2707_v17, %v1195_v48  ;;  %v2603_v23 = vpop.f32.mrb[13].mxu0  ;;  %v2709_v24 = vpop.f32.mrb[21].mxu1 }
 0x32b   :  { %v2968_v14 = vrot.slane %v2967_v4, 4  ;;  %v2982_v20 = vrot.slane %v2981_v6, 4  ;;  %v3553_v26 = vadd.f32 %v2603_v23, %v5043_v40  ;;  %v3561_v44 = vadd.f32 %v2709_v24, %v5048_v25  ;;  %v2605_v28 = vpop.f32.mrb[14].mxu0  ;;  %v2711_v29 = vpop.f32.mrb[22].mxu1 }
 0x32c   :  { %v2962_v30 = vmax.f32 %v2960_v49, %v2961_v18  ;;  %v2976_v31 = vmax.f32 %v2974_v2, %v2975_v19  ;;  %v2944_v32 = vmax.f32 %v3552_v21, 0.0  ;;  %v2946_v7 = vmax.f32 %v3560_v22, 0.0  ;;  %v2607_v9 = vpop.f32.mrb[15].mxu0  ;;  %v2713_v10 = vpop.f32.mrb[23].mxu1 }
 0x32d   :  { %v2969_v16 = vmax.f32 %v2967_v4, %v2968_v14  ;;  %v2983_v33 = vmax.f32 %v2981_v6, %v2982_v20  ;;  %v2945_v34 = vmax.f32 %v3553_v26, 0.0  ;;  %v2947_v35 = vmax.f32 %v3561_v44, 0.0 }
 0x32e   :  { %v2963_v36 = vrot.slane %v2962_v30, 2  ;;  %v2977_v37 = vrot.slane %v2976_v31, 2  ;;  %v3554_v27 = vadd.f32 %v2605_v28, %v1187_v0  ;;  %v3562_v38 = vadd.f32 %v2711_v29, %v1195_v48 }
 0x32f   :  { %v2970_v41 = vrot.slane %v2969_v16, 2  ;;  %v2984_v63 = vrot.slane %v2983_v33, 2  ;;  %v3555_v42 = vadd.f32 %v2607_v9, %v5043_v40  ;;  %v3563_v43 = vadd.f32 %v2713_v10, %v5048_v25 }
 0x330   :  { %v2964_v8 = vmax.f32 %v2962_v30, %v2963_v36  ;;  %v2978_v45 = vmax.f32 %v2976_v31, %v2977_v37  ;;  %v2952_v15 = vmax.f32 %v3554_v27, 0.0  ;;  %v2954_v61 = vmax.f32 %v3562_v38, 0.0 }
 0x331   :  { %v2971_v46 = vmax.f32 %v2969_v16, %v2970_v41  ;;  %v2985_v11 = vmax.f32 %v2983_v33, %v2984_v63  ;;  %v2953_v47 = vmax.f32 %v3555_v42, 0.0  ;;  %v2955_v50 = vmax.f32 %v3563_v43, 0.0 }
 0x332   :  { %v2965_v51 = vrot.slane %v2964_v8, 1  ;;  %v2979_v52 = vrot.slane %v2978_v45, 1  ;;  %v3016_v1 = vmax.f32 %v2944_v32, %v2952_v15  ;;  %v3030_v53 = vmax.f32 %v2946_v7, %v2954_v61 }
 0x333   :  { %v2972_v0 = vrot.slane %v2971_v46, 1  ;;  %v2986_v48 = vrot.slane %v2985_v11, 1  ;;  %v3023_v54 = vmax.f32 %v2945_v34, %v2953_v47  ;;  %v3037_v55 = vmax.f32 %v2947_v35, %v2955_v50 }
 0x334   :  { %v2966_v56 = vmax.f32 %v2964_v8, %v2965_v51  ;;  %v2980_v40 = vmax.f32 %v2978_v45, %v2979_v52  ;;  %v3017_v57 = vrot.slane %v3016_v1, 4  ;;  %v3031_v25 = vrot.slane %v3030_v53, 4 }
 0x335   :  { %v2973_v58 = vmax.f32 %v2971_v46, %v2972_v0  ;;  %v2987_v13 = vmax.f32 %v2985_v11, %v2986_v48  ;;  %v3024_v59 = vrot.slane %v3023_v54, 4  ;;  %v3038_v60 = vrot.slane %v3037_v55, 4 }
 0x336   :  { %v3018_v62 = vmax.f32 %v3016_v1, %v3017_v57  ;;  %v3032_v49 = vmax.f32 %v3030_v53, %v3031_v25  ;;  %v1202_v42 = vsub.s32 4, %v4106_v3  ;;  %v1210_v43 = vsub.s32 6, %v4106_v3 }
 0x337   :  { %v3088_v2 = vcombine.low %v2966_v56, %v2973_v58  ;;  %v3089_v4 = vcombine.low %v2980_v40, %v2987_v13  ;;  %v3025_v6 = vmax.f32 %v3023_v54, %v3024_v59  ;;  %v3039_v12 = vmax.f32 %v3037_v55, %v3038_v60 }
 0x338   :  { %v3019_v17 = vrot.slane %v3018_v62, 2  ;;  %v3033_v18 = vrot.slane %v3032_v49, 2  ;;  %v1206_v8 = vsub.s32 5, %v4106_v3  ;;  %v1214_v45 = vsub.s32 7, %v4106_v3 }
 0x339   :  { %v3096_v19 = vrot.slane %v3088_v2, %v5055_v5  ;;  %v3103_v21 = vrot.slane %v3089_v4, %v5055_v5  ;;  %v3026_v22 = vrot.slane %v3025_v6, 2  ;;  %v3040_v23 = vrot.slane %v3039_v12, 2 }
 0x33a   :  { %v3020_v24 = vmax.f32 %v3018_v62, %v3019_v17  ;;  %v3034_v14 = vmax.f32 %v3032_v49, %v3033_v18  ;;  %v1203_v15 = vrot.slane %v5034_v39, %v1202_v42  ;;  %v1211_v61 = vrot.slane %v5034_v39, %v1210_v43 }
 0x33b   :  { %v3104_v20 = vcombine.low %v3096_v19, %v3103_v21  ;;  %v3027_v26 = vmax.f32 %v3025_v6, %v3026_v22  ;;  %v3041_v44 = vmax.f32 %v3039_v12, %v3040_v23  ;;  %v1207_v46 = vrot.slane %v5034_v39, %v1206_v8 }
 0x33c   :  { %v3021_v28 = vrot.slane %v3020_v24, 1  ;;  %v3035_v29 = vrot.slane %v3034_v14, 1  ;;  %v1215_v11 = vrot.slane %v5034_v39, %v1214_v45 }
 0x33d   :  { %v3028_v30 = vrot.slane %v3027_v26, 1  ;;  %v3042_v31 = vrot.slane %v3041_v44, 1 }
 0x33e   :  { %v3022_v32 = vmax.f32 %v3020_v24, %v3021_v28  ;;  %v3036_v7 = vmax.f32 %v3034_v14, %v3035_v29 }
 0x33f   :  { %v3029_v9 = vmax.f32 %v3027_v26, %v3028_v30  ;;  %v3043_v10 = vmax.f32 %v3041_v44, %v3042_v31 }
 0x341   :  { %v3122_v16 = vcombine.low %v3022_v32, %v3029_v9  ;;  %v3123_v33 = vcombine.low %v3036_v7, %v3043_v10 }
 0x343   :  { %v3130_v34 = vrot.slane %v3122_v16, %v5055_v5  ;;  %v3137_v35 = vrot.slane %v3123_v33, %v5055_v5 }
 0x345   :  { %v3138_v36 = vcombine.low %v3130_v34, %v3137_v35 }
 0x347   :  { %v3160_v37 = vrot.slane %v3138_v36, 7 }
 0x349   :  { %v3162_v27 = vsel %vm3161_vm3, %v3160_v37, %v3104_v20 }
 0x34a   :  { %v3164_v38 = vsel %vm3163_vm4, %v3160_v37, %v3162_v27 }
 0x34b   :  { %v3166_v41 = vsel %vm3165_vm5, %v3160_v37, %v3164_v38 }
 0x34c   :  { %v3168_v63 = vsel %vm3167_vm6, %v3160_v37, %v3166_v41 }
 0x34d   :  { %3178 = vst [vmem:[%s5098_s7] sm:$0xff] %v3168_v63 }
 0x3a2   :  { %v2803_v47 = vpop.f32.mrb[16].mxu0 }
 0x3a3   :  { %v3564_v50 = vadd.f32 %v2803_v47, %v1203_v15  ;;  %v2909_v51 = vpop.f32.mrb[24].mxu1  ;;  %v2805_v52 = vpop.f32.mrb[17].mxu0 }
 0x3a4   :  { %v3572_v1 = vadd.f32 %v2909_v51, %v1211_v61  ;;  %v3565_v53 = vadd.f32 %v2805_v52, %v1207_v46  ;;  %v2911_v0 = vpop.f32.mrb[25].mxu1  ;;  %v2807_v48 = vpop.f32.mrb[18].mxu0 }
 0x3a5   :  { %v3573_v54 = vadd.f32 %v2911_v0, %v1215_v11  ;;  %v3566_v55 = vadd.f32 %v2807_v48, %v1203_v15  ;;  %v2913_v56 = vpop.f32.mrb[26].mxu1  ;;  %v2809_v3 = vpop.f32.mrb[19].mxu0  ;;  %v2932_v58 = vmax.f32 %v3564_v50, 0.0 }
 0x3a6   :  { %v3574_v40 = vadd.f32 %v2913_v56, %v1211_v61  ;;  %v3567_v57 = vadd.f32 %v2809_v3, %v1207_v46  ;;  %v2915_v25 = vpop.f32.mrb[27].mxu1  ;;  %v2934_v60 = vmax.f32 %v3572_v1, 0.0  ;;  %v2933_v39 = vmax.f32 %v3565_v53, 0.0 }
 0x3a7   :  { %v2940_v13 = vmax.f32 %v3566_v55, 0.0  ;;  %v3575_v59 = vadd.f32 %v2915_v25, %v1215_v11  ;;  %v2935_v2 = vmax.f32 %v3573_v54, 0.0 }
 0x3a8   :  { %v2942_v62 = vmax.f32 %v3574_v40, 0.0  ;;  %v2941_v49 = vmax.f32 %v3567_v57, 0.0 }
 0x3a9   :  { %v2988_v4 = vmax.f32 %v2932_v58, %v2940_v13  ;;  %v2943_v6 = vmax.f32 %v3575_v59, 0.0 }
 0x3aa   :  { %v3002_v12 = vmax.f32 %v2934_v60, %v2942_v62  ;;  %v2995_v17 = vmax.f32 %v2933_v39, %v2941_v49  ;;  %v2813_v18 = vpop.f32.mrb[20].mxu0 }
 0x3ab   :  { %v2989_v19 = vrot.slane %v2988_v4, 4  ;;  %v3009_v21 = vmax.f32 %v2935_v2, %v2943_v6  ;;  %v3568_v22 = vadd.f32 %v2813_v18, %v1203_v15  ;;  %v2919_v23 = vpop.f32.mrb[28].mxu1  ;;  %v2815_v24 = vpop.f32.mrb[21].mxu0 }
 0x3ac   :  { %v3003_v14 = vrot.slane %v3002_v12, 4  ;;  %v2996_v20 = vrot.slane %v2995_v17, 4  ;;  %v3576_v26 = vadd.f32 %v2919_v23, %v1211_v61  ;;  %v3569_v44 = vadd.f32 %v2815_v24, %v1207_v46  ;;  %v2921_v28 = vpop.f32.mrb[29].mxu1  ;;  %v2817_v29 = vpop.f32.mrb[22].mxu0 }
 0x3ad   :  { %v2990_v30 = vmax.f32 %v2988_v4, %v2989_v19  ;;  %v3010_v31 = vrot.slane %v3009_v21, 4  ;;  %v2948_v32 = vmax.f32 %v3568_v22, 0.0  ;;  %v3577_v7 = vadd.f32 %v2921_v28, %v1215_v11  ;;  %v2923_v9 = vpop.f32.mrb[30].mxu1  ;;  %v2819_v10 = vpop.f32.mrb[23].mxu0 }
 0x3ae   :  { %v3004_v16 = vmax.f32 %v3002_v12, %v3003_v14  ;;  %v2997_v33 = vmax.f32 %v2995_v17, %v2996_v20  ;;  %v2950_v34 = vmax.f32 %v3576_v26, 0.0  ;;  %v2949_v35 = vmax.f32 %v3569_v44, 0.0  ;;  %v2925_v36 = vpop.f32.mrb[31].mxu1 }
 0x3af   :  { %v2991_v37 = vrot.slane %v2990_v30, 2  ;;  %v3011_v27 = vmax.f32 %v3009_v21, %v3010_v31  ;;  %v2951_v38 = vmax.f32 %v3577_v7, 0.0  ;;  %v3570_v41 = vadd.f32 %v2817_v29, %v1203_v15 }
 0x3b0   :  { %v3005_v63 = vrot.slane %v3004_v16, 2  ;;  %v2998_v42 = vrot.slane %v2997_v33, 2  ;;  %v3578_v43 = vadd.f32 %v2923_v9, %v1211_v61  ;;  %v3571_v8 = vadd.f32 %v2819_v10, %v1207_v46 }
 0x3b1   :  { %v2992_v45 = vmax.f32 %v2990_v30, %v2991_v37  ;;  %v3012_v47 = vrot.slane %v3011_v27, 2  ;;  %v2956_v50 = vmax.f32 %v3570_v41, 0.0  ;;  %v3579_v51 = vadd.f32 %v2925_v36, %v1215_v11 }
 0x3b2   :  { %v3006_v52 = vmax.f32 %v3004_v16, %v3005_v63  ;;  %v2999_v1 = vmax.f32 %v2997_v33, %v2998_v42  ;;  %v2958_v53 = vmax.f32 %v3578_v43, 0.0  ;;  %v2957_v0 = vmax.f32 %v3571_v8, 0.0 }
 0x3b3   :  { %v2993_v48 = vrot.slane %v2992_v45, 1  ;;  %v3013_v54 = vmax.f32 %v3011_v27, %v3012_v47  ;;  %v3044_v55 = vmax.f32 %v2948_v32, %v2956_v50  ;;  %v2959_v56 = vmax.f32 %v3579_v51, 0.0 }
 0x3b4   :  { %v3007_v3 = vrot.slane %v3006_v52, 1  ;;  %v3000_v40 = vrot.slane %v2999_v1, 1  ;;  %v3058_v57 = vmax.f32 %v2950_v34, %v2958_v53  ;;  %v3051_v15 = vmax.f32 %v2949_v35, %v2957_v0 }
 0x3b5   :  { %v2994_v25 = vmax.f32 %v2992_v45, %v2993_v48  ;;  %v3014_v58 = vrot.slane %v3013_v54, 1  ;;  %v3045_v61 = vrot.slane %v3044_v55, 4  ;;  %v3065_v46 = vmax.f32 %v2951_v38, %v2959_v56 }
 0x3b6   :  { %v3008_v13 = vmax.f32 %v3006_v52, %v3007_v3  ;;  %v3001_v59 = vmax.f32 %v2999_v1, %v3000_v40  ;;  %v3059_v60 = vrot.slane %v3058_v57, 4  ;;  %v3052_v11 = vrot.slane %v3051_v15, 4 }
 0x3b7   :  { %v3015_v39 = vmax.f32 %v3013_v54, %v3014_v58  ;;  %v3046_v62 = vmax.f32 %v3044_v55, %v3045_v61  ;;  %v3066_v49 = vrot.slane %v3065_v46, 4 }
 0x3b8   :  { %v3105_v2 = vcombine.low %v2994_v25, %v3001_v59  ;;  %v3060_v4 = vmax.f32 %v3058_v57, %v3059_v60  ;;  %v3053_v6 = vmax.f32 %v3051_v15, %v3052_v11 }
 0x3b9   :  { %v3106_v12 = vcombine.low %v3008_v13, %v3015_v39  ;;  %v3047_v17 = vrot.slane %v3046_v62, 2  ;;  %v3067_v18 = vmax.f32 %v3065_v46, %v3066_v49 }
 0x3ba   :  { %v3113_v19 = vrot.slane %v3105_v2, %v5055_v5  ;;  %v3061_v21 = vrot.slane %v3060_v4, 2  ;;  %v3054_v22 = vrot.slane %v3053_v6, 2 }
 0x3bb   :  { %v3120_v23 = vrot.slane %v3106_v12, %v5055_v5  ;;  %v3048_v24 = vmax.f32 %v3046_v62, %v3047_v17  ;;  %v3068_v14 = vrot.slane %v3067_v18, 2 }
 0x3bc   :  { %v3062_v20 = vmax.f32 %v3060_v4, %v3061_v21  ;;  %v3055_v26 = vmax.f32 %v3053_v6, %v3054_v22 }
 0x3bd   :  { %v3121_v44 = vcombine.low %v3113_v19, %v3120_v23  ;;  %v3049_v28 = vrot.slane %v3048_v24, 1  ;;  %v3069_v29 = vmax.f32 %v3067_v18, %v3068_v14 }
 0x3be   :  { %v3063_v30 = vrot.slane %v3062_v20, 1  ;;  %v3056_v31 = vrot.slane %v3055_v26, 1 }
 0x3bf   :  { %v3050_v32 = vmax.f32 %v3048_v24, %v3049_v28  ;;  %v3070_v7 = vrot.slane %v3069_v29, 1 }
 0x3c0   :  { %v3064_v9 = vmax.f32 %v3062_v20, %v3063_v30  ;;  %v3057_v10 = vmax.f32 %v3055_v26, %v3056_v31 }
 0x3c1   :  { %v3071_v16 = vmax.f32 %v3069_v29, %v3070_v7 }
 0x3c2   :  { %v3139_v33 = vcombine.low %v3050_v32, %v3057_v10 }
 0x3c3   :  { %v3140_v34 = vcombine.low %v3064_v9, %v3071_v16 }
 0x3c4   :  { %v3147_v35 = vrot.slane %v3139_v33, %v5055_v5 }
 0x3c5   :  { %v3154_v36 = vrot.slane %v3140_v34, %v5055_v5 }
 0x3c7   :  { %v3155_v37 = vcombine.low %v3147_v35, %v3154_v36 }
 0x3c9   :  { %v3171_v27 = vrot.slane %v3155_v37, 7 }
 0x3cb   :  { %v3172_v38 = vsel %vm3161_vm3, %v3171_v27, %v3121_v44 }
 0x3cc   :  { %v3173_v41 = vsel %vm3163_vm4, %v3171_v27, %v3172_v38 }
 0x3cd   :  { %v3174_v63 = vsel %vm3165_vm5, %v3171_v27, %v3173_v41 }
 0x3ce   :  { %v3175_v42 = vsel %vm3167_vm6, %v3171_v27, %v3174_v63 }
 0x3cf   :  { %3179 = vst [vmem:[%s5098_s7 + $0x8] sm:$0xff] %v3175_v42 }

// kernel: _lambda_.10
= control target key start
LH: loop header
LB: loop body
LE: loop exit
PB: predicated region body
PF: predicated region fallthrough
CT: control target
= control target key end

     0   :  { %s1173_s18 = smov 0   ;;  %s1408_s0 = inlined_call_operand.vmem [shape: f32[64,384], index: 0, kind: input, shape index: {}]   ;;  %s1409_s1 = inlined_call_operand.vmem [shape: bf16[384,256], index: 1, kind: input, shape index: {}]   ;;  %s1410_s2 = inlined_call_operand.vmem [shape: f32[1,256], index: 2, kind: input, shape index: {}]   ;;  %s1411_s3 = inlined_call_operand.vmem [shape: bf16[256,128], index: 3, kind: input, shape index: {}]   ;;  %s1412_s4 = inlined_call_operand.vmem [shape: f32[1,128], index: 4, kind: input, shape index: {}]   ;;  %s1413_s5 = inlined_call_operand.vmem [shape: f32[64,128], index: 5, kind: output, shape index: {}]  }
   0x1 LB: > { %s916_s19 = sadd.s32 4294967295, %s1140_s18   ;;  %p920_p0 = scmp.ge.s32.totalorder %s1140_s18, 1  ;;  %s1140_s18 = sphi %s1173_s18, %s15_s18  }
   0x2   : > { %p189_p1 = scmp.lt.s32.totalorder %s1140_s18, 3 }
   0x4   : > { %p190_p2 = pnand %p920_p0, %p189_p1 }
   0x5   : > { %v1046_v0 = vld [vmem:[%s1409_s1 + $0x4] ss:$8 sps:$4 sm:$0xff] (!%p190_p2)   ;;  %v1048_v1 = vld [vmem:[%s1409_s1] ss:$8 sps:$4 sm:$0xff] (!%p190_p2)   ;;  %v1142_v2 = vmov (!%p190_p2), 0   ;;  %s921_s21 = sshll.u32 (!%p190_p2), %s916_s19, 2 }
   0x6   : > { %193 = sbr.rel (%p190_p2) target bundleno = 524 (0x20c), region = 40  ;;  %635 = vmatprep.mubr.bf16.mxu1 (!%p190_p2), %v1142_v2  ;;  %550 = vmatprep.subr.bf16.mxu0 (!%p190_p2), %v1046_v0  ;;  %v1049_v3 = vld [vmem:[%s1409_s1 + $0x14] ss:$8 sps:$4 sm:$0xff] (!%p190_p2)   ;;  %v1051_v4 = vld [vmem:[%s1409_s1 + $0x10] ss:$8 sps:$4 sm:$0xff] (!%p190_p2)   ;;  %p219_p3 = scmp.lt.s32.totalorder (!%p190_p2), %s921_s21, 7 }
   0x7   : > { %551 = vmatpush1.bf16.msra.mxu0 (!%p190_p2), %v1048_v1  ;;  %v1052_v5 = vld [vmem:[%s1409_s1 + $0x24] ss:$8 sps:$4 sm:$0xff] (!%p190_p2)   ;;  %v1054_v6 = vld [vmem:[%s1409_s1 + $0x20] ss:$8 sps:$4 sm:$0xff] (!%p190_p2)   ;;  %v1055_v7 = vld [vmem:[%s1409_s1 + $0x34] ss:$8 sps:$4 sm:$0xff] (!%p190_p2)  }
   0x8   : > { %552 = vmatprep.subr.bf16.mxu0 (!%p190_p2), %v1049_v3  ;;  %v1057_v8 = vld [vmem:[%s1409_s1 + $0x30] ss:$8 sps:$4 sm:$0xff] (!%p190_p2)   ;;  %v1070_v9 = vld [vmem:[%s1409_s1 + $0x104] ss:$8 sps:$4 sm:$0xff] (!%p190_p2)   ;;  %v1074_v11 = vld [vmem:[%s1409_s1 + $0x100] ss:$8 sps:$4 sm:$0xff] (!%p190_p2)  }
   0x9   : > { %v1058_v10 = vld [vmem:[%s1409_s1 + $0x44] ss:$8 sps:$4 sm:$0xff] (!%p190_p2)   ;;  %603 = vmatprep.subr.bf16.mxu1 (!%p190_p2), %v1070_v9  ;;  %v1076_v12 = vld [vmem:[%s1409_s1 + $0x114] ss:$8 sps:$4 sm:$0xff] (!%p190_p2)   ;;  %v1060_v13 = vld [vmem:[%s1409_s1 + $0x40] ss:$8 sps:$4 sm:$0xff] (!%p190_p2)  }
   0xa   : > { %604 = vmatpush1.bf16.msra.mxu1 (!%p190_p2), %v1074_v11  ;;  %v1061_v14 = vld [vmem:[%s1409_s1 + $0x54] ss:$8 sps:$4 sm:$0xff] (!%p190_p2)   ;;  %v1080_v15 = vld [vmem:[%s1409_s1 + $0x110] ss:$8 sps:$4 sm:$0xff] (!%p190_p2)   ;;  %v1082_v16 = vld [vmem:[%s1409_s1 + $0x124] ss:$8 sps:$4 sm:$0xff] (!%p190_p2)  }
   0xb   : > { %553 = vmatpush1.bf16.msra.mxu0 (!%p190_p2), %v1051_v4  ;;  %605 = vmatprep.subr.bf16.mxu1 (!%p190_p2), %v1076_v12  ;;  %v1063_v17 = vld [vmem:[%s1409_s1 + $0x50] ss:$8 sps:$4 sm:$0xff] (!%p190_p2)   ;;  %v1086_v18 = vld [vmem:[%s1409_s1 + $0x120] ss:$8 sps:$4 sm:$0xff] (!%p190_p2)   ;;  %v1088_v19 = vld [vmem:[%s1409_s1 + $0x134] ss:$8 sps:$4 sm:$0xff] (!%p190_p2)  }
   0xc   : > { %554 = vmatprep.subr.bf16.mxu0 (!%p190_p2), %v1052_v5  ;;  %v1064_v20 = vld [vmem:[%s1409_s1 + $0x64] ss:$8 sps:$4 sm:$0xff] (!%p190_p2)   ;;  %v1092_v21 = vld [vmem:[%s1409_s1 + $0x130] ss:$8 sps:$4 sm:$0xff] (!%p190_p2)   ;;  %v1066_v22 = vld [vmem:[%s1409_s1 + $0x60] ss:$8 sps:$4 sm:$0xff] (!%p190_p2)  }
   0xd   : > { %s1415_s21 = smov (!%p219_p3, %s921_s21), 7  ;;  %v1094_v23 = vld [vmem:[%s1409_s1 + $0x144] ss:$8 sps:$4 sm:$0xff]   ;;  %v1067_v24 = vld [vmem:[%s1409_s1 + $0x74] ss:$8 sps:$4 sm:$0xff]  }
   0xe   : > { %606 = vmatpush1.bf16.msra.mxu1 %v1080_v15  ;;  %s1036_s23 = smul.u32 24, %s1415_s21  ;;  %v1069_v25 = vld [vmem:[%s1409_s1 + $0x70] ss:$8 sps:$4 sm:$0xff]   ;;  %v1098_v26 = vld [vmem:[%s1409_s1 + $0x140] ss:$8 sps:$4 sm:$0xff]   ;;  %s924_s20 = sshll.u32 %s1415_s21, 3 }
   0xf   : > { %555 = vmatpush1.bf16.msra.mxu0 %v1054_v6  ;;  %607 = vmatprep.subr.bf16.mxu1 %v1082_v16  ;;  %v1100_v27 = vld [vmem:[%s1409_s1 + $0x154] ss:$8 sps:$4 sm:$0xff]   ;;  %v1072_v28 = vld [vmem:[%s1409_s1 + $0x84] ss:$8 sps:$4 sm:$0xff]   ;;  %v1104_v29 = vld [vmem:[%s1409_s1 + $0x150] ss:$8 sps:$4 sm:$0xff]   ;;  %s229_s24 = scalar_lea.vmem %s1413_s5, %s924_s20 }
  0x10   : > { %556 = vmatprep.subr.bf16.mxu0 %v1055_v7  ;;  %s1272_s8 = scalar_lea.vmem %s1408_s0, %s1036_s23  ;;  %v1075_v30 = vld [vmem:[%s1409_s1 + $0x80] ss:$8 sps:$4 sm:$0xff]   ;;  %v1106_v31 = vld [vmem:[%s1409_s1 + $0x164] ss:$8 sps:$4 sm:$0xff]   ;;  %v1078_v32 = vld [vmem:[%s1409_s1 + $0x94] ss:$8 sps:$4 sm:$0xff]  }
  0x11   : > { %v233_v33 = vld [vmem:[%s1272_s8 + $0x8] sm:$0xff]  ;;  %v236_v34 = vld [vmem:[%s1272_s8 + $0x20] sm:$0xff]  ;;  %v1081_v37 = vld [vmem:[%s1409_s1 + $0x90] ss:$8 sps:$4 sm:$0xff]  }
  0x12   : > { %608 = vmatpush1.bf16.msra.mxu1 %v1086_v18  ;;  %v294_v35 = vpack.c.bf16 %v236_v34, %v233_v33  ;;  %v1110_v36 = vld [vmem:[%s1409_s1 + $0x160] ss:$8 sps:$4 sm:$0xff]   ;;  %v1084_v38 = vld [vmem:[%s1409_s1 + $0xa4] ss:$8 sps:$4 sm:$0xff]   ;;  %v1112_v39 = vld [vmem:[%s1409_s1 + $0x174] ss:$8 sps:$4 sm:$0xff]  }
  0x13   : > { %557 = vmatpush1.bf16.msra.mxu0 %v1057_v8  ;;  %609 = vmatprep.subr.bf16.mxu1 %v1088_v19  ;;  %v1116_v40 = vld [vmem:[%s1409_s1 + $0x170] ss:$8 sps:$4 sm:$0xff]   ;;  %v1087_v41 = vld [vmem:[%s1409_s1 + $0xa0] ss:$8 sps:$4 sm:$0xff]   ;;  %v1090_v45 = vld [vmem:[%s1409_s1 + $0xb4] ss:$8 sps:$4 sm:$0xff]  }
  0x14   : > { %558 = vmatprep.subr.bf16.mxu0 %v1058_v10  ;;  %582 = vmatprep.mubr.bf16.mxu0 %v294_v35  ;;  %v234_v42 = vld [vmem:[%s1272_s8 + $0x10] sm:$0xff]  ;;  %v237_v43 = vld [vmem:[%s1272_s8 + $0x28] sm:$0xff]  ;;  %v1118_v44 = vld [vmem:[%s1411_s3 + $0x40] sm:$0xff]  }
  0x15   : > { %v1093_v46 = vld [vmem:[%s1409_s1 + $0xb0] ss:$8 sps:$4 sm:$0xff]   ;;  %v295_v47 = vpack.c.bf16 %v237_v43, %v234_v42  ;;  %v1096_v48 = vld [vmem:[%s1409_s1 + $0xc4] ss:$8 sps:$4 sm:$0xff]   ;;  %v1099_v54 = vld [vmem:[%s1409_s1 + $0xc0] ss:$8 sps:$4 sm:$0xff]  }
  0x16   : > { %610 = vmatpush1.bf16.msra.mxu1 %v1092_v21  ;;  %v1119_v49 = vld [vmem:[%s1411_s3] sm:$0xff]   ;;  %v1120_v50 = vld [vmem:[%s1411_s3 + $0x48] sm:$0xff]   ;;  %v243_v52 = vld [vmem:[%s1272_s8 + $0x58] sm:$0xff] }
  0x17   : > { %559 = vmatpush1.bf16.msra.mxu0 %v1060_v13  ;;  %611 = vmatprep.subr.bf16.mxu1 %v1094_v23  ;;  %v240_v51 = vld [vmem:[%s1272_s8 + $0x40] sm:$0xff]  ;;  %v1121_v53 = vld [vmem:[%s1411_s3 + $0x8] sm:$0xff]   ;;  %v1122_v55 = vld [vmem:[%s1411_s3 + $0x50] sm:$0xff]   ;;  %v300_v23 = vlaneseq }
  0x18   : > { %560 = vmatprep.subr.bf16.mxu0 %v1061_v14  ;;  %v1102_v56 = vld [vmem:[%s1409_s1 + $0xd4] ss:$8 sps:$4 sm:$0xff]   ;;  %v298_v57 = vpack.c.bf16 %v243_v52, %v240_v51  ;;  %v1105_v59 = vld [vmem:[%s1409_s1 + $0xd0] ss:$8 sps:$4 sm:$0xff]   ;;  %v1108_v61 = vld [vmem:[%s1409_s1 + $0xe4] ss:$8 sps:$4 sm:$0xff]  }
  0x19   : > { %v1123_v58 = vld [vmem:[%s1411_s3 + $0x10] sm:$0xff]   ;;  %v1124_v60 = vld [vmem:[%s1411_s3 + $0x58] sm:$0xff]   ;;  %v1111_v63 = vld [vmem:[%s1409_s1 + $0xe0] ss:$8 sps:$4 sm:$0xff]  }
  0x1a   : > { %612 = vmatpush1.bf16.msra.mxu1 %v1098_v26  ;;  %v1125_v62 = vld [vmem:[%s1411_s3 + $0x18] sm:$0xff]   ;;  %v1126_v0 = vld [vmem:[%s1411_s3 + $0x60] sm:$0xff]   ;;  %v242_v7 = vld [vmem:[%s1272_s8 + $0x50] sm:$0xff]  ;;  %v301_v26 = vshrl.u32 %v300_v23, 7 }
  0x1b   : > { %561 = vmatpush1.bf16.msra.mxu0 %v1063_v17  ;;  %613 = vmatprep.subr.bf16.mxu1 %v1100_v27  ;;  %v1114_v1 = vld [vmem:[%s1409_s1 + $0xf4] ss:$8 sps:$4 sm:$0xff]   ;;  %v1117_v3 = vld [vmem:[%s1409_s1 + $0xf0] ss:$8 sps:$4 sm:$0xff]   ;;  %v232_v4 = vld [vmem:[%s1272_s8] sm:$0xff] }
  0x1c   : > { %562 = vmatprep.subr.bf16.mxu0 %v1064_v20  ;;  %v235_v5 = vld [vmem:[%s1272_s8 + $0x18] sm:$0xff]  ;;  %v238_v10 = vld [vmem:[%s1272_s8 + $0x30] sm:$0xff]  ;;  %v241_v11 = vld [vmem:[%s1272_s8 + $0x48] sm:$0xff] }
  0x1d   : > { %v239_v6 = vld [vmem:[%s1272_s8 + $0x38] sm:$0xff]  ;;  %v293_v8 = vpack.c.bf16 %v235_v5, %v232_v4  ;;  %v296_v12 = vpack.c.bf16 %v241_v11, %v238_v10  ;;  %v1128_v13 = vld [vmem:[%s1411_s3 + $0x68] sm:$0xff]   ;;  %v1130_v15 = vld [vmem:[%s1411_s3 + $0x70] sm:$0xff]  }
  0x1e   : > { %614 = vmatpush1.bf16.msra.mxu1 %v1104_v29  ;;  %v297_v9 = vpack.c.bf16 %v242_v7, %v239_v6  ;;  %v1129_v14 = vld [vmem:[%s1411_s3 + $0x28] sm:$0xff]   ;;  %v1131_v16 = vld [vmem:[%s1411_s3 + $0x30] sm:$0xff]   ;;  %v1132_v17 = vld [vmem:[%s1411_s3 + $0x78] sm:$0xff]   ;;  %v302_v29 = vsub.s32 0, %v301_v26 }
  0x1f   : > { %563 = vmatpush1.bf16.msra.mxu0 %v1066_v22  ;;  %615 = vmatprep.subr.bf16.mxu1 %v1106_v31  ;;  %v1133_v18 = vld [vmem:[%s1411_s3 + $0x38] sm:$0xff]   ;;  %v306_v31 = vsub.s32 1, %v301_v26  ;;  %v973_v7 = vld [vmem:[%s1412_s4] ss:$0 sm:$0xff] }
  0x20   : > { %564 = vmatprep.subr.bf16.mxu0 %v1067_v24 }
  0x22   : > { %616 = vmatpush1.bf16.msra.mxu1 %v1110_v36 }
  0x23   : > { %565 = vmatpush1.bf16.msra.mxu0 %v1069_v25  ;;  %617 = vmatprep.subr.bf16.mxu1 %v1112_v39 }
  0x24   : > { %566 = vmatprep.subr.bf16.mxu0 %v1072_v28 }
  0x26   : > { %618 = vmatpush1.bf16.msra.mxu1 %v1116_v40 }
  0x27   : > { %567 = vmatpush1.bf16.msra.mxu0 %v1075_v30  ;;  %992 = vmatprep.subr.bf16.mxu1 %v1118_v44  ;;  %v292_v30 = vld [vmem:[%s1410_s2] sm:$0x3] }
  0x28   : > { %568 = vmatprep.subr.bf16.mxu0 %v1078_v32  ;;  %v303_v32 = vrot.slane %v292_v30, %v302_v29  ;;  %v307_v33 = vrot.slane %v292_v30, %v306_v31 }
  0x29   : > { %636 = vmatmul.mubr.bf16.vlgmr.msra.gmra.mrb[0].mxu1 %v295_v47 }
  0x2a   : > { %645 = vmatprep.mubr.bf16.mxu1 %v1142_v2  ;;  %993 = vmatpush3.bf16.msra.mxu1 %v1119_v49  ;;  %v1127_v2 = vld [vmem:[%s1411_s3 + $0x20] sm:$0xff]  }
  0x2b   : > { %569 = vmatpush1.bf16.msra.mxu0 %v1081_v37  ;;  %994 = vmatprep.subr.bf16.mxu1 %v1120_v50 }
  0x2c   : > { %570 = vmatprep.subr.bf16.mxu0 %v1084_v38 }
  0x2e   : > { %995 = vmatpush3.bf16.msra.mxu1 %v1121_v53 }
  0x2f   : > { %571 = vmatpush1.bf16.msra.mxu0 %v1087_v41  ;;  %996 = vmatprep.subr.bf16.mxu1 %v1122_v55 }
  0x30   : > { %572 = vmatprep.subr.bf16.mxu0 %v1090_v45 }
  0x31   : > { %646 = vmatmul.mubr.bf16.gmra.mrb[4].mxu1 %v298_v57 }
  0x32   : > { %997 = vmatpush3.bf16.msra.mxu1 %v1123_v58 }
  0x33   : > { %573 = vmatpush1.bf16.msra.mxu0 %v1093_v46  ;;  %998 = vmatprep.subr.bf16.mxu1 %v1124_v60 }
  0x34   : > { %574 = vmatprep.subr.bf16.mxu0 %v1096_v48 }
  0x36   : > { %999 = vmatpush3.bf16.msra.mxu1 %v1125_v62 }
  0x37   : > { %575 = vmatpush1.bf16.msra.mxu0 %v1099_v54  ;;  %1000 = vmatprep.subr.bf16.mxu1 %v1126_v0 }
  0x38   : > { %576 = vmatprep.subr.bf16.mxu0 %v1102_v56 }
  0x3a   : > { %1001 = vmatpush3.bf16.msra.mxu1 %v1127_v2 }
  0x3b   : > { %577 = vmatpush1.bf16.msra.mxu0 %v1105_v59  ;;  %1002 = vmatprep.subr.bf16.mxu1 %v1128_v13 }
  0x3c   : > { %578 = vmatprep.subr.bf16.mxu0 %v1108_v61 }
  0x3e   : > { %1003 = vmatpush3.bf16.msra.mxu1 %v1129_v14 }
  0x3f   : > { %579 = vmatpush1.bf16.msra.mxu0 %v1111_v63  ;;  %1004 = vmatprep.subr.bf16.mxu1 %v1130_v15 }
  0x40   : > { %580 = vmatprep.subr.bf16.mxu0 %v1114_v1 }
  0x42   : > { %1005 = vmatpush3.bf16.msra.mxu1 %v1131_v16 }
  0x43   : > { %581 = vmatpush1.bf16.msra.mxu0 %v1117_v3  ;;  %1006 = vmatprep.subr.bf16.mxu1 %v1132_v17 }
  0x46   : > { %583 = vmatmul.mubr.bf16.vlgmr.msra.gmra.mrb[0].mxu0 %v293_v8  ;;  %1007 = vmatpush3.bf16.msra.mxu1 %v1133_v18 }
  0x47   : > { %592 = vmatprep.mubr.bf16.mxu0 %v297_v9 }
  0x4e   : > { %593 = vmatmul.mubr.bf16.gmra.mrb[4].mxu0 %v296_v12 }
  0xfc   : > { %v637_v19 = vpop.f32.mrb[0].mxu1 }
  0xfd   : > { %v639_v20 = vpop.f32.mrb[1].mxu1 }
  0xfe   : > { %v641_v21 = vpop.f32.mrb[2].mxu1 }
  0xff   : > { %v643_v22 = vpop.f32.mrb[3].mxu1 }
 0x104   : > { %v647_v24 = vpop.f32.mrb[4].mxu1 }
 0x105   : > { %v649_v25 = vpop.f32.mrb[5].mxu1 }
 0x106   : > { %v651_v27 = vpop.f32.mrb[6].mxu1 }
 0x107   : > { %v653_v28 = vpop.f32.mrb[7].mxu1 }
 0x119   : > { %v584_v34 = vpop.f32.mrb[0].mxu0 }
 0x11a   : > { %v585_v35 = vadd.f32 %v584_v34, %v303_v32  ;;  %v586_v36 = vpop.f32.mrb[1].mxu0 }
 0x11b   : > { %v587_v37 = vadd.f32 %v586_v36, %v307_v33  ;;  %v588_v38 = vpop.f32.mrb[2].mxu0 }
 0x11c   : > { %v638_v39 = vadd.f32 %v637_v19, %v585_v35  ;;  %v589_v40 = vadd.f32 %v588_v38, %v303_v32  ;;  %v590_v41 = vpop.f32.mrb[3].mxu0 }
 0x11d   : > { %v640_v42 = vadd.f32 %v639_v20, %v587_v37  ;;  %v591_v43 = vadd.f32 %v590_v41, %v307_v33 }
 0x11e   : > { %v642_v44 = vadd.f32 %v641_v21, %v589_v40  ;;  %v656_v46 = vmax.f32 %v638_v39, 0.0 }
 0x11f   : > { %v644_v45 = vadd.f32 %v643_v22, %v591_v43  ;;  %v657_v48 = vmax.f32 %v640_v42, 0.0 }
 0x120   : > { %v658_v47 = vmax.f32 %v642_v44, 0.0 }
 0x121   : > { %v659_v49 = vmax.f32 %v644_v45, 0.0  ;;  %v594_v50 = vpop.f32.mrb[4].mxu0 }
 0x122   : > { %v697_v51 = vpack.c.bf16 %v658_v47, %v656_v46  ;;  %v595_v52 = vadd.f32 %v594_v50, %v303_v32  ;;  %v596_v53 = vpop.f32.mrb[5].mxu0 }
 0x123   : > { %v597_v54 = vadd.f32 %v596_v53, %v307_v33  ;;  %v598_v55 = vpop.f32.mrb[6].mxu0  ;;  %v698_v56 = vpack.c.bf16 %v659_v49, %v657_v48 }
 0x124   : > { %v648_v57 = vadd.f32 %v647_v24, %v595_v52  ;;  %v599_v58 = vadd.f32 %v598_v55, %v303_v32  ;;  %v600_v59 = vpop.f32.mrb[7].mxu0 }
 0x125   : > { %v650_v60 = vadd.f32 %v649_v25, %v597_v54  ;;  %v601_v61 = vadd.f32 %v600_v59, %v307_v33  ;;  %835 = vmatprep.mubr.bf16.mxu1 %v698_v56 }
 0x126   : > { %v652_v62 = vadd.f32 %v651_v27, %v599_v58  ;;  %836 = vmatmul.mubr.bf16.vlgmr.msra.gmra.mrb[8].mxu1 %v697_v51  ;;  %v660_v0 = vmax.f32 %v648_v57, 0.0 }
 0x127   : > { %v654_v63 = vadd.f32 %v653_v28, %v601_v61  ;;  %v661_v2 = vmax.f32 %v650_v60, 0.0 }
 0x128   : > { %v662_v1 = vmax.f32 %v652_v62, 0.0 }
 0x129   : > { %v663_v3 = vmax.f32 %v654_v63, 0.0 }
 0x12a   : > { %v699_v4 = vpack.c.bf16 %v662_v1, %v660_v0 }
 0x12b   : > { %v700_v5 = vpack.c.bf16 %v663_v3, %v661_v2 }
 0x12d   : > { %843 = vmatprep.mubr.bf16.mxu1 %v700_v5 }
 0x12e   : > { %844 = vmatmul.mubr.bf16.gmra.mrb[12].mxu1 %v699_v4 }
 0x1f9   : > { %v1008_v6 = vpop.f32.mrb[8].mxu1 }
 0x1fa   : > { %v1009_v8 = vpop.f32.mrb[9].mxu1 }
 0x1fb   : > { %v1010_v9 = vadd.f32 %v1009_v8, %v1008_v6  ;;  %v1011_v10 = vpop.f32.mrb[10].mxu1 }
 0x1fc   : > { %v1012_v11 = vpop.f32.mrb[11].mxu1 }
 0x1fd   : > { %v838_v12 = vadd.f32 %v1010_v9, %v973_v7  ;;  %v1013_v13 = vadd.f32 %v1012_v11, %v1011_v10 }
 0x1ff   : > { %v852_v14 = vmax.f32 %v838_v12, 0.0  ;;  %v841_v15 = vadd.f32 %v1013_v13, %v973_v7 }
 0x201   : > { %856 = vst [vmem:[%s229_s24] sm:$0xff] %v852_v14  ;;  %v853_v16 = vmax.f32 %v841_v15, 0.0  ;;  %v1014_v17 = vpop.f32.mrb[12].mxu1 }
 0x202   : > { %v1015_v18 = vpop.f32.mrb[13].mxu1 }
 0x203   : > { %857 = vst [vmem:[%s229_s24 + $0x8] sm:$0xff] %v853_v16  ;;  %v1016_v19 = vadd.f32 %v1015_v18, %v1014_v17  ;;  %v1017_v20 = vpop.f32.mrb[14].mxu1 }
 0x204   : > { %v1018_v21 = vpop.f32.mrb[15].mxu1 }
 0x205   : > { %v846_v22 = vadd.f32 %v1016_v19, %v973_v7  ;;  %v1019_v23 = vadd.f32 %v1018_v21, %v1017_v20 }
 0x207   : > { %v854_v24 = vmax.f32 %v846_v22, 0.0  ;;  %v849_v25 = vadd.f32 %v1019_v23, %v973_v7 }
 0x209   : > { %858 = vst [vmem:[%s229_s24 + $0x10] sm:$0xff] %v854_v24  ;;  %v855_v26 = vmax.f32 %v849_v25, 0.0 }
 0x20b   : > { %859 = vst [vmem:[%s229_s24 + $0x18] sm:$0xff] %v855_v26 }
 0x20c PF: > { %s15_s18 = sadd.s32 1, %s1140_s18  }
 0x20d   : > { %p12_p4 = scmp.ge.s32.totalorder %s15_s18, 4  }
 0x20f   :  { %14 = sbr.rel (!%p12_p4) target bundleno = 1 (0x1), region = 70 }

// kernel: _lambda_.11
= control target key start
LH: loop header
LB: loop body
LE: loop exit
PB: predicated region body
PF: predicated region fallthrough
CT: control target
= control target key end

     0   :  { %s1690_s17 = smov 0   ;;  %s1905_s0 = inlined_call_operand.vmem [shape: f32[128,131], index: 0, kind: input, shape index: {}]   ;;  %s1906_s1 = inlined_call_operand.vmem [shape: bf16[131,128], index: 1, kind: input, shape index: {}]   ;;  %s1907_s2 = inlined_call_operand.vmem [shape: f32[1,128], index: 2, kind: input, shape index: {}]   ;;  %s1908_s3 = inlined_call_operand.vmem [shape: bf16[128,128], index: 3, kind: input, shape index: {}]   ;;  %s1909_s4 = inlined_call_operand.vmem [shape: f32[1,128], index: 4, kind: input, shape index: {}]   ;;  %s1910_s5 = inlined_call_operand.vmem [shape: bf16[128,128], index: 5, kind: input, shape index: {}]   ;;  %s1911_s6 = inlined_call_operand.vmem [shape: f32[1,128], index: 6, kind: input, shape index: {}]   ;;  %s1912_s7 = inlined_call_operand.vmem [shape: bf16[128,128], index: 7, kind: input, shape index: {}]   ;;  %s1913_s8 = inlined_call_operand.vmem [shape: f32[1,128], index: 8, kind: input, shape index: {}]   ;;  %s1914_s9 = inlined_call_operand.vmem [shape: bf16[128,128], index: 9, kind: input, shape index: {}]   ;;  %s1915_s10 = inlined_call_operand.vmem [shape: f32[1,128], index: 10, kind: input, shape index: {}]   ;;  %s1916_s11 = inlined_call_operand.vmem [shape: f32[128,128], index: 11, kind: output, shape index: {}]  }
   0x1 LB: > { %s1314_s18 = sadd.s32 4294967295, %s1626_s17   ;;  %p1318_p0 = scmp.ge.s32.totalorder %s1626_s17, 1  ;;  %s1626_s17 = sphi %s1690_s17, %s21_s17  }
   0x2   : > { %p339_p1 = scmp.lt.s32.totalorder %s1626_s17, 3 }
   0x4   : > { %p340_p2 = pnand %p1318_p0, %p339_p1 }
   0x5   : > { %v1547_v0 = vld [vmem:[%s1906_s1] sm:$0xff] (!%p340_p2)   ;;  %v1628_v1 = vmov (!%p340_p2), 0   ;;  %v1548_v2 = vld [vmem:[%s1906_s1 + $0x8] sm:$0xff] (!%p340_p2)   ;;  %v1549_v3 = vld [vmem:[%s1906_s1 + $0x10] sm:$0xff] (!%p340_p2)   ;;  %s1319_s25 = sshll.u32 (!%p340_p2), %s1314_s18, 3  ;;  %vm506_vm0 = vcmask (!%p340_p2), 1040384  }
   0x6   : > { %343 = sbr.rel (%p340_p2) target bundleno = 1488 (0x5d0), region = 64  ;;  %513 = vmatprep.subr.bf16.mxu0 (!%p340_p2), %v1628_v1  ;;  %p381_p3 = scmp.lt.s32.totalorder (!%p340_p2), %s1319_s25, 15  ;;  %v1550_v4 = vld [vmem:[%s1906_s1 + $0x18] sm:$0xff] (!%p340_p2)   ;;  %v1556_v5 = vld [vmem:[%s1908_s3] sm:$0xff] (!%p340_p2)   ;;  %v1557_v6 = vld [vmem:[%s1908_s3 + $0x8] sm:$0xff] (!%p340_p2)   ;;  %vm493_vm1 = vcmask (!%p340_p2), 23552  }
   0x7   : > { %514 = vmatpush1.bf16.msra.mxu0 (!%p340_p2), %v1547_v0  ;;  %1425 = vmatprep.subr.bf16.mxu1 (!%p340_p2), %v1556_v5  ;;  %v1558_v9 = vld [vmem:[%s1908_s3 + $0x10] sm:$0xff] (!%p340_p2)   ;;  %v1551_v10 = vld [vmem:[%s1906_s1 + $0x20] sm:$0xff] (!%p340_p2)   ;;  %vm507_vm2 = vcmask (!%p340_p2), 1041408   ;;  %v1629_v12 = vmov (!%p340_p2), 65535   ;;  %v1559_v14 = vld [vmem:[%s1908_s3 + $0x18] sm:$0xff] (!%p340_p2)  }
   0x8   : > { %515 = vmatprep.subr.bf16.mxu0 (!%p340_p2), %v1628_v1  ;;  %1426 = vmatpush3.bf16.msra.mxu1 (!%p340_p2), %v1556_v5  ;;  %v508_v13 = vsel (!%p340_p2), %vm506_vm0, 4294967295, %v1629_v12  ;;  %v1552_v15 = vld [vmem:[%s1906_s1 + $0x28] sm:$0xff] (!%p340_p2)   ;;  %v1553_v17 = vld [vmem:[%s1906_s1 + $0x30] sm:$0xff] (!%p340_p2)   ;;  %v1554_v18 = vld [vmem:[%s1906_s1 + $0x38] sm:$0xff] (!%p340_p2)  }
   0x9   : > { %1427 = vmatprep.subr.bf16.mxu1 (!%p340_p2), %v1557_v6  ;;  %v509_v16 = vsel (!%p340_p2), %vm507_vm2, %v508_v13, 0  ;;  %v1555_v19 = vld [vmem:[%s1906_s1 + $0x40] ss:$0 sps:$4 sm:$0x33] (!%p340_p2)   ;;  %v1561_v43 = vld [vmem:[%s1908_s3 + $0x28] sm:$0xff] (!%p340_p2)   ;;  %v1562_v44 = vld [vmem:[%s1908_s3 + $0x30] sm:$0xff] (!%p340_p2)  }
   0xa   : > { %v511_v24 = vand.u32 (!%p340_p2), %v1555_v19, %v509_v16  ;;  %v1560_v42 = vld [vmem:[%s1908_s3 + $0x20] sm:$0xff] (!%p340_p2)   ;;  %v1563_v45 = vld [vmem:[%s1908_s3 + $0x38] sm:$0xff] (!%p340_p2)  }
   0xb   : > { %516 = vmatpush1.bf16.msra.mxu0 (!%p340_p2), %v1548_v2  ;;  %v1564_v46 = vld [vmem:[%s1910_s5] sm:$0xff] (!%p340_p2)   ;;  %v1565_v2 = vld [vmem:[%s1910_s5 + $0x8] sm:$0xff] (!%p340_p2)   ;;  %v1567_v13 = vld [vmem:[%s1910_s5 + $0x18] sm:$0xff] (!%p340_p2)  }
   0xc   : > { %517 = vmatprep.subr.bf16.mxu0 (!%p340_p2), %v1628_v1  ;;  %1428 = vmatpush3.bf16.msra.mxu1 (!%p340_p2), %v1557_v6  ;;  %v1324_v47 = vld [vmem:[%s1907_s2] ss:$0 sm:$0xff] (!%p340_p2) }
   0xd   : > { %s1918_s25 = smov (!%p381_p3, %s1319_s25), 15  ;;  %1429 = vmatprep.subr.bf16.mxu1 %v1558_v9 }
   0xe   : > { %s1376_s13 = sshll.u32 %s1918_s25, 4  ;;  %s1323_s12 = sshll.u32 %s1918_s25, 3 }
   0xf   : > { %518 = vmatpush1.bf16.msra.mxu0 %v1549_v3  ;;  %s1722_s16 = scalar_lea.vmem %s1905_s0, %s1376_s13  ;;  %s1886_s15 = scalar_lea.vmem %s1916_s11, %s1323_s12 }
  0x10   : > { %519 = vmatprep.subr.bf16.mxu0 %v1628_v1  ;;  %v395_v7 = vld [vmem:[%s1722_s16 + $0x8] sm:$0xff]  ;;  %v397_v8 = vld [vmem:[%s1722_s16 + $0x18] sm:$0xff]  ;;  %1430 = vmatpush3.bf16.msra.mxu1 %v1558_v9  ;;  %v394_v20 = vld [vmem:[%s1722_s16] sm:$0xff] }
  0x11   : > { %v429_v11 = vpack.c.bf16 %v397_v8, %v395_v7  ;;  %1431 = vmatprep.subr.bf16.mxu1 %v1559_v14  ;;  %v396_v21 = vld [vmem:[%s1722_s16 + $0x10] sm:$0xff]  ;;  %v399_v22 = vld [vmem:[%s1722_s16 + $0x28] sm:$0xff]  ;;  %v401_v23 = vld [vmem:[%s1722_s16 + $0x38] sm:$0xff] }
  0x12   : > { %v428_v25 = vpack.c.bf16 %v396_v21, %v394_v20  ;;  %v431_v26 = vpack.c.bf16 %v401_v23, %v399_v22  ;;  %v398_v27 = vld [vmem:[%s1722_s16 + $0x20] sm:$0xff]  ;;  %v400_v28 = vld [vmem:[%s1722_s16 + $0x30] sm:$0xff]  ;;  %v403_v29 = vld [vmem:[%s1722_s16 + $0x48] sm:$0xff] }
  0x13   : > { %520 = vmatpush1.bf16.msra.mxu0 %v1550_v4  ;;  %1334 = vmatprep.mubr.msk.bf16.mxu0 %vm493_vm1, %v429_v11  ;;  %v405_v30 = vld [vmem:[%s1722_s16 + $0x58] sm:$0xff]  ;;  %v430_v31 = vpack.c.bf16 %v400_v28, %v398_v27  ;;  %v402_v33 = vld [vmem:[%s1722_s16 + $0x40] sm:$0xff]  ;;  %v404_v34 = vld [vmem:[%s1722_s16 + $0x50] sm:$0xff] }
  0x14   : > { %521 = vmatprep.subr.bf16.mxu0 %v1628_v1  ;;  %1432 = vmatpush3.bf16.msra.mxu1 %v1559_v14  ;;  %v433_v32 = vpack.c.bf16 %v405_v30, %v403_v29  ;;  %v407_v35 = vld [vmem:[%s1722_s16 + $0x68] sm:$0xff]  ;;  %v409_v36 = vld [vmem:[%s1722_s16 + $0x78] sm:$0xff]  ;;  %v432_v37 = vpack.c.bf16 %v404_v34, %v402_v33  ;;  %v406_v39 = vld [vmem:[%s1722_s16 + $0x60] sm:$0xff] }
  0x15   : > { %v435_v38 = vpack.c.bf16 %v409_v36, %v407_v35  ;;  %v408_v40 = vld [vmem:[%s1722_s16 + $0x70] sm:$0xff]  ;;  %1433 = vmatprep.subr.bf16.mxu1 %v1560_v42  ;;  %v1568_v20 = vld [vmem:[%s1910_s5 + $0x20] sm:$0xff]   ;;  %v1573_v28 = vld [vmem:[%s1912_s7 + $0x8] sm:$0xff]  }
  0x16   : > { %v434_v41 = vpack.c.bf16 %v408_v40, %v406_v39  ;;  %v1566_v9 = vld [vmem:[%s1910_s5 + $0x10] sm:$0xff]   ;;  %v1572_v27 = vld [vmem:[%s1912_s7] sm:$0xff]   ;;  %v1575_v30 = vld [vmem:[%s1912_s7 + $0x18] sm:$0xff]  }
  0x17   : > { %522 = vmatpush1.bf16.msra.mxu0 %v1551_v10  ;;  %v1574_v29 = vld [vmem:[%s1912_s7 + $0x10] sm:$0xff]   ;;  %v1338_v33 = vld [vmem:[%s1909_s4] ss:$0 sm:$0xff] }
  0x18   : > { %523 = vmatprep.subr.bf16.mxu0 %v1628_v1  ;;  %1434 = vmatpush3.bf16.msra.mxu1 %v1560_v42 }
  0x19   : > { %1435 = vmatprep.subr.bf16.mxu1 %v1561_v43 }
  0x1b   : > { %524 = vmatpush1.bf16.msra.mxu0 %v1552_v15 }
  0x1c   : > { %525 = vmatprep.subr.bf16.mxu0 %v1628_v1  ;;  %1436 = vmatpush3.bf16.msra.mxu1 %v1561_v43 }
  0x1d   : > { %1437 = vmatprep.subr.bf16.mxu1 %v1562_v44 }
  0x1f   : > { %526 = vmatpush1.bf16.msra.mxu0 %v1553_v17 }
  0x20   : > { %527 = vmatprep.subr.bf16.mxu0 %v1628_v1  ;;  %1438 = vmatpush3.bf16.msra.mxu1 %v1562_v44 }
  0x21   : > { %1439 = vmatprep.subr.bf16.mxu1 %v1563_v45 }
  0x23   : > { %528 = vmatpush1.bf16.msra.mxu0 %v1554_v18 }
  0x24   : > { %529 = vmatprep.subr.bf16.mxu0 %v1628_v1  ;;  %1440 = vmatpush3.bf16.msra.mxu1 %v1563_v45 }
  0x25   : > { %1449 = vmatprep.subr.bf16.mxu1 %v1564_v46 }
  0x27   : > { %530 = vmatpush1.bf16.msra.mxu0 %v511_v24  ;;  %v1569_v24 = vld [vmem:[%s1910_s5 + $0x28] sm:$0xff]  }
  0x28   : > { %1473 = vmatprep.subr.bf16.mxu0 %v1572_v27 }
  0x2a   : > { %546 = vmatmul.mubr.bf16.vlgmr.msra.gmra.mrb[0].mxu0 %v428_v25  ;;  %v1570_v25 = vld [vmem:[%s1910_s5 + $0x30] sm:$0xff]  }
  0x2b   : > { %1335 = vmatprep.mubr.msk.bf16.mxu0 %vm493_vm1, %v431_v26  ;;  %v1571_v26 = vld [vmem:[%s1910_s5 + $0x38] sm:$0xff]   ;;  %1474 = vmatpush3.bf16.msra.mxu0 %v1572_v27 }
  0x2c   : > { %1475 = vmatprep.subr.bf16.mxu0 %v1573_v28 }
  0x2f   : > { %1476 = vmatpush3.bf16.msra.mxu0 %v1573_v28 }
  0x30   : > { %1477 = vmatprep.subr.bf16.mxu0 %v1574_v29 }
  0x32   : > { %554 = vmatmul.mubr.bf16.gmra.mrb[4].mxu0 %v430_v31  ;;  %v1576_v31 = vld [vmem:[%s1912_s7 + $0x20] sm:$0xff]  }
  0x33   : > { %1336 = vmatprep.mubr.msk.bf16.mxu0 %vm493_vm1, %v433_v32  ;;  %1478 = vmatpush3.bf16.msra.mxu0 %v1574_v29  ;;  %v1577_v32 = vld [vmem:[%s1912_s7 + $0x28] sm:$0xff]  }
  0x34   : > { %1479 = vmatprep.subr.bf16.mxu0 %v1575_v30 }
  0x37   : > { %1480 = vmatpush3.bf16.msra.mxu0 %v1575_v30 }
  0x38   : > { %1481 = vmatprep.subr.bf16.mxu0 %v1576_v31 }
  0x3a   : > { %562 = vmatmul.mubr.bf16.gmra.mrb[8].mxu0 %v432_v37 }
  0x3b   : > { %1337 = vmatprep.mubr.msk.bf16.mxu0 %vm493_vm1, %v435_v38  ;;  %1482 = vmatpush3.bf16.msra.mxu0 %v1576_v31 }
  0x3c   : > { %1483 = vmatprep.subr.bf16.mxu0 %v1577_v32 }
  0x3f   : > { %1484 = vmatpush3.bf16.msra.mxu0 %v1577_v32 }
  0x42   : > { %570 = vmatmul.mubr.bf16.gmra.mrb[12].mxu0 %v434_v41 }
  0xfd   : > { %v547_v48 = vpop.f32.mrb[0].mxu0 }
  0xfe   : > { %v548_v49 = vadd.f32 %v1324_v47, %v547_v48  ;;  %v549_v50 = vpop.f32.mrb[1].mxu0 }
  0xff   : > { %v550_v51 = vpop.f32.mrb[2].mxu0 }
 0x100   : > { %v551_v52 = vadd.f32 %v1324_v47, %v550_v51  ;;  %v552_v53 = vpop.f32.mrb[3].mxu0  ;;  %v578_v54 = vmax.f32 %v548_v49, 0.0 }
 0x102   : > { %v579_v55 = vmax.f32 %v551_v52, 0.0 }
 0x104   : > { %v603_v56 = vpack.c.bf16 %v579_v55, %v578_v54 }
 0x105   : > { %v555_v57 = vpop.f32.mrb[4].mxu0 }
 0x106   : > { %v556_v58 = vadd.f32 %v1324_v47, %v555_v57  ;;  %v557_v59 = vpop.f32.mrb[5].mxu0  ;;  %1441 = vmatprep.mubr.bf16.mxu1 %v603_v56 }
 0x107   : > { %v558_v60 = vpop.f32.mrb[6].mxu0 }
 0x108   : > { %v559_v61 = vadd.f32 %v1324_v47, %v558_v60  ;;  %v560_v62 = vpop.f32.mrb[7].mxu0  ;;  %v580_v63 = vmax.f32 %v556_v58, 0.0 }
 0x109   : > { %v1578_v62 = vld [vmem:[%s1912_s7 + $0x30] sm:$0xff]  }
 0x10a   : > { %v581_v0 = vmax.f32 %v559_v61, 0.0  ;;  %1485 = vmatprep.subr.bf16.mxu0 %v1578_v62 }
 0x10b   : > { %1486 = vmatpush3.bf16.msra.mxu0 %v1578_v62 }
 0x10c   : > { %v604_v1 = vpack.c.bf16 %v581_v0, %v580_v63  ;;  %v1579_v63 = vld [vmem:[%s1912_s7 + $0x38] sm:$0xff]   ;;  %v1580_v0 = vld [vmem:[%s1914_s9] sm:$0xff]  }
 0x10d   : > { %v563_v3 = vpop.f32.mrb[8].mxu0  ;;  %1487 = vmatprep.subr.bf16.mxu0 %v1579_v63 }
 0x10e   : > { %v564_v4 = vadd.f32 %v1324_v47, %v563_v3  ;;  %v565_v5 = vpop.f32.mrb[9].mxu0  ;;  %1442 = vmatmul.mubr.bf16.vlgmr.msra.gmra.mrb[0].mxu1 %v604_v1  ;;  %v1581_v1 = vld [vmem:[%s1914_s9 + $0x8] sm:$0xff]   ;;  %v1583_v3 = vld [vmem:[%s1914_s9 + $0x18] sm:$0xff]  }
 0x10f   : > { %v566_v6 = vpop.f32.mrb[10].mxu0  ;;  %1450 = vmatpush3.bf16.msra.mxu1 %v1564_v46  ;;  %1488 = vmatpush3.bf16.msra.mxu0 %v1579_v63  ;;  %v1585_v5 = vld [vmem:[%s1914_s9 + $0x28] sm:$0xff]  }
 0x110   : > { %v567_v7 = vadd.f32 %v1324_v47, %v566_v6  ;;  %v568_v8 = vpop.f32.mrb[11].mxu0  ;;  %1451 = vmatprep.subr.bf16.mxu1 %v1565_v2  ;;  %v582_v10 = vmax.f32 %v564_v4, 0.0  ;;  %1497 = vmatprep.subr.bf16.mxu0 %v1580_v0  ;;  %v1584_v4 = vld [vmem:[%s1914_s9 + $0x20] sm:$0xff]  }
 0x111   : > { %v1347_v6 = vld [vmem:[%s1911_s6] ss:$0 sm:$0xff] }
 0x112   : > { %v583_v11 = vmax.f32 %v567_v7, 0.0 }
 0x113   : > { %1452 = vmatpush3.bf16.msra.mxu1 %v1565_v2  ;;  %v1582_v2 = vld [vmem:[%s1914_s9 + $0x10] sm:$0xff]  }
 0x114   : > { %v605_v12 = vpack.c.bf16 %v583_v11, %v582_v10  ;;  %1453 = vmatprep.subr.bf16.mxu1 %v1566_v9 }
 0x115   : > { %v571_v14 = vpop.f32.mrb[12].mxu0 }
 0x116   : > { %v572_v15 = vadd.f32 %v1324_v47, %v571_v14  ;;  %v573_v16 = vpop.f32.mrb[13].mxu0  ;;  %1445 = vmatprep.mubr.bf16.mxu1 %v605_v12 }
 0x117   : > { %v574_v17 = vpop.f32.mrb[14].mxu0  ;;  %1454 = vmatpush3.bf16.msra.mxu1 %v1566_v9 }
 0x118   : > { %v575_v18 = vadd.f32 %v1324_v47, %v574_v17  ;;  %v576_v19 = vpop.f32.mrb[15].mxu0  ;;  %1455 = vmatprep.subr.bf16.mxu1 %v1567_v13  ;;  %v584_v21 = vmax.f32 %v572_v15, 0.0 }
 0x11a   : > { %v585_v22 = vmax.f32 %v575_v18, 0.0 }
 0x11b   : > { %1456 = vmatpush3.bf16.msra.mxu1 %v1567_v13 }
 0x11c   : > { %v606_v23 = vpack.c.bf16 %v585_v22, %v584_v21  ;;  %1457 = vmatprep.subr.bf16.mxu1 %v1568_v20 }
 0x11e   : > { %1446 = vmatmul.mubr.bf16.gmra.mrb[4].mxu1 %v606_v23 }
 0x11f   : > { %1458 = vmatpush3.bf16.msra.mxu1 %v1568_v20 }
 0x120   : > { %1459 = vmatprep.subr.bf16.mxu1 %v1569_v24 }
 0x123   : > { %1460 = vmatpush3.bf16.msra.mxu1 %v1569_v24 }
 0x124   : > { %1461 = vmatprep.subr.bf16.mxu1 %v1570_v25 }
 0x127   : > { %1462 = vmatpush3.bf16.msra.mxu1 %v1570_v25 }
 0x128   : > { %1463 = vmatprep.subr.bf16.mxu1 %v1571_v26 }
 0x12b   : > { %1464 = vmatpush3.bf16.msra.mxu1 %v1571_v26 }
 0x12c   : > { %1521 = vmatprep.subr.bf16.mxu1 %v1580_v0 }
 0x1e1   : > { %v1443_v34 = vpop.f32.mrb[0].mxu1 }
 0x1e2   : > { %v704_v35 = vadd.f32 %v1443_v34, %v1338_v33  ;;  %v695_v36 = vpop.f32.mrb[1].mxu1 }
 0x1e3   : > { %v696_v37 = vadd.f32 %v1338_v33, %v695_v36  ;;  %v1444_v38 = vpop.f32.mrb[2].mxu1  ;;  %v1587_v36 = vld [vmem:[%s1914_s9 + $0x38] sm:$0xff]  }
 0x1e4   : > { %v707_v39 = vadd.f32 %v1444_v38, %v1338_v33  ;;  %v698_v40 = vpop.f32.mrb[3].mxu1  ;;  %v728_v42 = vmax.f32 %v704_v35, 0.0  ;;  %v1586_v35 = vld [vmem:[%s1914_s9 + $0x30] sm:$0xff]  }
 0x1e5   : > { %v699_v41 = vadd.f32 %v1338_v33, %v698_v40  ;;  %v726_v44 = vmax.f32 %v696_v37, 0.0  ;;  %v1356_v37 = vld [vmem:[%s1913_s8] ss:$0 sm:$0xff] }
 0x1e6   : > { %v729_v43 = vmax.f32 %v707_v39, 0.0 }
 0x1e7   : > { %v727_v45 = vmax.f32 %v699_v41, 0.0 }
 0x1e8   : > { %v752_v46 = vpack.c.bf16 %v729_v43, %v728_v42 }
 0x1e9   : > { %v751_v47 = vpack.c.bf16 %v727_v45, %v726_v44 }
 0x1eb   : > { %1465 = vmatprep.mubr.bf16.mxu1 %v751_v47 }
 0x1ec   : > { %1466 = vmatmul.mubr.bf16.vlgmr.msra.gmra.mrb[8].mxu1 %v752_v46 }
 0x1ed   : > { %1529 = vmatpush3.bf16.msra.mxu1 %v1580_v0 }
 0x1ee   : > { %1522 = vmatprep.subr.bf16.mxu1 %v1581_v1 }
 0x1f1   : > { %v1447_v48 = vpop.f32.mrb[4].mxu1  ;;  %1530 = vmatpush3.bf16.msra.mxu1 %v1581_v1 }
 0x1f2   : > { %v720_v49 = vadd.f32 %v1447_v48, %v1338_v33  ;;  %v711_v50 = vpop.f32.mrb[5].mxu1  ;;  %1523 = vmatprep.subr.bf16.mxu1 %v1582_v2 }
 0x1f3   : > { %v712_v51 = vadd.f32 %v1338_v33, %v711_v50  ;;  %v1448_v52 = vpop.f32.mrb[6].mxu1 }
 0x1f4   : > { %v723_v53 = vadd.f32 %v1448_v52, %v1338_v33  ;;  %v714_v54 = vpop.f32.mrb[7].mxu1  ;;  %v732_v56 = vmax.f32 %v720_v49, 0.0 }
 0x1f5   : > { %v715_v55 = vadd.f32 %v1338_v33, %v714_v54  ;;  %v730_v58 = vmax.f32 %v712_v51, 0.0  ;;  %1531 = vmatpush3.bf16.msra.mxu1 %v1582_v2 }
 0x1f6   : > { %v733_v57 = vmax.f32 %v723_v53, 0.0  ;;  %1524 = vmatprep.subr.bf16.mxu1 %v1583_v3 }
 0x1f7   : > { %v731_v59 = vmax.f32 %v715_v55, 0.0 }
 0x1f8   : > { %v754_v60 = vpack.c.bf16 %v733_v57, %v732_v56 }
 0x1f9   : > { %v753_v61 = vpack.c.bf16 %v731_v59, %v730_v58  ;;  %1532 = vmatpush3.bf16.msra.mxu1 %v1583_v3 }
 0x1fa   : > { %1525 = vmatprep.subr.bf16.mxu1 %v1584_v4 }
 0x1fb   : > { %1469 = vmatprep.mubr.bf16.mxu1 %v753_v61 }
 0x1fc   : > { %1470 = vmatmul.mubr.bf16.gmra.mrb[12].mxu1 %v754_v60 }
 0x1fd   : > { %1533 = vmatpush3.bf16.msra.mxu1 %v1584_v4 }
 0x1fe   : > { %1526 = vmatprep.subr.bf16.mxu1 %v1585_v5 }
 0x201   : > { %1534 = vmatpush3.bf16.msra.mxu1 %v1585_v5 }
 0x202   : > { %1527 = vmatprep.subr.bf16.mxu1 %v1586_v35 }
 0x205   : > { %1535 = vmatpush3.bf16.msra.mxu1 %v1586_v35 }
 0x206   : > { %1528 = vmatprep.subr.bf16.mxu1 %v1587_v36 }
 0x209   : > { %1536 = vmatpush3.bf16.msra.mxu1 %v1587_v36 }
 0x2bf   : > { %v1467_v7 = vpop.f32.mrb[8].mxu1 }
 0x2c0   : > { %v852_v8 = vadd.f32 %v1467_v7, %v1347_v6  ;;  %v843_v9 = vpop.f32.mrb[9].mxu1 }
 0x2c1   : > { %v844_v10 = vadd.f32 %v1347_v6, %v843_v9  ;;  %v1468_v11 = vpop.f32.mrb[10].mxu1 }
 0x2c2   : > { %v855_v12 = vadd.f32 %v1468_v11, %v1347_v6  ;;  %v846_v13 = vpop.f32.mrb[11].mxu1  ;;  %v876_v15 = vmax.f32 %v852_v8, 0.0 }
 0x2c3   : > { %v847_v14 = vadd.f32 %v1347_v6, %v846_v13  ;;  %v874_v17 = vmax.f32 %v844_v10, 0.0 }
 0x2c4   : > { %v877_v16 = vmax.f32 %v855_v12, 0.0 }
 0x2c5   : > { %v875_v18 = vmax.f32 %v847_v14, 0.0 }
 0x2c6   : > { %v900_v19 = vpack.c.bf16 %v877_v16, %v876_v15 }
 0x2c7   : > { %v899_v20 = vpack.c.bf16 %v875_v18, %v874_v17 }
 0x2c9   : > { %1489 = vmatprep.mubr.bf16.mxu0 %v899_v20 }
 0x2ca   : > { %1490 = vmatmul.mubr.bf16.vlgmr.msra.gmra.mrb[16].mxu0 %v900_v19 }
 0x2cb   : > { %1498 = vmatpush3.bf16.msra.mxu0 %v1580_v0 }
 0x2cc   : > { %1499 = vmatprep.subr.bf16.mxu0 %v1581_v1 }
 0x2cf   : > { %v1471_v21 = vpop.f32.mrb[12].mxu1  ;;  %1500 = vmatpush3.bf16.msra.mxu0 %v1581_v1 }
 0x2d0   : > { %v868_v22 = vadd.f32 %v1471_v21, %v1347_v6  ;;  %v859_v23 = vpop.f32.mrb[13].mxu1  ;;  %1501 = vmatprep.subr.bf16.mxu0 %v1582_v2 }
 0x2d1   : > { %v860_v24 = vadd.f32 %v1347_v6, %v859_v23  ;;  %v1472_v25 = vpop.f32.mrb[14].mxu1 }
 0x2d2   : > { %v871_v26 = vadd.f32 %v1472_v25, %v1347_v6  ;;  %v862_v27 = vpop.f32.mrb[15].mxu1  ;;  %v880_v29 = vmax.f32 %v868_v22, 0.0 }
 0x2d3   : > { %v863_v28 = vadd.f32 %v1347_v6, %v862_v27  ;;  %1502 = vmatpush3.bf16.msra.mxu0 %v1582_v2  ;;  %v878_v31 = vmax.f32 %v860_v24, 0.0  ;;  %v1365_v2 = vld [vmem:[%s1915_s10] ss:$0 sm:$0xff] }
 0x2d4   : > { %v881_v30 = vmax.f32 %v871_v26, 0.0  ;;  %1503 = vmatprep.subr.bf16.mxu0 %v1583_v3 }
 0x2d5   : > { %v879_v32 = vmax.f32 %v863_v28, 0.0 }
 0x2d6   : > { %v902_v33 = vpack.c.bf16 %v881_v30, %v880_v29 }
 0x2d7   : > { %v901_v34 = vpack.c.bf16 %v879_v32, %v878_v31  ;;  %1504 = vmatpush3.bf16.msra.mxu0 %v1583_v3 }
 0x2d8   : > { %1505 = vmatprep.subr.bf16.mxu0 %v1584_v4 }
 0x2d9   : > { %1493 = vmatprep.mubr.bf16.mxu0 %v901_v34 }
 0x2da   : > { %1494 = vmatmul.mubr.bf16.gmra.mrb[20].mxu0 %v902_v33 }
 0x2db   : > { %1506 = vmatpush3.bf16.msra.mxu0 %v1584_v4 }
 0x2dc   : > { %1507 = vmatprep.subr.bf16.mxu0 %v1585_v5 }
 0x2df   : > { %1508 = vmatpush3.bf16.msra.mxu0 %v1585_v5 }
 0x2e0   : > { %1509 = vmatprep.subr.bf16.mxu0 %v1586_v35 }
 0x2e3   : > { %1510 = vmatpush3.bf16.msra.mxu0 %v1586_v35 }
 0x2e4   : > { %1511 = vmatprep.subr.bf16.mxu0 %v1587_v36 }
 0x2e7   : > { %1512 = vmatpush3.bf16.msra.mxu0 %v1587_v36 }
 0x39d   : > { %v1491_v38 = vpop.f32.mrb[16].mxu0 }
 0x39e   : > { %v1000_v39 = vadd.f32 %v1491_v38, %v1356_v37  ;;  %v991_v40 = vpop.f32.mrb[17].mxu0 }
 0x39f   : > { %v992_v41 = vadd.f32 %v1356_v37, %v991_v40  ;;  %v1492_v42 = vpop.f32.mrb[18].mxu0 }
 0x3a0   : > { %v1003_v43 = vadd.f32 %v1492_v42, %v1356_v37  ;;  %v994_v44 = vpop.f32.mrb[19].mxu0  ;;  %v1024_v46 = vmax.f32 %v1000_v39, 0.0 }
 0x3a1   : > { %v995_v45 = vadd.f32 %v1356_v37, %v994_v44  ;;  %v1022_v48 = vmax.f32 %v992_v41, 0.0 }
 0x3a2   : > { %v1025_v47 = vmax.f32 %v1003_v43, 0.0 }
 0x3a3   : > { %v1023_v49 = vmax.f32 %v995_v45, 0.0 }
 0x3a4   : > { %v1048_v50 = vpack.c.bf16 %v1025_v47, %v1024_v46 }
 0x3a5   : > { %v1047_v51 = vpack.c.bf16 %v1023_v49, %v1022_v48 }
 0x3a7   : > { %1513 = vmatprep.mubr.bf16.mxu0 %v1047_v51 }
 0x3a8   : > { %1514 = vmatmul.mubr.bf16.vlgmr.msra.gmra.mrb[24].mxu0 %v1048_v50 }
 0x3ad   : > { %v1495_v52 = vpop.f32.mrb[20].mxu0 }
 0x3ae   : > { %v1016_v53 = vadd.f32 %v1495_v52, %v1356_v37  ;;  %v1007_v54 = vpop.f32.mrb[21].mxu0 }
 0x3af   : > { %v1008_v55 = vadd.f32 %v1356_v37, %v1007_v54  ;;  %v1496_v56 = vpop.f32.mrb[22].mxu0 }
 0x3b0   : > { %v1019_v57 = vadd.f32 %v1496_v56, %v1356_v37  ;;  %v1010_v58 = vpop.f32.mrb[23].mxu0  ;;  %v1028_v60 = vmax.f32 %v1016_v53, 0.0 }
 0x3b1   : > { %v1011_v59 = vadd.f32 %v1356_v37, %v1010_v58  ;;  %v1026_v62 = vmax.f32 %v1008_v55, 0.0 }
 0x3b2   : > { %v1029_v61 = vmax.f32 %v1019_v57, 0.0 }
 0x3b3   : > { %v1027_v63 = vmax.f32 %v1011_v59, 0.0 }
 0x3b4   : > { %v1050_v0 = vpack.c.bf16 %v1029_v61, %v1028_v60 }
 0x3b5   : > { %v1049_v1 = vpack.c.bf16 %v1027_v63, %v1026_v62 }
 0x3b7   : > { %1517 = vmatprep.mubr.bf16.mxu1 %v1049_v1 }
 0x3b8   : > { %1518 = vmatmul.mubr.bf16.vlgmr.msra.gmra.mrb[16].mxu1 %v1050_v0 }
 0x47b   : > { %v1515_v3 = vpop.f32.mrb[24].mxu0 }
 0x47c   : > { %v1148_v4 = vadd.f32 %v1515_v3, %v1365_v2  ;;  %v1139_v5 = vpop.f32.mrb[25].mxu0 }
 0x47d   : > { %v1140_v6 = vadd.f32 %v1365_v2, %v1139_v5  ;;  %v1516_v7 = vpop.f32.mrb[26].mxu0 }
 0x47e   : > { %1174 = vmax.xlane.f32.xlu1 %v1148_v4  ;;  %v1142_v8 = vpop.f32.mrb[27].mxu0  ;;  %v1151_v9 = vadd.f32 %v1516_v7, %v1365_v2 }
 0x47f   : > { %1170 = vmax.xlane.f32.xlu0 %v1140_v6  ;;  %v1143_v10 = vadd.f32 %v1365_v2, %v1142_v8 }
 0x482   : > { %1176 = vmax.xlane.f32.xlu1 %v1151_v9 }
 0x483   : > { %1172 = vmax.xlane.f32.xlu0 %v1143_v10 }
 0x48b   : > { %v1519_v11 = vpop.f32.mrb[16].mxu1 }
 0x48c   : > { %v1155_v12 = vpop.f32.mrb[17].mxu1  ;;  %v1164_v17 = vadd.f32 %v1519_v11, %v1365_v2 }
 0x48d   : > { %v1156_v13 = vadd.f32 %v1365_v2, %v1155_v12  ;;  %v1520_v14 = vpop.f32.mrb[18].mxu1 }
 0x48e   : > { %v1158_v15 = vpop.f32.mrb[19].mxu1  ;;  %v1167_v18 = vadd.f32 %v1520_v14, %v1365_v2 }
 0x48f   : > { %v1159_v16 = vadd.f32 %v1365_v2, %v1158_v15  ;;  %1178 = vmax.xlane.f32.xlu0 %v1156_v13 }
 0x491   : > { %1180 = vmax.xlane.f32.xlu1 %v1159_v16 }
 0x493   : > { %1182 = vmax.xlane.f32.xlu0 %v1164_v17 }
 0x495   : > { %1184 = vmax.xlane.f32.xlu1 %v1167_v18 }
 0x50b   : > { %v1175_v19 = vpop.xlane.xlu1 %1174 }
 0x50c   : > { %v1188_v20 = vsub.f32 %v1148_v4, %v1175_v19  ;;  %v1171_v21 = vpop.xlane.xlu0 %1170 }
 0x50d   : > { %v1864_v22 = vsub.f32 %v1140_v6, %v1171_v21 }
 0x50e   : > { %v1198_v23 = vmul.f32 1.442695, %v1188_v20 }
 0x50f   : > { %v1194_v24 = vmul.f32 1.442695, %v1864_v22  ;;  %v1177_v25 = vpop.xlane.xlu1 %1176 }
 0x510   : > { %1588 = vpow2.f32 %v1198_v23  ;;  %v1867_v26 = vsub.f32 %v1151_v9, %v1177_v25  ;;  %v1173_v27 = vpop.xlane.xlu0 %1172 }
 0x511   : > { %v1869_v28 = vsub.f32 %v1143_v10, %v1173_v27  ;;  %1590 = vpow2.f32 %v1194_v24 }
 0x512   : > { %v1200_v29 = vmul.f32 1.442695, %v1867_v26 }
 0x513   : > { %v1196_v30 = vmul.f32 1.442695, %v1869_v28 }
 0x514   : > { %1592 = vpow2.f32 %v1200_v29 }
 0x515   : > { %1594 = vpow2.f32 %v1196_v30 }
 0x51a   : > { %v1589_v31 = vpop.eup %1588 }
 0x51b   : > { %1214 = vadd.xlane.f32.xlu0 %v1589_v31  ;;  %v1591_v33 = vpop.eup %1590 }
 0x51c   : > { %v1179_v32 = vpop.xlane.xlu0 %1178 }
 0x51d   : > { %v1873_v34 = vsub.f32 %v1156_v13, %v1179_v32 }
 0x51e   : > { %v1593_v35 = vpop.eup %1592  ;;  %v1181_v36 = vpop.xlane.xlu1 %1180 }
 0x51f   : > { %v1202_v37 = vmul.f32 1.442695, %v1873_v34  ;;  %v1876_v38 = vsub.f32 %v1159_v16, %v1181_v36  ;;  %1216 = vadd.xlane.f32.xlu1 %v1593_v35  ;;  %1210 = vadd.xlane.f32.xlu0 %v1591_v33  ;;  %v1595_v42 = vpop.eup %1594 }
 0x520   : > { %v1183_v39 = vpop.xlane.xlu0 %1182 }
 0x521   : > { %1596 = vpow2.f32 %v1202_v37  ;;  %v1204_v40 = vmul.f32 1.442695, %v1876_v38  ;;  %v1879_v41 = vsub.f32 %v1164_v17, %v1183_v39 }
 0x522   : > { %v1185_v43 = vpop.xlane.xlu1 %1184 }
 0x523   : > { %1598 = vpow2.f32 %v1204_v40  ;;  %v1206_v44 = vmul.f32 1.442695, %v1879_v41  ;;  %v1193_v45 = vsub.f32 %v1167_v18, %v1185_v43  ;;  %1212 = vadd.xlane.f32.xlu1 %v1595_v42 }
 0x525   : > { %1600 = vpow2.f32 %v1206_v44  ;;  %v1208_v46 = vmul.f32 1.442695, %v1193_v45 }
 0x527   : > { %1602 = vpow2.f32 %v1208_v46 }
 0x52b   : > { %v1597_v47 = vpop.eup %1596 }
 0x52c   : > { %1218 = vadd.xlane.f32.xlu0 %v1597_v47 }
 0x52d   : > { %v1599_v48 = vpop.eup %1598 }
 0x52e   : > { %1220 = vadd.xlane.f32.xlu1 %v1599_v48 }
 0x52f   : > { %v1601_v49 = vpop.eup %1600 }
 0x530   : > { %1222 = vadd.xlane.f32.xlu0 %v1601_v49 }
 0x531   : > { %v1603_v50 = vpop.eup %1602 }
 0x532   : > { %1224 = vadd.xlane.f32.xlu1 %v1603_v50 }
 0x5a8   : > { %v1215_v51 = vpop.xlane.xlu0 %1214 }
 0x5a9   : > { %1604 = vlog2.f32 %v1215_v51 }
 0x5ac   : > { %v1217_v52 = vpop.xlane.xlu1 %1216  ;;  %v1211_v53 = vpop.xlane.xlu0 %1210 }
 0x5ad   : > { %1606 = vlog2.f32 %v1217_v52 }
 0x5ae   : > { %1608 = vlog2.f32 %v1211_v53 }
 0x5b0   : > { %v1213_v54 = vpop.xlane.xlu1 %1212 }
 0x5b1   : > { %1610 = vlog2.f32 %v1213_v54 }
 0x5b3   : > { %v1605_v55 = vpop.eup %1604 }
 0x5b4   : > { %v1231_v56 = vmul.f32 0.6931472, %v1605_v55 }
 0x5b6   : > { %v1244_v57 = vsub.f32 %v1188_v20, %v1231_v56 }
 0x5b7   : > { %v1607_v58 = vpop.eup %1606 }
 0x5b8   : > { %v1609_v59 = vpop.eup %1608  ;;  %1252 = vst [vmem:[%s1886_s15 + $0x10] sm:$0xff] %v1244_v57  ;;  %v1233_v60 = vmul.f32 0.6931472, %v1607_v58 }
 0x5b9   : > { %v1227_v61 = vmul.f32 0.6931472, %v1609_v59  ;;  %v1219_v62 = vpop.xlane.xlu0 %1218 }
 0x5ba   : > { %v1245_v63 = vsub.f32 %v1867_v26, %v1233_v60  ;;  %1612 = vlog2.f32 %v1219_v62 }
 0x5bb   : > { %v1611_v0 = vpop.eup %1610  ;;  %v1242_v1 = vsub.f32 %v1864_v22, %v1227_v61  ;;  %v1221_v2 = vpop.xlane.xlu1 %1220 }
 0x5bc   : > { %1253 = vst [vmem:[%s1886_s15 + $0x18] sm:$0xff] %v1245_v63  ;;  %v1229_v3 = vmul.f32 0.6931472, %v1611_v0  ;;  %1614 = vlog2.f32 %v1221_v2 }
 0x5bd   : > { %1250 = vst [vmem:[%s1886_s15] sm:$0xff] %v1242_v1  ;;  %v1223_v4 = vpop.xlane.xlu0 %1222 }
 0x5be   : > { %v1243_v5 = vsub.f32 %v1869_v28, %v1229_v3  ;;  %1616 = vlog2.f32 %v1223_v4 }
 0x5bf   : > { %v1225_v6 = vpop.xlane.xlu1 %1224 }
 0x5c0   : > { %1251 = vst [vmem:[%s1886_s15 + $0x8] sm:$0xff] %v1243_v5  ;;  %1618 = vlog2.f32 %v1225_v6 }
 0x5c4   : > { %v1613_v7 = vpop.eup %1612 }
 0x5c5   : > { %v1235_v8 = vmul.f32 0.6931472, %v1613_v7 }
 0x5c6   : > { %v1615_v9 = vpop.eup %1614 }
 0x5c7   : > { %v1246_v10 = vsub.f32 %v1873_v34, %v1235_v8  ;;  %v1237_v11 = vmul.f32 0.6931472, %v1615_v9 }
 0x5c8   : > { %v1617_v12 = vpop.eup %1616 }
 0x5c9   : > { %1254 = vst [vmem:[%s1886_s15 + $0x20] sm:$0xff] %v1246_v10  ;;  %v1247_v13 = vsub.f32 %v1876_v38, %v1237_v11  ;;  %v1239_v14 = vmul.f32 0.6931472, %v1617_v12 }
 0x5ca   : > { %v1619_v15 = vpop.eup %1618 }
 0x5cb   : > { %1255 = vst [vmem:[%s1886_s15 + $0x28] sm:$0xff] %v1247_v13  ;;  %v1248_v16 = vsub.f32 %v1879_v41, %v1239_v14  ;;  %v1241_v17 = vmul.f32 0.6931472, %v1619_v15 }
 0x5cd   : > { %1256 = vst [vmem:[%s1886_s15 + $0x30] sm:$0xff] %v1248_v16  ;;  %v1249_v18 = vsub.f32 %v1193_v45, %v1241_v17 }
 0x5cf   : > { %1257 = vst [vmem:[%s1886_s15 + $0x38] sm:$0xff] %v1249_v18 }
 0x5d0 PF: > { %s21_s17 = sadd.s32 1, %s1626_s17  }
 0x5d1   : > { %p18_p4 = scmp.ge.s32.totalorder %s21_s17, 4  }
 0x5d3   :  { %20 = sbr.rel (!%p18_p4) target bundleno = 1 (0x1), region = 94 }

</bundles_post_ra>
